<compile_context>
chip_gen: v7x
topology: tpu7x:2x2x1
jax: 0.10.0
libtpu: 0.0.40
codegen_flags: <defaults>
</compile_context>

<pallas_src>
import functools

import jax
import jax.numpy as jnp
from jax.experimental import pallas as pl
from jax.experimental.pallas import tpu as pltpu

NEG_SLOPE = 0.01  # torch.nn.LeakyReLU default


def _leaky(v):
    return jnp.where(v > 0, v, NEG_SLOPE * v)


def _round_up(n, m):
    return ((n + m - 1) // m) * m


def _mm(act_f32, w_ref, b_ref):
    """bf16 operands on the MXU, f32 accumulation, f32 bias add."""
    return (
        jnp.dot(
            act_f32.astype(jnp.bfloat16),
            w_ref[...],
            preferred_element_type=jnp.float32,
        )
        + b_ref[...]
    )


def dmv_kernel(
    x_ref,
    w_hcnc_ref, b_hcnc_ref,   # fused [NOCHILD | HASCHILD]  (H, 2H)
    w_val_ref, b_val_ref,     # valence_linear              (H, H)
    w_lr_ref, b_lr_ref,       # fused [LEFT | RIGHT]        (H, 2H)
    w_dir_ref, b_dir_ref,     # direction_linear            (H, H)
    w1_ref, b1_ref,           # linear1                     (H, H)
    w2_ref, b2_ref,           # linear2                     (H, H)
    o_ref,                    # (tm, 4H) -- lanes ordered (dir, valence, H)
):
    tm, H = x_ref.shape
    x = x_ref[...]                                            # (tm, H) f32

    # --- valence branch: one (tm,H)@(H,2H) matmul for NOCHILD/HASCHILD ----
    hn = _mm(x, w_hcnc_ref, b_hcnc_ref)                       # (tm, 2H)
    no_child = hn[:, :H] + x                                  # valence 0
    has_child = hn[:, H:] + x                                 # valence 1

    # batch both valences along M for the shared valence_linear
    v_in = jnp.concatenate([no_child, has_child], axis=0)     # (2tm, H)
    v = _leaky(_mm(_leaky(v_in), w_val_ref, b_val_ref))       # (2tm, H)

    # --- direction branch: one (2tm,H)@(H,2H) matmul for LEFT/RIGHT -------
    lr = _mm(v, w_lr_ref, b_lr_ref)                           # (2tm, 2H)
    x2 = jnp.concatenate([x, x], axis=0)                      # (2tm, H)
    left = lr[:, :H] + x2                                     # dir 0
    right = lr[:, H:] + x2                                    # dir 1

    # batch all four (dir, valence) branches along M for the shared tail.
    # Row order: (d0,v0), (d0,v1), (d1,v0), (d1,v1).
    d_in = jnp.concatenate([left, right], axis=0)             # (4tm, H)
    h = _leaky(_mm(_leaky(d_in), w_dir_ref, b_dir_ref))       # (4tm, H)
    h = _leaky(_mm(h, w1_ref, b1_ref))                        # (4tm, H)
    out = _mm(h, w2_ref, b2_ref)                              # (4tm, H) f32

    # Lane-dense full-block store: branch k -> lanes [k*H, (k+1)*H).
    o_ref[...] = jnp.concatenate(
        [out[k * tm:(k + 1) * tm, :] for k in range(4)], axis=-1
    ).astype(o_ref.dtype)


def dmv_skip_connect_encoder(x, params, *, tm=256):
    """x: (B, S, H) float32 -> (B, S, 2, 2, H) float32.

    dim -3 is direction (0=left, 1=right), dim -2 is valence
    (0=no_child, 1=has_child) -- same as the PyTorch module.
    """
    B, S, H = x.shape
    M = B * S
    # Clamp tile to the (8-rounded) problem size, keep it a multiple of 8.
    tm = _round_up(min(tm, _round_up(M, 8)), 8)
    M_pad = _round_up(M, tm)

    xf = x.reshape(M, H).astype(jnp.float32)
    if M_pad != M:
        xf = jnp.pad(xf, ((0, M_pad - M), (0, 0)))

    bf16 = jnp.bfloat16
    # Fuse weight pairs along the output dim (N=2H fills the wide MXUs on
    # v6e/v7x; harmless on v5e).  Weights in bf16, biases stay f32.
    w_hcnc = jnp.concatenate([params["w_nc"], params["w_hc"]], axis=1).astype(bf16)
    b_hcnc = jnp.concatenate([params["b_nc"], params["b_hc"]], axis=1)
    w_lr = jnp.concatenate([params["w_l"], params["w_r"]], axis=1).astype(bf16)
    b_lr = jnp.concatenate([params["b_l"], params["b_r"]], axis=1)

    flat = [
        w_hcnc, b_hcnc,
        params["w_val"].astype(bf16), params["b_val"],
        w_lr, b_lr,
        params["w_dir"].astype(bf16), params["b_dir"],
        params["w_1"].astype(bf16), params["b_1"],
        params["w_2"].astype(bf16), params["b_2"],
    ]

    def full_spec(a):
        zeros = (0,) * a.ndim
        return pl.BlockSpec(a.shape, lambda i, _z=zeros: _z)

    in_specs = [pl.BlockSpec((tm, H), lambda i: (i, 0))]
    in_specs += [full_spec(p) for p in flat]

    out = pl.pallas_call(
        dmv_kernel,
        out_shape=jax.ShapeDtypeStruct((M_pad, 4 * H), jnp.float32),
        grid=(M_pad // tm,),
        in_specs=in_specs,
        out_specs=pl.BlockSpec((tm, 4 * H), lambda i: (i, 0)),
        compiler_params=pltpu.CompilerParams(
            dimension_semantics=("parallel",),
            vmem_limit_bytes=64 * 1024 * 1024,
        ),
    )(xf, *flat)

    if M_pad != M:
        out = out[:M]
    # (M, 4H) with lanes ordered (dir, valence, H) -> free reshape.
    return out.reshape(B, S, 2, 2, H)


def ref_forward(x, p, *, mxu_dtype=jnp.float32):
    """Pure-JAX reference matching the PyTorch forward.

    mxu_dtype=bfloat16 mimics the kernel's bf16-operand / f32-accumulate
    matmuls so the kernel can be checked with a tight tolerance.
    """
    def lin(v, w, b):
        return jnp.dot(v.astype(mxu_dtype), w.astype(mxu_dtype),
                       preferred_element_type=jnp.float32) + b

    has_child = lin(x, p["w_hc"], p["b_hc"]) + x
    no_child = lin(x, p["w_nc"], p["b_nc"]) + x
    h = jnp.stack([no_child, has_child], axis=-2)               # (..., 2, H)
    h = _leaky(lin(_leaky(h), p["w_val"], p["b_val"]))
    xe = x[..., None, :]
    left_h = lin(h, p["w_l"], p["b_l"]) + xe
    right_h = lin(h, p["w_r"], p["b_r"]) + xe
    h = jnp.stack([left_h, right_h], axis=-3)                   # (..., 2, 2, H)
    h = _leaky(lin(_leaky(h), p["w_dir"], p["b_dir"]))
    return lin(_leaky(lin(h, p["w_1"], p["b_1"])), p["w_2"], p["b_2"])


def init_params(key, hidden):
    names = ["hc", "nc", "val", "l", "r", "dir", "1", "2"]
    params = {}
    keys = jax.random.split(key, 2 * len(names))
    for i, n in enumerate(names):
        wk, bk = keys[2 * i], keys[2 * i + 1]
        # nn.Linear weights stored pre-transposed to (in, out): y = x @ W + b.
        params[f"w_{n}"] = (
            jax.random.normal(wk, (hidden, hidden), jnp.float32) * 0.05
        )
        # biases kept 2-D (1, H) for TPU-friendly layout; broadcast identical.
        params[f"b_{n}"] = (
            jax.random.normal(bk, (1, hidden), jnp.float32) * 0.01
        )
    return params


if __name__ == "__main__":
    # M = 300 -> padded to 512, grid = 2 at tm = 256 (exercises padding path).
    B, S, H = 3, 100, 128
    key = jax.random.PRNGKey(0)
    kx, kp = jax.random.split(key)
    x = jax.random.normal(kx, (B, S, H), jnp.float32)
    params = init_params(kp, H)

    fwd = jax.jit(functools.partial(dmv_skip_connect_encoder, tm=256))
    out = jax.block_until_ready(fwd(x, params))
    assert out.shape == (B, S, 2, 2, H), out.shape

    # Tight check vs a reference that applies the same bf16 operand rounding.
    ref_bf16 = ref_forward(x, params, mxu_dtype=jnp.bfloat16)
    assert jnp.allclose(out, ref_bf16, atol=5e-3, rtol=5e-3), (
        float(jnp.max(jnp.abs(out - ref_bf16)))
    )
    # Loose sanity check vs the full-f32 reference (bf16 MXU rounding only).
    ref_f32 = ref_forward(x, params, mxu_dtype=jnp.float32)
    assert jnp.allclose(out, ref_f32, atol=1e-1, rtol=1e-1), (
        float(jnp.max(jnp.abs(out - ref_f32)))
    )

    print("KERNEL_OK")
</pallas_src>

<mosaic_0001>
module attributes {stable_mosaic.version = 11 : i64} {
  func.func @dmv_kernel(%arg0: i32, %arg1: memref<256x128xf32, #tpu.memory_space<vmem>>, %arg2: memref<128x256xbf16, #tpu.memory_space<vmem>>, %arg3: memref<1x256xf32, #tpu.memory_space<vmem>>, %arg4: memref<128x128xbf16, #tpu.memory_space<vmem>>, %arg5: memref<1x128xf32, #tpu.memory_space<vmem>>, %arg6: memref<128x256xbf16, #tpu.memory_space<vmem>>, %arg7: memref<1x256xf32, #tpu.memory_space<vmem>>, %arg8: memref<128x128xbf16, #tpu.memory_space<vmem>>, %arg9: memref<1x128xf32, #tpu.memory_space<vmem>>, %arg10: memref<128x128xbf16, #tpu.memory_space<vmem>>, %arg11: memref<1x128xf32, #tpu.memory_space<vmem>>, %arg12: memref<128x128xbf16, #tpu.memory_space<vmem>>, %arg13: memref<1x128xf32, #tpu.memory_space<vmem>>, %arg14: memref<256x512xf32, #tpu.memory_space<vmem>>) attributes {dimension_semantics = [#tpu.dimension_semantics<parallel>], iteration_bounds = array<i64: 2>, scalar_prefetch = 0 : i64, scratch_operands = 0 : i64, tpu.core_type = #tpu.core_type<tc>, window_params = [{transform_indices = @transform_0, window_bounds = array<i64: 256, 128>}, {pipeline_mode = #tpu.pipeline_mode<synchronous>, transform_indices = @transform_1, window_bounds = array<i64: 128, 256>}, {pipeline_mode = #tpu.pipeline_mode<synchronous>, transform_indices = @transform_2, window_bounds = array<i64: 1, 256>}, {pipeline_mode = #tpu.pipeline_mode<synchronous>, transform_indices = @transform_3, window_bounds = array<i64: 128, 128>}, {pipeline_mode = #tpu.pipeline_mode<synchronous>, transform_indices = @transform_4, window_bounds = array<i64: 1, 128>}, {pipeline_mode = #tpu.pipeline_mode<synchronous>, transform_indices = @transform_5, window_bounds = array<i64: 128, 256>}, {pipeline_mode = #tpu.pipeline_mode<synchronous>, transform_indices = @transform_6, window_bounds = array<i64: 1, 256>}, {pipeline_mode = #tpu.pipeline_mode<synchronous>, transform_indices = @transform_7, window_bounds = array<i64: 128, 128>}, {pipeline_mode = #tpu.pipeline_mode<synchronous>, transform_indices = @transform_8, window_bounds = array<i64: 1, 128>}, {pipeline_mode = #tpu.pipeline_mode<synchronous>, transform_indices = @transform_9, window_bounds = array<i64: 128, 128>}, {pipeline_mode = #tpu.pipeline_mode<synchronous>, transform_indices = @transform_10, window_bounds = array<i64: 1, 128>}, {pipeline_mode = #tpu.pipeline_mode<synchronous>, transform_indices = @transform_11, window_bounds = array<i64: 128, 128>}, {pipeline_mode = #tpu.pipeline_mode<synchronous>, transform_indices = @transform_12, window_bounds = array<i64: 1, 128>}, {transform_indices = @transform_13, window_bounds = array<i64: 256, 512>}]} {
    %c0 = arith.constant 0 : index
    %c0_0 = arith.constant 0 : index
    %0 = vector.load %arg1[%c0, %c0_0] : memref<256x128xf32, #tpu.memory_space<vmem>>, vector<256x128xf32>
    %1 = arith.truncf %0 : vector<256x128xf32> to vector<256x128xbf16>
    %c0_1 = arith.constant 0 : index
    %c0_2 = arith.constant 0 : index
    %2 = vector.load %arg2[%c0_1, %c0_2] : memref<128x256xbf16, #tpu.memory_space<vmem>>, vector<128x256xbf16>
    %cst = arith.constant dense<0.000000e+00> : vector<256x256xf32>
    %3 = tpu.matmul %1, %2, %cst {dimension_numbers = #tpu.dot_dimension_numbers<[1], [0], [0], [1], [0, 0, 1, 1], [], []>} : vector<256x128xbf16>, vector<128x256xbf16>, vector<256x256xf32> -> vector<256x256xf32>
    %c0_3 = arith.constant 0 : index
    %c0_4 = arith.constant 0 : index
    %4 = vector.load %arg3[%c0_3, %c0_4] : memref<1x256xf32, #tpu.memory_space<vmem>>, vector<1x256xf32>
    %5 = vector.broadcast %4 : vector<1x256xf32> to vector<256x256xf32>
    %6 = arith.addf %3, %5 : vector<256x256xf32>
    %7 = vector.extract_strided_slice %6 {offsets = [0, 0], sizes = [256, 128], strides = [1, 1]} : vector<256x256xf32> to vector<256x128xf32>
    %8 = arith.addf %7, %0 : vector<256x128xf32>
    %9 = vector.extract_strided_slice %6 {offsets = [0, 128], sizes = [256, 128], strides = [1, 1]} : vector<256x256xf32> to vector<256x128xf32>
    %10 = arith.addf %9, %0 : vector<256x128xf32>
    %11 = tpu.concatenate %8, %10 in 0 : vector<256x128xf32>, vector<256x128xf32> -> vector<512x128xf32>
    %cst_5 = arith.constant 0.000000e+00 : f32
    %12 = vector.broadcast %cst_5 : f32 to vector<512x128xf32>
    %13 = arith.cmpf ogt, %11, %12 : vector<512x128xf32>
    %cst_6 = arith.constant 0.00999999977 : f32
    %14 = vector.broadcast %cst_6 : f32 to vector<512x128xf32>
    %15 = arith.mulf %14, %11 : vector<512x128xf32>
    %16 = arith.select %13, %11, %15 : vector<512x128xi1>, vector<512x128xf32>
    %17 = arith.truncf %16 : vector<512x128xf32> to vector<512x128xbf16>
    %c0_7 = arith.constant 0 : index
    %c0_8 = arith.constant 0 : index
    %18 = vector.load %arg4[%c0_7, %c0_8] : memref<128x128xbf16, #tpu.memory_space<vmem>>, vector<128x128xbf16>
    %cst_9 = arith.constant dense<0.000000e+00> : vector<512x128xf32>
    %19 = tpu.matmul %17, %18, %cst_9 {dimension_numbers = #tpu.dot_dimension_numbers<[1], [0], [0], [1], [0, 0, 1, 1], [], []>} : vector<512x128xbf16>, vector<128x128xbf16>, vector<512x128xf32> -> vector<512x128xf32>
    %c0_10 = arith.constant 0 : index
    %c0_11 = arith.constant 0 : index
    %20 = vector.load %arg5[%c0_10, %c0_11] : memref<1x128xf32, #tpu.memory_space<vmem>>, vector<1x128xf32>
    %21 = vector.broadcast %20 : vector<1x128xf32> to vector<512x128xf32>
    %22 = arith.addf %19, %21 : vector<512x128xf32>
    %cst_12 = arith.constant 0.000000e+00 : f32
    %23 = vector.broadcast %cst_12 : f32 to vector<512x128xf32>
    %24 = arith.cmpf ogt, %22, %23 : vector<512x128xf32>
    %cst_13 = arith.constant 0.00999999977 : f32
    %25 = vector.broadcast %cst_13 : f32 to vector<512x128xf32>
    %26 = arith.mulf %25, %22 : vector<512x128xf32>
    %27 = arith.select %24, %22, %26 : vector<512x128xi1>, vector<512x128xf32>
    %28 = arith.truncf %27 : vector<512x128xf32> to vector<512x128xbf16>
    %c0_14 = arith.constant 0 : index
    %c0_15 = arith.constant 0 : index
    %29 = vector.load %arg6[%c0_14, %c0_15] : memref<128x256xbf16, #tpu.memory_space<vmem>>, vector<128x256xbf16>
    %cst_16 = arith.constant dense<0.000000e+00> : vector<512x256xf32>
    %30 = tpu.matmul %28, %29, %cst_16 {dimension_numbers = #tpu.dot_dimension_numbers<[1], [0], [0], [1], [0, 0, 1, 1], [], []>} : vector<512x128xbf16>, vector<128x256xbf16>, vector<512x256xf32> -> vector<512x256xf32>
    %c0_17 = arith.constant 0 : index
    %c0_18 = arith.constant 0 : index
    %31 = vector.load %arg7[%c0_17, %c0_18] : memref<1x256xf32, #tpu.memory_space<vmem>>, vector<1x256xf32>
    %32 = vector.broadcast %31 : vector<1x256xf32> to vector<512x256xf32>
    %33 = arith.addf %30, %32 : vector<512x256xf32>
    %34 = tpu.concatenate %0, %0 in 0 : vector<256x128xf32>, vector<256x128xf32> -> vector<512x128xf32>
    %35 = vector.extract_strided_slice %33 {offsets = [0, 0], sizes = [512, 128], strides = [1, 1]} : vector<512x256xf32> to vector<512x128xf32>
    %36 = arith.addf %35, %34 : vector<512x128xf32>
    %37 = vector.extract_strided_slice %33 {offsets = [0, 128], sizes = [512, 128], strides = [1, 1]} : vector<512x256xf32> to vector<512x128xf32>
    %38 = arith.addf %37, %34 : vector<512x128xf32>
    %39 = tpu.concatenate %36, %38 in 0 : vector<512x128xf32>, vector<512x128xf32> -> vector<1024x128xf32>
    %cst_19 = arith.constant 0.000000e+00 : f32
    %40 = vector.broadcast %cst_19 : f32 to vector<1024x128xf32>
    %41 = arith.cmpf ogt, %39, %40 : vector<1024x128xf32>
    %cst_20 = arith.constant 0.00999999977 : f32
    %42 = vector.broadcast %cst_20 : f32 to vector<1024x128xf32>
    %43 = arith.mulf %42, %39 : vector<1024x128xf32>
    %44 = arith.select %41, %39, %43 : vector<1024x128xi1>, vector<1024x128xf32>
    %45 = arith.truncf %44 : vector<1024x128xf32> to vector<1024x128xbf16>
    %c0_21 = arith.constant 0 : index
    %c0_22 = arith.constant 0 : index
    %46 = vector.load %arg8[%c0_21, %c0_22] : memref<128x128xbf16, #tpu.memory_space<vmem>>, vector<128x128xbf16>
    %cst_23 = arith.constant dense<0.000000e+00> : vector<1024x128xf32>
    %47 = tpu.matmul %45, %46, %cst_23 {dimension_numbers = #tpu.dot_dimension_numbers<[1], [0], [0], [1], [0, 0, 1, 1], [], []>} : vector<1024x128xbf16>, vector<128x128xbf16>, vector<1024x128xf32> -> vector<1024x128xf32>
    %c0_24 = arith.constant 0 : index
    %c0_25 = arith.constant 0 : index
    %48 = vector.load %arg9[%c0_24, %c0_25] : memref<1x128xf32, #tpu.memory_space<vmem>>, vector<1x128xf32>
    %49 = vector.broadcast %48 : vector<1x128xf32> to vector<1024x128xf32>
    %50 = arith.addf %47, %49 : vector<1024x128xf32>
    %cst_26 = arith.constant 0.000000e+00 : f32
    %51 = vector.broadcast %cst_26 : f32 to vector<1024x128xf32>
    %52 = arith.cmpf ogt, %50, %51 : vector<1024x128xf32>
    %cst_27 = arith.constant 0.00999999977 : f32
    %53 = vector.broadcast %cst_27 : f32 to vector<1024x128xf32>
    %54 = arith.mulf %53, %50 : vector<1024x128xf32>
    %55 = arith.select %52, %50, %54 : vector<1024x128xi1>, vector<1024x128xf32>
    %56 = arith.truncf %55 : vector<1024x128xf32> to vector<1024x128xbf16>
    %c0_28 = arith.constant 0 : index
    %c0_29 = arith.constant 0 : index
    %57 = vector.load %arg10[%c0_28, %c0_29] : memref<128x128xbf16, #tpu.memory_space<vmem>>, vector<128x128xbf16>
    %cst_30 = arith.constant dense<0.000000e+00> : vector<1024x128xf32>
    %58 = tpu.matmul %56, %57, %cst_30 {dimension_numbers = #tpu.dot_dimension_numbers<[1], [0], [0], [1], [0, 0, 1, 1], [], []>} : vector<1024x128xbf16>, vector<128x128xbf16>, vector<1024x128xf32> -> vector<1024x128xf32>
    %c0_31 = arith.constant 0 : index
    %c0_32 = arith.constant 0 : index
    %59 = vector.load %arg11[%c0_31, %c0_32] : memref<1x128xf32, #tpu.memory_space<vmem>>, vector<1x128xf32>
    %60 = vector.broadcast %59 : vector<1x128xf32> to vector<1024x128xf32>
    %61 = arith.addf %58, %60 : vector<1024x128xf32>
    %cst_33 = arith.constant 0.000000e+00 : f32
    %62 = vector.broadcast %cst_33 : f32 to vector<1024x128xf32>
    %63 = arith.cmpf ogt, %61, %62 : vector<1024x128xf32>
    %cst_34 = arith.constant 0.00999999977 : f32
    %64 = vector.broadcast %cst_34 : f32 to vector<1024x128xf32>
    %65 = arith.mulf %64, %61 : vector<1024x128xf32>
    %66 = arith.select %63, %61, %65 : vector<1024x128xi1>, vector<1024x128xf32>
    %67 = arith.truncf %66 : vector<1024x128xf32> to vector<1024x128xbf16>
    %c0_35 = arith.constant 0 : index
    %c0_36 = arith.constant 0 : index
    %68 = vector.load %arg12[%c0_35, %c0_36] : memref<128x128xbf16, #tpu.memory_space<vmem>>, vector<128x128xbf16>
    %cst_37 = arith.constant dense<0.000000e+00> : vector<1024x128xf32>
    %69 = tpu.matmul %67, %68, %cst_37 {dimension_numbers = #tpu.dot_dimension_numbers<[1], [0], [0], [1], [0, 0, 1, 1], [], []>} : vector<1024x128xbf16>, vector<128x128xbf16>, vector<1024x128xf32> -> vector<1024x128xf32>
    %c0_38 = arith.constant 0 : index
    %c0_39 = arith.constant 0 : index
    %70 = vector.load %arg13[%c0_38, %c0_39] : memref<1x128xf32, #tpu.memory_space<vmem>>, vector<1x128xf32>
    %71 = vector.broadcast %70 : vector<1x128xf32> to vector<1024x128xf32>
    %72 = arith.addf %69, %71 : vector<1024x128xf32>
    %73 = vector.extract_strided_slice %72 {offsets = [0, 0], sizes = [256, 128], strides = [1, 1]} : vector<1024x128xf32> to vector<256x128xf32>
    %74 = vector.extract_strided_slice %72 {offsets = [256, 0], sizes = [256, 128], strides = [1, 1]} : vector<1024x128xf32> to vector<256x128xf32>
    %75 = vector.extract_strided_slice %72 {offsets = [512, 0], sizes = [256, 128], strides = [1, 1]} : vector<1024x128xf32> to vector<256x128xf32>
    %76 = vector.extract_strided_slice %72 {offsets = [768, 0], sizes = [256, 128], strides = [1, 1]} : vector<1024x128xf32> to vector<256x128xf32>
    %77 = tpu.concatenate %73, %74, %75, %76 in 1 : vector<256x128xf32>, vector<256x128xf32>, vector<256x128xf32>, vector<256x128xf32> -> vector<256x512xf32>
    %c0_40 = arith.constant 0 : index
    %c0_41 = arith.constant 0 : index
    %78 = vector.load %arg14[%c0_40, %c0_41] : memref<256x512xf32, #tpu.memory_space<vmem>>, vector<256x512xf32>
    tpu.vector_store %arg14[%c0_40, %c0_41], %77 {strides = array<i32>} : memref<256x512xf32, #tpu.memory_space<vmem>>, vector<256x512xf32>,
    return
  }
  func.func @transform_0(%arg0: i32) -> (i32, i32) {
    %c0_i32 = arith.constant 0 : i32
    %c0_i32_0 = arith.constant 0 : i32
    return %arg0, %c0_i32 : i32, i32
  }
  func.func @transform_1(%arg0: i32) -> (i32, i32) {
    %c0_i32 = arith.constant 0 : i32
    %c0_i32_0 = arith.constant 0 : i32
    %c0_i32_1 = arith.constant 0 : i32
    return %c0_i32, %c0_i32_0 : i32, i32
  }
  func.func @transform_2(%arg0: i32) -> (i32, i32) {
    %c0_i32 = arith.constant 0 : i32
    %c0_i32_0 = arith.constant 0 : i32
    %c0_i32_1 = arith.constant 0 : i32
    return %c0_i32, %c0_i32_0 : i32, i32
  }
  func.func @transform_3(%arg0: i32) -> (i32, i32) {
    %c0_i32 = arith.constant 0 : i32
    %c0_i32_0 = arith.constant 0 : i32
    %c0_i32_1 = arith.constant 0 : i32
    return %c0_i32, %c0_i32_0 : i32, i32
  }
  func.func @transform_4(%arg0: i32) -> (i32, i32) {
    %c0_i32 = arith.constant 0 : i32
    %c0_i32_0 = arith.constant 0 : i32
    %c0_i32_1 = arith.constant 0 : i32
    return %c0_i32, %c0_i32_0 : i32, i32
  }
  func.func @transform_5(%arg0: i32) -> (i32, i32) {
    %c0_i32 = arith.constant 0 : i32
    %c0_i32_0 = arith.constant 0 : i32
    %c0_i32_1 = arith.constant 0 : i32
    return %c0_i32, %c0_i32_0 : i32, i32
  }
  func.func @transform_6(%arg0: i32) -> (i32, i32) {
    %c0_i32 = arith.constant 0 : i32
    %c0_i32_0 = arith.constant 0 : i32
    %c0_i32_1 = arith.constant 0 : i32
    return %c0_i32, %c0_i32_0 : i32, i32
  }
  func.func @transform_7(%arg0: i32) -> (i32, i32) {
    %c0_i32 = arith.constant 0 : i32
    %c0_i32_0 = arith.constant 0 : i32
    %c0_i32_1 = arith.constant 0 : i32
    return %c0_i32, %c0_i32_0 : i32, i32
  }
  func.func @transform_8(%arg0: i32) -> (i32, i32) {
    %c0_i32 = arith.constant 0 : i32
    %c0_i32_0 = arith.constant 0 : i32
    %c0_i32_1 = arith.constant 0 : i32
    return %c0_i32, %c0_i32_0 : i32, i32
  }
  func.func @transform_9(%arg0: i32) -> (i32, i32) {
    %c0_i32 = arith.constant 0 : i32
    %c0_i32_0 = arith.constant 0 : i32
    %c0_i32_1 = arith.constant 0 : i32
    return %c0_i32, %c0_i32_0 : i32, i32
  }
  func.func @transform_10(%arg0: i32) -> (i32, i32) {
    %c0_i32 = arith.constant 0 : i32
    %c0_i32_0 = arith.constant 0 : i32
    %c0_i32_1 = arith.constant 0 : i32
    return %c0_i32, %c0_i32_0 : i32, i32
  }
  func.func @transform_11(%arg0: i32) -> (i32, i32) {
    %c0_i32 = arith.constant 0 : i32
    %c0_i32_0 = arith.constant 0 : i32
    %c0_i32_1 = arith.constant 0 : i32
    return %c0_i32, %c0_i32_0 : i32, i32
  }
  func.func @transform_12(%arg0: i32) -> (i32, i32) {
    %c0_i32 = arith.constant 0 : i32
    %c0_i32_0 = arith.constant 0 : i32
    %c0_i32_1 = arith.constant 0 : i32
    return %c0_i32, %c0_i32_0 : i32, i32
  }
  func.func @transform_13(%arg0: i32) -> (i32, i32) {
    %c0_i32 = arith.constant 0 : i32
    %c0_i32_0 = arith.constant 0 : i32
    return %arg0, %c0_i32 : i32, i32
  }
}

</mosaic_0001>

<bundles_post_ra>
// kernel: dmv_skip_connect_encoder.1
= control target key start
LH: loop header
LB: loop body
LE: loop exit
PB: predicated region body
PF: predicated region fallthrough
CT: control target
= control target key end

     0   :  { %s10014_s0 = inlined_call_operand.hbm [shape: f32[512,128], index: 0, kind: input, shape index: {}]   ;;  %s10015_s1 = inlined_call_operand.hbm [shape: bf16[128,256], index: 1, kind: input, shape index: {}]   ;;  %s10016_s2 = inlined_call_operand.hbm [shape: f32[1,256], index: 2, kind: input, shape index: {}]   ;;  %s10017_s3 = inlined_call_operand.hbm [shape: bf16[128,128], index: 3, kind: input, shape index: {}]   ;;  %s10018_s4 = inlined_call_operand.hbm [shape: f32[1,128], index: 4, kind: input, shape index: {}]   ;;  %s10019_s5 = inlined_call_operand.hbm [shape: bf16[128,256], index: 5, kind: input, shape index: {}]   ;;  %s10020_s6 = inlined_call_operand.hbm [shape: f32[1,256], index: 6, kind: input, shape index: {}]   ;;  %s10021_s7 = inlined_call_operand.hbm [shape: bf16[128,128], index: 7, kind: input, shape index: {}]   ;;  %s10022_s8 = inlined_call_operand.hbm [shape: f32[1,128], index: 8, kind: input, shape index: {}]   ;;  %s10023_s9 = inlined_call_operand.hbm [shape: bf16[128,128], index: 9, kind: input, shape index: {}]   ;;  %s10024_s10 = inlined_call_operand.hbm [shape: f32[1,128], index: 10, kind: input, shape index: {}]   ;;  %s10025_s11 = inlined_call_operand.hbm [shape: bf16[128,128], index: 11, kind: input, shape index: {}]   ;;  %s10026_s12 = inlined_call_operand.hbm [shape: f32[1,128], index: 12, kind: input, shape index: {}]   ;;  %s10027_s13 = inlined_call_operand.hbm [shape: f32[512,512], index: 13, kind: output, shape index: {}]  }
   0x1   :  { %10078 = sst [smem:[#allocation65_spill]] %s10014_s0 }
   0x2   :  { %10079 = sst [smem:[#allocation66_spill]] %s10015_s1 }
   0x3   :  { %10080 = sst [smem:[#allocation67_spill]] %s10017_s3 }
   0x4   :  { %10081 = sst [smem:[#allocation68_spill]] %s10027_s13 }
   0x5   :  { %18 = vsyncpa [#allocation3], 0 }
   0x6   :  { %20 = vsyncpa [#allocation3 + $0x1], 0 }
   0x7   :  { %21 = vsyncpa [#allocation6], 0 }
   0x8   :  { %22 = vsyncpa [#allocation9], 0 }
   0x9   :  { %23 = vsyncpa [#allocation12], 0 }
   0xa   :  { %24 = vsyncpa [#allocation15], 0 }
   0xb   :  { %25 = vsyncpa [#allocation18], 0 }
   0xc   :  { %26 = vsyncpa [#allocation21], 0 }
   0xd   :  { %27 = vsyncpa [#allocation4], 0 }
   0xe   :  { %29 = vsyncpa [#allocation4 + $0x1], 0  ;;  %s7674_s25 = smov 0   ;;  %s7676_s26 = smov 0  }
   0xf   :  { %s7678_s27 = smov 0   ;;  %s7680_s28 = smov 0  }
  0x10 LB: > { %10082 = sst [smem:[#allocation32_spill]] %s7569_s25  ;;  %s7583_s29 = smov [#allocation5]   ;;  %s7581_s28 = sphi %s7680_s28, %s10224_s28   ;;  %s7577_s27 = sphi %s7678_s27, %s10223_s27   ;;  %s7573_s26 = sphi %s7676_s26, %s10222_s26   ;;  %s7569_s25 = sphi %s7674_s25, %s10221_s25  }
  0x11   : > { %s356_s30 = sshll.u32 %s7583_s29, 4  ;;  %s7695_s14 = sadd.s32 4294967295, %s7581_s28   ;;  %s7700_s30 = int_to_ptr.vmem [resolvable:$true] %s356_s30 }
  0x12   : > { %10083 = sst [smem:[#allocation33_spill]] %s7695_s14  ;;  %p5957_p0 = scmp.ge.s32.totalorder %s7581_s28, 1 }
  0x13   : > { %p10036_p1 = scmp.eq.s32.totalorder %s7695_s14, 0  ;;  %p344_p2 = scmp.lt.s32.totalorder %s7581_s28, 3 }
  0x14   : > { %s7584_s16 = smov [#allocation8]   ;;  %s7585_s19 = smov [#allocation11]  }
  0x15   : > { %p7702_p3 = pnand %p5957_p0, %p344_p2  ;;  %s380_s17 = sshll.u32 %s7584_s16, 4  ;;  %s7715_s17 = int_to_ptr.vmem [resolvable:$true] %s380_s17 }
  0x16   : > { %s7717_s20 = sshll.u32 %s7585_s19, 4  ;;  %s10087_s1 = sld [smem:[#allocation66_spill]]  ;;  %s405_s20 = int_to_ptr.vmem [resolvable:$true] %s7717_s20 }
  0x17   : > { %s10084_s15 = scalar_select %p7702_p3, 1, 0 }
  0x18   : > { %p6886_p5 = pneg %p7702_p3 }
  0x19   : > { %10085 = sst [smem:[#allocation34_spill]] %s10084_s15 }
  0x1a   : > { %p7711_p6 = pnand %p6886_p5, %p10036_p1 }
  0x1c   : > { %s7125_s23 = scalar_lea.hbm %s10087_s1, 2048  ;;  %p7727_p8 = pneg %p7711_p6 }
  0x1d   : > { %p7126_p7 = scmp.ne.s32.totalorder %s10087_s1, %s7125_s23  ;;  %p7132_p11 = scmp.lt.u32.totalorder %s7125_s23, %s10087_s1 }
  0x1f   : > { %p7128_p9 = pnand %p7727_p8, %p7126_p7 }
  0x21   : > { %p7129_p10 = pneg %p7128_p9 }
  0x23   : > { %p7134_p12 = pnand %p7132_p11, %p7129_p10 }
  0x25   : > { %7137 = shalt.err (!%p7134_p12)
}
  0x26   : > { %s7138_s21 = scalar_lea.vmem %s7700_s30, 2048  ;;  %p7146_p5 = scmp.lt.s32.totalorder %s7700_s30, %s7700_s30 }
  0x27   : > { %p7139_p13 = scmp.ne.s32.totalorder %s7700_s30, %s7138_s21  ;;  %p7147_p4 = scmp.lt.s32.totalorder %s7138_s21, %s7138_s21 }
  0x29   : > { %p7141_p0 = pnand %p7139_p13, %p7727_p8  ;;  %p7148_p7 = por %p7147_p4, %p7146_p5 }
  0x2b   : > { %p7142_p2 = pneg %p7141_p0 }
  0x2d   : > { %p7149_p9 = pnand %p7148_p7, %p7142_p2 }
  0x2f   : > { %7152 = shalt.err (!%p7149_p9)
}
  0x30   : > { %s10034_s22 = smov 128   ;;  %s10042_s13 = smov 8  }
  0x31   : > { %6889 = dma.hbm_to_vmem [thread:$0]  (!%p7711_p6), %s10087_s1, 2048, %s7700_s30, [#allocation6], %s10034_s22, %s10034_s22, %s10042_s13  }
  0x32   : > { %s10089_s3 = sld [smem:[#allocation67_spill]] }
  0x38   : > { %s7153_s21 = scalar_lea.hbm %s10089_s3, 1024 }
  0x39   : > { %p7154_p4 = scmp.ne.s32.totalorder %s10089_s3, %s7153_s21  ;;  %p7160_p12 = scmp.lt.u32.totalorder %s7153_s21, %s10089_s3 }
  0x3b   : > { %p7156_p10 = pnand %p7154_p4, %p7727_p8 }
  0x3d   : > { %p7157_p11 = pneg %p7156_p10 }
  0x3f   : > { %p7162_p13 = pnand %p7160_p12, %p7157_p11 }
  0x41   : > { %7165 = shalt.err (!%p7162_p13)
}
  0x42   : > { %s7166_s30 = scalar_lea.vmem %s7715_s17, 1024  ;;  %p7174_p7 = scmp.lt.s32.totalorder %s7715_s17, %s7715_s17 }
  0x43   : > { %p7167_p0 = scmp.ne.s32.totalorder %s7715_s17, %s7166_s30  ;;  %p7175_p9 = scmp.lt.s32.totalorder %s7166_s30, %s7166_s30 }
  0x45   : > { %p7169_p2 = pnand %p7167_p0, %p7727_p8  ;;  %p7176_p4 = por %p7175_p9, %p7174_p7 }
  0x47   : > { %p7170_p5 = pneg %p7169_p2 }
  0x49   : > { %p7177_p10 = pnand %p7176_p4, %p7170_p5 }
  0x4b   : > { %7180 = shalt.err (!%p7177_p10)
}
  0x4c   : > { %s10038_s0 = smov 64   ;;  %s10040_s25 = smov 4  }
  0x4d   : > { %6895 = dma.hbm_to_vmem [thread:$0]  (!%p7711_p6), %s10089_s3, 1024, %s7715_s17, [#allocation9], %s10038_s0, %s10038_s0, %s10040_s25  }
  0x4e   : > { %s7181_s29 = scalar_lea.hbm %s10019_s5, 2048 }
  0x4f   : > { %p7182_p11 = scmp.ne.s32.totalorder %s10019_s5, %s7181_s29  ;;  %p7188_p0 = scmp.lt.u32.totalorder %s7181_s29, %s10019_s5 }
  0x51   : > { %p7184_p12 = pnand %p7182_p11, %p7727_p8 }
  0x53   : > { %p7185_p13 = pneg %p7184_p12 }
  0x55   : > { %p7190_p2 = pnand %p7188_p0, %p7185_p13 }
  0x57   : > { %7193 = shalt.err (!%p7190_p2)
}
  0x58   : > { %s7194_s14 = scalar_lea.vmem %s405_s20, 2048  ;;  %p7202_p4 = scmp.lt.s32.totalorder %s405_s20, %s405_s20 }
  0x59   : > { %p7195_p5 = scmp.ne.s32.totalorder %s405_s20, %s7194_s14  ;;  %p7203_p10 = scmp.lt.s32.totalorder %s7194_s14, %s7194_s14 }
  0x5b   : > { %p7197_p7 = pnand %p7195_p5, %p7727_p8  ;;  %p7204_p1 = por %p7203_p10, %p7202_p4 }
  0x5d   : > { %p7198_p9 = pneg %p7197_p7 }
  0x5f   : > { %p7205_p3 = pnand %p7204_p1, %p7198_p9 }
  0x61   : > { %7208 = shalt.err (!%p7205_p3)
}
  0x62   : > { %s10090_s17 = smov 128   ;;  %s7590_s23 = smov [#allocation14]  }
  0x63   : > { %6901 = dma.hbm_to_vmem [thread:$0]  (!%p7711_p6), %s10019_s5, 2048, %s405_s20, [#allocation12], %s10090_s17, %s10090_s17, %s10042_s13  }
  0x64   : > { %s428_s24 = sshll.u32 %s7590_s23, 4  ;;  %s7591_s29 = smov [#allocation17]   ;;  %s429_s24 = int_to_ptr.vmem [resolvable:$true] %s428_s24 }
  0x65   : > { %s452_s19 = sshll.u32 %s7591_s29, 4  ;;  %s7209_s14 = scalar_lea.hbm %s10021_s7, 1024  ;;  %s453_s19 = int_to_ptr.vmem [resolvable:$true] %s452_s19 }
  0x66   : > { %p7210_p1 = scmp.ne.s32.totalorder %s10021_s7, %s7209_s14  ;;  %p7216_p12 = scmp.lt.u32.totalorder %s7209_s14, %s10021_s7 }
  0x68   : > { %p7212_p3 = pnand %p7210_p1, %p7727_p8 }
  0x6a   : > { %p7213_p11 = pneg %p7212_p3 }
  0x6c   : > { %p7218_p13 = pnand %p7216_p12, %p7213_p11 }
  0x6e   : > { %7221 = shalt.err (!%p7218_p13)
}
  0x6f   : > { %s7222_s20 = scalar_lea.vmem %s429_s24, 1024  ;;  %p7230_p7 = scmp.lt.s32.totalorder %s429_s24, %s429_s24 }
  0x70   : > { %p7223_p0 = scmp.ne.s32.totalorder %s429_s24, %s7222_s20  ;;  %p7231_p9 = scmp.lt.s32.totalorder %s7222_s20, %s7222_s20 }
  0x72   : > { %p7225_p2 = pnand %p7223_p0, %p7727_p8  ;;  %p7232_p4 = por %p7231_p9, %p7230_p7 }
  0x74   : > { %p7226_p5 = pneg %p7225_p2 }
  0x76   : > { %p7233_p10 = pnand %p7232_p4, %p7226_p5 }
  0x78   : > { %7236 = shalt.err (!%p7233_p10)
}
  0x79   : > { %s10091_s0 = smov 4   ;;  %s10092_s25 = smov 64  }
  0x7a   : > { %6907 = dma.hbm_to_vmem [thread:$0]  (!%p7711_p6), %s10021_s7, 1024, %s429_s24, [#allocation15], %s10092_s25, %s10092_s25, %s10091_s0  }
  0x7b   : > { %s7237_s21 = scalar_lea.hbm %s10023_s9, 1024 }
  0x7c   : > { %p7238_p1 = scmp.ne.s32.totalorder %s10023_s9, %s7237_s21  ;;  %p7244_p12 = scmp.lt.u32.totalorder %s7237_s21, %s10023_s9 }
  0x7e   : > { %p7240_p3 = pnand %p7238_p1, %p7727_p8 }
  0x80   : > { %p7241_p11 = pneg %p7240_p3 }
  0x82   : > { %p7246_p13 = pnand %p7244_p12, %p7241_p11 }
  0x84   : > { %7249 = shalt.err (!%p7246_p13)
}
  0x85   : > { %s7250_s1 = scalar_lea.vmem %s453_s19, 1024  ;;  %p7258_p7 = scmp.lt.s32.totalorder %s453_s19, %s453_s19 }
  0x86   : > { %p7251_p0 = scmp.ne.s32.totalorder %s453_s19, %s7250_s1  ;;  %p7259_p9 = scmp.lt.s32.totalorder %s7250_s1, %s7250_s1 }
  0x88   : > { %p7253_p2 = pnand %p7251_p0, %p7727_p8  ;;  %p7260_p4 = por %p7259_p9, %p7258_p7 }
  0x8a   : > { %p7254_p5 = pneg %p7253_p2 }
  0x8c   : > { %p7261_p10 = pnand %p7260_p4, %p7254_p5 }
  0x8e   : > { %7264 = shalt.err (!%p7261_p10)
}
  0x8f   : > { %6913 = dma.hbm_to_vmem [thread:$0]  (!%p7711_p6), %s10023_s9, 1024, %s453_s19, [#allocation18], %s10092_s25, %s10092_s25, %s10091_s0  }
  0x90   : > { %s7592_s23 = smov [#allocation20]   ;;  %s7593_s21 = smov [#allocation7]  }
  0x91   : > { %s476_s29 = sshll.u32 %s7592_s23, 4  ;;  %s370_s30 = sshll.u32 %s7593_s21, 4  ;;  %s477_s29 = int_to_ptr.vmem [resolvable:$true] %s476_s29  ;;  %s371_s30 = int_to_ptr.vmem [resolvable:$true] %s370_s30 }
  0x92   : > { %s7265_s20 = scalar_lea.hbm %s10025_s11, 1024 }
  0x93   : > { %p7266_p1 = scmp.ne.s32.totalorder %s10025_s11, %s7265_s20  ;;  %p7272_p12 = scmp.lt.u32.totalorder %s7265_s20, %s10025_s11 }
  0x95   : > { %p7268_p3 = pnand %p7266_p1, %p7727_p8 }
  0x97   : > { %p7269_p11 = pneg %p7268_p3 }
  0x99   : > { %p7274_p13 = pnand %p7272_p12, %p7269_p11 }
  0x9b   : > { %7277 = shalt.err (!%p7274_p13)
}
  0x9c   : > { %s7278_s19 = scalar_lea.vmem %s477_s29, 1024  ;;  %p7286_p7 = scmp.lt.s32.totalorder %s477_s29, %s477_s29 }
  0x9d   : > { %p7279_p0 = scmp.ne.s32.totalorder %s477_s29, %s7278_s19  ;;  %p7287_p9 = scmp.lt.s32.totalorder %s7278_s19, %s7278_s19 }
  0x9f   : > { %p7281_p2 = pnand %p7279_p0, %p7727_p8  ;;  %p7288_p4 = por %p7287_p9, %p7286_p7 }
  0xa1   : > { %p7282_p5 = pneg %p7281_p2 }
  0xa3   : > { %p7289_p10 = pnand %p7288_p4, %p7282_p5 }
  0xa5   : > { %7292 = shalt.err (!%p7289_p10)
}
  0xa6   : > { %6919 = dma.hbm_to_vmem [thread:$0]  (!%p7711_p6), %s10025_s11, 1024, %s477_s29, [#allocation21], %s10092_s25, %s10092_s25, %s10091_s0  }
  0xa7   : > { %s7293_s21 = scalar_lea.hbm %s10016_s2, 32 }
  0xa8   : > { %p7294_p1 = scmp.ne.s32.totalorder %s10016_s2, %s7293_s21  ;;  %p7300_p12 = scmp.lt.u32.totalorder %s7293_s21, %s10016_s2 }
  0xaa   : > { %p7296_p3 = pnand %p7294_p1, %p7727_p8 }
  0xac   : > { %p7297_p11 = pneg %p7296_p3 }
  0xae   : > { %p7302_p13 = pnand %p7300_p12, %p7297_p11 }
  0xb0   : > { %7305 = shalt.err (!%p7302_p13)
}
  0xb1   : > { %s7306_s24 = scalar_lea.vmem %s371_s30, 32  ;;  %p7314_p7 = scmp.lt.s32.totalorder %s371_s30, %s371_s30 }
  0xb2   : > { %p7307_p0 = scmp.ne.s32.totalorder %s371_s30, %s7306_s24  ;;  %p7315_p9 = scmp.lt.s32.totalorder %s7306_s24, %s7306_s24 }
  0xb4   : > { %p7309_p2 = pnand %p7307_p0, %p7727_p8  ;;  %p7316_p4 = por %p7315_p9, %p7314_p7 }
  0xb6   : > { %p7310_p5 = pneg %p7309_p2 }
  0xb8   : > { %p7317_p10 = pnand %p7316_p4, %p7310_p5 }
  0xba   : > { %7320 = shalt.err (!%p7317_p10)
}
  0xbb   : > { %6892 = dma.hbm_to_vmem [thread:$0]  (!%p7711_p6), %s10016_s2, 32, %s371_s30, [#allocation6]  }
  0xbc   : > { %s7594_s29 = smov [#allocation10]   ;;  %s7595_s3 = smov [#allocation13]  }
  0xbd   : > { %s394_s19 = sshll.u32 %s7594_s29, 4  ;;  %s418_s13 = sshll.u32 %s7595_s3, 4  ;;  %s395_s19 = int_to_ptr.vmem [resolvable:$true] %s394_s19  ;;  %s419_s13 = int_to_ptr.vmem [resolvable:$true] %s418_s13 }
  0xbe   : > { %s7321_s21 = scalar_lea.hbm %s10018_s4, 16 }
  0xbf   : > { %p7322_p1 = scmp.ne.s32.totalorder %s10018_s4, %s7321_s21  ;;  %p7328_p12 = scmp.lt.u32.totalorder %s7321_s21, %s10018_s4 }
  0xc1   : > { %p7324_p3 = pnand %p7322_p1, %p7727_p8 }
  0xc3   : > { %p7325_p11 = pneg %p7324_p3 }
  0xc5   : > { %p7330_p13 = pnand %p7328_p12, %p7325_p11 }
  0xc7   : > { %7333 = shalt.err (!%p7330_p13)
}
  0xc8   : > { %s7334_s30 = scalar_lea.vmem %s395_s19, 16  ;;  %s7341_s24 = scalar_lea.vmem %s395_s19, 32 }
  0xc9   : > { %p7335_p0 = scmp.ne.s32.totalorder %s395_s19, %s7334_s30  ;;  %p7342_p7 = scmp.lt.s32.totalorder %s395_s19, %s395_s19 }
  0xca   : > { %p7343_p9 = scmp.lt.s32.totalorder %s7341_s24, %s7334_s30 }
  0xcb   : > { %p7337_p2 = pnand %p7335_p0, %p7727_p8 }
  0xcc   : > { %p7344_p4 = por %p7343_p9, %p7342_p7 }
  0xcd   : > { %p7338_p5 = pneg %p7337_p2 }
  0xcf   : > { %p7345_p10 = pnand %p7344_p4, %p7338_p5 }
  0xd1   : > { %7348 = shalt.err (!%p7345_p10)
}
  0xd2   : > { %6898 = dma.hbm_to_vmem [thread:$0]  (!%p7711_p6), %s10018_s4, 16, %s395_s19, [#allocation9]  }
  0xd3   : > { %s7349_s15 = scalar_lea.hbm %s10020_s6, 32 }
  0xd4   : > { %p7350_p1 = scmp.ne.s32.totalorder %s10020_s6, %s7349_s15  ;;  %p7356_p12 = scmp.lt.u32.totalorder %s7349_s15, %s10020_s6 }
  0xd6   : > { %p7352_p3 = pnand %p7350_p1, %p7727_p8 }
  0xd8   : > { %p7353_p11 = pneg %p7352_p3 }
  0xda   : > { %p7358_p13 = pnand %p7356_p12, %p7353_p11 }
  0xdc   : > { %7361 = shalt.err (!%p7358_p13)
}
  0xdd   : > { %s7362_s20 = scalar_lea.vmem %s419_s13, 32  ;;  %p7370_p7 = scmp.lt.s32.totalorder %s419_s13, %s419_s13 }
  0xde   : > { %p7363_p0 = scmp.ne.s32.totalorder %s419_s13, %s7362_s20  ;;  %p7371_p9 = scmp.lt.s32.totalorder %s7362_s20, %s7362_s20 }
  0xe0   : > { %p7365_p2 = pnand %p7363_p0, %p7727_p8  ;;  %p7372_p4 = por %p7371_p9, %p7370_p7 }
  0xe2   : > { %p7366_p5 = pneg %p7365_p2 }
  0xe4   : > { %p7373_p10 = pnand %p7372_p4, %p7366_p5 }
  0xe6   : > { %7376 = shalt.err (!%p7373_p10)
}
  0xe7   : > { %6904 = dma.hbm_to_vmem [thread:$0]  (!%p7711_p6), %s10020_s6, 32, %s419_s13, [#allocation12]  }
  0xe8   : > { %s7596_s30 = smov [#allocation16]   ;;  %s7597_s0 = smov [#allocation19]  }
  0xe9   : > { %s442_s24 = sshll.u32 %s7596_s30, 4  ;;  %s466_s25 = sshll.u32 %s7597_s0, 4  ;;  %s443_s24 = int_to_ptr.vmem [resolvable:$true] %s442_s24  ;;  %s467_s25 = int_to_ptr.vmem [resolvable:$true] %s466_s25 }
  0xea   : > { %s7377_s15 = scalar_lea.hbm %s10022_s8, 16 }
  0xeb   : > { %p7378_p1 = scmp.ne.s32.totalorder %s10022_s8, %s7377_s15  ;;  %p7384_p12 = scmp.lt.u32.totalorder %s7377_s15, %s10022_s8 }
  0xed   : > { %p7380_p3 = pnand %p7378_p1, %p7727_p8 }
  0xef   : > { %p7381_p11 = pneg %p7380_p3 }
  0xf1   : > { %p7386_p13 = pnand %p7384_p12, %p7381_p11 }
  0xf3   : > { %7389 = shalt.err (!%p7386_p13)
}
  0xf4   : > { %s7390_s13 = scalar_lea.vmem %s443_s24, 16  ;;  %s7397_s20 = scalar_lea.vmem %s443_s24, 32 }
  0xf5   : > { %p7391_p0 = scmp.ne.s32.totalorder %s443_s24, %s7390_s13  ;;  %p7398_p7 = scmp.lt.s32.totalorder %s443_s24, %s443_s24 }
  0xf6   : > { %p7399_p9 = scmp.lt.s32.totalorder %s7397_s20, %s7390_s13 }
  0xf7   : > { %p7393_p2 = pnand %p7391_p0, %p7727_p8 }
  0xf8   : > { %p7400_p4 = por %p7399_p9, %p7398_p7 }
  0xf9   : > { %p7394_p5 = pneg %p7393_p2 }
  0xfb   : > { %p7401_p10 = pnand %p7400_p4, %p7394_p5 }
  0xfd   : > { %7404 = shalt.err (!%p7401_p10)
}
  0xfe   : > { %6910 = dma.hbm_to_vmem [thread:$0]  (!%p7711_p6), %s10022_s8, 16, %s443_s24, [#allocation15]  }
  0xff   : > { %s7405_s29 = scalar_lea.hbm %s10024_s10, 16 }
 0x100   : > { %p7406_p1 = scmp.ne.s32.totalorder %s10024_s10, %s7405_s29  ;;  %p7412_p12 = scmp.lt.u32.totalorder %s7405_s29, %s10024_s10 }
 0x102   : > { %p7408_p3 = pnand %p7406_p1, %p7727_p8 }
 0x104   : > { %p7409_p11 = pneg %p7408_p3 }
 0x106   : > { %p7414_p13 = pnand %p7412_p12, %p7409_p11 }
 0x108   : > { %7417 = shalt.err (!%p7414_p13)
}
 0x109   : > { %s7418_s14 = scalar_lea.vmem %s467_s25, 16  ;;  %s7425_s24 = scalar_lea.vmem %s467_s25, 32 }
 0x10a   : > { %p7419_p0 = scmp.ne.s32.totalorder %s467_s25, %s7418_s14  ;;  %p7426_p7 = scmp.lt.s32.totalorder %s467_s25, %s467_s25 }
 0x10b   : > { %p7427_p9 = scmp.lt.s32.totalorder %s7425_s24, %s7418_s14 }
 0x10c   : > { %p7421_p2 = pnand %p7419_p0, %p7727_p8 }
 0x10d   : > { %p7428_p4 = por %p7427_p9, %p7426_p7 }
 0x10e   : > { %p7422_p5 = pneg %p7421_p2 }
 0x110   : > { %p7429_p10 = pnand %p7428_p4, %p7422_p5 }
 0x112   : > { %7432 = shalt.err (!%p7429_p10)
}
 0x113   : > { %6916 = dma.hbm_to_vmem [thread:$0]  (!%p7711_p6), %s10024_s10, 16, %s467_s25, [#allocation18]  }
 0x114   : > { %s7598_s20 = smov [#allocation22]   ;;  %s7433_s0 = scalar_lea.hbm %s10026_s12, 16 }
 0x115   : > { %s490_s19 = sshll.u32 %s7598_s20, 4  ;;  %p7434_p1 = scmp.ne.s32.totalorder %s10026_s12, %s7433_s0  ;;  %s491_s19 = int_to_ptr.vmem [resolvable:$true] %s490_s19 }
 0x116   : > { %p7440_p12 = scmp.lt.u32.totalorder %s7433_s0, %s10026_s12 }
 0x117   : > { %p7436_p3 = pnand %p7434_p1, %p7727_p8 }
 0x119   : > { %p7437_p11 = pneg %p7436_p3 }
 0x11b   : > { %p7442_p13 = pnand %p7440_p12, %p7437_p11 }
 0x11d   : > { %7445 = shalt.err (!%p7442_p13)
}
 0x11e   : > { %s7446_s25 = scalar_lea.vmem %s491_s19, 16  ;;  %s7453_s21 = scalar_lea.vmem %s491_s19, 32 }
 0x11f   : > { %p7447_p0 = scmp.ne.s32.totalorder %s491_s19, %s7446_s25  ;;  %p7454_p7 = scmp.lt.s32.totalorder %s491_s19, %s491_s19 }
 0x120   : > { %p7455_p9 = scmp.lt.s32.totalorder %s7453_s21, %s7446_s25 }
 0x121   : > { %p7449_p2 = pnand %p7447_p0, %p7727_p8 }
 0x122   : > { %p7456_p4 = por %p7455_p9, %p7454_p7 }
 0x123   : > { %p7450_p5 = pneg %p7449_p2 }
 0x125   : > { %p7457_p10 = pnand %p7456_p4, %p7450_p5 }
 0x127   : > { %7460 = shalt.err (!%p7457_p10)
}
 0x128   : > { %s10093_s16 = sld [smem:[#allocation32_spill]]  ;;  %s10094_s22 = sld [smem:[#allocation33_spill]] }
 0x129   : > { %6922 = dma.hbm_to_vmem [thread:$0]  (!%p7711_p6), %s10026_s12, 16, %s491_s19, [#allocation21]  }
 0x12a   : > { %s5956_s13 = sadd.s32 4294967294, %s7581_s28   ;;  %s7972_s18 = sadd.s32 1, %s7581_s28  }
 0x12b   : > { %s39_s20 = ssub.s32 %s7581_s28, %s7972_s18  ;;  %s42_s1 = sadd.s32 1, %s7577_s27 }
 0x12c   : > { %p40_p8 = scmp.eq.s32.totalorder %s39_s20, 0  ;;  %p49_p1 = scmp.ne.s32.totalorder %s7577_s27, %s7573_s26 }
 0x12d   : > { %p50_p3 = scmp.eq.s32.totalorder %s7581_s28, 0  ;;  %p337_p2 = scmp.eq.s32.totalorder %s5956_s13, 1 }
 0x12e   : > { %p55_p11 = scmp.ne.s32.totalorder %s7573_s26, %s10093_s16  ;;  %p10096_p13 = scmp.eq.s32.totalorder %s10094_s22, 0 }
 0x12f   : > { %s7983_s30 = scalar_select %p40_p8, %s7577_s27, %s42_s1  }
 0x130   : > { %p7985_p12 = por %p50_p3, %p49_p1  ;;  %p7991_p6 = por %p10096_p13, %p55_p11 }
 0x131   : > { %p331_p0 = scmp.eq.s32.totalorder %s10094_s22, 1  ;;  %p6943_p5 = scmp.lt.s32.totalorder %s7581_s28, 2 }
 0x132   : > { %s501_s29 = sand.u32 1, %s7577_s27   ;;  %p8002_p9 = por %p337_p2, %p55_p11 }
 0x133   : > { %p7998_p7 = por %p331_p0, %p49_p1  ;;  %s5971_s23 = sshll.u32 %s501_s29, 8 }
 0x134   : > { %s10099_s15 = scalar_select %p8002_p9, 1, 0 }
 0x135   : > { %s10098_s3 = scalar_select %p7998_p7, 1, 0 }
 0x136   : > { %s6063_s25 = sshll.u32 %s7581_s28, 12  ;;  %s10100_s24 = sld [smem:[#allocation65_spill]] }
 0x137   : > { %s505_s22 = scalar_lea.vmem [#allocation2], %s5971_s23  ;;  %p8016_p4 = pnand %p6943_p5, %p7985_p12 }
 0x138   : > { %s512_s13 = sshll.u32 %s505_s22, 4  ;;  %s8020_s1 = scalar_lea.sflag [#allocation3], %s501_s29  ;;  %s8012_s13 = int_to_ptr.vmem [resolvable:$true] %s512_s13 }
 0x139   : > { %p7463_p8 = pneg %p8016_p4 }
 0x13c   : > { %s8010_s16 = scalar_lea.hbm %s10100_s24, %s6063_s25  ;;  %s7466_s0 = scalar_lea.hbm %s10100_s24, 8192 }
 0x13d   : > { %s7461_s21 = scalar_lea.hbm %s8010_s16, 4096  ;;  %p7467_p11 = scmp.lt.u32.totalorder %s8010_s16, %s10100_s24 }
 0x13e   : > { %p7462_p10 = scmp.ne.s32.totalorder %s8010_s16, %s7461_s21  ;;  %p7468_p12 = scmp.lt.u32.totalorder %s7466_s0, %s7461_s21 }
 0x13f   : > { %p7470_p0 = scmp.lt.u32.totalorder %s7461_s21, %s8010_s16 }
 0x140   : > { %p7464_p1 = pnand %p7463_p8, %p7462_p10  ;;  %p7469_p13 = por %p7468_p12, %p7467_p11 }
 0x142   : > { %p7465_p3 = pneg %p7464_p1  ;;  %p7471_p2 = por %p7470_p0, %p7469_p13 }
 0x144   : > { %p7472_p5 = pnand %p7471_p2, %p7465_p3 }
 0x146   : > { %7475 = shalt.err (!%p7472_p5)
}
 0x147   : > { %s7476_s29 = scalar_lea.vmem %s8012_s13, 4096  ;;  %s7599_s23 = smov [#allocation2]  }
 0x148   : > { %p7477_p10 = scmp.ne.s32.totalorder %s8012_s13, %s7476_s29  ;;  %s7481_s25 = sshll.u32 %s7599_s23, 4  ;;  %s7482_s25 = int_to_ptr.vmem [resolvable:$false] %s7481_s25 }
 0x149   : > { %s7483_s14 = scalar_lea.vmem %s7482_s25, 8192  ;;  %p7484_p7 = scmp.lt.s32.totalorder %s8012_s13, %s7482_s25 }
 0x14a   : > { %p7479_p1 = pnand %p7477_p10, %p7463_p8  ;;  %p7485_p11 = scmp.lt.s32.totalorder %s7483_s14, %s7476_s29 }
 0x14c   : > { %p7480_p9 = pneg %p7479_p1  ;;  %p7486_p12 = por %p7485_p11, %p7484_p7 }
 0x14e   : > { %p7487_p13 = pnand %p7486_p12, %p7480_p9 }
 0x150   : > { %7490 = shalt.err (!%p7487_p13)
}
 0x151   : > { %s10102_s21 = smov 8   ;;  %s10103_s0 = sld [smem:[#allocation34_spill]] }
 0x152   : > { %6926 = dma.hbm_to_vmem [thread:$0]  (!%p8016_p4), %s8010_s16, 4096, %s8012_s13, %s8020_s1, %s10090_s17, %s10090_s17, %s10102_s21  }
 0x157   : > { %p10104_p8 = scmp.ne.s32.totalorder %s10103_s0, 0 }
 0x159   : > { %524 = sbr.rel (%p10104_p8) target bundleno = 2149 (0x865), region = 72 }
 0x160   : > { %s8054_s22 = sand.u32 1, %s7573_s26  }
 0x161   : > { %s5975_s29 = sshll.u32 %s8054_s22, 8  ;;  %s527_s23 = scalar_lea.sflag [#allocation3], %s8054_s22 }
 0x162   : > { %s8058_s25 = scalar_lea.vmem [#allocation2], %s5975_s29 }
 0x163   : > { %7536 = dma.done.wait (%p7991_p6), %s527_s23, 4096  }
 0x164   : > { %7538 = vsyncadd (%p7991_p6), %s527_s23, 4294963200  ;;  %s10105_s20 = sld [smem:[#allocation33_spill]] }
 0x16a   : > { %p10106_p7 = scmp.eq.s32.totalorder %s10105_s20, 0 }
 0x16c   : > { %7540 = dma.done.wait (%p10106_p7), [#allocation6], 2080   ;;  %p10107_p9 = pmov %p10106_p7 }
 0x16d   : > { %p10108_p4 = pmov %p10106_p7 }
 0x16e   : > { %7542 = vsyncadd (%p10107_p9), [#allocation6], 4294965216 }
 0x16f   : > { %7544 = dma.done.wait (%p10108_p4), [#allocation9], 1040   ;;  %p10109_p3 = pmov %p10108_p4 }
 0x171   : > { %7546 = vsyncadd (%p10109_p3), [#allocation9], 4294966256  ;;  %p10110_p0 = pmov %p10109_p3 }
 0x173   : > { %7548 = dma.done.wait (%p10110_p0), [#allocation12], 2080   ;;  %p10111_p2 = pmov %p10110_p0 }
 0x174   : > { %p10112_p6 = pmov %p10110_p0 }
 0x175   : > { %7550 = vsyncadd (%p10111_p2), [#allocation12], 4294965216 }
 0x176   : > { %7552 = dma.done.wait (%p10112_p6), [#allocation15], 1040   ;;  %p10113_p5 = pmov %p10110_p0 }
 0x177   : > { %p10114_p10 = pmov %p10110_p0 }
 0x178   : > { %7554 = vsyncadd (%p10113_p5), [#allocation15], 4294966256 }
 0x179   : > { %7556 = dma.done.wait (%p10114_p10), [#allocation18], 1040   ;;  %p10115_p1 = pmov %p10110_p0 }
 0x17a   : > { %p10116_p11 = pmov %p10110_p0 }
 0x17b   : > { %7558 = vsyncadd (%p10115_p1), [#allocation18], 4294966256 }
 0x17c   : > { %7560 = dma.done.wait (%p10116_p11), [#allocation21], 1040   ;;  %p10117_p12 = pmov %p10110_p0 }
 0x17d   : > { %v10046_v0 = vmov 0   ;;  %v7008_v1 = vld [vmem:[#allocation5 + $0x4] ss:$8 sps:$4 sm:$0xff]   ;;  %v7010_v2 = vld [vmem:[#allocation5] ss:$8 sps:$4 sm:$0xff]   ;;  %v7034_v21 = vld [vmem:[#allocation8 + $0x10] sm:$0xff]  }
 0x17e   : > { %7562 = vsyncadd (%p10117_p12), [#allocation21], 4294966256  ;;  %812 = vmatprep.mubr.bf16.mxu0 %v10046_v0  ;;  %780 = vmatprep.subr.bf16.mxu0 %v7008_v1  ;;  %v7011_v3 = vld [vmem:[#allocation5 + $0x14] ss:$8 sps:$4 sm:$0xff]   ;;  %v7013_v4 = vld [vmem:[#allocation5 + $0x10] ss:$8 sps:$4 sm:$0xff]  }
 0x17f   : > { %781 = vmatpush1.bf16.msra.mxu0 %v7010_v2  ;;  %v7014_v5 = vld [vmem:[#allocation5 + $0x24] ss:$8 sps:$4 sm:$0xff]   ;;  %v7016_v6 = vld [vmem:[#allocation5 + $0x20] ss:$8 sps:$4 sm:$0xff]   ;;  %v7017_v7 = vld [vmem:[#allocation5 + $0x34] ss:$8 sps:$4 sm:$0xff]  }
 0x180   : > { %782 = vmatprep.subr.bf16.mxu0 %v7011_v3  ;;  %v7019_v8 = vld [vmem:[#allocation5 + $0x30] ss:$8 sps:$4 sm:$0xff]   ;;  %v7020_v9 = vld [vmem:[#allocation5 + $0x44] ss:$8 sps:$4 sm:$0xff]   ;;  %v7022_v10 = vld [vmem:[#allocation5 + $0x40] ss:$8 sps:$4 sm:$0xff]  }
 0x181   : > { %v7023_v11 = vld [vmem:[#allocation5 + $0x54] ss:$8 sps:$4 sm:$0xff]   ;;  %v7025_v12 = vld [vmem:[#allocation5 + $0x50] ss:$8 sps:$4 sm:$0xff]   ;;  %v7026_v13 = vld [vmem:[#allocation5 + $0x64] ss:$8 sps:$4 sm:$0xff]  }
 0x182   : > { %v7028_v14 = vld [vmem:[#allocation5 + $0x60] ss:$8 sps:$4 sm:$0xff]   ;;  %v7029_v15 = vld [vmem:[#allocation5 + $0x74] ss:$8 sps:$4 sm:$0xff]   ;;  %v7031_v16 = vld [vmem:[#allocation5 + $0x70] ss:$8 sps:$4 sm:$0xff]  }
 0x183   : > { %783 = vmatpush1.bf16.msra.mxu0 %v7013_v4  ;;  %v8090_v17 = vld [vmem:[%s8058_s25] sm:$0xff]  ;;  %v7033_v19 = vld [vmem:[#allocation8 + $0x8] sm:$0xff]   ;;  %v8101_v24 = vld [vmem:[%s8058_s25 + $0x18] sm:$0xff]  ;;  %s5988_s17 = sshll.u32 %s8054_s22, 10  ;;  %s6065_s16 = sshll.u32 %s10105_s20, 14 }
 0x184   : > { %784 = vmatprep.subr.bf16.mxu0 %v7014_v5  ;;  %v7032_v18 = vld [vmem:[#allocation8] sm:$0xff]   ;;  %v8098_v23 = vld [vmem:[%s8058_s25 + $0x10] sm:$0xff]  ;;  %v8120_v30 = vld [vmem:[%s8058_s25 + $0x38] sm:$0xff]  ;;  %s9618_s19 = scalar_lea.vmem [#allocation23], %s5988_s17  ;;  %s10216_s21 = sld [smem:[#allocation68_spill]] }
 0x185   : > { %v8093_v20 = vld [vmem:[%s8058_s25 + $0x8] sm:$0xff]  ;;  %6322 = vmatprep.subr.bf16.mxu1 %v7032_v18  ;;  %v657_v25 = vpack.c.bf16 %v8101_v24, %v8098_v23  ;;  %v8107_v26 = vld [vmem:[%s8058_s25 + $0x20] sm:$0xff]  ;;  %v8117_v29 = vld [vmem:[%s8058_s25 + $0x30] sm:$0xff]  ;;  %s5769_s13 = sshll.u32 %s9618_s19, 4  ;;  %s5755_s29 = scalar_lea.sflag [#allocation4], %s8054_s22  ;;  %s9966_s13 = int_to_ptr.vmem [resolvable:$true] %s5769_s13 }
 0x186   : > { %6323 = vmatpush3.bf16.msra.mxu1 %v7032_v18  ;;  %v656_v22 = vpack.c.bf16 %v8093_v20, %v8090_v17  ;;  %v8110_v27 = vld [vmem:[%s8058_s25 + $0x28] sm:$0xff]  ;;  %v659_v31 = vpack.c.bf16 %v8120_v30, %v8117_v29  ;;  %v8126_v32 = vld [vmem:[%s8058_s25 + $0x40] sm:$0xff]  ;;  %v8135_v35 = vld [vmem:[%s8058_s25 + $0x50] sm:$0xff]  ;;  %s7491_s23 = scalar_lea.vmem %s9966_s13, 16384  ;;  %p10217_p8 = scmp.ne.s32.totalorder %s10098_s3, 0 }
 0x187   : > { %785 = vmatpush1.bf16.msra.mxu0 %v7016_v6  ;;  %6324 = vmatprep.subr.bf16.mxu1 %v7033_v19  ;;  %v658_v28 = vpack.c.bf16 %v8110_v27, %v8107_v26  ;;  %v8129_v33 = vld [vmem:[%s8058_s25 + $0x48] sm:$0xff]  ;;  %v8138_v36 = vld [vmem:[%s8058_s25 + $0x58] sm:$0xff]  ;;  %v8144_v38 = vld [vmem:[%s8058_s25 + $0x60] sm:$0xff]  ;;  %p7492_p13 = scmp.ne.s32.totalorder %s9966_s13, %s7491_s23 }
 0x188   : > { %786 = vmatprep.subr.bf16.mxu0 %v7017_v7  ;;  %v660_v34 = vpack.c.bf16 %v8129_v33, %v8126_v32  ;;  %v661_v37 = vpack.c.bf16 %v8138_v36, %v8135_v35  ;;  %v8147_v39 = vld [vmem:[%s8058_s25 + $0x68] sm:$0xff]  ;;  %v8153_v41 = vld [vmem:[%s8058_s25 + $0x70] sm:$0xff]  ;;  %v8156_v42 = vld [vmem:[%s8058_s25 + $0x78] sm:$0xff] }
 0x189   : > { %v662_v40 = vpack.c.bf16 %v8147_v39, %v8144_v38  ;;  %v663_v43 = vpack.c.bf16 %v8156_v42, %v8153_v41  ;;  %v8162_v44 = vld [vmem:[%s8058_s25 + $0x80] sm:$0xff]  ;;  %v8165_v45 = vld [vmem:[%s8058_s25 + $0x88] sm:$0xff]  ;;  %v8171_v47 = vld [vmem:[%s8058_s25 + $0x90] sm:$0xff]  ;;  %p7493_p7 = pnand %p7492_p13, %p10217_p8 }
 0x18a   : > { %6325 = vmatpush3.bf16.msra.mxu1 %v7033_v19  ;;  %v664_v46 = vpack.c.bf16 %v8165_v45, %v8162_v44  ;;  %v8174_v48 = vld [vmem:[%s8058_s25 + $0x98] sm:$0xff]  ;;  %v8180_v50 = vld [vmem:[%s8058_s25 + $0xa0] sm:$0xff]  ;;  %v8183_v51 = vld [vmem:[%s8058_s25 + $0xa8] sm:$0xff]  ;;  %s9964_s0 = scalar_lea.hbm %s10216_s21, %s6065_s16 }
 0x18b   : > { %787 = vmatpush1.bf16.msra.mxu0 %v7019_v8  ;;  %6326 = vmatprep.subr.bf16.mxu1 %v7034_v21  ;;  %v665_v49 = vpack.c.bf16 %v8174_v48, %v8171_v47  ;;  %v666_v52 = vpack.c.bf16 %v8183_v51, %v8180_v50  ;;  %v8189_v53 = vld [vmem:[%s8058_s25 + $0xb0] sm:$0xff]  ;;  %v8192_v54 = vld [vmem:[%s8058_s25 + $0xb8] sm:$0xff]  ;;  %v7036_v57 = vld [vmem:[#allocation8 + $0x20] sm:$0xff]   ;;  %p7494_p9 = pneg %p7493_p7 }
 0x18c   : > { %788 = vmatprep.subr.bf16.mxu0 %v7020_v9  ;;  %v7035_v55 = vld [vmem:[#allocation8 + $0x18] sm:$0xff]   ;;  %v667_v56 = vpack.c.bf16 %v8192_v54, %v8189_v53  ;;  %v8201_v59 = vld [vmem:[%s8058_s25 + $0xc8] sm:$0xff]  ;;  %v7038_v62 = vld [vmem:[#allocation8 + $0x30] sm:$0xff]  }
 0x18d   : > { %v8198_v58 = vld [vmem:[%s8058_s25 + $0xc0] sm:$0xff]  ;;  %v7037_v60 = vld [vmem:[#allocation8 + $0x28] sm:$0xff]   ;;  %v8210_v1 = vld [vmem:[%s8058_s25 + $0xd8] sm:$0xff] }
 0x18e   : > { %6327 = vmatpush3.bf16.msra.mxu1 %v7034_v21  ;;  %v668_v61 = vpack.c.bf16 %v8201_v59, %v8198_v58  ;;  %v8207_v63 = vld [vmem:[%s8058_s25 + $0xd0] sm:$0xff]  ;;  %v7039_v2 = vld [vmem:[#allocation8 + $0x38] sm:$0xff]   ;;  %v8219_v5 = vld [vmem:[%s8058_s25 + $0xe8] sm:$0xff] }
 0x18f   : > { %789 = vmatpush1.bf16.msra.mxu0 %v7022_v10  ;;  %6328 = vmatprep.subr.bf16.mxu1 %v7035_v55  ;;  %v669_v3 = vpack.c.bf16 %v8210_v1, %v8207_v63  ;;  %v8216_v4 = vld [vmem:[%s8058_s25 + $0xe0] sm:$0xff]  ;;  %v8225_v7 = vld [vmem:[%s8058_s25 + $0xf0] sm:$0xff]  ;;  %v8228_v8 = vld [vmem:[%s8058_s25 + $0xf8] sm:$0xff]  ;;  %v690_v10 = vlaneseq }
 0x190   : > { %790 = vmatprep.subr.bf16.mxu0 %v7023_v11  ;;  %v670_v6 = vpack.c.bf16 %v8219_v5, %v8216_v4  ;;  %v671_v9 = vpack.c.bf16 %v8228_v8, %v8225_v7  ;;  %v7040_v11 = vld [vmem:[#allocation11] ss:$8 sps:$4 sm:$0xff]   ;;  %v7043_v21 = vld [vmem:[#allocation11 + $0x10] ss:$8 sps:$4 sm:$0xff]  }
 0x192   : > { %6329 = vmatpush3.bf16.msra.mxu1 %v7035_v55 }
 0x193   : > { %791 = vmatpush1.bf16.msra.mxu0 %v7025_v12  ;;  %6330 = vmatprep.subr.bf16.mxu1 %v7036_v57  ;;  %v7042_v12 = vld [vmem:[#allocation11 + $0x4] ss:$8 sps:$4 sm:$0xff]  }
 0x194   : > { %792 = vmatprep.subr.bf16.mxu0 %v7026_v13  ;;  %v8233_v13 = vshrl.u32 %v690_v10, 7 }
 0x196   : > { %6331 = vmatpush3.bf16.msra.mxu1 %v7036_v57 }
 0x197   : > { %793 = vmatpush1.bf16.msra.mxu0 %v7028_v14  ;;  %6332 = vmatprep.subr.bf16.mxu1 %v7037_v60  ;;  %v10045_v14 = vsub.s32 0, %v8233_v13 }
 0x198   : > { %794 = vmatprep.subr.bf16.mxu0 %v7029_v15  ;;  %v688_v15 = vld [vmem:[#allocation7] sm:$0x3] }
 0x199   : > { %v8239_v18 = vrot.slane %v688_v15, %v10045_v14 }
 0x19a   : > { %6333 = vmatpush3.bf16.msra.mxu1 %v7037_v60 }
 0x19b   : > { %795 = vmatpush1.bf16.msra.mxu0 %v7031_v16  ;;  %6334 = vmatprep.subr.bf16.mxu1 %v7038_v62  ;;  %v10044_v16 = vsub.s32 1, %v8233_v13 }
 0x19c   : > { %1953 = vmatprep.subr.bf16.mxu0 %v7042_v12 }
 0x19d   : > { %v8243_v19 = vrot.slane %v688_v15, %v10044_v16 }
 0x19e   : > { %813 = vmatmul.mubr.bf16.vlgmr.msra.gmra.mrb[0].mxu0 %v656_v22  ;;  %6335 = vmatpush3.bf16.msra.mxu1 %v7038_v62  ;;  %v7045_v22 = vld [vmem:[#allocation11 + $0x14] ss:$8 sps:$4 sm:$0xff]  }
 0x19f   : > { %822 = vmatprep.mubr.bf16.mxu0 %v10046_v0  ;;  %6336 = vmatprep.subr.bf16.mxu1 %v7039_v2 }
 0x1a0   : > { %1954 = vmatpush1.bf16.msra.mxu0 %v7040_v11 }
 0x1a1   : > { %1955 = vmatprep.subr.bf16.mxu0 %v7045_v22 }
 0x1a2   : > { %6337 = vmatpush3.bf16.msra.mxu1 %v7039_v2 }
 0x1a4   : > { %1956 = vmatpush1.bf16.msra.mxu0 %v7043_v21 }
 0x1a6   : > { %823 = vmatmul.mubr.bf16.gmra.mrb[4].mxu0 %v657_v25 }
 0x1a7   : > { %832 = vmatprep.mubr.bf16.mxu0 %v10046_v0 }
 0x1ae   : > { %833 = vmatmul.mubr.bf16.gmra.mrb[8].mxu0 %v658_v28 }
 0x1af   : > { %842 = vmatprep.mubr.bf16.mxu0 %v10046_v0 }
 0x1b6   : > { %843 = vmatmul.mubr.bf16.gmra.mrb[12].mxu0 %v659_v31 }
 0x1b7   : > { %852 = vmatprep.mubr.bf16.mxu0 %v10046_v0 }
 0x1be   : > { %853 = vmatmul.mubr.bf16.gmra.mrb[16].mxu0 %v660_v34 }
 0x1bf   : > { %862 = vmatprep.mubr.bf16.mxu0 %v10046_v0 }
 0x1c6   : > { %863 = vmatmul.mubr.bf16.gmra.mrb[20].mxu0 %v661_v37 }
 0x1c7   : > { %872 = vmatprep.mubr.bf16.mxu0 %v10046_v0 }
 0x1ce   : > { %873 = vmatmul.mubr.bf16.gmra.mrb[24].mxu0 %v662_v40 }
 0x1cf   : > { %882 = vmatprep.mubr.bf16.mxu0 %v10046_v0 }
 0x1d6   : > { %883 = vmatmul.mubr.bf16.gmra.mrb[28].mxu0 %v663_v43 }
 0x1d7   : > { %892 = vmatprep.mubr.bf16.mxu0 %v10046_v0 }
 0x1de   : > { %893 = vmatmul.mubr.bf16.gmra.mrb[32].mxu0 %v664_v46 }
 0x1df   : > { %902 = vmatprep.mubr.bf16.mxu0 %v10046_v0 }
 0x1e6   : > { %903 = vmatmul.mubr.bf16.gmra.mrb[36].mxu0 %v665_v49 }
 0x1e7   : > { %912 = vmatprep.mubr.bf16.mxu0 %v10046_v0 }
 0x1ee   : > { %913 = vmatmul.mubr.bf16.gmra.mrb[40].mxu0 %v666_v52 }
 0x1ef   : > { %922 = vmatprep.mubr.bf16.mxu0 %v10046_v0 }
 0x1f6   : > { %923 = vmatmul.mubr.bf16.gmra.mrb[44].mxu0 %v667_v56 }
 0x1f7   : > { %932 = vmatprep.mubr.bf16.mxu0 %v10046_v0 }
 0x1fe   : > { %933 = vmatmul.mubr.bf16.gmra.mrb[48].mxu0 %v668_v61 }
 0x1ff   : > { %942 = vmatprep.mubr.bf16.mxu0 %v10046_v0 }
 0x206   : > { %943 = vmatmul.mubr.bf16.gmra.mrb[52].mxu0 %v669_v3 }
 0x207   : > { %952 = vmatprep.mubr.bf16.mxu0 %v10046_v0 }
 0x20e   : > { %953 = vmatmul.mubr.bf16.gmra.mrb[56].mxu0 %v670_v6 }
 0x20f   : > { %962 = vmatprep.mubr.bf16.mxu0 %v10046_v0 }
 0x216   : > { %963 = vmatmul.mubr.bf16.gmra.mrb[60].mxu0 %v671_v9 }
 0x217   : > { %1985 = vmatprep.mubr.bf16.mxu0 %v10046_v0 }
 0x271   : > { %v814_v25 = vpop.f32.mrb[0].mxu0 }
 0x272   : > { %v815_v28 = vadd.f32 %v814_v25, %v8239_v18  ;;  %v816_v31 = vpop.f32.mrb[1].mxu0 }
 0x273   : > { %v817_v34 = vadd.f32 %v816_v31, %v8243_v19  ;;  %v818_v37 = vpop.f32.mrb[2].mxu0 }
 0x274   : > { %v819_v40 = vadd.f32 %v818_v37, %v8239_v18  ;;  %v820_v43 = vpop.f32.mrb[3].mxu0  ;;  %v973_v46 = vadd.f32 %v815_v28, %v8090_v17 }
 0x275   : > { %v1005_v49 = vadd.f32 %v817_v34, %v8090_v17  ;;  %v821_v52 = vadd.f32 %v820_v43, %v8243_v19  ;;  %v7046_v43 = vld [vmem:[#allocation11 + $0x20] ss:$8 sps:$4 sm:$0xff]  }
 0x276   : > { %v974_v55 = vadd.f32 %v819_v40, %v8093_v20  ;;  %v1101_v56 = vmul.f32 0.01, %v973_v46  ;;  %vm1037_vm0 = vcmp.gt.f32.partialorder %v973_v46, 0.0 }
 0x277   : > { %v1006_v57 = vadd.f32 %v821_v52, %v8093_v20  ;;  %v1133_v60 = vmul.f32 0.01, %v1005_v49  ;;  %vm1069_vm2 = vcmp.gt.f32.partialorder %v1005_v49, 0.0  ;;  %v7048_v52 = vld [vmem:[#allocation11 + $0x24] ss:$8 sps:$4 sm:$0xff]  }
 0x278   : > { %vm1038_vm1 = vcmp.gt.f32.partialorder %v974_v55, 0.0  ;;  %v1102_v61 = vmul.f32 0.01, %v974_v55  ;;  %v1165_v9 = vsel %vm1037_vm0, %v973_v46, %v1101_v56  ;;  %1957 = vmatprep.subr.bf16.mxu0 %v7048_v52 }
 0x279   : > { %v824_v62 = vpop.f32.mrb[4].mxu0  ;;  %vm1070_vm3 = vcmp.gt.f32.partialorder %v1006_v57, 0.0  ;;  %v1134_v2 = vmul.f32 0.01, %v1006_v57  ;;  %v8255_v15 = vsel %vm1069_vm2, %v1005_v49, %v1133_v60  ;;  %1958 = vmatpush1.bf16.msra.mxu0 %v7046_v43 }
 0x27a   : > { %v825_v3 = vadd.f32 %v824_v62, %v8239_v18  ;;  %v826_v6 = vpop.f32.mrb[5].mxu0  ;;  %v1166_v17 = vsel %vm1038_vm1, %v974_v55, %v1102_v61 }
 0x27b   : > { %v827_v10 = vadd.f32 %v826_v6, %v8243_v19  ;;  %v828_v11 = vpop.f32.mrb[6].mxu0  ;;  %v1229_v12 = vpack.c.bf16 %v1166_v17, %v1165_v9  ;;  %v8257_v20 = vsel %vm1070_vm3, %v1006_v57, %v1134_v2 }
 0x27c   : > { %v975_v21 = vadd.f32 %v825_v3, %v8098_v23  ;;  %v829_v22 = vadd.f32 %v828_v11, %v8239_v18  ;;  %v830_v25 = vpop.f32.mrb[7].mxu0  ;;  %v1245_v28 = vpack.c.bf16 %v8257_v20, %v8255_v15 }
 0x27d   : > { %v1007_v31 = vadd.f32 %v827_v10, %v8098_v23  ;;  %v831_v34 = vadd.f32 %v830_v25, %v8243_v19  ;;  %6338 = vmatprep.mubr.bf16.mxu1 %v1229_v12 }
 0x27e   : > { %v976_v37 = vadd.f32 %v829_v22, %v8101_v24  ;;  %v1103_v40 = vmul.f32 0.01, %v975_v21  ;;  %vm1039_vm4 = vcmp.gt.f32.partialorder %v975_v21, 0.0 }
 0x27f   : > { %v1008_v46 = vadd.f32 %v831_v34, %v8101_v24  ;;  %v1135_v49 = vmul.f32 0.01, %v1007_v31  ;;  %vm1071_vm6 = vcmp.gt.f32.partialorder %v1007_v31, 0.0 }
 0x280   : > { %vm1040_vm5 = vcmp.gt.f32.partialorder %v976_v37, 0.0  ;;  %v1104_v55 = vmul.f32 0.01, %v976_v37  ;;  %v1167_v61 = vsel %vm1039_vm4, %v975_v21, %v1103_v40 }
 0x281   : > { %v834_v56 = vpop.f32.mrb[8].mxu0  ;;  %vm1072_vm7 = vcmp.gt.f32.partialorder %v1008_v46, 0.0  ;;  %v1136_v57 = vmul.f32 0.01, %v1008_v46  ;;  %v8269_v6 = vsel %vm1071_vm6, %v1007_v31, %v1135_v49 }
 0x282   : > { %v835_v23 = vadd.f32 %v834_v56, %v8239_v18  ;;  %v836_v60 = vpop.f32.mrb[9].mxu0  ;;  %v1168_v62 = vsel %vm1040_vm5, %v976_v37, %v1104_v55 }
 0x283   : > { %v837_v2 = vadd.f32 %v836_v60, %v8243_v19  ;;  %v838_v3 = vpop.f32.mrb[10].mxu0  ;;  %v1230_v24 = vpack.c.bf16 %v1168_v62, %v1167_v61  ;;  %v8271_v9 = vsel %vm1072_vm7, %v1008_v46, %v1136_v57 }
 0x284   : > { %v977_v17 = vadd.f32 %v835_v23, %v8107_v26  ;;  %v839_v10 = vadd.f32 %v838_v3, %v8239_v18  ;;  %v840_v11 = vpop.f32.mrb[11].mxu0  ;;  %v1246_v12 = vpack.c.bf16 %v8271_v9, %v8269_v6  ;;  %v8496_v6 = vld [vmem:[#allocation10] ss:$0 sm:$0xff] }
 0x285   : > { %v1009_v21 = vadd.f32 %v837_v2, %v8107_v26  ;;  %v841_v22 = vadd.f32 %v840_v11, %v8243_v19  ;;  %6339 = vmatmul.mubr.bf16.vlgmr.msra.gmra.mrb[0].mxu1 %v1230_v24 }
 0x286   : > { %v978_v25 = vadd.f32 %v839_v10, %v8110_v27  ;;  %v1105_v34 = vmul.f32 0.01, %v977_v17  ;;  %vm1041_vm8 = vcmp.gt.f32.partialorder %v977_v17, 0.0 }
 0x287   : > { %v1010_v31 = vadd.f32 %v841_v22, %v8110_v27  ;;  %v1137_v37 = vmul.f32 0.01, %v1009_v21  ;;  %vm1073_vm10 = vcmp.gt.f32.partialorder %v1009_v21, 0.0 }
 0x288   : > { %vm1042_vm9 = vcmp.gt.f32.partialorder %v978_v25, 0.0  ;;  %v1106_v40 = vmul.f32 0.01, %v978_v25  ;;  %v1169_v26 = vsel %vm1041_vm8, %v977_v17, %v1105_v34  ;;  %v7051_v34 = vld [vmem:[#allocation11 + $0x34] ss:$8 sps:$4 sm:$0xff]  }
 0x289   : > { %v844_v43 = vpop.f32.mrb[12].mxu0  ;;  %vm1074_vm11 = vcmp.gt.f32.partialorder %v1010_v31, 0.0  ;;  %v1138_v46 = vmul.f32 0.01, %v1010_v31  ;;  %v8283_v60 = vsel %vm1073_vm10, %v1009_v21, %v1137_v37  ;;  %v7049_v21 = vld [vmem:[#allocation11 + $0x30] ss:$8 sps:$4 sm:$0xff]   ;;  %1959 = vmatprep.subr.bf16.mxu0 %v7051_v34 }
 0x28a   : > { %v845_v49 = vadd.f32 %v844_v43, %v8239_v18  ;;  %v846_v52 = vpop.f32.mrb[13].mxu0  ;;  %v1170_v55 = vsel %vm1042_vm9, %v978_v25, %v1106_v40  ;;  %1960 = vmatpush1.bf16.msra.mxu0 %v7049_v21 }
 0x28b   : > { %v847_v56 = vadd.f32 %v846_v52, %v8243_v19  ;;  %v848_v57 = vpop.f32.mrb[14].mxu0  ;;  %v1231_v23 = vpack.c.bf16 %v1170_v55, %v1169_v26  ;;  %v8285_v27 = vsel %vm1074_vm11, %v1010_v31, %v1138_v46 }
 0x28c   : > { %v979_v61 = vadd.f32 %v845_v49, %v8117_v29  ;;  %v849_v62 = vadd.f32 %v848_v57, %v8239_v18  ;;  %v850_v2 = vpop.f32.mrb[15].mxu0  ;;  %v1247_v3 = vpack.c.bf16 %v8285_v27, %v8283_v60 }
 0x28d   : > { %v1011_v24 = vadd.f32 %v847_v56, %v8117_v29  ;;  %v851_v17 = vadd.f32 %v850_v2, %v8243_v19  ;;  %6342 = vmatprep.mubr.bf16.mxu1 %v1231_v23 }
 0x28e   : > { %v980_v10 = vadd.f32 %v849_v62, %v8120_v30  ;;  %v1107_v11 = vmul.f32 0.01, %v979_v61  ;;  %vm1043_vm12 = vcmp.gt.f32.partialorder %v979_v61, 0.0 }
 0x28f   : > { %v1012_v22 = vadd.f32 %v851_v17, %v8120_v30  ;;  %v1139_v25 = vmul.f32 0.01, %v1011_v24  ;;  %vm1075_vm14 = vcmp.gt.f32.partialorder %v1011_v24, 0.0 }
 0x290   : > { %vm1044_vm13 = vcmp.gt.f32.partialorder %v980_v10, 0.0  ;;  %v1108_v31 = vmul.f32 0.01, %v980_v10  ;;  %v1171_v46 = vsel %vm1043_vm12, %v979_v61, %v1107_v11 }
 0x291   : > { %v854_v37 = vpop.f32.mrb[16].mxu0  ;;  %vm1076_vm15 = vcmp.gt.f32.partialorder %v1012_v22, 0.0  ;;  %v1140_v40 = vmul.f32 0.01, %v1012_v22  ;;  %v8297_v55 = vsel %vm1075_vm14, %v1011_v24, %v1139_v25 }
 0x292   : > { %v855_v29 = vadd.f32 %v854_v37, %v8239_v18  ;;  %v856_v43 = vpop.f32.mrb[17].mxu0  ;;  %v1172_v49 = vsel %vm1044_vm13, %v980_v10, %v1108_v31 }
 0x293   : > { %v857_v52 = vadd.f32 %v856_v43, %v8243_v19  ;;  %v858_v26 = vpop.f32.mrb[18].mxu0  ;;  %v1232_v30 = vpack.c.bf16 %v1172_v49, %v1171_v46  ;;  %v8299_v56 = vsel %vm1076_vm15, %v1012_v22, %v1140_v40 }
 0x294   : > { %v981_v57 = vadd.f32 %v855_v29, %v8126_v32  ;;  %v859_v23 = vadd.f32 %v858_v26, %v8239_v18  ;;  %v860_v62 = vpop.f32.mrb[19].mxu0  ;;  %v1248_v2 = vpack.c.bf16 %v8299_v56, %v8297_v55 }
 0x295   : > { %v1013_v61 = vadd.f32 %v857_v52, %v8126_v32  ;;  %v861_v17 = vadd.f32 %v860_v62, %v8243_v19  ;;  %6343 = vmatmul.mubr.bf16.gmra.mrb[4].mxu1 %v1232_v30 }
 0x296   : > { %v982_v10 = vadd.f32 %v859_v23, %v8129_v33  ;;  %v1109_v11 = vmul.f32 0.01, %v981_v57  ;;  %vm1045_vm0 = vcmp.gt.f32.partialorder %v981_v57, 0.0 }
 0x297   : > { %v1014_v24 = vadd.f32 %v861_v17, %v8129_v33  ;;  %v1141_v21 = vmul.f32 0.01, %v1013_v61  ;;  %vm1077_vm2 = vcmp.gt.f32.partialorder %v1013_v61, 0.0 }
 0x298   : > { %vm1046_vm1 = vcmp.gt.f32.partialorder %v982_v10, 0.0  ;;  %v1110_v22 = vmul.f32 0.01, %v982_v10  ;;  %v1173_v32 = vsel %vm1045_vm0, %v981_v57, %v1109_v11 }
 0x299   : > { %v864_v25 = vpop.f32.mrb[20].mxu0  ;;  %vm1078_vm3 = vcmp.gt.f32.partialorder %v1014_v24, 0.0  ;;  %v1142_v34 = vmul.f32 0.01, %v1014_v24  ;;  %v8311_v49 = vsel %vm1077_vm2, %v1013_v61, %v1141_v21  ;;  %v7052_v61 = vld [vmem:[#allocation11 + $0x40] ss:$8 sps:$4 sm:$0xff]  }
 0x29a   : > { %v865_v31 = vadd.f32 %v864_v25, %v8239_v18  ;;  %v866_v37 = vpop.f32.mrb[21].mxu0  ;;  %v1174_v40 = vsel %vm1046_vm1, %v982_v10, %v1110_v22  ;;  %v7054_v21 = vld [vmem:[#allocation11 + $0x44] ss:$8 sps:$4 sm:$0xff]  }
 0x29b   : > { %v867_v29 = vadd.f32 %v866_v37, %v8243_v19  ;;  %v868_v43 = vpop.f32.mrb[22].mxu0  ;;  %v1233_v46 = vpack.c.bf16 %v1174_v40, %v1173_v32  ;;  %v8313_v33 = vsel %vm1078_vm3, %v1014_v24, %v1142_v34  ;;  %1961 = vmatprep.subr.bf16.mxu0 %v7054_v21 }
 0x29c   : > { %v983_v52 = vadd.f32 %v865_v31, %v8135_v35  ;;  %v869_v26 = vadd.f32 %v868_v43, %v8239_v18  ;;  %v870_v30 = vpop.f32.mrb[23].mxu0  ;;  %v1249_v23 = vpack.c.bf16 %v8313_v33, %v8311_v49  ;;  %1962 = vmatpush1.bf16.msra.mxu0 %v7052_v61 }
 0x29d   : > { %v1015_v62 = vadd.f32 %v867_v29, %v8135_v35  ;;  %v871_v57 = vadd.f32 %v870_v30, %v8243_v19  ;;  %6346 = vmatprep.mubr.bf16.mxu1 %v1233_v46 }
 0x29e   : > { %v984_v17 = vadd.f32 %v869_v26, %v8138_v36  ;;  %v1111_v10 = vmul.f32 0.01, %v983_v52  ;;  %vm1047_vm4 = vcmp.gt.f32.partialorder %v983_v52, 0.0 }
 0x29f   : > { %v1016_v11 = vadd.f32 %v871_v57, %v8138_v36  ;;  %v1143_v24 = vmul.f32 0.01, %v1015_v62  ;;  %vm1079_vm6 = vcmp.gt.f32.partialorder %v1015_v62, 0.0 }
 0x2a0   : > { %vm1048_vm5 = vcmp.gt.f32.partialorder %v984_v17, 0.0  ;;  %v1112_v22 = vmul.f32 0.01, %v984_v17  ;;  %v1175_v37 = vsel %vm1047_vm4, %v983_v52, %v1111_v10 }
 0x2a1   : > { %v874_v25 = vpop.f32.mrb[24].mxu0  ;;  %vm1080_vm7 = vcmp.gt.f32.partialorder %v1016_v11, 0.0  ;;  %v1144_v34 = vmul.f32 0.01, %v1016_v11  ;;  %v8325_v43 = vsel %vm1079_vm6, %v1015_v62, %v1143_v24 }
 0x2a2   : > { %v875_v35 = vadd.f32 %v874_v25, %v8239_v18  ;;  %v876_v31 = vpop.f32.mrb[25].mxu0  ;;  %v1176_v32 = vsel %vm1048_vm5, %v984_v17, %v1112_v22 }
 0x2a3   : > { %v877_v40 = vadd.f32 %v876_v31, %v8243_v19  ;;  %v878_v29 = vpop.f32.mrb[26].mxu0  ;;  %v1234_v36 = vpack.c.bf16 %v1176_v32, %v1175_v37  ;;  %v8327_v46 = vsel %vm1080_vm7, %v1016_v11, %v1144_v34 }
 0x2a4   : > { %v985_v26 = vadd.f32 %v875_v35, %v8144_v38  ;;  %v879_v30 = vadd.f32 %v878_v29, %v8239_v18  ;;  %v880_v57 = vpop.f32.mrb[27].mxu0  ;;  %v1250_v21 = vpack.c.bf16 %v8327_v46, %v8325_v43 }
 0x2a5   : > { %v1017_v52 = vadd.f32 %v877_v40, %v8144_v38  ;;  %v881_v17 = vadd.f32 %v880_v57, %v8243_v19  ;;  %6347 = vmatmul.mubr.bf16.gmra.mrb[8].mxu1 %v1234_v36 }
 0x2a6   : > { %v986_v10 = vadd.f32 %v879_v30, %v8147_v39  ;;  %v1113_v61 = vmul.f32 0.01, %v985_v26  ;;  %vm1049_vm8 = vcmp.gt.f32.partialorder %v985_v26, 0.0 }
 0x2a7   : > { %v1018_v62 = vadd.f32 %v881_v17, %v8147_v39  ;;  %v1145_v11 = vmul.f32 0.01, %v1017_v52  ;;  %vm1081_vm10 = vcmp.gt.f32.partialorder %v1017_v52, 0.0 }
 0x2a8   : > { %vm1050_vm9 = vcmp.gt.f32.partialorder %v986_v10, 0.0  ;;  %v1114_v24 = vmul.f32 0.01, %v986_v10  ;;  %v1177_v38 = vsel %vm1049_vm8, %v985_v26, %v1113_v61 }
 0x2a9   : > { %v884_v22 = vpop.f32.mrb[28].mxu0  ;;  %vm1082_vm11 = vcmp.gt.f32.partialorder %v1018_v62, 0.0  ;;  %v1146_v25 = vmul.f32 0.01, %v1018_v62  ;;  %v8339_v29 = vsel %vm1081_vm10, %v1017_v52, %v1145_v11  ;;  %v7055_v52 = vld [vmem:[#allocation11 + $0x50] ss:$8 sps:$4 sm:$0xff]  }
 0x2aa   : > { %v885_v34 = vadd.f32 %v884_v22, %v8239_v18  ;;  %v886_v35 = vpop.f32.mrb[29].mxu0  ;;  %v1178_v31 = vsel %vm1050_vm9, %v986_v10, %v1114_v24  ;;  %v7057_v24 = vld [vmem:[#allocation11 + $0x54] ss:$8 sps:$4 sm:$0xff]  }
 0x2ab   : > { %v887_v37 = vadd.f32 %v886_v35, %v8243_v19  ;;  %v888_v32 = vpop.f32.mrb[30].mxu0  ;;  %v1235_v40 = vpack.c.bf16 %v1178_v31, %v1177_v38  ;;  %v8341_v39 = vsel %vm1082_vm11, %v1018_v62, %v1146_v25  ;;  %1963 = vmatprep.subr.bf16.mxu0 %v7057_v24 }
 0x2ac   : > { %v987_v36 = vadd.f32 %v885_v34, %v8153_v41  ;;  %v889_v30 = vadd.f32 %v888_v32, %v8239_v18  ;;  %v890_v57 = vpop.f32.mrb[31].mxu0  ;;  %v1251_v17 = vpack.c.bf16 %v8341_v39, %v8339_v29  ;;  %1964 = vmatpush1.bf16.msra.mxu0 %v7055_v52  ;;  %v7060_v52 = vld [vmem:[#allocation11 + $0x64] ss:$8 sps:$4 sm:$0xff]  }
 0x2ad   : > { %v1019_v22 = vadd.f32 %v887_v37, %v8153_v41  ;;  %v891_v26 = vadd.f32 %v890_v57, %v8243_v19  ;;  %6350 = vmatprep.mubr.bf16.mxu1 %v1235_v40  ;;  %1965 = vmatprep.subr.bf16.mxu0 %v7060_v52 }
 0x2ae   : > { %v988_v10 = vadd.f32 %v889_v30, %v8156_v42  ;;  %v1115_v61 = vmul.f32 0.01, %v987_v36  ;;  %vm1051_vm12 = vcmp.gt.f32.partialorder %v987_v36, 0.0 }
 0x2af   : > { %v1020_v62 = vadd.f32 %v891_v26, %v8156_v42  ;;  %v1147_v11 = vmul.f32 0.01, %v1019_v22  ;;  %vm1083_vm14 = vcmp.gt.f32.partialorder %v1019_v22, 0.0 }
 0x2b0   : > { %vm1052_vm13 = vcmp.gt.f32.partialorder %v988_v10, 0.0  ;;  %v1116_v25 = vmul.f32 0.01, %v988_v10  ;;  %v1179_v31 = vsel %vm1051_vm12, %v987_v36, %v1115_v61  ;;  %v7058_v61 = vld [vmem:[#allocation11 + $0x60] ss:$8 sps:$4 sm:$0xff]  }
 0x2b1   : > { %v894_v34 = vpop.f32.mrb[32].mxu0  ;;  %vm1084_vm15 = vcmp.gt.f32.partialorder %v1020_v62, 0.0  ;;  %v1148_v35 = vmul.f32 0.01, %v1020_v62  ;;  %v8353_v30 = vsel %vm1083_vm14, %v1019_v22, %v1147_v11  ;;  %1966 = vmatpush1.bf16.msra.mxu0 %v7058_v61 }
 0x2b2   : > { %v895_v41 = vadd.f32 %v894_v34, %v8239_v18  ;;  %v896_v38 = vpop.f32.mrb[33].mxu0  ;;  %v1180_v37 = vsel %vm1052_vm13, %v988_v10, %v1116_v25 }
 0x2b3   : > { %v897_v32 = vadd.f32 %v896_v38, %v8243_v19  ;;  %v898_v40 = vpop.f32.mrb[34].mxu0  ;;  %v1236_v42 = vpack.c.bf16 %v1180_v37, %v1179_v31  ;;  %v8355_v57 = vsel %vm1084_vm15, %v1020_v62, %v1148_v35  ;;  %v7063_v62 = vld [vmem:[#allocation11 + $0x74] ss:$8 sps:$4 sm:$0xff]  }
 0x2b4   : > { %v989_v26 = vadd.f32 %v895_v41, %v8162_v44  ;;  %v899_v16 = vadd.f32 %v898_v40, %v8239_v18  ;;  %v900_v14 = vpop.f32.mrb[35].mxu0  ;;  %v1252_v24 = vpack.c.bf16 %v8355_v57, %v8353_v30  ;;  %v7061_v41 = vld [vmem:[#allocation11 + $0x70] ss:$8 sps:$4 sm:$0xff]   ;;  %1967 = vmatprep.subr.bf16.mxu0 %v7063_v62  ;;  %v10123_v57 = vmov 0  }
 0x2b5   : > { %v1021_v36 = vadd.f32 %v897_v32, %v8162_v44  ;;  %v901_v10 = vadd.f32 %v900_v14, %v8243_v19  ;;  %6351 = vmatmul.mubr.bf16.gmra.mrb[12].mxu1 %v1236_v42  ;;  %1968 = vmatpush1.bf16.msra.mxu0 %v7061_v41 }
 0x2b6   : > { %v990_v22 = vadd.f32 %v899_v16, %v8165_v45  ;;  %v1117_v11 = vmul.f32 0.01, %v989_v26  ;;  %vm1053_vm0 = vcmp.gt.f32.partialorder %v989_v26, 0.0 }
 0x2b7   : > { %v1022_v25 = vadd.f32 %v901_v10, %v8165_v45  ;;  %v1149_v34 = vmul.f32 0.01, %v1021_v36  ;;  %vm1085_vm2 = vcmp.gt.f32.partialorder %v1021_v36, 0.0 }
 0x2b8   : > { %vm1054_vm1 = vcmp.gt.f32.partialorder %v990_v22, 0.0  ;;  %v1118_v35 = vmul.f32 0.01, %v990_v22  ;;  %v1181_v16 = vsel %vm1053_vm0, %v989_v26, %v1117_v11 }
 0x2b9   : > { %v904_v44 = vpop.f32.mrb[36].mxu0  ;;  %vm1086_vm3 = vcmp.gt.f32.partialorder %v1022_v25, 0.0  ;;  %v1150_v14 = vmul.f32 0.01, %v1022_v25  ;;  %v8367_v42 = vsel %vm1085_vm2, %v1021_v36, %v1149_v34 }
 0x2ba   : > { %v905_v38 = vadd.f32 %v904_v44, %v8239_v18  ;;  %v906_v31 = vpop.f32.mrb[37].mxu0  ;;  %v1182_v37 = vsel %vm1054_vm1, %v990_v22, %v1118_v35 }
 0x2bb   : > { %v907_v32 = vadd.f32 %v906_v31, %v8243_v19  ;;  %v908_v45 = vpop.f32.mrb[38].mxu0  ;;  %v1237_v40 = vpack.c.bf16 %v1182_v37, %v1181_v16  ;;  %v8369_v10 = vsel %vm1086_vm3, %v1022_v25, %v1150_v14 }
 0x2bc   : > { %v991_v61 = vadd.f32 %v905_v38, %v8171_v47  ;;  %v909_v52 = vadd.f32 %v908_v45, %v8239_v18  ;;  %v910_v0 = vpop.f32.mrb[39].mxu0 }
 0x2bd   : > { %v1023_v26 = vadd.f32 %v907_v32, %v8171_v47  ;;  %v911_v22 = vadd.f32 %v910_v0, %v8243_v19  ;;  %6354 = vmatprep.mubr.bf16.mxu1 %v1237_v40 }
 0x2be   : > { %v992_v11 = vadd.f32 %v909_v52, %v8174_v48  ;;  %v1119_v36 = vmul.f32 0.01, %v991_v61  ;;  %vm1055_vm4 = vcmp.gt.f32.partialorder %v991_v61, 0.0 }
 0x2bf   : > { %v1024_v25 = vadd.f32 %v911_v22, %v8174_v48  ;;  %v1151_v34 = vmul.f32 0.01, %v1023_v26  ;;  %vm1087_vm6 = vcmp.gt.f32.partialorder %v1023_v26, 0.0 }
 0x2c0   : > { %vm1056_vm5 = vcmp.gt.f32.partialorder %v992_v11, 0.0  ;;  %v1120_v35 = vmul.f32 0.01, %v992_v11  ;;  %v1183_v47 = vsel %vm1055_vm4, %v991_v61, %v1119_v36 }
 0x2c1   : > { %v914_v44 = vpop.f32.mrb[40].mxu0  ;;  %vm1088_vm7 = vcmp.gt.f32.partialorder %v1024_v25, 0.0  ;;  %v1152_v14 = vmul.f32 0.01, %v1024_v25  ;;  %v8381_v32 = vsel %vm1087_vm6, %v1023_v26, %v1151_v34 }
 0x2c2   : > { %v915_v41 = vadd.f32 %v914_v44, %v8239_v18  ;;  %v916_v38 = vpop.f32.mrb[41].mxu0  ;;  %v1184_v31 = vsel %vm1056_vm5, %v992_v11, %v1120_v35 }
 0x2c3   : > { %v917_v0 = vadd.f32 %v916_v38, %v8243_v19  ;;  %v918_v16 = vpop.f32.mrb[42].mxu0  ;;  %v1238_v37 = vpack.c.bf16 %v1184_v31, %v1183_v47  ;;  %v8383_v48 = vsel %vm1088_vm7, %v1024_v25, %v1152_v14 }
 0x2c4   : > { %v993_v45 = vadd.f32 %v915_v41, %v8180_v50  ;;  %v919_v40 = vadd.f32 %v918_v16, %v8239_v18  ;;  %v920_v52 = vpop.f32.mrb[43].mxu0 }
 0x2c5   : > { %v1025_v44 = vadd.f32 %v917_v0, %v8180_v50  ;;  %v921_v61 = vadd.f32 %v920_v52, %v8243_v19  ;;  %6355 = vmatmul.mubr.bf16.gmra.mrb[16].mxu1 %v1238_v37 }
 0x2c6   : > { %v994_v11 = vadd.f32 %v919_v40, %v8183_v51  ;;  %v1121_v36 = vmul.f32 0.01, %v993_v45  ;;  %vm1057_vm8 = vcmp.gt.f32.partialorder %v993_v45, 0.0 }
 0x2c7   : > { %v1026_v26 = vadd.f32 %v921_v61, %v8183_v51  ;;  %v1153_v25 = vmul.f32 0.01, %v1025_v44  ;;  %vm1089_vm10 = vcmp.gt.f32.partialorder %v1025_v44, 0.0 }
 0x2c8   : > { %vm1058_vm9 = vcmp.gt.f32.partialorder %v994_v11, 0.0  ;;  %v1122_v34 = vmul.f32 0.01, %v994_v11  ;;  %v1185_v50 = vsel %vm1057_vm8, %v993_v45, %v1121_v36 }
 0x2c9   : > { %v924_v35 = vpop.f32.mrb[44].mxu0  ;;  %vm1090_vm11 = vcmp.gt.f32.partialorder %v1026_v26, 0.0  ;;  %v1154_v14 = vmul.f32 0.01, %v1026_v26  ;;  %v8395_v37 = vsel %vm1089_vm10, %v1025_v44, %v1153_v25 }
 0x2ca   : > { %v925_v41 = vadd.f32 %v924_v35, %v8239_v18  ;;  %v926_v38 = vpop.f32.mrb[45].mxu0  ;;  %v1186_v47 = vsel %vm1058_vm9, %v994_v11, %v1122_v34 }
 0x2cb   : > { %v927_v31 = vadd.f32 %v926_v38, %v8243_v19  ;;  %v928_v0 = vpop.f32.mrb[46].mxu0  ;;  %v1239_v16 = vpack.c.bf16 %v1186_v47, %v1185_v50  ;;  %v8397_v51 = vsel %vm1090_vm11, %v1026_v26, %v1154_v14 }
 0x2cc   : > { %v995_v40 = vadd.f32 %v925_v41, %v8189_v53  ;;  %v929_v52 = vadd.f32 %v928_v0, %v8239_v18  ;;  %v930_v61 = vpop.f32.mrb[47].mxu0  ;;  %v10120_v15 = vpack.c.bf16 %v8397_v51, %v8395_v37 }
 0x2cd   : > { %v1027_v35 = vadd.f32 %v927_v31, %v8189_v53  ;;  %v931_v45 = vadd.f32 %v930_v61, %v8243_v19  ;;  %6358 = vmatprep.mubr.bf16.mxu1 %v1239_v16 }
 0x2ce   : > { %v996_v11 = vadd.f32 %v929_v52, %v8192_v54  ;;  %v1123_v36 = vmul.f32 0.01, %v995_v40  ;;  %vm1059_vm12 = vcmp.gt.f32.partialorder %v995_v40, 0.0 }
 0x2cf   : > { %v1028_v44 = vadd.f32 %v931_v45, %v8192_v54  ;;  %v1155_v26 = vmul.f32 0.01, %v1027_v35  ;;  %vm1091_vm14 = vcmp.gt.f32.partialorder %v1027_v35, 0.0 }
 0x2d0   : > { %vm1060_vm13 = vcmp.gt.f32.partialorder %v996_v11, 0.0  ;;  %v1124_v25 = vmul.f32 0.01, %v996_v11  ;;  %v1187_v53 = vsel %vm1059_vm12, %v995_v40, %v1123_v36 }
 0x2d1   : > { %v934_v34 = vpop.f32.mrb[48].mxu0  ;;  %vm1092_vm15 = vcmp.gt.f32.partialorder %v1028_v44, 0.0  ;;  %v1156_v14 = vmul.f32 0.01, %v1028_v44  ;;  %v8409_v16 = vsel %vm1091_vm14, %v1027_v35, %v1155_v26 }
 0x2d2   : > { %v935_v41 = vadd.f32 %v934_v34, %v8239_v18  ;;  %v936_v38 = vpop.f32.mrb[49].mxu0  ;;  %v1188_v50 = vsel %vm1060_vm13, %v996_v11, %v1124_v25 }
 0x2d3   : > { %v937_v47 = vadd.f32 %v936_v38, %v8243_v19  ;;  %v938_v31 = vpop.f32.mrb[50].mxu0  ;;  %v1240_v0 = vpack.c.bf16 %v1188_v50, %v1187_v53  ;;  %v8411_v54 = vsel %vm1092_vm15, %v1028_v44, %v1156_v14 }
 0x2d4   : > { %v997_v52 = vadd.f32 %v935_v41, %v8198_v58  ;;  %v939_v61 = vadd.f32 %v938_v31, %v8239_v18  ;;  %v940_v45 = vpop.f32.mrb[51].mxu0  ;;  %v10121_v20 = vpack.c.bf16 %v8411_v54, %v8409_v16 }
 0x2d5   : > { %v1029_v34 = vadd.f32 %v937_v47, %v8198_v58  ;;  %v941_v40 = vadd.f32 %v940_v45, %v8243_v19  ;;  %6359 = vmatmul.mubr.bf16.gmra.mrb[20].mxu1 %v1240_v0 }
 0x2d6   : > { %v998_v11 = vadd.f32 %v939_v61, %v8201_v59  ;;  %v1125_v36 = vmul.f32 0.01, %v997_v52  ;;  %vm1061_vm0 = vcmp.gt.f32.partialorder %v997_v52, 0.0 }
 0x2d7   : > { %v1030_v35 = vadd.f32 %v941_v40, %v8201_v59  ;;  %v1157_v44 = vmul.f32 0.01, %v1029_v34  ;;  %vm1093_vm2 = vcmp.gt.f32.partialorder %v1029_v34, 0.0 }
 0x2d8   : > { %vm1062_vm1 = vcmp.gt.f32.partialorder %v998_v11, 0.0  ;;  %v1126_v26 = vmul.f32 0.01, %v998_v11  ;;  %v1189_v58 = vsel %vm1061_vm0, %v997_v52, %v1125_v36 }
 0x2d9   : > { %v944_v25 = vpop.f32.mrb[52].mxu0  ;;  %vm1094_vm3 = vcmp.gt.f32.partialorder %v1030_v35, 0.0  ;;  %v1158_v14 = vmul.f32 0.01, %v1030_v35  ;;  %v8423_v0 = vsel %vm1093_vm2, %v1029_v34, %v1157_v44 }
 0x2da   : > { %v945_v41 = vadd.f32 %v944_v25, %v8239_v18  ;;  %v946_v38 = vpop.f32.mrb[53].mxu0  ;;  %v1190_v53 = vsel %vm1062_vm1, %v998_v11, %v1126_v26 }
 0x2db   : > { %v947_v50 = vadd.f32 %v946_v38, %v8243_v19  ;;  %v948_v47 = vpop.f32.mrb[54].mxu0  ;;  %v1241_v31 = vpack.c.bf16 %v1190_v53, %v1189_v58  ;;  %v8425_v59 = vsel %vm1094_vm3, %v1030_v35, %v1158_v14 }
 0x2dc   : > { %v999_v61 = vadd.f32 %v945_v41, %v8207_v63  ;;  %v949_v45 = vadd.f32 %v948_v47, %v8239_v18  ;;  %v950_v40 = vpop.f32.mrb[55].mxu0 }
 0x2dd   : > { %v1031_v25 = vadd.f32 %v947_v50, %v8207_v63  ;;  %v951_v52 = vadd.f32 %v950_v40, %v8243_v19  ;;  %6362 = vmatprep.mubr.bf16.mxu1 %v1241_v31 }
 0x2de   : > { %v1000_v11 = vadd.f32 %v949_v45, %v8210_v1  ;;  %v1127_v36 = vmul.f32 0.01, %v999_v61  ;;  %vm1063_vm4 = vcmp.gt.f32.partialorder %v999_v61, 0.0 }
 0x2df   : > { %v1032_v34 = vadd.f32 %v951_v52, %v8210_v1  ;;  %v1159_v35 = vmul.f32 0.01, %v1031_v25  ;;  %vm1095_vm6 = vcmp.gt.f32.partialorder %v1031_v25, 0.0 }
 0x2e0   : > { %vm1064_vm5 = vcmp.gt.f32.partialorder %v1000_v11, 0.0  ;;  %v1128_v44 = vmul.f32 0.01, %v1000_v11  ;;  %v1191_v63 = vsel %vm1063_vm4, %v999_v61, %v1127_v36 }
 0x2e1   : > { %v954_v26 = vpop.f32.mrb[56].mxu0  ;;  %vm1096_vm7 = vcmp.gt.f32.partialorder %v1032_v34, 0.0  ;;  %v1160_v14 = vmul.f32 0.01, %v1032_v34  ;;  %v8437_v31 = vsel %vm1095_vm6, %v1031_v25, %v1159_v35 }
 0x2e2   : > { %v955_v41 = vadd.f32 %v954_v26, %v8239_v18  ;;  %v956_v38 = vpop.f32.mrb[57].mxu0  ;;  %v1192_v58 = vsel %vm1064_vm5, %v1000_v11, %v1128_v44 }
 0x2e3   : > { %v957_v53 = vadd.f32 %v956_v38, %v8243_v19  ;;  %v958_v50 = vpop.f32.mrb[58].mxu0  ;;  %v1242_v47 = vpack.c.bf16 %v1192_v58, %v1191_v63  ;;  %v8439_v1 = vsel %vm1096_vm7, %v1032_v34, %v1160_v14 }
 0x2e4   : > { %v1001_v45 = vadd.f32 %v955_v41, %v8216_v4  ;;  %v959_v40 = vadd.f32 %v958_v50, %v8239_v18  ;;  %v960_v52 = vpop.f32.mrb[59].mxu0  ;;  %v1258_v22 = vpack.c.bf16 %v8439_v1, %v8437_v31 }
 0x2e5   : > { %v1033_v26 = vadd.f32 %v957_v53, %v8216_v4  ;;  %v961_v61 = vadd.f32 %v960_v52, %v8243_v19  ;;  %6363 = vmatmul.mubr.bf16.gmra.mrb[24].mxu1 %v1242_v47 }
 0x2e6   : > { %v1002_v11 = vadd.f32 %v959_v40, %v8219_v5  ;;  %v1129_v36 = vmul.f32 0.01, %v1001_v45  ;;  %vm1065_vm8 = vcmp.gt.f32.partialorder %v1001_v45, 0.0 }
 0x2e7   : > { %v1034_v25 = vadd.f32 %v961_v61, %v8219_v5  ;;  %v1161_v34 = vmul.f32 0.01, %v1033_v26  ;;  %vm1097_vm10 = vcmp.gt.f32.partialorder %v1033_v26, 0.0 }
 0x2e8   : > { %vm1066_vm9 = vcmp.gt.f32.partialorder %v1002_v11, 0.0  ;;  %v1130_v35 = vmul.f32 0.01, %v1002_v11  ;;  %v1193_v4 = vsel %vm1065_vm8, %v1001_v45, %v1129_v36 }
 0x2e9   : > { %v964_v44 = vpop.f32.mrb[60].mxu0  ;;  %vm1098_vm11 = vcmp.gt.f32.partialorder %v1034_v25, 0.0  ;;  %v1162_v14 = vmul.f32 0.01, %v1034_v25  ;;  %v1225_v47 = vsel %vm1097_vm10, %v1033_v26, %v1161_v34 }
 0x2ea   : > { %v965_v41 = vadd.f32 %v964_v44, %v8239_v18  ;;  %v966_v38 = vpop.f32.mrb[61].mxu0  ;;  %v1194_v63 = vsel %vm1066_vm9, %v1002_v11, %v1130_v35 }
 0x2eb   : > { %v967_v58 = vadd.f32 %v966_v38, %v8243_v19  ;;  %v968_v53 = vpop.f32.mrb[62].mxu0  ;;  %v1243_v50 = vpack.c.bf16 %v1194_v63, %v1193_v4  ;;  %v1226_v31 = vsel %vm1098_vm11, %v1034_v25, %v1162_v14 }
 0x2ec   : > { %v1003_v5 = vadd.f32 %v965_v41, %v8225_v7  ;;  %v969_v1 = vadd.f32 %v968_v53, %v8239_v18  ;;  %v970_v40 = vpop.f32.mrb[63].mxu0  ;;  %v1259_v52 = vpack.c.bf16 %v1226_v31, %v1225_v47 }
 0x2ed   : > { %v1035_v61 = vadd.f32 %v967_v58, %v8225_v7  ;;  %v971_v62 = vadd.f32 %v970_v40, %v8243_v19  ;;  %6366 = vmatprep.mubr.bf16.mxu1 %v1243_v50  ;;  %v10119_v19 = vpack.c.bf16 %v8383_v48, %v8381_v32 }
 0x2ee   : > { %v1004_v45 = vadd.f32 %v969_v1, %v8228_v8  ;;  %v1131_v11 = vmul.f32 0.01, %v1003_v5  ;;  %vm1067_vm12 = vcmp.gt.f32.partialorder %v1003_v5, 0.0 }
 0x2ef   : > { %v1036_v36 = vadd.f32 %v971_v62, %v8228_v8  ;;  %v1163_v35 = vmul.f32 0.01, %v1035_v61  ;;  %vm1099_vm14 = vcmp.gt.f32.partialorder %v1035_v61, 0.0  ;;  %v10118_v8 = vpack.c.bf16 %v8369_v10, %v8367_v42 }
 0x2f0   : > { %vm1068_vm13 = vcmp.gt.f32.partialorder %v1004_v45, 0.0  ;;  %v1132_v26 = vmul.f32 0.01, %v1004_v45  ;;  %v1195_v18 = vsel %vm1067_vm12, %v1003_v5, %v1131_v11 }
 0x2f1   : > { %vm1100_vm15 = vcmp.gt.f32.partialorder %v1036_v36, 0.0  ;;  %v1164_v25 = vmul.f32 0.01, %v1036_v36  ;;  %v1227_v14 = vsel %vm1099_vm14, %v1035_v61, %v1163_v35 }
 0x2f2   : > { %v1196_v34 = vsel %vm1068_vm13, %v1004_v45, %v1132_v26 }
 0x2f3   : > { %v1244_v44 = vpack.c.bf16 %v1196_v34, %v1195_v18  ;;  %v1228_v7 = vsel %vm1100_vm15, %v1036_v36, %v1164_v25 }
 0x2f4   : > { %v1260_v41 = vpack.c.bf16 %v1228_v7, %v1227_v14 }
 0x2f5   : > { %6367 = vmatmul.mubr.bf16.gmra.mrb[28].mxu1 %v1244_v44 }
 0x2f6   : > { %6370 = vmatprep.mubr.bf16.mxu1 %v1245_v28  ;;  %v10122_v28 = vpack.c.bf16 %v8425_v59, %v8423_v0 }
 0x2fd   : > { %6371 = vmatmul.mubr.bf16.gmra.mrb[32].mxu1 %v1246_v12 }
 0x2fe   : > { %6374 = vmatprep.mubr.bf16.mxu1 %v1247_v3 }
 0x305   : > { %6375 = vmatmul.mubr.bf16.gmra.mrb[36].mxu1 %v1248_v2 }
 0x306   : > { %6378 = vmatprep.mubr.bf16.mxu1 %v1249_v23 }
 0x30d   : > { %6379 = vmatmul.mubr.bf16.gmra.mrb[40].mxu1 %v1250_v21 }
 0x30e   : > { %6382 = vmatprep.mubr.bf16.mxu1 %v1251_v17 }
 0x315   : > { %6383 = vmatmul.mubr.bf16.gmra.mrb[44].mxu1 %v1252_v24 }
 0x316   : > { %6386 = vmatprep.mubr.bf16.mxu1 %v10118_v8 }
 0x31d   : > { %6387 = vmatmul.mubr.bf16.gmra.mrb[48].mxu1 %v10119_v19 }
 0x31e   : > { %6390 = vmatprep.mubr.bf16.mxu1 %v10120_v15 }
 0x325   : > { %6391 = vmatmul.mubr.bf16.gmra.mrb[52].mxu1 %v10121_v20 }
 0x326   : > { %6394 = vmatprep.mubr.bf16.mxu1 %v10122_v28 }
 0x32d   : > { %6395 = vmatmul.mubr.bf16.gmra.mrb[56].mxu1 %v1258_v22 }
 0x32e   : > { %6398 = vmatprep.mubr.bf16.mxu1 %v1259_v52 }
 0x335   : > { %6399 = vmatmul.mubr.bf16.gmra.mrb[60].mxu1 %v1260_v41 }
 0x358   : > { %v6340_v9 = vpop.f32.mrb[0].mxu1 }
 0x359   : > { %v1375_v12 = vadd.f32 %v6340_v9, %v8496_v6  ;;  %v1366_v60 = vpop.f32.mrb[1].mxu1 }
 0x35a   : > { %v1367_v27 = vadd.f32 %v8496_v6, %v1366_v60  ;;  %v6341_v3 = vpop.f32.mrb[2].mxu1 }
 0x35b   : > { %v1687_v55 = vmul.f32 0.01, %v1375_v12  ;;  %v1378_v56 = vadd.f32 %v6341_v3, %v8496_v6  ;;  %v1369_v2 = vpop.f32.mrb[3].mxu1  ;;  %vm1623_vm0 = vcmp.gt.f32.partialorder %v1375_v12, 0.0 }
 0x35c   : > { %v1685_v49 = vmul.f32 0.01, %v1367_v27  ;;  %v1370_v33 = vadd.f32 %v8496_v6, %v1369_v2  ;;  %vm1621_vm1 = vcmp.gt.f32.partialorder %v1367_v27, 0.0 }
 0x35d   : > { %v1688_v23 = vmul.f32 0.01, %v1378_v56  ;;  %vm1624_vm2 = vcmp.gt.f32.partialorder %v1378_v56, 0.0  ;;  %v1751_v46 = vsel %vm1623_vm0, %v1375_v12, %v1687_v55 }
 0x35e   : > { %vm1622_vm3 = vcmp.gt.f32.partialorder %v1370_v33, 0.0  ;;  %v1686_v43 = vmul.f32 0.01, %v1370_v33  ;;  %v1749_v29 = vsel %vm1621_vm1, %v1367_v27, %v1685_v49 }
 0x35f   : > { %v1752_v21 = vsel %vm1624_vm2, %v1378_v56, %v1688_v23 }
 0x360   : > { %v1750_v39 = vsel %vm1622_vm3, %v1370_v33, %v1686_v43  ;;  %v1814_v17 = vpack.c.bf16 %v1752_v21, %v1751_v46 }
 0x361   : > { %v1813_v30 = vpack.c.bf16 %v1750_v39, %v1749_v29 }
 0x363   : > { %1986 = vmatmul.mubr.bf16.vlgmr.msra.gmra.mrb[64].mxu0 %v1813_v30 }
 0x364   : > { %1995 = vmatprep.mubr.bf16.mxu0 %v10123_v57 }
 0x368   : > { %v6344_v24 = vpop.f32.mrb[4].mxu1 }
 0x369   : > { %v1391_v42 = vadd.f32 %v6344_v24, %v8496_v6  ;;  %v1382_v10 = vpop.f32.mrb[5].mxu1 }
 0x36a   : > { %v1383_v62 = vadd.f32 %v8496_v6, %v1382_v10  ;;  %v6345_v32 = vpop.f32.mrb[6].mxu1 }
 0x36b   : > { %v1691_v48 = vmul.f32 0.01, %v1391_v42  ;;  %v1394_v22 = vadd.f32 %v6345_v32, %v8496_v6  ;;  %v1385_v37 = vpop.f32.mrb[7].mxu1  ;;  %1996 = vmatmul.mubr.bf16.gmra.mrb[68].mxu0 %v1814_v17  ;;  %vm1627_vm4 = vcmp.gt.f32.partialorder %v1391_v42, 0.0 }
 0x36c   : > { %v1689_v51 = vmul.f32 0.01, %v1383_v62  ;;  %v1386_v16 = vadd.f32 %v8496_v6, %v1385_v37  ;;  %2005 = vmatprep.mubr.bf16.mxu0 %v10123_v57  ;;  %vm1625_vm5 = vcmp.gt.f32.partialorder %v1383_v62, 0.0 }
 0x36d   : > { %v1692_v54 = vmul.f32 0.01, %v1394_v22  ;;  %vm1628_vm6 = vcmp.gt.f32.partialorder %v1394_v22, 0.0  ;;  %v1755_v59 = vsel %vm1627_vm4, %v1391_v42, %v1691_v48 }
 0x36e   : > { %v1690_v0 = vmul.f32 0.01, %v1386_v16  ;;  %vm1626_vm7 = vcmp.gt.f32.partialorder %v1386_v16, 0.0  ;;  %v1753_v4 = vsel %vm1625_vm5, %v1383_v62, %v1689_v51 }
 0x36f   : > { %v1756_v38 = vsel %vm1628_vm6, %v1394_v22, %v1692_v54 }
 0x370   : > { %v1754_v63 = vsel %vm1626_vm7, %v1386_v16, %v1690_v0  ;;  %v1816_v58 = vpack.c.bf16 %v1756_v38, %v1755_v59  ;;  %v7064_v0 = vld [vmem:[#allocation14] sm:$0xff]  }
 0x371   : > { %v1815_v53 = vpack.c.bf16 %v1754_v63, %v1753_v4  ;;  %6402 = vmatprep.subr.bf16.mxu1 %v7064_v0 }
 0x372   : > { %6403 = vmatpush3.bf16.msra.mxu1 %v7064_v0 }
 0x373   : > { %2006 = vmatmul.mubr.bf16.gmra.mrb[72].mxu0 %v1815_v53 }
 0x374   : > { %2015 = vmatprep.mubr.bf16.mxu0 %v10123_v57 }
 0x378   : > { %v6348_v50 = vpop.f32.mrb[8].mxu1 }
 0x379   : > { %v1407_v47 = vadd.f32 %v6348_v50, %v8496_v6  ;;  %v1398_v31 = vpop.f32.mrb[9].mxu1 }
 0x37a   : > { %v1399_v5 = vadd.f32 %v8496_v6, %v1398_v31  ;;  %v6349_v1 = vpop.f32.mrb[10].mxu1  ;;  %v7065_v31 = vld [vmem:[#allocation14 + $0x8] sm:$0xff]  }
 0x37b   : > { %v1695_v40 = vmul.f32 0.01, %v1407_v47  ;;  %v1410_v52 = vadd.f32 %v6349_v1, %v8496_v6  ;;  %v1401_v61 = vpop.f32.mrb[11].mxu1  ;;  %2016 = vmatmul.mubr.bf16.gmra.mrb[76].mxu0 %v1816_v58  ;;  %vm1631_vm8 = vcmp.gt.f32.partialorder %v1407_v47, 0.0  ;;  %6404 = vmatprep.subr.bf16.mxu1 %v7065_v31 }
 0x37c   : > { %v1693_v45 = vmul.f32 0.01, %v1399_v5  ;;  %v1402_v11 = vadd.f32 %v8496_v6, %v1401_v61  ;;  %2025 = vmatprep.mubr.bf16.mxu0 %v10123_v57  ;;  %vm1629_vm9 = vcmp.gt.f32.partialorder %v1399_v5, 0.0  ;;  %6405 = vmatpush3.bf16.msra.mxu1 %v7065_v31 }
 0x37d   : > { %v1696_v36 = vmul.f32 0.01, %v1410_v52  ;;  %vm1632_vm10 = vcmp.gt.f32.partialorder %v1410_v52, 0.0  ;;  %v1759_v26 = vsel %vm1631_vm8, %v1407_v47, %v1695_v40  ;;  %v7066_v40 = vld [vmem:[#allocation14 + $0x10] sm:$0xff]  }
 0x37e   : > { %v1694_v35 = vmul.f32 0.01, %v1402_v11  ;;  %vm1630_vm11 = vcmp.gt.f32.partialorder %v1402_v11, 0.0  ;;  %v1757_v18 = vsel %vm1629_vm9, %v1399_v5, %v1693_v45  ;;  %6406 = vmatprep.subr.bf16.mxu1 %v7066_v40 }
 0x37f   : > { %v1760_v25 = vsel %vm1632_vm10, %v1410_v52, %v1696_v36 }
 0x380   : > { %v1758_v34 = vsel %vm1630_vm11, %v1402_v11, %v1694_v35  ;;  %v1818_v44 = vpack.c.bf16 %v1760_v25, %v1759_v26  ;;  %6407 = vmatpush3.bf16.msra.mxu1 %v7066_v40 }
 0x381   : > { %v1817_v14 = vpack.c.bf16 %v1758_v34, %v1757_v18  ;;  %v7067_v18 = vld [vmem:[#allocation14 + $0x18] sm:$0xff]  }
 0x382   : > { %6408 = vmatprep.subr.bf16.mxu1 %v7067_v18 }
 0x383   : > { %2026 = vmatmul.mubr.bf16.gmra.mrb[80].mxu0 %v1817_v14 }
 0x384   : > { %2035 = vmatprep.mubr.bf16.mxu0 %v10123_v57  ;;  %6409 = vmatpush3.bf16.msra.mxu1 %v7067_v18 }
 0x388   : > { %v6352_v7 = vpop.f32.mrb[12].mxu1 }
 0x389   : > { %v1423_v41 = vadd.f32 %v6352_v7, %v8496_v6  ;;  %v1414_v8 = vpop.f32.mrb[13].mxu1 }
 0x38a   : > { %v1415_v19 = vadd.f32 %v8496_v6, %v1414_v8  ;;  %v6353_v15 = vpop.f32.mrb[14].mxu1 }
 0x38b   : > { %v1699_v20 = vmul.f32 0.01, %v1423_v41  ;;  %v1426_v28 = vadd.f32 %v6353_v15, %v8496_v6  ;;  %v1417_v9 = vpop.f32.mrb[15].mxu1  ;;  %2036 = vmatmul.mubr.bf16.gmra.mrb[84].mxu0 %v1818_v44  ;;  %vm1635_vm12 = vcmp.gt.f32.partialorder %v1423_v41, 0.0  ;;  %v7068_v44 = vld [vmem:[#allocation14 + $0x20] sm:$0xff]  }
 0x38c   : > { %v1697_v12 = vmul.f32 0.01, %v1415_v19  ;;  %v1418_v60 = vadd.f32 %v8496_v6, %v1417_v9  ;;  %2045 = vmatprep.mubr.bf16.mxu0 %v10123_v57  ;;  %vm1633_vm13 = vcmp.gt.f32.partialorder %v1415_v19, 0.0  ;;  %6410 = vmatprep.subr.bf16.mxu1 %v7068_v44 }
 0x38d   : > { %v1700_v27 = vmul.f32 0.01, %v1426_v28  ;;  %vm1636_vm14 = vcmp.gt.f32.partialorder %v1426_v28, 0.0  ;;  %v1763_v55 = vsel %vm1635_vm12, %v1423_v41, %v1699_v20  ;;  %6411 = vmatpush3.bf16.msra.mxu1 %v7068_v44 }
 0x38e   : > { %v1698_v3 = vmul.f32 0.01, %v1418_v60  ;;  %vm1634_vm15 = vcmp.gt.f32.partialorder %v1418_v60, 0.0  ;;  %v1761_v2 = vsel %vm1633_vm13, %v1415_v19, %v1697_v12  ;;  %v7069_v12 = vld [vmem:[#allocation14 + $0x28] sm:$0xff]  }
 0x38f   : > { %v1764_v56 = vsel %vm1636_vm14, %v1426_v28, %v1700_v27  ;;  %6412 = vmatprep.subr.bf16.mxu1 %v7069_v12 }
 0x390   : > { %v1762_v49 = vsel %vm1634_vm15, %v1418_v60, %v1698_v3  ;;  %v1820_v33 = vpack.c.bf16 %v1764_v56, %v1763_v55 }
 0x391   : > { %v1819_v23 = vpack.c.bf16 %v1762_v49, %v1761_v2  ;;  %6413 = vmatpush3.bf16.msra.mxu1 %v7069_v12 }
 0x393   : > { %2046 = vmatmul.mubr.bf16.gmra.mrb[88].mxu0 %v1819_v23 }
 0x394   : > { %2055 = vmatprep.mubr.bf16.mxu0 %v10123_v57 }
 0x398   : > { %v6356_v43 = vpop.f32.mrb[16].mxu1 }
 0x399   : > { %v1439_v46 = vadd.f32 %v6356_v43, %v8496_v6  ;;  %v1430_v21 = vpop.f32.mrb[17].mxu1  ;;  %v7071_v43 = vld [vmem:[#allocation14 + $0x38] sm:$0xff]  }
 0x39a   : > { %v1431_v29 = vadd.f32 %v8496_v6, %v1430_v21  ;;  %v6357_v39 = vpop.f32.mrb[18].mxu1 }
 0x39b   : > { %v1703_v17 = vmul.f32 0.01, %v1439_v46  ;;  %v1442_v30 = vadd.f32 %v6357_v39, %v8496_v6  ;;  %v1433_v24 = vpop.f32.mrb[19].mxu1  ;;  %2056 = vmatmul.mubr.bf16.gmra.mrb[92].mxu0 %v1820_v33  ;;  %vm1639_vm0 = vcmp.gt.f32.partialorder %v1439_v46, 0.0  ;;  %v7070_v33 = vld [vmem:[#allocation14 + $0x30] sm:$0xff]  }
 0x39c   : > { %v1701_v42 = vmul.f32 0.01, %v1431_v29  ;;  %v1434_v10 = vadd.f32 %v8496_v6, %v1433_v24  ;;  %2065 = vmatprep.mubr.bf16.mxu0 %v10123_v57  ;;  %vm1637_vm1 = vcmp.gt.f32.partialorder %v1431_v29, 0.0  ;;  %6414 = vmatprep.subr.bf16.mxu1 %v7070_v33 }
 0x39d   : > { %v1704_v62 = vmul.f32 0.01, %v1442_v30  ;;  %vm1640_vm2 = vcmp.gt.f32.partialorder %v1442_v30, 0.0  ;;  %v1767_v48 = vsel %vm1639_vm0, %v1439_v46, %v1703_v17  ;;  %6415 = vmatpush3.bf16.msra.mxu1 %v7070_v33 }
 0x39e   : > { %v1702_v32 = vmul.f32 0.01, %v1434_v10  ;;  %vm1638_vm3 = vcmp.gt.f32.partialorder %v1434_v10, 0.0  ;;  %v1765_v37 = vsel %vm1637_vm1, %v1431_v29, %v1701_v42  ;;  %6416 = vmatprep.subr.bf16.mxu1 %v7071_v43 }
 0x39f   : > { %v1768_v22 = vsel %vm1640_vm2, %v1442_v30, %v1704_v62 }
 0x3a0   : > { %v1766_v51 = vsel %vm1638_vm3, %v1434_v10, %v1702_v32  ;;  %v1822_v16 = vpack.c.bf16 %v1768_v22, %v1767_v48 }
 0x3a1   : > { %v1821_v54 = vpack.c.bf16 %v1766_v51, %v1765_v37  ;;  %6417 = vmatpush3.bf16.msra.mxu1 %v7071_v43 }
 0x3a3   : > { %2066 = vmatmul.mubr.bf16.gmra.mrb[96].mxu0 %v1821_v54 }
 0x3a4   : > { %2075 = vmatprep.mubr.bf16.mxu0 %v10123_v57 }
 0x3a8   : > { %v6360_v59 = vpop.f32.mrb[20].mxu1 }
 0x3a9   : > { %v1455_v38 = vadd.f32 %v6360_v59, %v8496_v6  ;;  %v1446_v4 = vpop.f32.mrb[21].mxu1 }
 0x3aa   : > { %v1447_v63 = vadd.f32 %v8496_v6, %v1446_v4  ;;  %v6361_v58 = vpop.f32.mrb[22].mxu1 }
 0x3ab   : > { %v1707_v53 = vmul.f32 0.01, %v1455_v38  ;;  %v1458_v50 = vadd.f32 %v6361_v58, %v8496_v6  ;;  %v1449_v47 = vpop.f32.mrb[23].mxu1  ;;  %2076 = vmatmul.mubr.bf16.gmra.mrb[100].mxu0 %v1822_v16  ;;  %vm1643_vm4 = vcmp.gt.f32.partialorder %v1455_v38, 0.0 }
 0x3ac   : > { %v1705_v5 = vmul.f32 0.01, %v1447_v63  ;;  %v1450_v1 = vadd.f32 %v8496_v6, %v1449_v47  ;;  %2085 = vmatprep.mubr.bf16.mxu0 %v10123_v57  ;;  %vm1641_vm5 = vcmp.gt.f32.partialorder %v1447_v63, 0.0 }
 0x3ad   : > { %v1708_v52 = vmul.f32 0.01, %v1458_v50  ;;  %vm1644_vm6 = vcmp.gt.f32.partialorder %v1458_v50, 0.0  ;;  %v1771_v45 = vsel %vm1643_vm4, %v1455_v38, %v1707_v53 }
 0x3ae   : > { %v1706_v61 = vmul.f32 0.01, %v1450_v1  ;;  %vm1642_vm7 = vcmp.gt.f32.partialorder %v1450_v1, 0.0  ;;  %v1769_v36 = vsel %vm1641_vm5, %v1447_v63, %v1705_v5 }
 0x3af   : > { %v1772_v11 = vsel %vm1644_vm6, %v1458_v50, %v1708_v52 }
 0x3b0   : > { %v1770_v35 = vsel %vm1642_vm7, %v1450_v1, %v1706_v61  ;;  %v1824_v26 = vpack.c.bf16 %v1772_v11, %v1771_v45 }
 0x3b1   : > { %v1823_v25 = vpack.c.bf16 %v1770_v35, %v1769_v36 }
 0x3b3   : > { %2086 = vmatmul.mubr.bf16.gmra.mrb[104].mxu0 %v1823_v25 }
 0x3b4   : > { %2095 = vmatprep.mubr.bf16.mxu0 %v10123_v57 }
 0x3b8   : > { %v6364_v34 = vpop.f32.mrb[24].mxu1 }
 0x3b9   : > { %v1471_v14 = vadd.f32 %v6364_v34, %v8496_v6  ;;  %v1462_v7 = vpop.f32.mrb[25].mxu1 }
 0x3ba   : > { %v1463_v41 = vadd.f32 %v8496_v6, %v1462_v7  ;;  %v6365_v8 = vpop.f32.mrb[26].mxu1 }
 0x3bb   : > { %v1711_v19 = vmul.f32 0.01, %v1471_v14  ;;  %v1474_v15 = vadd.f32 %v6365_v8, %v8496_v6  ;;  %v1465_v20 = vpop.f32.mrb[27].mxu1  ;;  %2096 = vmatmul.mubr.bf16.gmra.mrb[108].mxu0 %v1824_v26  ;;  %vm1647_vm8 = vcmp.gt.f32.partialorder %v1471_v14, 0.0 }
 0x3bc   : > { %v1709_v28 = vmul.f32 0.01, %v1463_v41  ;;  %v1466_v9 = vadd.f32 %v8496_v6, %v1465_v20  ;;  %2105 = vmatprep.mubr.bf16.mxu0 %v10123_v57  ;;  %vm1645_vm9 = vcmp.gt.f32.partialorder %v1463_v41, 0.0 }
 0x3bd   : > { %v1712_v60 = vmul.f32 0.01, %v1474_v15  ;;  %vm1648_vm10 = vcmp.gt.f32.partialorder %v1474_v15, 0.0  ;;  %v1775_v3 = vsel %vm1647_vm8, %v1471_v14, %v1711_v19 }
 0x3be   : > { %v1710_v27 = vmul.f32 0.01, %v1466_v9  ;;  %vm1646_vm11 = vcmp.gt.f32.partialorder %v1466_v9, 0.0  ;;  %v1773_v56 = vsel %vm1645_vm9, %v1463_v41, %v1709_v28 }
 0x3bf   : > { %v1776_v55 = vsel %vm1648_vm10, %v1474_v15, %v1712_v60 }
 0x3c0   : > { %v1774_v2 = vsel %vm1646_vm11, %v1466_v9, %v1710_v27  ;;  %v1826_v49 = vpack.c.bf16 %v1776_v55, %v1775_v3 }
 0x3c1   : > { %v1825_v23 = vpack.c.bf16 %v1774_v2, %v1773_v56 }
 0x3c3   : > { %2106 = vmatmul.mubr.bf16.gmra.mrb[112].mxu0 %v1825_v23 }
 0x3c4   : > { %2115 = vmatprep.mubr.bf16.mxu0 %v10123_v57 }
 0x3c8   : > { %v6368_v46 = vpop.f32.mrb[28].mxu1 }
 0x3c9   : > { %v1487_v21 = vadd.f32 %v6368_v46, %v8496_v6  ;;  %v1478_v29 = vpop.f32.mrb[29].mxu1 }
 0x3ca   : > { %v1479_v39 = vadd.f32 %v8496_v6, %v1478_v29  ;;  %v6369_v17 = vpop.f32.mrb[30].mxu1 }
 0x3cb   : > { %v1715_v30 = vmul.f32 0.01, %v1487_v21  ;;  %v1490_v24 = vadd.f32 %v6369_v17, %v8496_v6  ;;  %v1481_v42 = vpop.f32.mrb[31].mxu1  ;;  %2116 = vmatmul.mubr.bf16.gmra.mrb[116].mxu0 %v1826_v49  ;;  %vm1651_vm12 = vcmp.gt.f32.partialorder %v1487_v21, 0.0 }
 0x3cc   : > { %v1713_v10 = vmul.f32 0.01, %v1479_v39  ;;  %v1482_v62 = vadd.f32 %v8496_v6, %v1481_v42  ;;  %2125 = vmatprep.mubr.bf16.mxu0 %v10123_v57  ;;  %vm1649_vm13 = vcmp.gt.f32.partialorder %v1479_v39, 0.0 }
 0x3cd   : > { %v1716_v32 = vmul.f32 0.01, %v1490_v24  ;;  %vm1652_vm14 = vcmp.gt.f32.partialorder %v1490_v24, 0.0  ;;  %v1779_v22 = vsel %vm1651_vm12, %v1487_v21, %v1715_v30 }
 0x3ce   : > { %v1714_v48 = vmul.f32 0.01, %v1482_v62  ;;  %vm1650_vm15 = vcmp.gt.f32.partialorder %v1482_v62, 0.0  ;;  %v1777_v16 = vsel %vm1649_vm13, %v1479_v39, %v1713_v10 }
 0x3cf   : > { %v1780_v37 = vsel %vm1652_vm14, %v1490_v24, %v1716_v32 }
 0x3d0   : > { %v6372_v51 = vpop.f32.mrb[32].mxu1  ;;  %v1778_v54 = vsel %vm1650_vm15, %v1482_v62, %v1714_v48  ;;  %v1828_v0 = vpack.c.bf16 %v1780_v37, %v1779_v22 }
 0x3d1   : > { %v1503_v59 = vadd.f32 %v6372_v51, %v8496_v6  ;;  %v1494_v38 = vpop.f32.mrb[33].mxu1  ;;  %v1827_v4 = vpack.c.bf16 %v1778_v54, %v1777_v16 }
 0x3d2   : > { %v1495_v63 = vadd.f32 %v8496_v6, %v1494_v38  ;;  %v6373_v58 = vpop.f32.mrb[34].mxu1 }
 0x3d3   : > { %v1719_v53 = vmul.f32 0.01, %v1503_v59  ;;  %v1506_v50 = vadd.f32 %v6373_v58, %v8496_v6  ;;  %v1497_v47 = vpop.f32.mrb[35].mxu1  ;;  %2126 = vmatmul.mubr.bf16.gmra.mrb[120].mxu0 %v1827_v4  ;;  %vm1655_vm0 = vcmp.gt.f32.partialorder %v1503_v59, 0.0 }
 0x3d4   : > { %v1717_v31 = vmul.f32 0.01, %v1495_v63  ;;  %v1498_v5 = vadd.f32 %v8496_v6, %v1497_v47  ;;  %2135 = vmatprep.mubr.bf16.mxu0 %v10123_v57  ;;  %vm1653_vm1 = vcmp.gt.f32.partialorder %v1495_v63, 0.0 }
 0x3d5   : > { %v1720_v1 = vmul.f32 0.01, %v1506_v50  ;;  %vm1656_vm2 = vcmp.gt.f32.partialorder %v1506_v50, 0.0  ;;  %v1783_v52 = vsel %vm1655_vm0, %v1503_v59, %v1719_v53 }
 0x3d6   : > { %v1718_v40 = vmul.f32 0.01, %v1498_v5  ;;  %vm1654_vm3 = vcmp.gt.f32.partialorder %v1498_v5, 0.0  ;;  %v1781_v11 = vsel %vm1653_vm1, %v1495_v63, %v1717_v31 }
 0x3d7   : > { %v1784_v61 = vsel %vm1656_vm2, %v1506_v50, %v1720_v1 }
 0x3d8   : > { %v6376_v45 = vpop.f32.mrb[36].mxu1  ;;  %v1782_v36 = vsel %vm1654_vm3, %v1498_v5, %v1718_v40  ;;  %v1830_v35 = vpack.c.bf16 %v1784_v61, %v1783_v52 }
 0x3d9   : > { %v1519_v26 = vadd.f32 %v6376_v45, %v8496_v6  ;;  %v1510_v25 = vpop.f32.mrb[37].mxu1  ;;  %v1829_v18 = vpack.c.bf16 %v1782_v36, %v1781_v11 }
 0x3da   : > { %v1511_v34 = vadd.f32 %v8496_v6, %v1510_v25  ;;  %v6377_v44 = vpop.f32.mrb[38].mxu1 }
 0x3db   : > { %v1723_v14 = vmul.f32 0.01, %v1519_v26  ;;  %v1522_v7 = vadd.f32 %v6377_v44, %v8496_v6  ;;  %v1513_v41 = vpop.f32.mrb[39].mxu1  ;;  %2136 = vmatmul.mubr.bf16.gmra.mrb[124].mxu0 %v1828_v0  ;;  %vm1659_vm4 = vcmp.gt.f32.partialorder %v1519_v26, 0.0 }
 0x3dc   : > { %v1721_v8 = vmul.f32 0.01, %v1511_v34  ;;  %v1514_v19 = vadd.f32 %v8496_v6, %v1513_v41  ;;  %2145 = vmatprep.mubr.bf16.mxu0 %v10123_v57  ;;  %vm1657_vm5 = vcmp.gt.f32.partialorder %v1511_v34, 0.0 }
 0x3dd   : > { %v1724_v15 = vmul.f32 0.01, %v1522_v7  ;;  %vm1660_vm6 = vcmp.gt.f32.partialorder %v1522_v7, 0.0  ;;  %v8554_v28 = vsel %vm1659_vm4, %v1519_v26, %v1723_v14 }
 0x3de   : > { %v1722_v20 = vmul.f32 0.01, %v1514_v19  ;;  %vm1658_vm7 = vcmp.gt.f32.partialorder %v1514_v19, 0.0  ;;  %v1785_v60 = vsel %vm1657_vm5, %v1511_v34, %v1721_v8 }
 0x3df   : > { %v8556_v9 = vsel %vm1660_vm6, %v1522_v7, %v1724_v15 }
 0x3e0   : > { %v6380_v12 = vpop.f32.mrb[40].mxu1  ;;  %v1786_v27 = vsel %vm1658_vm7, %v1514_v19, %v1722_v20  ;;  %v1832_v3 = vpack.c.bf16 %v8556_v9, %v8554_v28 }
 0x3e1   : > { %v1535_v55 = vadd.f32 %v6380_v12, %v8496_v6  ;;  %v1526_v56 = vpop.f32.mrb[41].mxu1  ;;  %v1831_v2 = vpack.c.bf16 %v1786_v27, %v1785_v60 }
 0x3e2   : > { %v1527_v49 = vadd.f32 %v8496_v6, %v1526_v56  ;;  %v6381_v33 = vpop.f32.mrb[42].mxu1 }
 0x3e3   : > { %v1727_v23 = vmul.f32 0.01, %v1535_v55  ;;  %v1538_v43 = vadd.f32 %v6381_v33, %v8496_v6  ;;  %v1529_v46 = vpop.f32.mrb[43].mxu1  ;;  %2146 = vmatmul.mubr.bf16.gmra.mrb[128].mxu0 %v1829_v18  ;;  %vm1663_vm8 = vcmp.gt.f32.partialorder %v1535_v55, 0.0 }
 0x3e4   : > { %v1725_v21 = vmul.f32 0.01, %v1527_v49  ;;  %v1530_v29 = vadd.f32 %v8496_v6, %v1529_v46  ;;  %2155 = vmatprep.mubr.bf16.mxu0 %v10123_v57  ;;  %vm1661_vm9 = vcmp.gt.f32.partialorder %v1527_v49, 0.0 }
 0x3e5   : > { %v1728_v39 = vmul.f32 0.01, %v1538_v43  ;;  %vm1664_vm10 = vcmp.gt.f32.partialorder %v1538_v43, 0.0  ;;  %v8565_v30 = vsel %vm1663_vm8, %v1535_v55, %v1727_v23 }
 0x3e6   : > { %v1726_v17 = vmul.f32 0.01, %v1530_v29  ;;  %vm1662_vm11 = vcmp.gt.f32.partialorder %v1530_v29, 0.0  ;;  %v8569_v10 = vsel %vm1661_vm9, %v1527_v49, %v1725_v21 }
 0x3e7   : > { %v8567_v24 = vsel %vm1664_vm10, %v1538_v43, %v1728_v39 }
 0x3e8   : > { %v6384_v42 = vpop.f32.mrb[44].mxu1  ;;  %v8571_v62 = vsel %vm1662_vm11, %v1530_v29, %v1726_v17  ;;  %v1834_v32 = vpack.c.bf16 %v8567_v24, %v8565_v30  ;;  %v7072_v24 = vld [vmem:[#allocation17] sm:$0xff]  }
 0x3e9   : > { %v1551_v48 = vadd.f32 %v6384_v42, %v8496_v6  ;;  %v1542_v22 = vpop.f32.mrb[45].mxu1  ;;  %v1833_v37 = vpack.c.bf16 %v8571_v62, %v8569_v10  ;;  %6546 = vmatprep.subr.bf16.mxu0 %v7072_v24 }
 0x3ea   : > { %v1543_v51 = vadd.f32 %v8496_v6, %v1542_v22  ;;  %v6385_v16 = vpop.f32.mrb[46].mxu1  ;;  %6547 = vmatpush3.bf16.msra.mxu0 %v7072_v24 }
 0x3eb   : > { %v1731_v54 = vmul.f32 0.01, %v1551_v48  ;;  %v1554_v0 = vadd.f32 %v6385_v16, %v8496_v6  ;;  %v1545_v59 = vpop.f32.mrb[47].mxu1  ;;  %2156 = vmatmul.mubr.bf16.gmra.mrb[132].mxu0 %v1830_v35  ;;  %vm1667_vm12 = vcmp.gt.f32.partialorder %v1551_v48, 0.0 }
 0x3ec   : > { %v1729_v38 = vmul.f32 0.01, %v1543_v51  ;;  %v1546_v4 = vadd.f32 %v8496_v6, %v1545_v59  ;;  %2165 = vmatprep.mubr.bf16.mxu0 %v10123_v57  ;;  %vm1665_vm13 = vcmp.gt.f32.partialorder %v1543_v51, 0.0 }
 0x3ed   : > { %v1732_v63 = vmul.f32 0.01, %v1554_v0  ;;  %vm1668_vm14 = vcmp.gt.f32.partialorder %v1554_v0, 0.0  ;;  %v8582_v53 = vsel %vm1667_vm12, %v1551_v48, %v1731_v54 }
 0x3ee   : > { %v1730_v58 = vmul.f32 0.01, %v1546_v4  ;;  %vm1666_vm15 = vcmp.gt.f32.partialorder %v1546_v4, 0.0  ;;  %v8586_v31 = vsel %vm1665_vm13, %v1543_v51, %v1729_v38 }
 0x3ef   : > { %v8584_v50 = vsel %vm1668_vm14, %v1554_v0, %v1732_v63 }
 0x3f0   : > { %v6388_v47 = vpop.f32.mrb[48].mxu1  ;;  %v8588_v5 = vsel %vm1666_vm15, %v1546_v4, %v1730_v58  ;;  %v1836_v1 = vpack.c.bf16 %v8584_v50, %v8582_v53  ;;  %v10124_v53 = vsub.s32 0, %v8233_v13 }
 0x3f1   : > { %v1567_v40 = vadd.f32 %v6388_v47, %v8496_v6  ;;  %v1558_v52 = vpop.f32.mrb[49].mxu1  ;;  %v1835_v61 = vpack.c.bf16 %v8588_v5, %v8586_v31  ;;  %v10125_v31 = vsub.s32 1, %v8233_v13 }
 0x3f2   : > { %v1559_v45 = vadd.f32 %v8496_v6, %v1558_v52  ;;  %v6389_v11 = vpop.f32.mrb[50].mxu1 }
 0x3f3   : > { %v1735_v36 = vmul.f32 0.01, %v1567_v40  ;;  %v1570_v35 = vadd.f32 %v6389_v11, %v8496_v6  ;;  %v1561_v26 = vpop.f32.mrb[51].mxu1  ;;  %2166 = vmatmul.mubr.bf16.gmra.mrb[136].mxu0 %v1831_v2  ;;  %vm1671_vm0 = vcmp.gt.f32.partialorder %v1567_v40, 0.0 }
 0x3f4   : > { %v1733_v25 = vmul.f32 0.01, %v1559_v45  ;;  %v1562_v18 = vadd.f32 %v8496_v6, %v1561_v26  ;;  %2175 = vmatprep.mubr.bf16.mxu0 %v10123_v57  ;;  %vm1669_vm1 = vcmp.gt.f32.partialorder %v1559_v45, 0.0 }
 0x3f5   : > { %v1736_v34 = vmul.f32 0.01, %v1570_v35  ;;  %vm1672_vm2 = vcmp.gt.f32.partialorder %v1570_v35, 0.0  ;;  %v8599_v14 = vsel %vm1671_vm0, %v1567_v40, %v1735_v36 }
 0x3f6   : > { %v1734_v44 = vmul.f32 0.01, %v1562_v18  ;;  %vm1670_vm3 = vcmp.gt.f32.partialorder %v1562_v18, 0.0  ;;  %v8603_v8 = vsel %vm1669_vm1, %v1559_v45, %v1733_v25 }
 0x3f7   : > { %v8601_v7 = vsel %vm1672_vm2, %v1570_v35, %v1736_v34 }
 0x3f8   : > { %v6392_v41 = vpop.f32.mrb[52].mxu1  ;;  %v8605_v19 = vsel %vm1670_vm3, %v1562_v18, %v1734_v44  ;;  %v1838_v15 = vpack.c.bf16 %v8601_v7, %v8599_v14 }
 0x3f9   : > { %v1583_v20 = vadd.f32 %v6392_v41, %v8496_v6  ;;  %v1574_v12 = vpop.f32.mrb[53].mxu1  ;;  %v1837_v60 = vpack.c.bf16 %v8605_v19, %v8603_v8  ;;  %v8699_v19 = vld [vmem:[%s8058_s25] sm:$0xff] }
 0x3fa   : > { %v1575_v27 = vadd.f32 %v8496_v6, %v1574_v12  ;;  %v6393_v55 = vpop.f32.mrb[54].mxu1 }
 0x3fb   : > { %v1739_v56 = vmul.f32 0.01, %v1583_v20  ;;  %v1586_v2 = vadd.f32 %v6393_v55, %v8496_v6  ;;  %v1577_v49 = vpop.f32.mrb[55].mxu1  ;;  %2176 = vmatmul.mubr.bf16.gmra.mrb[140].mxu0 %v1832_v3  ;;  %vm1675_vm4 = vcmp.gt.f32.partialorder %v1583_v20, 0.0 }
 0x3fc   : > { %v1737_v33 = vmul.f32 0.01, %v1575_v27  ;;  %v1578_v23 = vadd.f32 %v8496_v6, %v1577_v49  ;;  %2185 = vmatprep.mubr.bf16.mxu0 %v10123_v57  ;;  %vm1673_vm5 = vcmp.gt.f32.partialorder %v1575_v27, 0.0 }
 0x3fd   : > { %v1740_v43 = vmul.f32 0.01, %v1586_v2  ;;  %vm1676_vm6 = vcmp.gt.f32.partialorder %v1586_v2, 0.0  ;;  %v8619_v21 = vsel %vm1675_vm4, %v1583_v20, %v1739_v56 }
 0x3fe   : > { %v1738_v46 = vmul.f32 0.01, %v1578_v23  ;;  %vm1674_vm7 = vcmp.gt.f32.partialorder %v1578_v23, 0.0  ;;  %v8623_v17 = vsel %vm1673_vm5, %v1575_v27, %v1737_v33 }
 0x3ff   : > { %v8621_v29 = vsel %vm1676_vm6, %v1586_v2, %v1740_v43 }
 0x400   : > { %v6396_v39 = vpop.f32.mrb[56].mxu1  ;;  %v8625_v28 = vsel %vm1674_vm7, %v1578_v23, %v1738_v46  ;;  %v1840_v9 = vpack.c.bf16 %v8621_v29, %v8619_v21  ;;  %v8706_v23 = vld [vmem:[%s8058_s25 + $0x8] sm:$0xff] }
 0x401   : > { %v1599_v3 = vadd.f32 %v6396_v39, %v8496_v6  ;;  %v1590_v42 = vpop.f32.mrb[57].mxu1  ;;  %v1839_v48 = vpack.c.bf16 %v8625_v28, %v8623_v17 }
 0x402   : > { %v1591_v22 = vadd.f32 %v8496_v6, %v1590_v42  ;;  %v6397_v51 = vpop.f32.mrb[58].mxu1 }
 0x403   : > { %v1743_v16 = vmul.f32 0.01, %v1599_v3  ;;  %v1602_v54 = vadd.f32 %v6397_v51, %v8496_v6  ;;  %v1593_v0 = vpop.f32.mrb[59].mxu1  ;;  %2186 = vmatmul.mubr.bf16.gmra.mrb[144].mxu0 %v1833_v37  ;;  %vm1679_vm8 = vcmp.gt.f32.partialorder %v1599_v3, 0.0 }
 0x404   : > { %v1741_v59 = vmul.f32 0.01, %v1591_v22  ;;  %v1594_v38 = vadd.f32 %v8496_v6, %v1593_v0  ;;  %2195 = vmatprep.mubr.bf16.mxu0 %v10123_v57  ;;  %vm1677_vm9 = vcmp.gt.f32.partialorder %v1591_v22, 0.0  ;;  %v8721_v0 = vld [vmem:[%s8058_s25 + $0x10] sm:$0xff] }
 0x405   : > { %v1744_v4 = vmul.f32 0.01, %v1602_v54  ;;  %vm1680_vm10 = vcmp.gt.f32.partialorder %v1602_v54, 0.0  ;;  %v8639_v58 = vsel %vm1679_vm8, %v1599_v3, %v1743_v16 }
 0x406   : > { %v1742_v63 = vmul.f32 0.01, %v1594_v38  ;;  %vm1678_vm11 = vcmp.gt.f32.partialorder %v1594_v38, 0.0  ;;  %v8643_v52 = vsel %vm1677_vm9, %v1591_v22, %v1741_v59 }
 0x407   : > { %v8641_v47 = vsel %vm1680_vm10, %v1602_v54, %v1744_v4 }
 0x408   : > { %v6400_v40 = vpop.f32.mrb[60].mxu1  ;;  %v8645_v10 = vsel %vm1678_vm11, %v1594_v38, %v1742_v63  ;;  %v1842_v62 = vpack.c.bf16 %v8641_v47, %v8639_v58 }
 0x409   : > { %v1615_v37 = vadd.f32 %v6400_v40, %v8496_v6  ;;  %v1606_v45 = vpop.f32.mrb[61].mxu1  ;;  %v1841_v11 = vpack.c.bf16 %v8645_v10, %v8643_v52 }
 0x40a   : > { %v1607_v36 = vadd.f32 %v8496_v6, %v1606_v45  ;;  %v6401_v35 = vpop.f32.mrb[62].mxu1 }
 0x40b   : > { %v1747_v26 = vmul.f32 0.01, %v1615_v37  ;;  %v1618_v25 = vadd.f32 %v6401_v35, %v8496_v6  ;;  %v1609_v18 = vpop.f32.mrb[63].mxu1  ;;  %2196 = vmatmul.mubr.bf16.gmra.mrb[148].mxu0 %v1834_v32  ;;  %vm1683_vm12 = vcmp.gt.f32.partialorder %v1615_v37, 0.0  ;;  %v1861_v32 = vld [vmem:[#allocation13] sm:$0x3] }
 0x40c   : > { %v1745_v34 = vmul.f32 0.01, %v1607_v36  ;;  %v1610_v44 = vadd.f32 %v8496_v6, %v1609_v18  ;;  %2205 = vmatprep.mubr.bf16.mxu0 %v10123_v57  ;;  %vm1681_vm13 = vcmp.gt.f32.partialorder %v1607_v36, 0.0  ;;  %v8689_v50 = vrot.slane %v1861_v32, %v10124_v53 }
 0x40d   : > { %v1748_v41 = vmul.f32 0.01, %v1618_v25  ;;  %vm1684_vm14 = vcmp.gt.f32.partialorder %v1618_v25, 0.0  ;;  %v8659_v12 = vsel %vm1683_vm12, %v1615_v37, %v1747_v26  ;;  %v8693_v5 = vrot.slane %v1861_v32, %v10125_v31 }
 0x40e   : > { %v1746_v20 = vmul.f32 0.01, %v1610_v44  ;;  %vm1682_vm15 = vcmp.gt.f32.partialorder %v1610_v44, 0.0  ;;  %v8663_v55 = vsel %vm1681_vm13, %v1607_v36, %v1745_v34  ;;  %v8730_v36 = vld [vmem:[%s8058_s25 + $0x18] sm:$0xff]  ;;  %v7073_v34 = vld [vmem:[#allocation17 + $0x8] sm:$0xff]  }
 0x40f   : > { %v8661_v27 = vsel %vm1684_vm14, %v1618_v25, %v1748_v41  ;;  %6548 = vmatprep.subr.bf16.mxu0 %v7073_v34 }
 0x410   : > { %v8665_v56 = vsel %vm1682_vm15, %v1610_v44, %v1746_v20  ;;  %v1844_v30 = vpack.c.bf16 %v8661_v27, %v8659_v12  ;;  %6549 = vmatpush3.bf16.msra.mxu0 %v7073_v34 }
 0x411   : > { %v1843_v6 = vpack.c.bf16 %v8665_v56, %v8663_v55 }
 0x413   : > { %2206 = vmatmul.mubr.bf16.gmra.mrb[152].mxu0 %v1835_v61 }
 0x414   : > { %2215 = vmatprep.mubr.bf16.mxu0 %v10123_v57 }
 0x41b   : > { %2216 = vmatmul.mubr.bf16.gmra.mrb[156].mxu0 %v1836_v1 }
 0x41c   : > { %2225 = vmatprep.mubr.bf16.mxu0 %v10123_v57 }
 0x423   : > { %2226 = vmatmul.mubr.bf16.gmra.mrb[160].mxu0 %v1837_v60 }
 0x424   : > { %2235 = vmatprep.mubr.bf16.mxu0 %v10123_v57 }
 0x42b   : > { %2236 = vmatmul.mubr.bf16.gmra.mrb[164].mxu0 %v1838_v15 }
 0x42c   : > { %2245 = vmatprep.mubr.bf16.mxu0 %v10123_v57 }
 0x433   : > { %2246 = vmatmul.mubr.bf16.gmra.mrb[168].mxu0 %v1839_v48 }
 0x434   : > { %2255 = vmatprep.mubr.bf16.mxu0 %v10123_v57 }
 0x436   : > { %v1987_v1 = vpop.f32.mrb[64].mxu0 }
 0x437   : > { %v1988_v61 = vadd.f32 %v1987_v1, %v8689_v50  ;;  %v1989_v14 = vpop.f32.mrb[65].mxu0 }
 0x438   : > { %v1990_v7 = vadd.f32 %v1989_v14, %v8693_v5  ;;  %v1991_v8 = vpop.f32.mrb[66].mxu0 }
 0x439   : > { %v2306_v15 = vadd.f32 %v8699_v19, %v1988_v61  ;;  %v1992_v60 = vadd.f32 %v1991_v8, %v8689_v50  ;;  %v1993_v2 = vpop.f32.mrb[67].mxu0  ;;  %v8746_v61 = vld [vmem:[%s8058_s25 + $0x20] sm:$0xff] }
 0x43a   : > { %v2370_v13 = vadd.f32 %v8699_v19, %v1990_v7  ;;  %v1994_v49 = vadd.f32 %v1993_v2, %v8693_v5 }
 0x43b   : > { %v2562_v33 = vmul.f32 0.01, %v2306_v15  ;;  %v2307_v43 = vadd.f32 %v8706_v23, %v1992_v60  ;;  %2256 = vmatmul.mubr.bf16.gmra.mrb[172].mxu0 %v1840_v9  ;;  %vm2434_vm0 = vcmp.gt.f32.partialorder %v2306_v15, 0.0 }
 0x43c   : > { %v2626_v46 = vmul.f32 0.01, %v2370_v13  ;;  %v2371_v39 = vadd.f32 %v8706_v23, %v1994_v49  ;;  %2265 = vmatprep.mubr.bf16.mxu0 %v10123_v57  ;;  %vm2498_vm1 = vcmp.gt.f32.partialorder %v2370_v13, 0.0  ;;  %v8755_v49 = vld [vmem:[%s8058_s25 + $0x28] sm:$0xff] }
 0x43d   : > { %vm2435_vm2 = vcmp.gt.f32.partialorder %v2307_v43, 0.0  ;;  %v2563_v17 = vmul.f32 0.01, %v2307_v43  ;;  %v2690_v22 = vsel %vm2434_vm0, %v2306_v15, %v2562_v33  ;;  %v8939_v15 = vld [vmem:[%s8058_s25 + $0xb0] sm:$0xff] }
 0x43e   : > { %vm2499_vm3 = vcmp.gt.f32.partialorder %v2371_v39, 0.0  ;;  %v2627_v28 = vmul.f32 0.01, %v2371_v39  ;;  %v1997_v3 = vpop.f32.mrb[68].mxu0  ;;  %v8716_v16 = vsel %vm2498_vm1, %v2370_v13, %v2626_v46 }
 0x43f   : > { %v1998_v42 = vadd.f32 %v1997_v3, %v8689_v50  ;;  %v1999_v48 = vpop.f32.mrb[69].mxu0  ;;  %v2691_v21 = vsel %vm2435_vm2, %v2307_v43, %v2563_v17 }
 0x440   : > { %v2000_v29 = vadd.f32 %v1999_v48, %v8693_v5  ;;  %v2001_v9 = vpop.f32.mrb[70].mxu0  ;;  %v2818_v51 = vpack.c.bf16 %v2691_v21, %v2690_v22  ;;  %v8718_v54 = vsel %vm2499_vm3, %v2371_v39, %v2627_v28 }
 0x441   : > { %v2308_v59 = vadd.f32 %v8721_v0, %v1998_v42  ;;  %v2002_v38 = vadd.f32 %v2001_v9, %v8689_v50  ;;  %v2003_v4 = vpop.f32.mrb[71].mxu0  ;;  %v8770_v9 = vld [vmem:[%s8058_s25 + $0x30] sm:$0xff] }
 0x442   : > { %v2372_v40 = vadd.f32 %v8721_v0, %v2000_v29  ;;  %v2004_v37 = vadd.f32 %v2003_v4, %v8693_v5  ;;  %6418 = vmatprep.mubr.bf16.mxu1 %v2818_v51 }
 0x443   : > { %v2564_v45 = vmul.f32 0.01, %v2308_v59  ;;  %v2309_v35 = vadd.f32 %v8730_v36, %v2002_v38  ;;  %2266 = vmatmul.mubr.bf16.gmra.mrb[176].mxu0 %v1841_v11  ;;  %vm2436_vm4 = vcmp.gt.f32.partialorder %v2308_v59, 0.0 }
 0x444   : > { %v2628_v26 = vmul.f32 0.01, %v2372_v40  ;;  %v2373_v25 = vadd.f32 %v8730_v36, %v2004_v37  ;;  %2275 = vmatprep.mubr.bf16.mxu0 %v10123_v57  ;;  %vm2500_vm5 = vcmp.gt.f32.partialorder %v2372_v40, 0.0 }
 0x445   : > { %vm2437_vm6 = vcmp.gt.f32.partialorder %v2309_v35, 0.0  ;;  %v2565_v18 = vmul.f32 0.01, %v2309_v35  ;;  %v2692_v20 = vsel %vm2436_vm4, %v2308_v59, %v2564_v45 }
 0x446   : > { %vm2501_vm7 = vcmp.gt.f32.partialorder %v2373_v25, 0.0  ;;  %v2629_v44 = vmul.f32 0.01, %v2373_v25  ;;  %v2007_v41 = vpop.f32.mrb[72].mxu0  ;;  %v8741_v31 = vsel %vm2500_vm5, %v2372_v40, %v2628_v26 }
 0x447   : > { %v2693_v24 = vsel %vm2437_vm6, %v2309_v35, %v2565_v18  ;;  %v2008_v32 = vadd.f32 %v2007_v41, %v8689_v50  ;;  %v2009_v52 = vpop.f32.mrb[73].mxu0  ;;  %v8779_v35 = vld [vmem:[%s8058_s25 + $0x38] sm:$0xff] }
 0x448   : > { %v2819_v10 = vpack.c.bf16 %v2693_v24, %v2692_v20  ;;  %v2010_v11 = vadd.f32 %v2009_v52, %v8693_v5  ;;  %v2011_v53 = vpop.f32.mrb[74].mxu0  ;;  %v8743_v1 = vsel %vm2501_vm7, %v2373_v25, %v2629_v44 }
 0x449   : > { %v2310_v14 = vadd.f32 %v8746_v61, %v2008_v32  ;;  %v2012_v7 = vadd.f32 %v2011_v53, %v8689_v50  ;;  %v2013_v8 = vpop.f32.mrb[75].mxu0 }
 0x44a   : > { %v2374_v60 = vadd.f32 %v8746_v61, %v2010_v11  ;;  %v2014_v2 = vadd.f32 %v2013_v8, %v8693_v5  ;;  %6419 = vmatmul.mubr.bf16.vlgmr.msra.gmra.mrb[64].mxu1 %v2819_v10  ;;  %v8794_v11 = vld [vmem:[%s8058_s25 + $0x40] sm:$0xff] }
 0x44b   : > { %v2566_v13 = vmul.f32 0.01, %v2310_v14  ;;  %v2311_v33 = vadd.f32 %v8755_v49, %v2012_v7  ;;  %2276 = vmatmul.mubr.bf16.gmra.mrb[180].mxu0 %v1842_v62  ;;  %vm2438_vm8 = vcmp.gt.f32.partialorder %v2310_v14, 0.0 }
 0x44c   : > { %v2630_v43 = vmul.f32 0.01, %v2374_v60  ;;  %v2375_v46 = vadd.f32 %v8755_v49, %v2014_v2  ;;  %2285 = vmatprep.mubr.bf16.mxu0 %v10123_v57  ;;  %vm2502_vm9 = vcmp.gt.f32.partialorder %v2374_v60, 0.0 }
 0x44d   : > { %vm2439_vm10 = vcmp.gt.f32.partialorder %v2311_v33, 0.0  ;;  %v2567_v39 = vmul.f32 0.01, %v2311_v33  ;;  %v2694_v48 = vsel %vm2438_vm8, %v2310_v14, %v2566_v13 }
 0x44e   : > { %vm2503_vm11 = vcmp.gt.f32.partialorder %v2375_v46, 0.0  ;;  %v2631_v17 = vmul.f32 0.01, %v2375_v46  ;;  %v2017_v28 = vpop.f32.mrb[76].mxu0  ;;  %v8765_v21 = vsel %vm2502_vm9, %v2374_v60, %v2630_v43 }
 0x44f   : > { %v2018_v3 = vadd.f32 %v2017_v28, %v8689_v50  ;;  %v2019_v42 = vpop.f32.mrb[77].mxu0  ;;  %v2695_v58 = vsel %vm2439_vm10, %v2311_v33, %v2567_v39  ;;  %v8803_v33 = vld [vmem:[%s8058_s25 + $0x48] sm:$0xff] }
 0x450   : > { %v2020_v47 = vadd.f32 %v2019_v42, %v8693_v5  ;;  %v2021_v62 = vpop.f32.mrb[78].mxu0  ;;  %v2820_v22 = vpack.c.bf16 %v2695_v58, %v2694_v48  ;;  %v8767_v29 = vsel %vm2503_vm11, %v2375_v46, %v2631_v17 }
 0x451   : > { %v2312_v51 = vadd.f32 %v8770_v9, %v2018_v3  ;;  %v2022_v59 = vadd.f32 %v2021_v62, %v8689_v50  ;;  %v2023_v38 = vpop.f32.mrb[79].mxu0 }
 0x452   : > { %v2376_v40 = vadd.f32 %v8770_v9, %v2020_v47  ;;  %v2024_v37 = vadd.f32 %v2023_v38, %v8693_v5  ;;  %6422 = vmatprep.mubr.bf16.mxu1 %v2820_v22 }
 0x453   : > { %v2568_v45 = vmul.f32 0.01, %v2312_v51  ;;  %v2313_v26 = vadd.f32 %v8779_v35, %v2022_v59  ;;  %2286 = vmatmul.mubr.bf16.gmra.mrb[184].mxu0 %v1843_v6  ;;  %vm2440_vm12 = vcmp.gt.f32.partialorder %v2312_v51, 0.0 }
 0x454   : > { %v2632_v25 = vmul.f32 0.01, %v2376_v40  ;;  %v2377_v18 = vadd.f32 %v8779_v35, %v2024_v37  ;;  %2295 = vmatprep.mubr.bf16.mxu0 %v10123_v57  ;;  %vm2504_vm13 = vcmp.gt.f32.partialorder %v2376_v40, 0.0  ;;  %v8919_v37 = vld [vmem:[%s8058_s25 + $0xa0] sm:$0xff] }
 0x455   : > { %vm2441_vm14 = vcmp.gt.f32.partialorder %v2313_v26, 0.0  ;;  %v2569_v34 = vmul.f32 0.01, %v2313_v26  ;;  %v2696_v32 = vsel %vm2440_vm12, %v2312_v51, %v2568_v45  ;;  %v8817_v51 = vld [vmem:[%s8058_s25 + $0x50] sm:$0xff] }
 0x456   : > { %vm2505_vm15 = vcmp.gt.f32.partialorder %v2377_v18, 0.0  ;;  %v2633_v44 = vmul.f32 0.01, %v2377_v18  ;;  %v2027_v41 = vpop.f32.mrb[80].mxu0  ;;  %v8789_v10 = vsel %vm2504_vm13, %v2376_v40, %v2632_v25 }
 0x457   : > { %v2028_v20 = vadd.f32 %v2027_v41, %v8689_v50  ;;  %v2029_v24 = vpop.f32.mrb[81].mxu0  ;;  %v2697_v55 = vsel %vm2441_vm14, %v2313_v26, %v2569_v34 }
 0x458   : > { %v2030_v56 = vadd.f32 %v2029_v24, %v8693_v5  ;;  %v2031_v6 = vpop.f32.mrb[82].mxu0  ;;  %v2821_v52 = vpack.c.bf16 %v2697_v55, %v2696_v32  ;;  %v8791_v57 = vsel %vm2505_vm15, %v2377_v18, %v2633_v44  ;;  %v8826_v18 = vld [vmem:[%s8058_s25 + $0x58] sm:$0xff] }
 0x459   : > { %v2314_v53 = vadd.f32 %v8794_v11, %v2028_v20  ;;  %v2032_v14 = vadd.f32 %v2031_v6, %v8689_v50  ;;  %v2033_v7 = vpop.f32.mrb[83].mxu0  ;;  %v7074_v24 = vld [vmem:[#allocation17 + $0x10] sm:$0xff]  }
 0x45a   : > { %v2378_v60 = vadd.f32 %v8794_v11, %v2030_v56  ;;  %v2034_v2 = vadd.f32 %v2033_v7, %v8693_v5  ;;  %6423 = vmatmul.mubr.bf16.gmra.mrb[68].mxu1 %v2821_v52  ;;  %6550 = vmatprep.subr.bf16.mxu0 %v7074_v24 }
 0x45b   : > { %v2570_v13 = vmul.f32 0.01, %v2314_v53  ;;  %v2315_v43 = vadd.f32 %v8803_v33, %v2032_v14  ;;  %2296 = vmatmul.mubr.bf16.gmra.mrb[188].mxu0 %v1844_v30  ;;  %vm2442_vm0 = vcmp.gt.f32.partialorder %v2314_v53, 0.0 }
 0x45c   : > { %v2634_v46 = vmul.f32 0.01, %v2378_v60  ;;  %v2379_v39 = vadd.f32 %v8803_v33, %v2034_v2  ;;  %vm2506_vm1 = vcmp.gt.f32.partialorder %v2378_v60, 0.0  ;;  %6551 = vmatpush3.bf16.msra.mxu0 %v7074_v24 }
 0x45d   : > { %vm2443_vm2 = vcmp.gt.f32.partialorder %v2315_v43, 0.0  ;;  %v2571_v17 = vmul.f32 0.01, %v2315_v43  ;;  %v2698_v58 = vsel %vm2442_vm0, %v2314_v53, %v2570_v13 }
 0x45e   : > { %vm2507_vm3 = vcmp.gt.f32.partialorder %v2379_v39, 0.0  ;;  %v2635_v28 = vmul.f32 0.01, %v2379_v39  ;;  %v2037_v3 = vpop.f32.mrb[84].mxu0  ;;  %v8812_v62 = vsel %vm2506_vm1, %v2378_v60, %v2634_v46 }
 0x45f   : > { %v2038_v42 = vadd.f32 %v2037_v3, %v8689_v50  ;;  %v2039_v48 = vpop.f32.mrb[85].mxu0  ;;  %v2699_v47 = vsel %vm2443_vm2, %v2315_v43, %v2571_v17  ;;  %10126 = vst [vmem:[#allocation35_spill] sm:$0xff] %v8812_v62  ;;  %v8838_v43 = vld [vmem:[%s8058_s25 + $0x60] sm:$0xff] }
 0x460   : > { %v2040_v12 = vadd.f32 %v2039_v48, %v8693_v5  ;;  %v2041_v27 = vpop.f32.mrb[86].mxu0  ;;  %v2822_v30 = vpack.c.bf16 %v2699_v47, %v2698_v58  ;;  %v8814_v22 = vsel %vm2507_vm3, %v2379_v39, %v2635_v28  ;;  %v8847_v58 = vld [vmem:[%s8058_s25 + $0x68] sm:$0xff] }
 0x461   : > { %10127 = vst [vmem:[#allocation36_spill] sm:$0xff] %v8814_v22  ;;  %v2316_v59 = vadd.f32 %v8817_v51, %v2038_v42  ;;  %v2042_v38 = vadd.f32 %v2041_v27, %v8689_v50  ;;  %v2043_v40 = vpop.f32.mrb[87].mxu0 }
 0x462   : > { %v2380_v45 = vadd.f32 %v8817_v51, %v2040_v12  ;;  %v2044_v26 = vadd.f32 %v2043_v40, %v8693_v5  ;;  %6426 = vmatprep.mubr.bf16.mxu1 %v2822_v30 }
 0x463   : > { %v2572_v25 = vmul.f32 0.01, %v2316_v59  ;;  %v2317_v34 = vadd.f32 %v8826_v18, %v2042_v38  ;;  %vm2444_vm4 = vcmp.gt.f32.partialorder %v2316_v59, 0.0 }
 0x464   : > { %v2636_v44 = vmul.f32 0.01, %v2380_v45  ;;  %v2381_v41 = vadd.f32 %v8826_v18, %v2044_v26  ;;  %vm2508_vm5 = vcmp.gt.f32.partialorder %v2380_v45, 0.0 }
 0x465   : > { %vm2445_vm6 = vcmp.gt.f32.partialorder %v2317_v34, 0.0  ;;  %v2573_v20 = vmul.f32 0.01, %v2317_v34  ;;  %v2700_v52 = vsel %vm2444_vm4, %v2316_v59, %v2572_v25 }
 0x466   : > { %vm2509_vm7 = vcmp.gt.f32.partialorder %v2381_v41, 0.0  ;;  %v2637_v32 = vmul.f32 0.01, %v2381_v41  ;;  %v2047_v55 = vpop.f32.mrb[88].mxu0  ;;  %v8833_v2 = vsel %vm2508_vm5, %v2380_v45, %v2636_v44 }
 0x467   : > { %v2048_v56 = vadd.f32 %v2047_v55, %v8689_v50  ;;  %v2049_v6 = vpop.f32.mrb[89].mxu0  ;;  %v2701_v53 = vsel %vm2445_vm6, %v2317_v34, %v2573_v20  ;;  %10128 = vst [vmem:[#allocation37_spill] sm:$0xff] %v8833_v2 }
 0x468   : > { %v2050_v14 = vadd.f32 %v2049_v6, %v8693_v5  ;;  %v2051_v7 = vpop.f32.mrb[90].mxu0  ;;  %v2823_v60 = vpack.c.bf16 %v2701_v53, %v2700_v52  ;;  %v8835_v13 = vsel %vm2509_vm7, %v2381_v41, %v2637_v32  ;;  %v8858_v32 = vld [vmem:[%s8058_s25 + $0x70] sm:$0xff] }
 0x469   : > { %10129 = vst [vmem:[#allocation38_spill] sm:$0xff] %v8835_v13  ;;  %v2318_v46 = vadd.f32 %v8838_v43, %v2048_v56  ;;  %v2052_v39 = vadd.f32 %v2051_v7, %v8689_v50  ;;  %v2053_v17 = vpop.f32.mrb[91].mxu0 }
 0x46a   : > { %v2382_v3 = vadd.f32 %v8838_v43, %v2050_v14  ;;  %v2054_v42 = vadd.f32 %v2053_v17, %v8693_v5  ;;  %6427 = vmatmul.mubr.bf16.gmra.mrb[72].mxu1 %v2823_v60  ;;  %v8867_v60 = vld [vmem:[%s8058_s25 + $0x78] sm:$0xff] }
 0x46b   : > { %v2574_v48 = vmul.f32 0.01, %v2318_v46  ;;  %v2319_v47 = vadd.f32 %v8847_v58, %v2052_v39  ;;  %vm2446_vm8 = vcmp.gt.f32.partialorder %v2318_v46, 0.0 }
 0x46c   : > { %v2638_v12 = vmul.f32 0.01, %v2382_v3  ;;  %v2383_v27 = vadd.f32 %v8847_v58, %v2054_v42  ;;  %vm2510_vm9 = vcmp.gt.f32.partialorder %v2382_v3, 0.0 }
 0x46d   : > { %vm2447_vm10 = vcmp.gt.f32.partialorder %v2319_v47, 0.0  ;;  %v2575_v30 = vmul.f32 0.01, %v2319_v47  ;;  %v2702_v26 = vsel %vm2446_vm8, %v2318_v46, %v2574_v48 }
 0x46e   : > { %vm2511_vm11 = vcmp.gt.f32.partialorder %v2383_v27, 0.0  ;;  %v2639_v59 = vmul.f32 0.01, %v2383_v27  ;;  %v2057_v38 = vpop.f32.mrb[92].mxu0  ;;  %v8853_v20 = vsel %vm2510_vm9, %v2382_v3, %v2638_v12 }
 0x46f   : > { %v2058_v40 = vadd.f32 %v2057_v38, %v8689_v50  ;;  %v2059_v45 = vpop.f32.mrb[93].mxu0  ;;  %v2703_v25 = vsel %vm2447_vm10, %v2319_v47, %v2575_v30  ;;  %10130 = vst [vmem:[#allocation39_spill] sm:$0xff] %v8853_v20  ;;  %v8999_v20 = vld [vmem:[%s8058_s25 + $0xe0] sm:$0xff] }
 0x470   : > { %v2060_v34 = vadd.f32 %v2059_v45, %v8693_v5  ;;  %v2061_v44 = vpop.f32.mrb[94].mxu0  ;;  %v2824_v41 = vpack.c.bf16 %v2703_v25, %v2702_v26  ;;  %v8855_v24 = vsel %vm2511_vm11, %v2383_v27, %v2639_v59  ;;  %v8878_v25 = vld [vmem:[%s8058_s25 + $0x80] sm:$0xff] }
 0x471   : > { %10131 = vst [vmem:[#allocation40_spill] sm:$0xff] %v8855_v24  ;;  %v2320_v55 = vadd.f32 %v8858_v32, %v2058_v40  ;;  %v2062_v56 = vadd.f32 %v2061_v44, %v8689_v50  ;;  %v2063_v6 = vpop.f32.mrb[95].mxu0 }
 0x472   : > { %v2384_v53 = vadd.f32 %v8858_v32, %v2060_v34  ;;  %v2064_v14 = vadd.f32 %v2063_v6, %v8693_v5  ;;  %6430 = vmatprep.mubr.bf16.mxu1 %v2824_v41 }
 0x473   : > { %v2576_v7 = vmul.f32 0.01, %v2320_v55  ;;  %v2321_v46 = vadd.f32 %v8867_v60, %v2062_v56  ;;  %vm2448_vm12 = vcmp.gt.f32.partialorder %v2320_v55, 0.0 }
 0x474   : > { %v2640_v39 = vmul.f32 0.01, %v2384_v53  ;;  %v2385_v17 = vadd.f32 %v8867_v60, %v2064_v14  ;;  %vm2512_vm13 = vcmp.gt.f32.partialorder %v2384_v53, 0.0 }
 0x475   : > { %vm2449_vm14 = vcmp.gt.f32.partialorder %v2321_v46, 0.0  ;;  %v2577_v3 = vmul.f32 0.01, %v2321_v46  ;;  %v2704_v27 = vsel %vm2448_vm12, %v2320_v55, %v2576_v7 }
 0x476   : > { %vm2513_vm15 = vcmp.gt.f32.partialorder %v2385_v17, 0.0  ;;  %v2641_v42 = vmul.f32 0.01, %v2385_v17  ;;  %v2067_v48 = vpop.f32.mrb[96].mxu0  ;;  %v8873_v45 = vsel %vm2512_vm13, %v2384_v53, %v2640_v39  ;;  %v8887_v53 = vld [vmem:[%s8058_s25 + $0x88] sm:$0xff] }
 0x477   : > { %v2068_v47 = vadd.f32 %v2067_v48, %v8689_v50  ;;  %v2069_v12 = vpop.f32.mrb[97].mxu0  ;;  %v2705_v30 = vsel %vm2449_vm14, %v2321_v46, %v2577_v3  ;;  %10132 = vst [vmem:[#allocation41_spill] sm:$0xff] %v8873_v45 }
 0x478   : > { %v2070_v59 = vadd.f32 %v2069_v12, %v8693_v5  ;;  %v2071_v38 = vpop.f32.mrb[98].mxu0  ;;  %v2825_v40 = vpack.c.bf16 %v2705_v30, %v2704_v27  ;;  %v8875_v26 = vsel %vm2513_vm15, %v2385_v17, %v2641_v42 }
 0x479   : > { %10133 = vst [vmem:[#allocation42_spill] sm:$0xff] %v8875_v26  ;;  %v2322_v34 = vadd.f32 %v8878_v25, %v2068_v47  ;;  %v2072_v44 = vadd.f32 %v2071_v38, %v8689_v50  ;;  %v2073_v41 = vpop.f32.mrb[99].mxu0 }
 0x47a   : > { %v2386_v56 = vadd.f32 %v8878_v25, %v2070_v59  ;;  %v2074_v6 = vadd.f32 %v2073_v41, %v8693_v5  ;;  %6431 = vmatmul.mubr.bf16.gmra.mrb[76].mxu1 %v2825_v40  ;;  %v8898_v41 = vld [vmem:[%s8058_s25 + $0x90] sm:$0xff] }
 0x47b   : > { %v2578_v14 = vmul.f32 0.01, %v2322_v34  ;;  %v2323_v7 = vadd.f32 %v8887_v53, %v2072_v44  ;;  %vm2450_vm0 = vcmp.gt.f32.partialorder %v2322_v34, 0.0 }
 0x47c   : > { %v2642_v46 = vmul.f32 0.01, %v2386_v56  ;;  %v2387_v39 = vadd.f32 %v8887_v53, %v2074_v6  ;;  %vm2514_vm1 = vcmp.gt.f32.partialorder %v2386_v56, 0.0 }
 0x47d   : > { %vm2451_vm2 = vcmp.gt.f32.partialorder %v2323_v7, 0.0  ;;  %v2579_v17 = vmul.f32 0.01, %v2323_v7  ;;  %v2706_v12 = vsel %vm2450_vm0, %v2322_v34, %v2578_v14 }
 0x47e   : > { %vm2515_vm3 = vcmp.gt.f32.partialorder %v2387_v39, 0.0  ;;  %v2643_v3 = vmul.f32 0.01, %v2387_v39  ;;  %v2077_v42 = vpop.f32.mrb[100].mxu0  ;;  %v8893_v40 = vsel %vm2514_vm1, %v2386_v56, %v2642_v46  ;;  %v8907_v56 = vld [vmem:[%s8058_s25 + $0x98] sm:$0xff] }
 0x47f   : > { %v2078_v48 = vadd.f32 %v2077_v42, %v8689_v50  ;;  %v2079_v47 = vpop.f32.mrb[101].mxu0  ;;  %v2707_v27 = vsel %vm2451_vm2, %v2323_v7, %v2579_v17  ;;  %10134 = vst [vmem:[#allocation43_spill] sm:$0xff] %v8893_v40 }
 0x480   : > { %v2080_v30 = vadd.f32 %v2079_v47, %v8693_v5  ;;  %v2081_v59 = vpop.f32.mrb[102].mxu0  ;;  %v2826_v38 = vpack.c.bf16 %v2707_v27, %v2706_v12  ;;  %v8895_v44 = vsel %vm2515_vm3, %v2387_v39, %v2643_v3 }
 0x481   : > { %10135 = vst [vmem:[#allocation44_spill] sm:$0xff] %v8895_v44  ;;  %v2324_v6 = vadd.f32 %v8898_v41, %v2078_v48  ;;  %v2082_v55 = vadd.f32 %v2081_v59, %v8689_v50  ;;  %v2083_v52 = vpop.f32.mrb[103].mxu0  ;;  %v7075_v48 = vld [vmem:[#allocation17 + $0x18] sm:$0xff]  }
 0x482   : > { %v2388_v14 = vadd.f32 %v8898_v41, %v2080_v30  ;;  %v2084_v7 = vadd.f32 %v2083_v52, %v8693_v5  ;;  %6434 = vmatprep.mubr.bf16.mxu1 %v2826_v38  ;;  %6552 = vmatprep.subr.bf16.mxu0 %v7075_v48 }
 0x483   : > { %v2580_v17 = vmul.f32 0.01, %v2324_v6  ;;  %v2325_v46 = vadd.f32 %v8907_v56, %v2082_v55  ;;  %vm2452_vm4 = vcmp.gt.f32.partialorder %v2324_v6, 0.0  ;;  %6553 = vmatpush3.bf16.msra.mxu0 %v7075_v48 }
 0x484   : > { %v2644_v39 = vmul.f32 0.01, %v2388_v14  ;;  %v2389_v3 = vadd.f32 %v8907_v56, %v2084_v7  ;;  %vm2516_vm5 = vcmp.gt.f32.partialorder %v2388_v14, 0.0 }
 0x485   : > { %vm2453_vm6 = vcmp.gt.f32.partialorder %v2325_v46, 0.0  ;;  %v2581_v42 = vmul.f32 0.01, %v2325_v46  ;;  %v2708_v30 = vsel %vm2452_vm4, %v2324_v6, %v2580_v17 }
 0x486   : > { %vm2517_vm7 = vcmp.gt.f32.partialorder %v2389_v3, 0.0  ;;  %v2645_v47 = vmul.f32 0.01, %v2389_v3  ;;  %v2087_v12 = vpop.f32.mrb[104].mxu0  ;;  %v8914_v7 = vsel %vm2516_vm5, %v2388_v14, %v2644_v39  ;;  %v8928_v14 = vld [vmem:[%s8058_s25 + $0xa8] sm:$0xff] }
 0x487   : > { %v2088_v52 = vadd.f32 %v2087_v12, %v8689_v50  ;;  %v2089_v27 = vpop.f32.mrb[105].mxu0  ;;  %v2709_v59 = vsel %vm2453_vm6, %v2325_v46, %v2581_v42  ;;  %10136 = vst [vmem:[#allocation45_spill] sm:$0xff] %v8914_v7 }
 0x488   : > { %v2090_v55 = vadd.f32 %v2089_v27, %v8693_v5  ;;  %v2091_v38 = vpop.f32.mrb[106].mxu0  ;;  %v2827_v34 = vpack.c.bf16 %v2709_v59, %v2708_v30  ;;  %v8916_v28 = vsel %vm2517_vm7, %v2389_v3, %v2645_v47 }
 0x489   : > { %10137 = vst [vmem:[#allocation46_spill] sm:$0xff] %v8916_v28  ;;  %v2326_v8 = vadd.f32 %v8919_v37, %v2088_v52  ;;  %v2092_v12 = vadd.f32 %v2091_v38, %v8689_v50  ;;  %v2093_v6 = vpop.f32.mrb[107].mxu0 }
 0x48a   : > { %v2390_v46 = vadd.f32 %v8919_v37, %v2090_v55  ;;  %v2094_v42 = vadd.f32 %v2093_v6, %v8693_v5  ;;  %6435 = vmatmul.mubr.bf16.gmra.mrb[80].mxu1 %v2827_v34 }
 0x48b   : > { %v2582_v48 = vmul.f32 0.01, %v2326_v8  ;;  %v2327_v39 = vadd.f32 %v8928_v14, %v2092_v12  ;;  %vm2454_vm8 = vcmp.gt.f32.partialorder %v2326_v8, 0.0 }
 0x48c   : > { %v2646_v3 = vmul.f32 0.01, %v2390_v46  ;;  %v2391_v47 = vadd.f32 %v8928_v14, %v2094_v42  ;;  %vm2518_vm9 = vcmp.gt.f32.partialorder %v2390_v46, 0.0 }
 0x48d   : > { %vm2455_vm10 = vcmp.gt.f32.partialorder %v2327_v39, 0.0  ;;  %v2583_v52 = vmul.f32 0.01, %v2327_v39  ;;  %v2710_v34 = vsel %vm2454_vm8, %v2326_v8, %v2582_v48 }
 0x48e   : > { %vm2519_vm11 = vcmp.gt.f32.partialorder %v2391_v47, 0.0  ;;  %v2647_v27 = vmul.f32 0.01, %v2391_v47  ;;  %v2097_v30 = vpop.f32.mrb[108].mxu0  ;;  %v8934_v4 = vsel %vm2518_vm9, %v2390_v46, %v2646_v3  ;;  %v8948_v46 = vld [vmem:[%s8058_s25 + $0xb8] sm:$0xff] }
 0x48f   : > { %v2098_v59 = vadd.f32 %v2097_v30, %v8689_v50  ;;  %v2099_v55 = vpop.f32.mrb[109].mxu0  ;;  %v2711_v38 = vsel %vm2455_vm10, %v2327_v39, %v2583_v52  ;;  %10138 = vst [vmem:[#allocation47_spill] sm:$0xff] %v8934_v4 }
 0x490   : > { %v2100_v6 = vadd.f32 %v2099_v55, %v8693_v5  ;;  %v2101_v12 = vpop.f32.mrb[110].mxu0  ;;  %v2828_v17 = vpack.c.bf16 %v2711_v38, %v2710_v34  ;;  %v8936_v42 = vsel %vm2519_vm11, %v2391_v47, %v2647_v27 }
 0x491   : > { %10139 = vst [vmem:[#allocation48_spill] sm:$0xff] %v8936_v42  ;;  %v2328_v63 = vadd.f32 %v8939_v15, %v2098_v59  ;;  %v2102_v7 = vadd.f32 %v2101_v12, %v8689_v50  ;;  %v2103_v28 = vpop.f32.mrb[111].mxu0  ;;  %v8959_v42 = vld [vmem:[%s8058_s25 + $0xc0] sm:$0xff] }
 0x492   : > { %v2392_v48 = vadd.f32 %v8939_v15, %v2100_v6  ;;  %v2104_v39 = vadd.f32 %v2103_v28, %v8693_v5  ;;  %6438 = vmatprep.mubr.bf16.mxu1 %v2828_v17  ;;  %v7076_v6 = vld [vmem:[#allocation17 + $0x20] sm:$0xff]  }
 0x493   : > { %v2584_v52 = vmul.f32 0.01, %v2328_v63  ;;  %v2329_v3 = vadd.f32 %v8948_v46, %v2102_v7  ;;  %vm2456_vm12 = vcmp.gt.f32.partialorder %v2328_v63, 0.0  ;;  %6554 = vmatprep.subr.bf16.mxu0 %v7076_v6 }
 0x494   : > { %v2648_v47 = vmul.f32 0.01, %v2392_v48  ;;  %v2393_v27 = vadd.f32 %v8948_v46, %v2104_v39  ;;  %vm2520_vm13 = vcmp.gt.f32.partialorder %v2392_v48, 0.0  ;;  %6555 = vmatpush3.bf16.msra.mxu0 %v7076_v6 }
 0x495   : > { %vm2457_vm14 = vcmp.gt.f32.partialorder %v2329_v3, 0.0  ;;  %v2585_v30 = vmul.f32 0.01, %v2329_v3  ;;  %v2712_v17 = vsel %vm2456_vm12, %v2328_v63, %v2584_v52 }
 0x496   : > { %vm2521_vm15 = vcmp.gt.f32.partialorder %v2393_v27, 0.0  ;;  %v2649_v59 = vmul.f32 0.01, %v2393_v27  ;;  %v2107_v55 = vpop.f32.mrb[112].mxu0  ;;  %v8954_v4 = vsel %vm2520_vm13, %v2392_v48, %v2648_v47  ;;  %v8968_v47 = vld [vmem:[%s8058_s25 + $0xc8] sm:$0xff] }
 0x497   : > { %v2108_v34 = vadd.f32 %v2107_v55, %v8689_v50  ;;  %v2109_v28 = vpop.f32.mrb[113].mxu0  ;;  %v2713_v38 = vsel %vm2457_vm14, %v2329_v3, %v2585_v30  ;;  %10140 = vst [vmem:[#allocation49_spill] sm:$0xff] %v8954_v4  ;;  %v7077_v30 = vld [vmem:[#allocation17 + $0x28] sm:$0xff]  }
 0x498   : > { %v2110_v12 = vadd.f32 %v2109_v28, %v8693_v5  ;;  %v2111_v7 = vpop.f32.mrb[114].mxu0  ;;  %v2829_v8 = vpack.c.bf16 %v2713_v38, %v2712_v17  ;;  %v8956_v39 = vsel %vm2521_vm15, %v2393_v27, %v2649_v59  ;;  %6556 = vmatprep.subr.bf16.mxu0 %v7077_v30 }
 0x499   : > { %10141 = vst [vmem:[#allocation50_spill] sm:$0xff] %v8956_v39  ;;  %v2330_v40 = vadd.f32 %v8959_v42, %v2108_v34  ;;  %v2112_v44 = vadd.f32 %v2111_v7, %v8689_v50  ;;  %v2113_v55 = vpop.f32.mrb[115].mxu0  ;;  %6557 = vmatpush3.bf16.msra.mxu0 %v7077_v30  ;;  %v8979_v39 = vld [vmem:[%s8058_s25 + $0xd0] sm:$0xff] }
 0x49a   : > { %v2394_v52 = vadd.f32 %v8959_v42, %v2110_v12  ;;  %v2114_v3 = vadd.f32 %v2113_v55, %v8693_v5  ;;  %6439 = vmatmul.mubr.bf16.gmra.mrb[84].mxu1 %v2829_v8 }
 0x49b   : > { %v2586_v48 = vmul.f32 0.01, %v2330_v40  ;;  %v2331_v27 = vadd.f32 %v8968_v47, %v2112_v44  ;;  %vm2458_vm0 = vcmp.gt.f32.partialorder %v2330_v40, 0.0 }
 0x49c   : > { %v2650_v59 = vmul.f32 0.01, %v2394_v52  ;;  %v2395_v34 = vadd.f32 %v8968_v47, %v2114_v3  ;;  %vm2522_vm1 = vcmp.gt.f32.partialorder %v2394_v52, 0.0 }
 0x49d   : > { %vm2459_vm2 = vcmp.gt.f32.partialorder %v2331_v27, 0.0  ;;  %v2587_v28 = vmul.f32 0.01, %v2331_v27  ;;  %v2714_v12 = vsel %vm2458_vm0, %v2330_v40, %v2586_v48 }
 0x49e   : > { %vm2523_vm3 = vcmp.gt.f32.partialorder %v2395_v34, 0.0  ;;  %v2651_v17 = vmul.f32 0.01, %v2395_v34  ;;  %v2117_v38 = vpop.f32.mrb[116].mxu0  ;;  %v8974_v3 = vsel %vm2522_vm1, %v2394_v52, %v2650_v59  ;;  %v8988_v59 = vld [vmem:[%s8058_s25 + $0xd8] sm:$0xff] }
 0x49f   : > { %v2118_v8 = vadd.f32 %v2117_v38, %v8689_v50  ;;  %v2119_v6 = vpop.f32.mrb[117].mxu0  ;;  %v2715_v7 = vsel %vm2459_vm2, %v2331_v27, %v2587_v28  ;;  %10142 = vst [vmem:[#allocation51_spill] sm:$0xff] %v8974_v3  ;;  %v7078_v28 = vld [vmem:[#allocation17 + $0x30] sm:$0xff]  }
 0x4a0   : > { %v2120_v44 = vadd.f32 %v2119_v6, %v8693_v5  ;;  %v2121_v55 = vpop.f32.mrb[118].mxu0  ;;  %v2830_v63 = vpack.c.bf16 %v2715_v7, %v2714_v12  ;;  %v8976_v4 = vsel %vm2523_vm3, %v2395_v34, %v2651_v17  ;;  %6558 = vmatprep.subr.bf16.mxu0 %v7078_v28 }
 0x4a1   : > { %10143 = vst [vmem:[#allocation52_spill] sm:$0xff] %v8976_v4  ;;  %v2332_v45 = vadd.f32 %v8979_v39, %v2118_v8  ;;  %v2122_v30 = vadd.f32 %v2121_v55, %v8689_v50  ;;  %v2123_v26 = vpop.f32.mrb[119].mxu0  ;;  %6559 = vmatpush3.bf16.msra.mxu0 %v7078_v28 }
 0x4a2   : > { %v2396_v48 = vadd.f32 %v8979_v39, %v2120_v44  ;;  %v2124_v27 = vadd.f32 %v2123_v26, %v8693_v5  ;;  %6442 = vmatprep.mubr.bf16.mxu1 %v2830_v63 }
 0x4a3   : > { %v2588_v52 = vmul.f32 0.01, %v2332_v45  ;;  %v2333_v34 = vadd.f32 %v8988_v59, %v2122_v30  ;;  %vm2460_vm4 = vcmp.gt.f32.partialorder %v2332_v45, 0.0 }
 0x4a4   : > { %v2652_v17 = vmul.f32 0.01, %v2396_v48  ;;  %v2397_v38 = vadd.f32 %v8988_v59, %v2124_v27  ;;  %vm2524_vm5 = vcmp.gt.f32.partialorder %v2396_v48, 0.0  ;;  %v7079_v27 = vld [vmem:[#allocation17 + $0x38] sm:$0xff]  }
 0x4a5   : > { %vm2461_vm6 = vcmp.gt.f32.partialorder %v2333_v34, 0.0  ;;  %v2589_v8 = vmul.f32 0.01, %v2333_v34  ;;  %v2716_v7 = vsel %vm2460_vm4, %v2332_v45, %v2588_v52  ;;  %6560 = vmatprep.subr.bf16.mxu0 %v7079_v27 }
 0x4a6   : > { %vm2525_vm7 = vcmp.gt.f32.partialorder %v2397_v38, 0.0  ;;  %v2653_v6 = vmul.f32 0.01, %v2397_v38  ;;  %v2127_v26 = vpop.f32.mrb[120].mxu0  ;;  %v8994_v3 = vsel %vm2524_vm5, %v2396_v48, %v2652_v17  ;;  %v9008_v17 = vld [vmem:[%s8058_s25 + $0xe8] sm:$0xff]  ;;  %6561 = vmatpush3.bf16.msra.mxu0 %v7079_v27 }
 0x4a7   : > { %v2128_v63 = vadd.f32 %v2127_v26, %v8689_v50  ;;  %v2129_v12 = vpop.f32.mrb[121].mxu0  ;;  %v2717_v44 = vsel %vm2461_vm6, %v2333_v34, %v2589_v8  ;;  %10144 = vst [vmem:[#allocation53_spill] sm:$0xff] %v8994_v3  ;;  %v9019_v3 = vld [vmem:[%s8058_s25 + $0xf0] sm:$0xff] }
 0x4a8   : > { %v2130_v55 = vadd.f32 %v2129_v12, %v8693_v5  ;;  %v2131_v30 = vpop.f32.mrb[122].mxu0  ;;  %v2831_v40 = vpack.c.bf16 %v2717_v44, %v2716_v7  ;;  %v8996_v4 = vsel %vm2525_vm7, %v2397_v38, %v2653_v6 }
 0x4a9   : > { %10145 = vst [vmem:[#allocation54_spill] sm:$0xff] %v8996_v4  ;;  %v2334_v28 = vadd.f32 %v8999_v20, %v2128_v63  ;;  %v2132_v24 = vadd.f32 %v2131_v30, %v8689_v50  ;;  %v2133_v26 = vpop.f32.mrb[123].mxu0 }
 0x4aa   : > { %v2398_v52 = vadd.f32 %v8999_v20, %v2130_v55  ;;  %v2134_v34 = vadd.f32 %v2133_v26, %v8693_v5  ;;  %6443 = vmatmul.mubr.bf16.gmra.mrb[88].mxu1 %v2831_v40 }
 0x4ab   : > { %v2590_v48 = vmul.f32 0.01, %v2334_v28  ;;  %v2335_v38 = vadd.f32 %v9008_v17, %v2132_v24  ;;  %vm2462_vm8 = vcmp.gt.f32.partialorder %v2334_v28, 0.0 }
 0x4ac   : > { %v2654_v8 = vmul.f32 0.01, %v2398_v52  ;;  %v2399_v6 = vadd.f32 %v9008_v17, %v2134_v34  ;;  %vm2526_vm9 = vcmp.gt.f32.partialorder %v2398_v52, 0.0 }
 0x4ad   : > { %vm2463_vm10 = vcmp.gt.f32.partialorder %v2335_v38, 0.0  ;;  %v2591_v63 = vmul.f32 0.01, %v2335_v38  ;;  %v2718_v55 = vsel %vm2462_vm8, %v2334_v28, %v2590_v48 }
 0x4ae   : > { %vm2527_vm11 = vcmp.gt.f32.partialorder %v2399_v6, 0.0  ;;  %v2655_v12 = vmul.f32 0.01, %v2399_v6  ;;  %v2137_v7 = vpop.f32.mrb[124].mxu0  ;;  %v9014_v45 = vsel %vm2526_vm9, %v2398_v52, %v2654_v8  ;;  %v9028_v52 = vld [vmem:[%s8058_s25 + $0xf8] sm:$0xff]  ;;  %s7601_s25 = smov [#allocation23]  }
 0x4af   : > { %v2138_v40 = vadd.f32 %v2137_v7, %v8689_v50  ;;  %v2139_v44 = vpop.f32.mrb[125].mxu0  ;;  %v2719_v30 = vsel %vm2463_vm10, %v2335_v38, %v2591_v63  ;;  %10146 = vst [vmem:[#allocation55_spill] sm:$0xff] %v9014_v45  ;;  %s7495_s20 = sshll.u32 %s7601_s25, 4  ;;  %s7496_s20 = int_to_ptr.vmem [resolvable:$false] %s7495_s20 }
 0x4b0   : > { %v2140_v24 = vadd.f32 %v2139_v44, %v8693_v5  ;;  %v2141_v27 = vpop.f32.mrb[126].mxu0  ;;  %v2832_v26 = vpack.c.bf16 %v2719_v30, %v2718_v55  ;;  %v9016_v34 = vsel %vm2527_vm11, %v2399_v6, %v2655_v12  ;;  %s7497_s17 = scalar_lea.vmem %s7496_s20, 32768  ;;  %p7498_p4 = scmp.lt.s32.totalorder %s9966_s13, %s7496_s20 }
 0x4b1   : > { %10147 = vst [vmem:[#allocation56_spill] sm:$0xff] %v9016_v34  ;;  %v2336_v4 = vadd.f32 %v9019_v3, %v2138_v40  ;;  %v2142_v2 = vadd.f32 %v2141_v27, %v8689_v50  ;;  %v2143_v13 = vpop.f32.mrb[127].mxu0  ;;  %p7499_p3 = scmp.lt.s32.totalorder %s7497_s17, %s7491_s23 }
 0x4b2   : > { %v2400_v48 = vadd.f32 %v9019_v3, %v2140_v24  ;;  %v2144_v38 = vadd.f32 %v2143_v13, %v8693_v5  ;;  %6446 = vmatprep.mubr.bf16.mxu1 %v2832_v26 }
 0x4b3   : > { %v2592_v63 = vmul.f32 0.01, %v2336_v4  ;;  %v2337_v8 = vadd.f32 %v9028_v52, %v2142_v2  ;;  %vm2464_vm12 = vcmp.gt.f32.partialorder %v2336_v4, 0.0  ;;  %p7500_p0 = por %p7499_p3, %p7498_p4 }
 0x4b4   : > { %v2656_v6 = vmul.f32 0.01, %v2400_v48  ;;  %v2401_v12 = vadd.f32 %v9028_v52, %v2144_v38  ;;  %vm2528_vm13 = vcmp.gt.f32.partialorder %v2400_v48, 0.0 }
 0x4b5   : > { %vm2465_vm14 = vcmp.gt.f32.partialorder %v2337_v8, 0.0  ;;  %v2593_v7 = vmul.f32 0.01, %v2337_v8  ;;  %v2720_v13 = vsel %vm2464_vm12, %v2336_v4, %v2592_v63  ;;  %p7501_p2 = pnand %p7500_p0, %p7494_p9 }
 0x4b6   : > { %vm2529_vm15 = vcmp.gt.f32.partialorder %v2401_v12, 0.0  ;;  %v2657_v40 = vmul.f32 0.01, %v2401_v12  ;;  %v2147_v44 = vpop.f32.mrb[128].mxu0  ;;  %v9034_v2 = vsel %vm2528_vm13, %v2400_v48, %v2656_v6 }
 0x4b7   : > { %v2148_v55 = vadd.f32 %v2147_v44, %v8689_v50  ;;  %v2149_v30 = vpop.f32.mrb[129].mxu0  ;;  %v2721_v24 = vsel %vm2465_vm14, %v2337_v8, %v2593_v7 }
 0x4b8   : > { %v2150_v27 = vadd.f32 %v2149_v30, %v8693_v5  ;;  %v2151_v26 = vpop.f32.mrb[130].mxu0  ;;  %v2833_v28 = vpack.c.bf16 %v2721_v24, %v2720_v13  ;;  %v9036_v45 = vsel %vm2529_vm15, %v2401_v12, %v2657_v40 }
 0x4b9   : > { %v2338_v38 = vadd.f32 %v8699_v19, %v2148_v55  ;;  %v2152_v34 = vadd.f32 %v2151_v26, %v8689_v50  ;;  %v2153_v62 = vpop.f32.mrb[131].mxu0 }
 0x4ba   : > { %v2402_v44 = vadd.f32 %v8699_v19, %v2150_v27  ;;  %v2154_v4 = vadd.f32 %v2153_v62, %v8693_v5  ;;  %6447 = vmatmul.mubr.bf16.gmra.mrb[92].mxu1 %v2833_v28 }
 0x4bb   : > { %v2594_v63 = vmul.f32 0.01, %v2338_v38  ;;  %v2339_v8 = vadd.f32 %v8706_v23, %v2152_v34  ;;  %vm2466_vm0 = vcmp.gt.f32.partialorder %v2338_v38, 0.0 }
 0x4bc   : > { %v2658_v48 = vmul.f32 0.01, %v2402_v44  ;;  %v2403_v6 = vadd.f32 %v8706_v23, %v2154_v4  ;;  %vm2530_vm1 = vcmp.gt.f32.partialorder %v2402_v44, 0.0 }
 0x4bd   : > { %vm2467_vm2 = vcmp.gt.f32.partialorder %v2339_v8, 0.0  ;;  %v2595_v12 = vmul.f32 0.01, %v2339_v8  ;;  %v2722_v19 = vsel %vm2466_vm0, %v2338_v38, %v2594_v63 }
 0x4be   : > { %vm2531_vm3 = vcmp.gt.f32.partialorder %v2403_v6, 0.0  ;;  %v2659_v7 = vmul.f32 0.01, %v2403_v6  ;;  %v2157_v40 = vpop.f32.mrb[132].mxu0  ;;  %v9048_v34 = vsel %vm2530_vm1, %v2402_v44, %v2658_v48 }
 0x4bf   : > { %v2158_v55 = vadd.f32 %v2157_v40, %v8689_v50  ;;  %v2159_v30 = vpop.f32.mrb[133].mxu0  ;;  %v2723_v13 = vsel %vm2467_vm2, %v2339_v8, %v2595_v12 }
 0x4c0   : > { %v2160_v62 = vadd.f32 %v2159_v30, %v8693_v5  ;;  %v2161_v28 = vpop.f32.mrb[134].mxu0  ;;  %v2834_v24 = vpack.c.bf16 %v2723_v13, %v2722_v19  ;;  %v9050_v27 = vsel %vm2531_vm3, %v2403_v6, %v2659_v7 }
 0x4c1   : > { %v2340_v23 = vadd.f32 %v8721_v0, %v2158_v55  ;;  %v2162_v26 = vadd.f32 %v2161_v28, %v8689_v50  ;;  %v2163_v4 = vpop.f32.mrb[135].mxu0 }
 0x4c2   : > { %v2404_v40 = vadd.f32 %v8721_v0, %v2160_v62  ;;  %v2164_v38 = vadd.f32 %v2163_v4, %v8693_v5  ;;  %6450 = vmatprep.mubr.bf16.mxu1 %v2834_v24 }
 0x4c3   : > { %v2596_v63 = vmul.f32 0.01, %v2340_v23  ;;  %v2341_v8 = vadd.f32 %v8730_v36, %v2162_v26  ;;  %vm2468_vm4 = vcmp.gt.f32.partialorder %v2340_v23, 0.0 }
 0x4c4   : > { %v2660_v44 = vmul.f32 0.01, %v2404_v40  ;;  %v2405_v48 = vadd.f32 %v8730_v36, %v2164_v38  ;;  %vm2532_vm5 = vcmp.gt.f32.partialorder %v2404_v40, 0.0 }
 0x4c5   : > { %vm2469_vm6 = vcmp.gt.f32.partialorder %v2341_v8, 0.0  ;;  %v2597_v6 = vmul.f32 0.01, %v2341_v8  ;;  %v2724_v0 = vsel %vm2468_vm4, %v2340_v23, %v2596_v63 }
 0x4c6   : > { %vm2533_vm7 = vcmp.gt.f32.partialorder %v2405_v48, 0.0  ;;  %v2661_v12 = vmul.f32 0.01, %v2405_v48  ;;  %v2167_v7 = vpop.f32.mrb[136].mxu0  ;;  %v9062_v24 = vsel %vm2532_vm5, %v2404_v40, %v2660_v44 }
 0x4c7   : > { %v2168_v55 = vadd.f32 %v2167_v7, %v8689_v50  ;;  %v2169_v30 = vpop.f32.mrb[137].mxu0  ;;  %v2725_v19 = vsel %vm2469_vm6, %v2341_v8, %v2597_v6 }
 0x4c8   : > { %v2170_v13 = vadd.f32 %v2169_v30, %v8693_v5  ;;  %v2171_v62 = vpop.f32.mrb[138].mxu0  ;;  %v2835_v28 = vpack.c.bf16 %v2725_v19, %v2724_v0  ;;  %v9064_v26 = vsel %vm2533_vm7, %v2405_v48, %v2661_v12 }
 0x4c9   : > { %v2342_v36 = vadd.f32 %v8746_v61, %v2168_v55  ;;  %v2172_v4 = vadd.f32 %v2171_v62, %v8689_v50  ;;  %v2173_v38 = vpop.f32.mrb[139].mxu0 }
 0x4ca   : > { %v2406_v7 = vadd.f32 %v8746_v61, %v2170_v13  ;;  %v2174_v23 = vadd.f32 %v2173_v38, %v8693_v5  ;;  %6451 = vmatmul.mubr.bf16.gmra.mrb[96].mxu1 %v2835_v28 }
 0x4cb   : > { %v2598_v63 = vmul.f32 0.01, %v2342_v36  ;;  %v2343_v8 = vadd.f32 %v8755_v49, %v2172_v4  ;;  %vm2470_vm8 = vcmp.gt.f32.partialorder %v2342_v36, 0.0 }
 0x4cc   : > { %v2662_v40 = vmul.f32 0.01, %v2406_v7  ;;  %v2407_v44 = vadd.f32 %v8755_v49, %v2174_v23  ;;  %vm2534_vm9 = vcmp.gt.f32.partialorder %v2406_v7, 0.0 }
 0x4cd   : > { %vm2471_vm10 = vcmp.gt.f32.partialorder %v2343_v8, 0.0  ;;  %v2599_v48 = vmul.f32 0.01, %v2343_v8  ;;  %v2726_v61 = vsel %vm2470_vm8, %v2342_v36, %v2598_v63 }
 0x4ce   : > { %vm2535_vm11 = vcmp.gt.f32.partialorder %v2407_v44, 0.0  ;;  %v2663_v6 = vmul.f32 0.01, %v2407_v44  ;;  %v2177_v12 = vpop.f32.mrb[140].mxu0  ;;  %v9076_v28 = vsel %vm2534_vm9, %v2406_v7, %v2662_v40 }
 0x4cf   : > { %v2178_v55 = vadd.f32 %v2177_v12, %v8689_v50  ;;  %v2179_v30 = vpop.f32.mrb[141].mxu0  ;;  %v2727_v0 = vsel %vm2471_vm10, %v2343_v8, %v2599_v48 }
 0x4d0   : > { %v2180_v19 = vadd.f32 %v2179_v30, %v8693_v5  ;;  %v2181_v13 = vpop.f32.mrb[142].mxu0  ;;  %v2836_v62 = vpack.c.bf16 %v2727_v0, %v2726_v61  ;;  %v9078_v4 = vsel %vm2535_vm11, %v2407_v44, %v2663_v6 }
 0x4d1   : > { %v2344_v49 = vadd.f32 %v8770_v9, %v2178_v55  ;;  %v2182_v38 = vadd.f32 %v2181_v13, %v8689_v50  ;;  %v2183_v23 = vpop.f32.mrb[143].mxu0 }
 0x4d2   : > { %v2408_v12 = vadd.f32 %v8770_v9, %v2180_v19  ;;  %v2184_v36 = vadd.f32 %v2183_v23, %v8693_v5  ;;  %6454 = vmatprep.mubr.bf16.mxu1 %v2836_v62 }
 0x4d3   : > { %v2600_v63 = vmul.f32 0.01, %v2344_v49  ;;  %v2345_v8 = vadd.f32 %v8779_v35, %v2182_v38  ;;  %vm2472_vm12 = vcmp.gt.f32.partialorder %v2344_v49, 0.0 }
 0x4d4   : > { %v2664_v7 = vmul.f32 0.01, %v2408_v12  ;;  %v2409_v40 = vadd.f32 %v8779_v35, %v2184_v36  ;;  %vm2536_vm13 = vcmp.gt.f32.partialorder %v2408_v12, 0.0 }
 0x4d5   : > { %vm2473_vm14 = vcmp.gt.f32.partialorder %v2345_v8, 0.0  ;;  %v2601_v44 = vmul.f32 0.01, %v2345_v8  ;;  %v2728_v9 = vsel %vm2472_vm12, %v2344_v49, %v2600_v63 }
 0x4d6   : > { %vm2537_vm15 = vcmp.gt.f32.partialorder %v2409_v40, 0.0  ;;  %v2665_v48 = vmul.f32 0.01, %v2409_v40  ;;  %v2187_v6 = vpop.f32.mrb[144].mxu0  ;;  %v9090_v62 = vsel %vm2536_vm13, %v2408_v12, %v2664_v7 }
 0x4d7   : > { %v2188_v55 = vadd.f32 %v2187_v6, %v8689_v50  ;;  %v2189_v30 = vpop.f32.mrb[145].mxu0  ;;  %v2729_v61 = vsel %vm2473_vm14, %v2345_v8, %v2601_v44 }
 0x4d8   : > { %v2190_v0 = vadd.f32 %v2189_v30, %v8693_v5  ;;  %v2191_v19 = vpop.f32.mrb[146].mxu0  ;;  %v2837_v13 = vpack.c.bf16 %v2729_v61, %v2728_v9  ;;  %v9092_v38 = vsel %vm2537_vm15, %v2409_v40, %v2665_v48 }
 0x4d9   : > { %v2346_v35 = vadd.f32 %v8794_v11, %v2188_v55  ;;  %v2192_v23 = vadd.f32 %v2191_v19, %v8689_v50  ;;  %v2193_v36 = vpop.f32.mrb[147].mxu0 }
 0x4da   : > { %v2410_v6 = vadd.f32 %v8794_v11, %v2190_v0  ;;  %v2194_v49 = vadd.f32 %v2193_v36, %v8693_v5  ;;  %6455 = vmatmul.mubr.bf16.gmra.mrb[100].mxu1 %v2837_v13 }
 0x4db   : > { %v2602_v63 = vmul.f32 0.01, %v2346_v35  ;;  %v2347_v8 = vadd.f32 %v8803_v33, %v2192_v23  ;;  %vm2474_vm0 = vcmp.gt.f32.partialorder %v2346_v35, 0.0 }
 0x4dc   : > { %v2666_v12 = vmul.f32 0.01, %v2410_v6  ;;  %v2411_v7 = vadd.f32 %v8803_v33, %v2194_v49  ;;  %vm2538_vm1 = vcmp.gt.f32.partialorder %v2410_v6, 0.0 }
 0x4dd   : > { %vm2475_vm2 = vcmp.gt.f32.partialorder %v2347_v8, 0.0  ;;  %v2603_v40 = vmul.f32 0.01, %v2347_v8  ;;  %v2730_v11 = vsel %vm2474_vm0, %v2346_v35, %v2602_v63 }
 0x4de   : > { %vm2539_vm3 = vcmp.gt.f32.partialorder %v2411_v7, 0.0  ;;  %v2667_v44 = vmul.f32 0.01, %v2411_v7  ;;  %v2197_v48 = vpop.f32.mrb[148].mxu0  ;;  %v9104_v13 = vsel %vm2538_vm1, %v2410_v6, %v2666_v12 }
 0x4df   : > { %v2198_v55 = vadd.f32 %v2197_v48, %v8689_v50  ;;  %v2199_v30 = vpop.f32.mrb[149].mxu0  ;;  %v2731_v9 = vsel %vm2475_vm2, %v2347_v8, %v2603_v40 }
 0x4e0   : > { %v2200_v61 = vadd.f32 %v2199_v30, %v8693_v5  ;;  %v2201_v0 = vpop.f32.mrb[150].mxu0  ;;  %v2838_v19 = vpack.c.bf16 %v2731_v9, %v2730_v11  ;;  %v9106_v23 = vsel %vm2539_vm3, %v2411_v7, %v2667_v44 }
 0x4e1   : > { %v2348_v33 = vadd.f32 %v8817_v51, %v2198_v55  ;;  %v2202_v36 = vadd.f32 %v2201_v0, %v8689_v50  ;;  %v2203_v49 = vpop.f32.mrb[151].mxu0 }
 0x4e2   : > { %v2412_v48 = vadd.f32 %v8817_v51, %v2200_v61  ;;  %v2204_v35 = vadd.f32 %v2203_v49, %v8693_v5  ;;  %6458 = vmatprep.mubr.bf16.mxu1 %v2838_v19 }
 0x4e3   : > { %v2604_v63 = vmul.f32 0.01, %v2348_v33  ;;  %v2349_v8 = vadd.f32 %v8826_v18, %v2202_v36  ;;  %vm2476_vm4 = vcmp.gt.f32.partialorder %v2348_v33, 0.0 }
 0x4e4   : > { %v2668_v6 = vmul.f32 0.01, %v2412_v48  ;;  %v2413_v12 = vadd.f32 %v8826_v18, %v2204_v35  ;;  %vm2540_vm5 = vcmp.gt.f32.partialorder %v2412_v48, 0.0 }
 0x4e5   : > { %vm2477_vm6 = vcmp.gt.f32.partialorder %v2349_v8, 0.0  ;;  %v2605_v7 = vmul.f32 0.01, %v2349_v8  ;;  %v2732_v51 = vsel %vm2476_vm4, %v2348_v33, %v2604_v63 }
 0x4e6   : > { %vm2541_vm7 = vcmp.gt.f32.partialorder %v2413_v12, 0.0  ;;  %v2669_v40 = vmul.f32 0.01, %v2413_v12  ;;  %v2207_v44 = vpop.f32.mrb[152].mxu0  ;;  %v9118_v19 = vsel %vm2540_vm5, %v2412_v48, %v2668_v6 }
 0x4e7   : > { %v2208_v55 = vadd.f32 %v2207_v44, %v8689_v50  ;;  %v2209_v30 = vpop.f32.mrb[153].mxu0  ;;  %v2733_v11 = vsel %vm2477_vm6, %v2349_v8, %v2605_v7 }
 0x4e8   : > { %v2210_v9 = vadd.f32 %v2209_v30, %v8693_v5  ;;  %v2211_v61 = vpop.f32.mrb[154].mxu0  ;;  %v2839_v0 = vpack.c.bf16 %v2733_v11, %v2732_v51  ;;  %v9120_v36 = vsel %vm2541_vm7, %v2413_v12, %v2669_v40 }
 0x4e9   : > { %v2350_v18 = vadd.f32 %v8838_v43, %v2208_v55  ;;  %v2212_v49 = vadd.f32 %v2211_v61, %v8689_v50  ;;  %v2213_v35 = vpop.f32.mrb[155].mxu0 }
 0x4ea   : > { %v2414_v44 = vadd.f32 %v8838_v43, %v2210_v9  ;;  %v2214_v33 = vadd.f32 %v2213_v35, %v8693_v5  ;;  %6459 = vmatmul.mubr.bf16.gmra.mrb[104].mxu1 %v2839_v0 }
 0x4eb   : > { %v2606_v63 = vmul.f32 0.01, %v2350_v18  ;;  %v2351_v8 = vadd.f32 %v8847_v58, %v2212_v49  ;;  %vm2478_vm8 = vcmp.gt.f32.partialorder %v2350_v18, 0.0 }
 0x4ec   : > { %v2670_v48 = vmul.f32 0.01, %v2414_v44  ;;  %v2415_v6 = vadd.f32 %v8847_v58, %v2214_v33  ;;  %vm2542_vm9 = vcmp.gt.f32.partialorder %v2414_v44, 0.0 }
 0x4ed   : > { %vm2479_vm10 = vcmp.gt.f32.partialorder %v2351_v8, 0.0  ;;  %v2607_v12 = vmul.f32 0.01, %v2351_v8  ;;  %v2734_v43 = vsel %vm2478_vm8, %v2350_v18, %v2606_v63 }
 0x4ee   : > { %vm2543_vm11 = vcmp.gt.f32.partialorder %v2415_v6, 0.0  ;;  %v2671_v7 = vmul.f32 0.01, %v2415_v6  ;;  %v2217_v40 = vpop.f32.mrb[156].mxu0  ;;  %v9132_v0 = vsel %vm2542_vm9, %v2414_v44, %v2670_v48 }
 0x4ef   : > { %v2218_v55 = vadd.f32 %v2217_v40, %v8689_v50  ;;  %v2219_v30 = vpop.f32.mrb[157].mxu0  ;;  %v2735_v51 = vsel %vm2479_vm10, %v2351_v8, %v2607_v12 }
 0x4f0   : > { %v2220_v11 = vadd.f32 %v2219_v30, %v8693_v5  ;;  %v2221_v9 = vpop.f32.mrb[158].mxu0  ;;  %v2840_v61 = vpack.c.bf16 %v2735_v51, %v2734_v43  ;;  %v9134_v49 = vsel %vm2543_vm11, %v2415_v6, %v2671_v7 }
 0x4f1   : > { %v2352_v58 = vadd.f32 %v8858_v32, %v2218_v55  ;;  %v2222_v35 = vadd.f32 %v2221_v9, %v8689_v50  ;;  %v2223_v33 = vpop.f32.mrb[159].mxu0 }
 0x4f2   : > { %v2416_v40 = vadd.f32 %v8858_v32, %v2220_v11  ;;  %v2224_v18 = vadd.f32 %v2223_v33, %v8693_v5  ;;  %6462 = vmatprep.mubr.bf16.mxu1 %v2840_v61 }
 0x4f3   : > { %v2608_v63 = vmul.f32 0.01, %v2352_v58  ;;  %v2353_v8 = vadd.f32 %v8867_v60, %v2222_v35  ;;  %vm2480_vm12 = vcmp.gt.f32.partialorder %v2352_v58, 0.0 }
 0x4f4   : > { %v2672_v44 = vmul.f32 0.01, %v2416_v40  ;;  %v2417_v48 = vadd.f32 %v8867_v60, %v2224_v18  ;;  %vm2544_vm13 = vcmp.gt.f32.partialorder %v2416_v40, 0.0 }
 0x4f5   : > { %vm2481_vm14 = vcmp.gt.f32.partialorder %v2353_v8, 0.0  ;;  %v2609_v6 = vmul.f32 0.01, %v2353_v8  ;;  %v2736_v32 = vsel %vm2480_vm12, %v2352_v58, %v2608_v63 }
 0x4f6   : > { %vm2545_vm15 = vcmp.gt.f32.partialorder %v2417_v48, 0.0  ;;  %v2673_v12 = vmul.f32 0.01, %v2417_v48  ;;  %v2227_v7 = vpop.f32.mrb[160].mxu0  ;;  %v9146_v61 = vsel %vm2544_vm13, %v2416_v40, %v2672_v44 }
 0x4f7   : > { %v2228_v55 = vadd.f32 %v2227_v7, %v8689_v50  ;;  %v2229_v30 = vpop.f32.mrb[161].mxu0  ;;  %v2737_v43 = vsel %vm2481_vm14, %v2353_v8, %v2609_v6 }
 0x4f8   : > { %v2230_v51 = vadd.f32 %v2229_v30, %v8693_v5  ;;  %v2231_v11 = vpop.f32.mrb[162].mxu0  ;;  %v2841_v9 = vpack.c.bf16 %v2737_v43, %v2736_v32  ;;  %v9148_v35 = vsel %vm2545_vm15, %v2417_v48, %v2673_v12 }
 0x4f9   : > { %v2354_v60 = vadd.f32 %v8878_v25, %v2228_v55  ;;  %v2232_v33 = vadd.f32 %v2231_v11, %v8689_v50  ;;  %v2233_v18 = vpop.f32.mrb[163].mxu0 }
 0x4fa   : > { %v2418_v7 = vadd.f32 %v8878_v25, %v2230_v51  ;;  %v2234_v58 = vadd.f32 %v2233_v18, %v8693_v5  ;;  %6463 = vmatmul.mubr.bf16.gmra.mrb[108].mxu1 %v2841_v9 }
 0x4fb   : > { %v2610_v63 = vmul.f32 0.01, %v2354_v60  ;;  %v2355_v8 = vadd.f32 %v8887_v53, %v2232_v33  ;;  %vm2482_vm0 = vcmp.gt.f32.partialorder %v2354_v60, 0.0 }
 0x4fc   : > { %v2674_v40 = vmul.f32 0.01, %v2418_v7  ;;  %v2419_v44 = vadd.f32 %v8887_v53, %v2234_v58  ;;  %vm2546_vm1 = vcmp.gt.f32.partialorder %v2418_v7, 0.0 }
 0x4fd   : > { %vm2483_vm2 = vcmp.gt.f32.partialorder %v2355_v8, 0.0  ;;  %v2611_v48 = vmul.f32 0.01, %v2355_v8  ;;  %v2738_v25 = vsel %vm2482_vm0, %v2354_v60, %v2610_v63  ;;  %v7080_v63 = vld [vmem:[#allocation20] sm:$0xff]  }
 0x4fe   : > { %vm2547_vm3 = vcmp.gt.f32.partialorder %v2419_v44, 0.0  ;;  %v2675_v6 = vmul.f32 0.01, %v2419_v44  ;;  %v2237_v12 = vpop.f32.mrb[164].mxu0  ;;  %v9160_v9 = vsel %vm2546_vm1, %v2418_v7, %v2674_v40  ;;  %6690 = vmatprep.subr.bf16.mxu1 %v7080_v63 }
 0x4ff   : > { %v2238_v55 = vadd.f32 %v2237_v12, %v8689_v50  ;;  %v2239_v30 = vpop.f32.mrb[165].mxu0  ;;  %v2739_v32 = vsel %vm2483_vm2, %v2355_v8, %v2611_v48  ;;  %10148 = vst [vmem:[#allocation57_spill] sm:$0xff] %v9160_v9  ;;  %6691 = vmatpush3.bf16.msra.mxu1 %v7080_v63 }
 0x500   : > { %v2240_v43 = vadd.f32 %v2239_v30, %v8693_v5  ;;  %v2241_v51 = vpop.f32.mrb[166].mxu0  ;;  %v2842_v11 = vpack.c.bf16 %v2739_v32, %v2738_v25  ;;  %v9162_v33 = vsel %vm2547_vm3, %v2419_v44, %v2675_v6 }
 0x501   : > { %v2356_v53 = vadd.f32 %v8898_v41, %v2238_v55  ;;  %v2242_v18 = vadd.f32 %v2241_v51, %v8689_v50  ;;  %v2243_v58 = vpop.f32.mrb[167].mxu0 }
 0x502   : > { %v2420_v12 = vadd.f32 %v8898_v41, %v2240_v43  ;;  %v2244_v60 = vadd.f32 %v2243_v58, %v8693_v5  ;;  %6466 = vmatprep.mubr.bf16.mxu1 %v2842_v11 }
 0x503   : > { %v2612_v8 = vmul.f32 0.01, %v2356_v53  ;;  %v2357_v7 = vadd.f32 %v8907_v56, %v2242_v18  ;;  %vm2484_vm4 = vcmp.gt.f32.partialorder %v2356_v53, 0.0 }
 0x504   : > { %v2676_v40 = vmul.f32 0.01, %v2420_v12  ;;  %v2421_v44 = vadd.f32 %v8907_v56, %v2244_v60  ;;  %vm2548_vm5 = vcmp.gt.f32.partialorder %v2420_v12, 0.0 }
 0x505   : > { %vm2485_vm6 = vcmp.gt.f32.partialorder %v2357_v7, 0.0  ;;  %v2613_v48 = vmul.f32 0.01, %v2357_v7  ;;  %v2740_v25 = vsel %vm2484_vm4, %v2356_v53, %v2612_v8 }
 0x506   : > { %vm2549_vm7 = vcmp.gt.f32.partialorder %v2421_v44, 0.0  ;;  %v2677_v6 = vmul.f32 0.01, %v2421_v44  ;;  %v2247_v55 = vpop.f32.mrb[168].mxu0  ;;  %v9174_v18 = vsel %vm2548_vm5, %v2420_v12, %v2676_v40 }
 0x507   : > { %v2248_v41 = vadd.f32 %v2247_v55, %v8689_v50  ;;  %v2249_v30 = vpop.f32.mrb[169].mxu0  ;;  %v2741_v32 = vsel %vm2485_vm6, %v2357_v7, %v2613_v48  ;;  %10149 = vst [vmem:[#allocation58_spill] sm:$0xff] %v9174_v18 }
 0x508   : > { %v2250_v43 = vadd.f32 %v2249_v30, %v8693_v5  ;;  %v2251_v51 = vpop.f32.mrb[170].mxu0  ;;  %v2843_v11 = vpack.c.bf16 %v2741_v32, %v2740_v25  ;;  %v9176_v56 = vsel %vm2549_vm7, %v2421_v44, %v2677_v6 }
 0x509   : > { %10150 = vst [vmem:[#allocation59_spill] sm:$0xff] %v9176_v56  ;;  %v2358_v58 = vadd.f32 %v8919_v37, %v2248_v41  ;;  %v2252_v60 = vadd.f32 %v2251_v51, %v8689_v50  ;;  %v2253_v63 = vpop.f32.mrb[171].mxu0 }
 0x50a   : > { %v2422_v55 = vadd.f32 %v8919_v37, %v2250_v43  ;;  %v2254_v53 = vadd.f32 %v2253_v63, %v8693_v5  ;;  %6467 = vmatmul.mubr.bf16.gmra.mrb[112].mxu1 %v2843_v11 }
 0x50b   : > { %v2614_v8 = vmul.f32 0.01, %v2358_v58  ;;  %v2359_v7 = vadd.f32 %v8928_v14, %v2252_v60  ;;  %vm2486_vm8 = vcmp.gt.f32.partialorder %v2358_v58, 0.0 }
 0x50c   : > { %v2678_v12 = vmul.f32 0.01, %v2422_v55  ;;  %v2423_v40 = vadd.f32 %v8928_v14, %v2254_v53  ;;  %vm2550_vm9 = vcmp.gt.f32.partialorder %v2422_v55, 0.0 }
 0x50d   : > { %vm2487_vm10 = vcmp.gt.f32.partialorder %v2359_v7, 0.0  ;;  %v2615_v44 = vmul.f32 0.01, %v2359_v7  ;;  %v2742_v37 = vsel %vm2486_vm8, %v2358_v58, %v2614_v8 }
 0x50e   : > { %vm2551_vm11 = vcmp.gt.f32.partialorder %v2423_v40, 0.0  ;;  %v2679_v48 = vmul.f32 0.01, %v2423_v40  ;;  %v2257_v6 = vpop.f32.mrb[172].mxu0  ;;  %v9188_v11 = vsel %vm2550_vm9, %v2422_v55, %v2678_v12 }
 0x50f   : > { %v2258_v41 = vadd.f32 %v2257_v6, %v8689_v50  ;;  %v2259_v30 = vpop.f32.mrb[173].mxu0  ;;  %v2743_v25 = vsel %vm2487_vm10, %v2359_v7, %v2615_v44  ;;  %10151 = vst [vmem:[#allocation60_spill] sm:$0xff] %v9188_v11 }
 0x510   : > { %v2260_v32 = vadd.f32 %v2259_v30, %v8693_v5  ;;  %v2261_v43 = vpop.f32.mrb[174].mxu0  ;;  %v2844_v51 = vpack.c.bf16 %v2743_v25, %v2742_v37  ;;  %v9190_v60 = vsel %vm2551_vm11, %v2423_v40, %v2679_v48 }
 0x511   : > { %10152 = vst [vmem:[#allocation61_spill] sm:$0xff] %v9190_v60  ;;  %v2360_v14 = vadd.f32 %v8939_v15, %v2258_v41  ;;  %v2262_v63 = vadd.f32 %v2261_v43, %v8689_v50  ;;  %v2263_v53 = vpop.f32.mrb[175].mxu0 }
 0x512   : > { %v2424_v6 = vadd.f32 %v8939_v15, %v2260_v32  ;;  %v2264_v58 = vadd.f32 %v2263_v53, %v8693_v5  ;;  %6470 = vmatprep.mubr.bf16.mxu1 %v2844_v51 }
 0x513   : > { %v2616_v8 = vmul.f32 0.01, %v2360_v14  ;;  %v2361_v7 = vadd.f32 %v8948_v46, %v2262_v63  ;;  %vm2488_vm12 = vcmp.gt.f32.partialorder %v2360_v14, 0.0 }
 0x514   : > { %v2680_v55 = vmul.f32 0.01, %v2424_v6  ;;  %v2425_v12 = vadd.f32 %v8948_v46, %v2264_v58  ;;  %vm2552_vm13 = vcmp.gt.f32.partialorder %v2424_v6, 0.0 }
 0x515   : > { %vm2489_vm14 = vcmp.gt.f32.partialorder %v2361_v7, 0.0  ;;  %v2617_v40 = vmul.f32 0.01, %v2361_v7  ;;  %v2744_v15 = vsel %vm2488_vm12, %v2360_v14, %v2616_v8 }
 0x516   : > { %vm2553_vm15 = vcmp.gt.f32.partialorder %v2425_v12, 0.0  ;;  %v2681_v44 = vmul.f32 0.01, %v2425_v12  ;;  %v2267_v48 = vpop.f32.mrb[176].mxu0  ;;  %v9202_v51 = vsel %vm2552_vm13, %v2424_v6, %v2680_v55 }
 0x517   : > { %v2268_v41 = vadd.f32 %v2267_v48, %v8689_v50  ;;  %v2269_v30 = vpop.f32.mrb[177].mxu0  ;;  %v2745_v37 = vsel %vm2489_vm14, %v2361_v7, %v2617_v40  ;;  %10153 = vst [vmem:[#allocation62_spill] sm:$0xff] %v9202_v51  ;;  %v9213_v7 = vld [vmem:[#allocation16] ss:$0 sm:$0xff] }
 0x518   : > { %v2270_v25 = vadd.f32 %v2269_v30, %v8693_v5  ;;  %v2271_v32 = vpop.f32.mrb[178].mxu0  ;;  %v2845_v43 = vpack.c.bf16 %v2745_v37, %v2744_v15  ;;  %v9204_v63 = vsel %vm2553_vm15, %v2425_v12, %v2681_v44 }
 0x519   : > { %10154 = vst [vmem:[#allocation63_spill] sm:$0xff] %v9204_v63  ;;  %v2362_v46 = vadd.f32 %v8959_v42, %v2268_v41  ;;  %v2272_v53 = vadd.f32 %v2271_v32, %v8689_v50  ;;  %v2273_v58 = vpop.f32.mrb[179].mxu0 }
 0x51a   : > { %v2426_v48 = vadd.f32 %v8959_v42, %v2270_v25  ;;  %v2274_v14 = vadd.f32 %v2273_v58, %v8693_v5  ;;  %6471 = vmatmul.mubr.bf16.gmra.mrb[116].mxu1 %v2845_v43 }
 0x51b   : > { %vm2490_vm0 = vcmp.gt.f32.partialorder %v2362_v46, 0.0  ;;  %v2618_v8 = vmul.f32 0.01, %v2362_v46  ;;  %v2363_v6 = vadd.f32 %v8968_v47, %v2272_v53 }
 0x51c   : > { %vm2554_vm1 = vcmp.gt.f32.partialorder %v2426_v48, 0.0  ;;  %v2682_v55 = vmul.f32 0.01, %v2426_v48  ;;  %v2427_v12 = vadd.f32 %v8968_v47, %v2274_v14 }
 0x51d   : > { %vm2491_vm2 = vcmp.gt.f32.partialorder %v2363_v6, 0.0  ;;  %v2619_v40 = vmul.f32 0.01, %v2363_v6  ;;  %v6420_v44 = vpop.f32.mrb[64].mxu1  ;;  %v2746_v37 = vsel %vm2490_vm0, %v2362_v46, %v2618_v8 }
 0x51e   : > { %vm2555_vm3 = vcmp.gt.f32.partialorder %v2427_v12, 0.0  ;;  %v2683_v41 = vmul.f32 0.01, %v2427_v12  ;;  %v2996_v42 = vadd.f32 %v6420_v44, %v9213_v7  ;;  %v2277_v30 = vpop.f32.mrb[180].mxu0  ;;  %v2987_v15 = vpop.f32.mrb[65].mxu1  ;;  %v9220_v22 = vsel %vm2554_vm1, %v2426_v48, %v2682_v55  ;;  %v7081_v55 = vld [vmem:[#allocation20 + $0x8] sm:$0xff]  }
 0x51f   : > { %v2278_v25 = vadd.f32 %v2277_v30, %v8689_v50  ;;  %v2988_v32 = vadd.f32 %v9213_v7, %v2987_v15  ;;  %v2279_v43 = vpop.f32.mrb[181].mxu0  ;;  %v6421_v53 = vpop.f32.mrb[66].mxu1  ;;  %v2747_v58 = vsel %vm2491_vm2, %v2363_v6, %v2619_v40  ;;  %6692 = vmatprep.subr.bf16.mxu1 %v7081_v55 }
 0x520   : > { %vm3500_vm4 = vcmp.gt.f32.partialorder %v2996_v42, 0.0  ;;  %v3628_v47 = vmul.f32 0.01, %v2996_v42  ;;  %v2280_v14 = vadd.f32 %v2279_v43, %v8693_v5  ;;  %v2999_v51 = vadd.f32 %v6421_v53, %v9213_v7  ;;  %v2281_v44 = vpop.f32.mrb[182].mxu0  ;;  %v2990_v63 = vpop.f32.mrb[67].mxu1  ;;  %6693 = vmatpush3.bf16.msra.mxu1 %v7081_v55 }
 0x521   : > { %v2364_v46 = vadd.f32 %v8979_v39, %v2278_v25  ;;  %vm3498_vm5 = vcmp.gt.f32.partialorder %v2988_v32, 0.0  ;;  %v3626_v8 = vmul.f32 0.01, %v2988_v32  ;;  %v2282_v30 = vadd.f32 %v2281_v44, %v8689_v50  ;;  %v2283_v15 = vpop.f32.mrb[183].mxu0 }
 0x522   : > { %v3756_v11 = vsel %vm3500_vm4, %v2996_v42, %v3628_v47  ;;  %v2428_v6 = vadd.f32 %v8979_v39, %v2280_v14  ;;  %vm3501_vm6 = vcmp.gt.f32.partialorder %v2999_v51, 0.0  ;;  %v3629_v48 = vmul.f32 0.01, %v2999_v51 }
 0x523   : > { %vm2492_vm7 = vcmp.gt.f32.partialorder %v2364_v46, 0.0  ;;  %v2620_v40 = vmul.f32 0.01, %v2364_v46  ;;  %v2365_v43 = vadd.f32 %v8988_v59, %v2282_v30  ;;  %v2991_v53 = vadd.f32 %v9213_v7, %v2990_v63 }
 0x524   : > { %vm2556_vm8 = vcmp.gt.f32.partialorder %v2428_v6, 0.0  ;;  %v2684_v60 = vmul.f32 0.01, %v2428_v6  ;;  %v3757_v25 = vsel %vm3501_vm6, %v2999_v51, %v3629_v48  ;;  %v2284_v18 = vadd.f32 %v2283_v15, %v8693_v5 }
 0x525   : > { %v3883_v44 = vpack.c.bf16 %v3757_v25, %v3756_v11  ;;  %vm2493_vm9 = vcmp.gt.f32.partialorder %v2365_v43, 0.0  ;;  %v2621_v42 = vmul.f32 0.01, %v2365_v43  ;;  %vm3499_vm10 = vcmp.gt.f32.partialorder %v2991_v53, 0.0 }
 0x526   : > { %v3627_v39 = vmul.f32 0.01, %v2991_v53  ;;  %v2429_v47 = vadd.f32 %v8988_v59, %v2284_v18  ;;  %v2846_v14 = vpack.c.bf16 %v2747_v58, %v2746_v37  ;;  %v2287_v56 = vpop.f32.mrb[184].mxu0  ;;  %v3754_v30 = vsel %vm3498_vm5, %v2988_v32, %v3626_v8 }
 0x527   : > { %v2288_v63 = vadd.f32 %v2287_v56, %v8689_v50  ;;  %v2289_v9 = vpop.f32.mrb[185].mxu0  ;;  %v2748_v51 = vsel %vm2492_vm7, %v2364_v46, %v2620_v40  ;;  %v2749_v48 = vsel %vm2493_vm9, %v2365_v43, %v2621_v42  ;;  %v9235_v15 = vsel %vm2555_vm3, %v2427_v12, %v2683_v41 }
 0x528   : > { %vm2557_vm11 = vcmp.gt.f32.partialorder %v2429_v47, 0.0  ;;  %v2685_v11 = vmul.f32 0.01, %v2429_v47  ;;  %6474 = vmatprep.mubr.bf16.mxu1 %v2846_v14  ;;  %v2290_v55 = vadd.f32 %v2289_v9, %v8693_v5  ;;  %v2291_v25 = vpop.f32.mrb[186].mxu0  ;;  %v3755_v59 = vsel %vm3499_vm10, %v2991_v53, %v3627_v39 }
 0x529   : > { %v2366_v18 = vadd.f32 %v8999_v20, %v2288_v63  ;;  %v2292_v37 = vadd.f32 %v2291_v25, %v8689_v50  ;;  %v3882_v56 = vpack.c.bf16 %v3755_v59, %v3754_v30  ;;  %v2293_v32 = vpop.f32.mrb[187].mxu0  ;;  %v2847_v58 = vpack.c.bf16 %v2749_v48, %v2748_v51 }
 0x52a   : > { %v9242_v46 = vadd.f32 %v8999_v20, %v2290_v55  ;;  %v2294_v12 = vadd.f32 %v2293_v32, %v8693_v5  ;;  %v9248_v9 = vsel %vm2556_vm8, %v2428_v6, %v2684_v60  ;;  %v9252_v43 = vsel %vm2557_vm11, %v2429_v47, %v2685_v11 }
 0x52b   : > { %10155 = vst [vmem:[#allocation64_spill] sm:$0xff] %v9248_v9  ;;  %vm2494_vm12 = vcmp.gt.f32.partialorder %v2366_v18, 0.0  ;;  %v2622_v8 = vmul.f32 0.01, %v2366_v18  ;;  %v2367_v40 = vadd.f32 %v9008_v17, %v2292_v37  ;;  %6562 = vmatprep.mubr.bf16.mxu0 %v3882_v56  ;;  %6475 = vmatmul.mubr.bf16.gmra.mrb[120].mxu1 %v2847_v58 }
 0x52c   : > { %v2431_v20 = vadd.f32 %v9008_v17, %v2294_v12  ;;  %6563 = vmatmul.mubr.bf16.vlgmr.msra.gmra.mrb[192].mxu0 %v3883_v44  ;;  %vm2558_vm13 = vcmp.gt.f32.partialorder %v9242_v46, 0.0  ;;  %v2686_v42 = vmul.f32 0.01, %v9242_v46 }
 0x52d   : > { %vm2495_vm14 = vcmp.gt.f32.partialorder %v2367_v40, 0.0  ;;  %v2623_v60 = vmul.f32 0.01, %v2367_v40  ;;  %v6424_v6 = vpop.f32.mrb[68].mxu1  ;;  %v2750_v47 = vsel %vm2494_vm12, %v2366_v18, %v2622_v8 }
 0x52e   : > { %vm2559_vm15 = vcmp.gt.f32.partialorder %v2431_v20, 0.0  ;;  %v3012_v39 = vadd.f32 %v6424_v6, %v9213_v7  ;;  %v2297_v14 = vpop.f32.mrb[188].mxu0  ;;  %v3003_v30 = vpop.f32.mrb[69].mxu1  ;;  %v2687_v63 = vmul.f32 0.01, %v2431_v20 }
 0x52f   : > { %v2298_v17 = vadd.f32 %v2297_v14, %v8689_v50  ;;  %v3004_v44 = vadd.f32 %v9213_v7, %v3003_v30  ;;  %v2299_v51 = vpop.f32.mrb[189].mxu0  ;;  %v6425_v48 = vpop.f32.mrb[70].mxu1  ;;  %v2751_v11 = vsel %vm2495_vm14, %v2367_v40, %v2623_v60 }
 0x530   : > { %vm3504_vm0 = vcmp.gt.f32.partialorder %v3012_v39, 0.0  ;;  %v3632_v55 = vmul.f32 0.01, %v3012_v39  ;;  %v2300_v25 = vadd.f32 %v2299_v51, %v8693_v5  ;;  %v3015_v59 = vadd.f32 %v6425_v48, %v9213_v7  ;;  %v2301_v37 = vpop.f32.mrb[190].mxu0  ;;  %v3006_v56 = vpop.f32.mrb[71].mxu1 }
 0x531   : > { %v2368_v32 = vadd.f32 %v9019_v3, %v2298_v17  ;;  %vm3502_vm1 = vcmp.gt.f32.partialorder %v3004_v44, 0.0  ;;  %v3630_v18 = vmul.f32 0.01, %v3004_v44  ;;  %v2302_v58 = vadd.f32 %v2301_v37, %v8689_v50  ;;  %v2303_v12 = vpop.f32.mrb[191].mxu0 }
 0x532   : > { %v2432_v8 = vadd.f32 %v9019_v3, %v2300_v25  ;;  %vm3505_vm2 = vcmp.gt.f32.partialorder %v3015_v59, 0.0  ;;  %v3633_v6 = vmul.f32 0.01, %v3015_v59  ;;  %v3007_v40 = vadd.f32 %v9213_v7, %v3006_v56 }
 0x533   : > { %vm2496_vm3 = vcmp.gt.f32.partialorder %v2368_v32, 0.0  ;;  %v2624_v60 = vmul.f32 0.01, %v2368_v32  ;;  %v2369_v14 = vadd.f32 %v9028_v52, %v2302_v58  ;;  %v2304_v30 = vadd.f32 %v2303_v12, %v8693_v5 }
 0x534   : > { %vm2560_vm4 = vcmp.gt.f32.partialorder %v2432_v8, 0.0  ;;  %v2688_v51 = vmul.f32 0.01, %v2432_v8  ;;  %vm3503_vm5 = vcmp.gt.f32.partialorder %v3007_v40, 0.0  ;;  %v3631_v17 = vmul.f32 0.01, %v3007_v40 }
 0x535   : > { %vm2497_vm6 = vcmp.gt.f32.partialorder %v2369_v14, 0.0  ;;  %v2625_v48 = vmul.f32 0.01, %v2369_v14  ;;  %v2433_v50 = vadd.f32 %v9028_v52, %v2304_v30  ;;  %v2848_v37 = vpack.c.bf16 %v2751_v11, %v2750_v47 }
 0x536   : > { %v3758_v3 = vsel %vm3502_vm1, %v3004_v44, %v3630_v18  ;;  %v3759_v25 = vsel %vm3503_vm5, %v3007_v40, %v3631_v17  ;;  %v3760_v56 = vsel %vm3504_vm0, %v3012_v39, %v3632_v55  ;;  %v3761_v53 = vsel %vm3505_vm2, %v3015_v59, %v3633_v6 }
 0x537   : > { %vm2561_vm7 = vcmp.gt.f32.partialorder %v2433_v50, 0.0  ;;  %v2689_v58 = vmul.f32 0.01, %v2433_v50  ;;  %6478 = vmatprep.mubr.bf16.mxu1 %v2848_v37  ;;  %v3884_v5 = vpack.c.bf16 %v3759_v25, %v3758_v3  ;;  %v3885_v12 = vpack.c.bf16 %v3761_v53, %v3760_v56 }
 0x538   : > { %v2752_v41 = vsel %vm2496_vm3, %v2368_v32, %v2624_v60  ;;  %v2753_v9 = vsel %vm2497_vm6, %v2369_v14, %v2625_v48  ;;  %v9279_v52 = vsel %vm2558_vm13, %v9242_v46, %v2686_v42  ;;  %v9282_v47 = vsel %vm2559_vm15, %v2431_v20, %v2687_v63 }
 0x539   : > { %6566 = vmatprep.mubr.bf16.mxu0 %v3884_v5  ;;  %v2849_v39 = vpack.c.bf16 %v2753_v9, %v2752_v41  ;;  %v2880_v44 = vpack.c.bf16 %v9282_v47, %v9279_v52  ;;  %v9287_v11 = vsel %vm2560_vm4, %v2432_v8, %v2688_v51  ;;  %v9289_v53 = vsel %vm2561_vm7, %v2433_v50, %v2689_v58 }
 0x53a   : > { %6567 = vmatmul.mubr.bf16.gmra.mrb[196].mxu0 %v3885_v12  ;;  %v2881_v55 = vpack.c.bf16 %v9289_v53, %v9287_v11  ;;  %v10156_v46 = vpack.c.bf16 %v8718_v54, %v8716_v16  ;;  %v7082_v16 = vld [vmem:[#allocation20 + $0x10] sm:$0xff]   ;;  %v10157_v60 = vpack.c.bf16 %v8743_v1, %v8741_v31  ;;  %v10158_v14 = vpack.c.bf16 %v8767_v29, %v8765_v21  ;;  %v10161_v1 = vld [vmem:[#allocation35_spill] sm:$0xff] }
 0x53b   : > { %6479 = vmatmul.mubr.bf16.gmra.mrb[124].mxu1 %v2849_v39  ;;  %6694 = vmatprep.subr.bf16.mxu1 %v7082_v16  ;;  %v10159_v3 = vpack.c.bf16 %v8791_v57, %v8789_v10  ;;  %v10160_v31 = vld [vmem:[#allocation36_spill] sm:$0xff] }
 0x53c   : > { %6482 = vmatprep.mubr.bf16.mxu1 %v10156_v46  ;;  %6695 = vmatpush3.bf16.msra.mxu1 %v7082_v16  ;;  %v10162_v25 = vpack.c.bf16 %v10160_v31, %v10161_v1 }
 0x53d   : > { %v6428_v20 = vpop.f32.mrb[72].mxu1 }
 0x53e   : > { %v3028_v41 = vadd.f32 %v6428_v20, %v9213_v7  ;;  %v3019_v9 = vpop.f32.mrb[73].mxu1 }
 0x53f   : > { %v3020_v42 = vadd.f32 %v9213_v7, %v3019_v9  ;;  %v6429_v63 = vpop.f32.mrb[74].mxu1  ;;  %v10163_v9 = vld [vmem:[#allocation38_spill] sm:$0xff] }
 0x540   : > { %v3636_v59 = vmul.f32 0.01, %v3028_v41  ;;  %v3031_v32 = vadd.f32 %v6429_v63, %v9213_v7  ;;  %v3022_v18 = vpop.f32.mrb[75].mxu1  ;;  %vm3508_vm8 = vcmp.gt.f32.partialorder %v3028_v41, 0.0 }
 0x541   : > { %v3634_v8 = vmul.f32 0.01, %v3020_v42  ;;  %v3023_v6 = vadd.f32 %v9213_v7, %v3022_v18  ;;  %vm3506_vm9 = vcmp.gt.f32.partialorder %v3020_v42, 0.0 }
 0x542   : > { %vm3509_vm10 = vcmp.gt.f32.partialorder %v3031_v32, 0.0  ;;  %v3637_v40 = vmul.f32 0.01, %v3031_v32  ;;  %v3764_v30 = vsel %vm3508_vm8, %v3028_v41, %v3636_v59  ;;  %v10166_v59 = vld [vmem:[#allocation40_spill] sm:$0xff] }
 0x543   : > { %vm3507_vm11 = vcmp.gt.f32.partialorder %v3023_v6, 0.0  ;;  %v3635_v54 = vmul.f32 0.01, %v3023_v6  ;;  %6483 = vmatmul.mubr.bf16.gmra.mrb[128].mxu1 %v10157_v60  ;;  %v3762_v17 = vsel %vm3506_vm9, %v3020_v42, %v3634_v8  ;;  %v10164_v42 = vld [vmem:[#allocation37_spill] sm:$0xff] }
 0x544   : > { %6486 = vmatprep.mubr.bf16.mxu1 %v10158_v14  ;;  %v3765_v51 = vsel %vm3509_vm10, %v3031_v32, %v3637_v40  ;;  %v10165_v63 = vpack.c.bf16 %v10163_v9, %v10164_v42  ;;  %v10167_v32 = vld [vmem:[#allocation39_spill] sm:$0xff]  ;;  %v10169_v14 = vld [vmem:[#allocation42_spill] sm:$0xff] }
 0x545   : > { %v3763_v48 = vsel %vm3507_vm11, %v3023_v6, %v3635_v54  ;;  %v3887_v50 = vpack.c.bf16 %v3765_v51, %v3764_v30  ;;  %v10168_v18 = vpack.c.bf16 %v10166_v59, %v10167_v32  ;;  %v10170_v30 = vld [vmem:[#allocation41_spill] sm:$0xff]  ;;  %v10179_v9 = vld [vmem:[#allocation47_spill] sm:$0xff] }
 0x546   : > { %v3886_v37 = vpack.c.bf16 %v3763_v48, %v3762_v17  ;;  %v10171_v51 = vpack.c.bf16 %v10169_v14, %v10170_v30  ;;  %v10172_v17 = vld [vmem:[#allocation44_spill] sm:$0xff]  ;;  %v10173_v48 = vld [vmem:[#allocation43_spill] sm:$0xff] }
 0x547   : > { %v10185_v14 = vld [vmem:[#allocation51_spill] sm:$0xff] }
 0x548   : > { %6570 = vmatprep.mubr.bf16.mxu0 %v3886_v37 }
 0x549   : > { %6571 = vmatmul.mubr.bf16.gmra.mrb[200].mxu0 %v3887_v50  ;;  %v10174_v50 = vpack.c.bf16 %v10172_v17, %v10173_v48 }
 0x54b   : > { %6487 = vmatmul.mubr.bf16.gmra.mrb[132].mxu1 %v10159_v3 }
 0x54c   : > { %6490 = vmatprep.mubr.bf16.mxu1 %v10162_v25 }
 0x54d   : > { %v6432_v21 = vpop.f32.mrb[76].mxu1 }
 0x54e   : > { %v3044_v29 = vadd.f32 %v6432_v21, %v9213_v7  ;;  %v3035_v56 = vpop.f32.mrb[77].mxu1 }
 0x54f   : > { %v3036_v58 = vadd.f32 %v9213_v7, %v3035_v56  ;;  %v6433_v5 = vpop.f32.mrb[78].mxu1 }
 0x550   : > { %v3640_v12 = vmul.f32 0.01, %v3044_v29  ;;  %v3047_v39 = vadd.f32 %v6433_v5, %v9213_v7  ;;  %v3038_v46 = vpop.f32.mrb[79].mxu1  ;;  %vm3512_vm12 = vcmp.gt.f32.partialorder %v3044_v29, 0.0 }
 0x551   : > { %v3638_v20 = vmul.f32 0.01, %v3036_v58  ;;  %v3039_v10 = vadd.f32 %v9213_v7, %v3038_v46  ;;  %vm3510_vm13 = vcmp.gt.f32.partialorder %v3036_v58, 0.0 }
 0x552   : > { %vm3513_vm14 = vcmp.gt.f32.partialorder %v3047_v39, 0.0  ;;  %v3641_v57 = vmul.f32 0.01, %v3047_v39  ;;  %v3768_v8 = vsel %vm3512_vm12, %v3044_v29, %v3640_v12 }
 0x553   : > { %vm3511_vm15 = vcmp.gt.f32.partialorder %v3039_v10, 0.0  ;;  %v3639_v41 = vmul.f32 0.01, %v3039_v10  ;;  %6491 = vmatmul.mubr.bf16.gmra.mrb[136].mxu1 %v10165_v63  ;;  %v3766_v40 = vsel %vm3510_vm13, %v3036_v58, %v3638_v20  ;;  %v10175_v20 = vld [vmem:[#allocation46_spill] sm:$0xff] }
 0x554   : > { %6494 = vmatprep.mubr.bf16.mxu1 %v10168_v18  ;;  %v3769_v6 = vsel %vm3513_vm14, %v3047_v39, %v3641_v57  ;;  %v7083_v39 = vld [vmem:[#allocation20 + $0x18] sm:$0xff]  }
 0x555   : > { %v3767_v16 = vsel %vm3511_vm15, %v3039_v10, %v3639_v41  ;;  %v3889_v54 = vpack.c.bf16 %v3769_v6, %v3768_v8  ;;  %v10176_v10 = vld [vmem:[#allocation45_spill] sm:$0xff]  ;;  %v10178_v41 = vld [vmem:[#allocation48_spill] sm:$0xff]  ;;  %6696 = vmatprep.subr.bf16.mxu1 %v7083_v39 }
 0x556   : > { %v3888_v60 = vpack.c.bf16 %v3767_v16, %v3766_v40  ;;  %v10177_v57 = vpack.c.bf16 %v10175_v20, %v10176_v10  ;;  %v10180_v42 = vpack.c.bf16 %v10178_v41, %v10179_v9  ;;  %6697 = vmatpush3.bf16.msra.mxu1 %v7083_v39  ;;  %v10181_v40 = vld [vmem:[#allocation50_spill] sm:$0xff]  ;;  %v10182_v16 = vld [vmem:[#allocation49_spill] sm:$0xff]  ;;  %v10190_v39 = vld [vmem:[#allocation56_spill] sm:$0xff] }
 0x558   : > { %6574 = vmatprep.mubr.bf16.mxu0 %v3888_v60  ;;  %v10184_v60 = vld [vmem:[#allocation52_spill] sm:$0xff] }
 0x559   : > { %6575 = vmatmul.mubr.bf16.gmra.mrb[204].mxu0 %v3889_v54  ;;  %v10183_v54 = vpack.c.bf16 %v10181_v40, %v10182_v16  ;;  %v10186_v30 = vpack.c.bf16 %v10184_v60, %v10185_v14 }
 0x55b   : > { %6495 = vmatmul.mubr.bf16.gmra.mrb[140].mxu1 %v10171_v51 }
 0x55c   : > { %6498 = vmatprep.mubr.bf16.mxu1 %v10174_v50 }
 0x55d   : > { %v6436_v37 = vpop.f32.mrb[80].mxu1 }
 0x55e   : > { %v3060_v3 = vadd.f32 %v6436_v37, %v9213_v7  ;;  %v3051_v31 = vpop.f32.mrb[81].mxu1 }
 0x55f   : > { %v3052_v1 = vadd.f32 %v9213_v7, %v3051_v31  ;;  %v6437_v25 = vpop.f32.mrb[82].mxu1 }
 0x560   : > { %v3644_v21 = vmul.f32 0.01, %v3060_v3  ;;  %v3063_v29 = vadd.f32 %v6437_v25, %v9213_v7  ;;  %v3054_v56 = vpop.f32.mrb[83].mxu1  ;;  %vm3516_vm0 = vcmp.gt.f32.partialorder %v3060_v3, 0.0 }
 0x561   : > { %v3642_v58 = vmul.f32 0.01, %v3052_v1  ;;  %v3055_v5 = vadd.f32 %v9213_v7, %v3054_v56  ;;  %vm3514_vm1 = vcmp.gt.f32.partialorder %v3052_v1, 0.0 }
 0x562   : > { %vm3517_vm2 = vcmp.gt.f32.partialorder %v3063_v29, 0.0  ;;  %v3645_v12 = vmul.f32 0.01, %v3063_v29  ;;  %v3772_v63 = vsel %vm3516_vm0, %v3060_v3, %v3644_v21 }
 0x563   : > { %vm3515_vm3 = vcmp.gt.f32.partialorder %v3055_v5, 0.0  ;;  %v3643_v46 = vmul.f32 0.01, %v3055_v5  ;;  %6499 = vmatmul.mubr.bf16.gmra.mrb[144].mxu1 %v10177_v57  ;;  %v3770_v32 = vsel %vm3514_vm1, %v3052_v1, %v3642_v58  ;;  %v10187_v58 = vld [vmem:[#allocation54_spill] sm:$0xff] }
 0x564   : > { %6502 = vmatprep.mubr.bf16.mxu1 %v10180_v42  ;;  %v3773_v59 = vsel %vm3517_vm2, %v3063_v29, %v3645_v12 }
 0x565   : > { %v3771_v18 = vsel %vm3515_vm3, %v3055_v5, %v3643_v46  ;;  %v3891_v8 = vpack.c.bf16 %v3773_v59, %v3772_v63  ;;  %v10188_v5 = vld [vmem:[#allocation53_spill] sm:$0xff]  ;;  %v10191_v46 = vld [vmem:[#allocation55_spill] sm:$0xff] }
 0x566   : > { %v3890_v6 = vpack.c.bf16 %v3771_v18, %v3770_v32  ;;  %v10189_v12 = vpack.c.bf16 %v10187_v58, %v10188_v5  ;;  %v10192_v20 = vpack.c.bf16 %v10190_v39, %v10191_v46  ;;  %v7084_v59 = vld [vmem:[#allocation20 + $0x20] sm:$0xff]   ;;  %v10193_v32 = vpack.c.bf16 %v9036_v45, %v9034_v2 }
 0x567   : > { %6698 = vmatprep.subr.bf16.mxu1 %v7084_v59  ;;  %v10194_v18 = vpack.c.bf16 %v9050_v27, %v9048_v34  ;;  %v10195_v27 = vpack.c.bf16 %v9064_v26, %v9062_v24  ;;  %v10197_v24 = vpack.c.bf16 %v9092_v38, %v9090_v62  ;;  %v10198_v26 = vpack.c.bf16 %v9106_v23, %v9104_v13 }
 0x568   : > { %6578 = vmatprep.mubr.bf16.mxu0 %v3890_v6  ;;  %6699 = vmatpush3.bf16.msra.mxu1 %v7084_v59 }
 0x569   : > { %6579 = vmatmul.mubr.bf16.gmra.mrb[208].mxu0 %v3891_v8 }
 0x56b   : > { %6503 = vmatmul.mubr.bf16.gmra.mrb[148].mxu1 %v10183_v54 }
 0x56c   : > { %6506 = vmatprep.mubr.bf16.mxu1 %v10186_v30 }
 0x56d   : > { %v6440_v51 = vpop.f32.mrb[84].mxu1 }
 0x56e   : > { %v3076_v17 = vadd.f32 %v6440_v51, %v9213_v7  ;;  %v3067_v48 = vpop.f32.mrb[85].mxu1 }
 0x56f   : > { %v3068_v50 = vadd.f32 %v9213_v7, %v3067_v48  ;;  %v6441_v37 = vpop.f32.mrb[86].mxu1  ;;  %v10196_v48 = vpack.c.bf16 %v9078_v4, %v9076_v28 }
 0x570   : > { %v3648_v3 = vmul.f32 0.01, %v3076_v17  ;;  %v3079_v31 = vadd.f32 %v6441_v37, %v9213_v7  ;;  %v3070_v1 = vpop.f32.mrb[87].mxu1  ;;  %vm3520_vm4 = vcmp.gt.f32.partialorder %v3076_v17, 0.0 }
 0x571   : > { %v3646_v25 = vmul.f32 0.01, %v3068_v50  ;;  %v3071_v21 = vadd.f32 %v9213_v7, %v3070_v1  ;;  %vm3518_vm5 = vcmp.gt.f32.partialorder %v3068_v50, 0.0 }
 0x572   : > { %vm3521_vm6 = vcmp.gt.f32.partialorder %v3079_v31, 0.0  ;;  %v3649_v29 = vmul.f32 0.01, %v3079_v31  ;;  %v3776_v10 = vsel %vm3520_vm4, %v3076_v17, %v3648_v3  ;;  %v7085_v17 = vld [vmem:[#allocation20 + $0x28] sm:$0xff]  }
 0x573   : > { %vm3519_vm7 = vcmp.gt.f32.partialorder %v3071_v21, 0.0  ;;  %v3647_v56 = vmul.f32 0.01, %v3071_v21  ;;  %6507 = vmatmul.mubr.bf16.gmra.mrb[152].mxu1 %v10189_v12  ;;  %v3774_v41 = vsel %vm3518_vm5, %v3068_v50, %v3646_v25  ;;  %6700 = vmatprep.subr.bf16.mxu1 %v7085_v17 }
 0x574   : > { %6510 = vmatprep.mubr.bf16.mxu1 %v10192_v20  ;;  %v3777_v57 = vsel %vm3521_vm6, %v3079_v31, %v3649_v29  ;;  %6701 = vmatpush3.bf16.msra.mxu1 %v7085_v17  ;;  %v7087_v29 = vld [vmem:[#allocation20 + $0x38] sm:$0xff]   ;;  %v10199_v20 = vpack.c.bf16 %v9120_v36, %v9118_v19 }
 0x575   : > { %v3775_v9 = vsel %vm3519_vm7, %v3071_v21, %v3647_v56  ;;  %v3893_v42 = vpack.c.bf16 %v3777_v57, %v3776_v10  ;;  %v7086_v21 = vld [vmem:[#allocation20 + $0x30] sm:$0xff]   ;;  %v10200_v10 = vpack.c.bf16 %v9134_v49, %v9132_v0 }
 0x576   : > { %v3892_v63 = vpack.c.bf16 %v3775_v9, %v3774_v41  ;;  %6702 = vmatprep.subr.bf16.mxu1 %v7086_v21 }
 0x578   : > { %6582 = vmatprep.mubr.bf16.mxu0 %v3892_v63  ;;  %6703 = vmatpush3.bf16.msra.mxu1 %v7086_v21  ;;  %v10213_v21 = vpack.c.bf16 %v9235_v15, %v9220_v22  ;;  %v10214_v15 = vld [vmem:[#allocation64_spill] sm:$0xff] }
 0x579   : > { %6583 = vmatmul.mubr.bf16.gmra.mrb[212].mxu0 %v3893_v42  ;;  %6704 = vmatprep.subr.bf16.mxu1 %v7087_v29 }
 0x57b   : > { %6511 = vmatmul.mubr.bf16.gmra.mrb[156].mxu1 %v10193_v32  ;;  %v10201_v32 = vpack.c.bf16 %v9148_v35, %v9146_v61 }
 0x57c   : > { %6514 = vmatprep.mubr.bf16.mxu1 %v10194_v18  ;;  %6705 = vmatpush3.bf16.msra.mxu1 %v7087_v29  ;;  %v10202_v18 = vld [vmem:[#allocation57_spill] sm:$0xff] }
 0x57d   : > { %v6444_v8 = vpop.f32.mrb[88].mxu1  ;;  %v10203_v19 = vpack.c.bf16 %v9162_v33, %v10202_v18 }
 0x57e   : > { %v3092_v6 = vadd.f32 %v6444_v8, %v9213_v7  ;;  %v3083_v40 = vpop.f32.mrb[89].mxu1 }
 0x57f   : > { %v3084_v16 = vadd.f32 %v9213_v7, %v3083_v40  ;;  %v6445_v54 = vpop.f32.mrb[90].mxu1 }
 0x580   : > { %v3652_v60 = vmul.f32 0.01, %v3092_v6  ;;  %v3095_v14 = vadd.f32 %v6445_v54, %v9213_v7  ;;  %v3086_v30 = vpop.f32.mrb[91].mxu1  ;;  %vm3524_vm8 = vcmp.gt.f32.partialorder %v3092_v6, 0.0 }
 0x581   : > { %v3650_v51 = vmul.f32 0.01, %v3084_v16  ;;  %v3087_v45 = vadd.f32 %v9213_v7, %v3086_v30  ;;  %vm3522_vm9 = vcmp.gt.f32.partialorder %v3084_v16, 0.0  ;;  %v10205_v30 = vld [vmem:[#allocation58_spill] sm:$0xff] }
 0x582   : > { %vm3525_vm10 = vcmp.gt.f32.partialorder %v3095_v14, 0.0  ;;  %v3653_v2 = vmul.f32 0.01, %v3095_v14  ;;  %v3780_v50 = vsel %vm3524_vm8, %v3092_v6, %v3652_v60 }
 0x583   : > { %vm3523_vm11 = vcmp.gt.f32.partialorder %v3087_v45, 0.0  ;;  %v3651_v34 = vmul.f32 0.01, %v3087_v45  ;;  %6515 = vmatmul.mubr.bf16.gmra.mrb[160].mxu1 %v10195_v27  ;;  %v3778_v3 = vsel %vm3522_vm9, %v3084_v16, %v3650_v51 }
 0x584   : > { %6518 = vmatprep.mubr.bf16.mxu1 %v10196_v48  ;;  %v3781_v37 = vsel %vm3525_vm10, %v3095_v14, %v3653_v2  ;;  %v10204_v14 = vld [vmem:[#allocation59_spill] sm:$0xff]  ;;  %v10208_v2 = vld [vmem:[#allocation60_spill] sm:$0xff] }
 0x585   : > { %v3779_v31 = vsel %vm3523_vm11, %v3087_v45, %v3651_v34  ;;  %v3895_v1 = vpack.c.bf16 %v3781_v37, %v3780_v50  ;;  %v10206_v51 = vpack.c.bf16 %v10204_v14, %v10205_v30  ;;  %v10207_v45 = vld [vmem:[#allocation61_spill] sm:$0xff] }
 0x586   : > { %v3894_v25 = vpack.c.bf16 %v3779_v31, %v3778_v3  ;;  %v10209_v34 = vpack.c.bf16 %v10207_v45, %v10208_v2  ;;  %v10210_v31 = vld [vmem:[#allocation63_spill] sm:$0xff] }
 0x588   : > { %6586 = vmatprep.mubr.bf16.mxu0 %v3894_v25 }
 0x589   : > { %6587 = vmatmul.mubr.bf16.gmra.mrb[216].mxu0 %v3895_v1  ;;  %v10211_v1 = vld [vmem:[#allocation62_spill] sm:$0xff] }
 0x58a   : > { %v10212_v25 = vpack.c.bf16 %v10210_v31, %v10211_v1 }
 0x58b   : > { %6519 = vmatmul.mubr.bf16.gmra.mrb[164].mxu1 %v10197_v24 }
 0x58c   : > { %6522 = vmatprep.mubr.bf16.mxu1 %v10198_v26 }
 0x58d   : > { %v6448_v28 = vpop.f32.mrb[92].mxu1 }
 0x58e   : > { %v3108_v4 = vadd.f32 %v6448_v28, %v9213_v7  ;;  %v3099_v56 = vpop.f32.mrb[93].mxu1 }
 0x58f   : > { %v3100_v58 = vadd.f32 %v9213_v7, %v3099_v56  ;;  %v6449_v5 = vpop.f32.mrb[94].mxu1 }
 0x590   : > { %v3656_v12 = vmul.f32 0.01, %v3108_v4  ;;  %v3111_v39 = vadd.f32 %v6449_v5, %v9213_v7  ;;  %v3102_v46 = vpop.f32.mrb[95].mxu1  ;;  %vm3528_vm12 = vcmp.gt.f32.partialorder %v3108_v4, 0.0 }
 0x591   : > { %v3654_v62 = vmul.f32 0.01, %v3100_v58  ;;  %v3103_v38 = vadd.f32 %v9213_v7, %v3102_v46  ;;  %vm3526_vm13 = vcmp.gt.f32.partialorder %v3100_v58, 0.0 }
 0x592   : > { %vm3529_vm14 = vcmp.gt.f32.partialorder %v3111_v39, 0.0  ;;  %v3657_v13 = vmul.f32 0.01, %v3111_v39  ;;  %v3784_v57 = vsel %vm3528_vm12, %v3108_v4, %v3656_v12 }
 0x593   : > { %vm3527_vm15 = vcmp.gt.f32.partialorder %v3103_v38, 0.0  ;;  %v3655_v23 = vmul.f32 0.01, %v3103_v38  ;;  %6523 = vmatmul.mubr.bf16.gmra.mrb[168].mxu1 %v10199_v20  ;;  %v3782_v9 = vsel %vm3526_vm13, %v3100_v58, %v3654_v62  ;;  %v10215_v62 = vpack.c.bf16 %v9252_v43, %v10214_v15 }
 0x594   : > { %6526 = vmatprep.mubr.bf16.mxu1 %v10200_v10  ;;  %v3785_v41 = vsel %vm3529_vm14, %v3111_v39, %v3657_v13 }
 0x595   : > { %v3783_v42 = vsel %vm3527_vm15, %v3103_v38, %v3655_v23  ;;  %v3897_v63 = vpack.c.bf16 %v3785_v41, %v3784_v57 }
 0x596   : > { %v3896_v59 = vpack.c.bf16 %v3783_v42, %v3782_v9 }
 0x598   : > { %6590 = vmatprep.mubr.bf16.mxu0 %v3896_v59 }
 0x599   : > { %6591 = vmatmul.mubr.bf16.gmra.mrb[220].mxu0 %v3897_v63 }
 0x59b   : > { %6527 = vmatmul.mubr.bf16.gmra.mrb[172].mxu1 %v10201_v32 }
 0x59c   : > { %6530 = vmatprep.mubr.bf16.mxu1 %v10203_v19 }
 0x59d   : > { %v6452_v36 = vpop.f32.mrb[96].mxu1 }
 0x59e   : > { %v3124_v0 = vadd.f32 %v6452_v36, %v9213_v7  ;;  %v3115_v49 = vpop.f32.mrb[97].mxu1 }
 0x59f   : > { %v3116_v8 = vadd.f32 %v9213_v7, %v3115_v49  ;;  %v6453_v6 = vpop.f32.mrb[98].mxu1 }
 0x5a0   : > { %v3660_v40 = vmul.f32 0.01, %v3124_v0  ;;  %v3127_v16 = vadd.f32 %v6453_v6, %v9213_v7  ;;  %v3118_v54 = vpop.f32.mrb[99].mxu1  ;;  %vm3532_vm0 = vcmp.gt.f32.partialorder %v3124_v0, 0.0 }
 0x5a1   : > { %v3658_v60 = vmul.f32 0.01, %v3116_v8  ;;  %v3119_v61 = vadd.f32 %v9213_v7, %v3118_v54  ;;  %vm3530_vm1 = vcmp.gt.f32.partialorder %v3116_v8, 0.0 }
 0x5a2   : > { %vm3533_vm2 = vcmp.gt.f32.partialorder %v3127_v16, 0.0  ;;  %v3661_v35 = vmul.f32 0.01, %v3127_v16  ;;  %v3788_v27 = vsel %vm3532_vm0, %v3124_v0, %v3660_v40 }
 0x5a3   : > { %vm3531_vm3 = vcmp.gt.f32.partialorder %v3119_v61, 0.0  ;;  %v3659_v33 = vmul.f32 0.01, %v3119_v61  ;;  %6531 = vmatmul.mubr.bf16.gmra.mrb[176].mxu1 %v10206_v51  ;;  %v3786_v48 = vsel %vm3530_vm1, %v3116_v8, %v3658_v60 }
 0x5a4   : > { %6534 = vmatprep.mubr.bf16.mxu1 %v10209_v34  ;;  %v3789_v17 = vsel %vm3533_vm2, %v3127_v16, %v3661_v35 }
 0x5a5   : > { %v3787_v50 = vsel %vm3531_vm3, %v3119_v61, %v3659_v33  ;;  %v3899_v37 = vpack.c.bf16 %v3789_v17, %v3788_v27 }
 0x5a6   : > { %v3898_v3 = vpack.c.bf16 %v3787_v50, %v3786_v48 }
 0x5a8   : > { %6594 = vmatprep.mubr.bf16.mxu0 %v3898_v3 }
 0x5a9   : > { %6595 = vmatmul.mubr.bf16.gmra.mrb[224].mxu0 %v3899_v37 }
 0x5ab   : > { %6535 = vmatmul.mubr.bf16.gmra.mrb[180].mxu1 %v10212_v25 }
 0x5ac   : > { %6538 = vmatprep.mubr.bf16.mxu1 %v10213_v21 }
 0x5ad   : > { %v6456_v29 = vpop.f32.mrb[100].mxu1 }
 0x5ae   : > { %v3140_v24 = vadd.f32 %v6456_v29, %v9213_v7  ;;  %v3131_v26 = vpop.f32.mrb[101].mxu1 }
 0x5af   : > { %v3132_v28 = vadd.f32 %v9213_v7, %v3131_v26  ;;  %v6457_v4 = vpop.f32.mrb[102].mxu1 }
 0x5b0   : > { %v3664_v56 = vmul.f32 0.01, %v3140_v24  ;;  %v3143_v58 = vadd.f32 %v6457_v4, %v9213_v7  ;;  %v3134_v5 = vpop.f32.mrb[103].mxu1  ;;  %vm3536_vm4 = vcmp.gt.f32.partialorder %v3140_v24, 0.0 }
 0x5b1   : > { %v3662_v12 = vmul.f32 0.01, %v3132_v28  ;;  %v3135_v39 = vadd.f32 %v9213_v7, %v3134_v5  ;;  %vm3534_vm5 = vcmp.gt.f32.partialorder %v3132_v28, 0.0 }
 0x5b2   : > { %vm3537_vm6 = vcmp.gt.f32.partialorder %v3143_v58, 0.0  ;;  %v3665_v46 = vmul.f32 0.01, %v3143_v58  ;;  %v3792_v38 = vsel %vm3536_vm4, %v3140_v24, %v3664_v56 }
 0x5b3   : > { %vm3535_vm7 = vcmp.gt.f32.partialorder %v3135_v39, 0.0  ;;  %v3663_v22 = vmul.f32 0.01, %v3135_v39  ;;  %6539 = vmatmul.mubr.bf16.gmra.mrb[184].mxu1 %v10215_v62  ;;  %v3790_v23 = vsel %vm3534_vm5, %v3132_v28, %v3662_v12 }
 0x5b4   : > { %6542 = vmatprep.mubr.bf16.mxu1 %v2880_v44  ;;  %v3793_v13 = vsel %vm3537_vm6, %v3143_v58, %v3665_v46 }
 0x5b5   : > { %v3791_v20 = vsel %vm3535_vm7, %v3135_v39, %v3663_v22  ;;  %v3901_v10 = vpack.c.bf16 %v3793_v13, %v3792_v38 }
 0x5b6   : > { %v3900_v57 = vpack.c.bf16 %v3791_v20, %v3790_v23 }
 0x5b8   : > { %6598 = vmatprep.mubr.bf16.mxu0 %v3900_v57 }
 0x5b9   : > { %6599 = vmatmul.mubr.bf16.gmra.mrb[228].mxu0 %v3901_v10 }
 0x5bb   : > { %6543 = vmatmul.mubr.bf16.gmra.mrb[188].mxu1 %v2881_v55 }
 0x5bd   : > { %v6460_v41 = vpop.f32.mrb[104].mxu1 }
 0x5be   : > { %v3156_v43 = vadd.f32 %v6460_v41, %v9213_v7  ;;  %v3147_v9 = vpop.f32.mrb[105].mxu1 }
 0x5bf   : > { %v3148_v42 = vadd.f32 %v9213_v7, %v3147_v9  ;;  %v6461_v52 = vpop.f32.mrb[106].mxu1 }
 0x5c0   : > { %v3668_v47 = vmul.f32 0.01, %v3156_v43  ;;  %v3159_v44 = vadd.f32 %v6461_v52, %v9213_v7  ;;  %v3150_v63 = vpop.f32.mrb[107].mxu1  ;;  %vm3540_vm8 = vcmp.gt.f32.partialorder %v3156_v43, 0.0 }
 0x5c1   : > { %v3666_v59 = vmul.f32 0.01, %v3148_v42  ;;  %v3151_v32 = vadd.f32 %v9213_v7, %v3150_v63  ;;  %vm3538_vm9 = vcmp.gt.f32.partialorder %v3148_v42, 0.0 }
 0x5c2   : > { %vm3541_vm10 = vcmp.gt.f32.partialorder %v3159_v44, 0.0  ;;  %v3669_v18 = vmul.f32 0.01, %v3159_v44  ;;  %v3796_v53 = vsel %vm3540_vm8, %v3156_v43, %v3668_v47 }
 0x5c3   : > { %vm3539_vm11 = vcmp.gt.f32.partialorder %v3151_v32, 0.0  ;;  %v3667_v11 = vmul.f32 0.01, %v3151_v32  ;;  %v3794_v19 = vsel %vm3538_vm9, %v3148_v42, %v3666_v59 }
 0x5c4   : > { %v3797_v55 = vsel %vm3541_vm10, %v3159_v44, %v3669_v18 }
 0x5c5   : > { %v3795_v36 = vsel %vm3539_vm11, %v3151_v32, %v3667_v11  ;;  %v3903_v0 = vpack.c.bf16 %v3797_v55, %v3796_v53  ;;  %v9437_v32 = vld [vmem:[#allocation19] ss:$0 sm:$0xff] }
 0x5c6   : > { %v3902_v49 = vpack.c.bf16 %v3795_v36, %v3794_v19 }
 0x5c8   : > { %6602 = vmatprep.mubr.bf16.mxu0 %v3902_v49 }
 0x5c9   : > { %6603 = vmatmul.mubr.bf16.gmra.mrb[232].mxu0 %v3903_v0 }
 0x5cd   : > { %v6464_v8 = vpop.f32.mrb[108].mxu1 }
 0x5ce   : > { %v3172_v6 = vadd.f32 %v6464_v8, %v9213_v7  ;;  %v3163_v40 = vpop.f32.mrb[109].mxu1 }
 0x5cf   : > { %v3164_v16 = vadd.f32 %v9213_v7, %v3163_v40  ;;  %v6465_v54 = vpop.f32.mrb[110].mxu1 }
 0x5d0   : > { %v3672_v60 = vmul.f32 0.01, %v3172_v6  ;;  %v3175_v61 = vadd.f32 %v6465_v54, %v9213_v7  ;;  %v3166_v35 = vpop.f32.mrb[111].mxu1  ;;  %vm3544_vm12 = vcmp.gt.f32.partialorder %v3172_v6, 0.0 }
 0x5d1   : > { %v3670_v33 = vmul.f32 0.01, %v3164_v16  ;;  %v3167_v14 = vadd.f32 %v9213_v7, %v3166_v35  ;;  %vm3542_vm13 = vcmp.gt.f32.partialorder %v3164_v16, 0.0 }
 0x5d2   : > { %vm3545_vm14 = vcmp.gt.f32.partialorder %v3175_v61, 0.0  ;;  %v3673_v30 = vmul.f32 0.01, %v3175_v61  ;;  %v3800_v45 = vsel %vm3544_vm12, %v3172_v6, %v3672_v60 }
 0x5d3   : > { %vm3543_vm15 = vcmp.gt.f32.partialorder %v3167_v14, 0.0  ;;  %v3671_v51 = vmul.f32 0.01, %v3167_v14  ;;  %v3798_v34 = vsel %vm3542_vm13, %v3164_v16, %v3670_v33 }
 0x5d4   : > { %v3801_v2 = vsel %vm3545_vm14, %v3175_v61, %v3673_v30 }
 0x5d5   : > { %v3799_v27 = vsel %vm3543_vm15, %v3167_v14, %v3671_v51  ;;  %v3905_v17 = vpack.c.bf16 %v3801_v2, %v3800_v45 }
 0x5d6   : > { %v3904_v48 = vpack.c.bf16 %v3799_v27, %v3798_v34 }
 0x5d8   : > { %6606 = vmatprep.mubr.bf16.mxu0 %v3904_v48 }
 0x5d9   : > { %6607 = vmatmul.mubr.bf16.gmra.mrb[236].mxu0 %v3905_v17 }
 0x5dd   : > { %v6468_v50 = vpop.f32.mrb[112].mxu1 }
 0x5de   : > { %v3188_v37 = vadd.f32 %v6468_v50, %v9213_v7  ;;  %v3179_v3 = vpop.f32.mrb[113].mxu1 }
 0x5df   : > { %v3180_v31 = vadd.f32 %v9213_v7, %v3179_v3  ;;  %v6469_v1 = vpop.f32.mrb[114].mxu1 }
 0x5e0   : > { %v3676_v25 = vmul.f32 0.01, %v3188_v37  ;;  %v3191_v21 = vadd.f32 %v6469_v1, %v9213_v7  ;;  %v3182_v29 = vpop.f32.mrb[115].mxu1  ;;  %vm3548_vm0 = vcmp.gt.f32.partialorder %v3188_v37, 0.0 }
 0x5e1   : > { %v3674_v24 = vmul.f32 0.01, %v3180_v31  ;;  %v3183_v26 = vadd.f32 %v9213_v7, %v3182_v29  ;;  %vm3546_vm1 = vcmp.gt.f32.partialorder %v3180_v31, 0.0 }
 0x5e2   : > { %vm3549_vm2 = vcmp.gt.f32.partialorder %v3191_v21, 0.0  ;;  %v3677_v28 = vmul.f32 0.01, %v3191_v21  ;;  %v3804_v56 = vsel %vm3548_vm0, %v3188_v37, %v3676_v25 }
 0x5e3   : > { %vm3547_vm3 = vcmp.gt.f32.partialorder %v3183_v26, 0.0  ;;  %v3675_v4 = vmul.f32 0.01, %v3183_v26  ;;  %v3802_v5 = vsel %vm3546_vm1, %v3180_v31, %v3674_v24 }
 0x5e4   : > { %v3805_v58 = vsel %vm3549_vm2, %v3191_v21, %v3677_v28 }
 0x5e5   : > { %v3803_v12 = vsel %vm3547_vm3, %v3183_v26, %v3675_v4  ;;  %v3907_v39 = vpack.c.bf16 %v3805_v58, %v3804_v56  ;;  %v9450_v58 = vld [vmem:[#allocation16] ss:$0 sm:$0xff] }
 0x5e6   : > { %v3906_v46 = vpack.c.bf16 %v3803_v12, %v3802_v5 }
 0x5e8   : > { %6610 = vmatprep.mubr.bf16.mxu0 %v3906_v46 }
 0x5e9   : > { %6611 = vmatmul.mubr.bf16.gmra.mrb[240].mxu0 %v3907_v39 }
 0x5ed   : > { %v6472_v22 = vpop.f32.mrb[116].mxu1 }
 0x5ee   : > { %v3204_v15 = vadd.f32 %v6472_v22, %v9213_v7  ;;  %v3195_v62 = vpop.f32.mrb[117].mxu1 }
 0x5ef   : > { %v3196_v38 = vadd.f32 %v9213_v7, %v3195_v62  ;;  %v6473_v13 = vpop.f32.mrb[118].mxu1 }
 0x5f0   : > { %v3680_v23 = vmul.f32 0.01, %v3204_v15  ;;  %v3207_v20 = vadd.f32 %v6473_v13, %v9213_v7  ;;  %v3198_v10 = vpop.f32.mrb[119].mxu1  ;;  %vm3552_vm4 = vcmp.gt.f32.partialorder %v3204_v15, 0.0 }
 0x5f1   : > { %v3678_v57 = vmul.f32 0.01, %v3196_v38  ;;  %v3199_v41 = vadd.f32 %v9213_v7, %v3198_v10  ;;  %vm3550_vm5 = vcmp.gt.f32.partialorder %v3196_v38, 0.0 }
 0x5f2   : > { %vm3553_vm6 = vcmp.gt.f32.partialorder %v3207_v20, 0.0  ;;  %v3681_v43 = vmul.f32 0.01, %v3207_v20  ;;  %v3808_v42 = vsel %vm3552_vm4, %v3204_v15, %v3680_v23 }
 0x5f3   : > { %vm3551_vm7 = vcmp.gt.f32.partialorder %v3199_v41, 0.0  ;;  %v3679_v9 = vmul.f32 0.01, %v3199_v41  ;;  %v3806_v47 = vsel %vm3550_vm5, %v3196_v38, %v3678_v57 }
 0x5f4   : > { %v3809_v52 = vsel %vm3553_vm6, %v3207_v20, %v3681_v43 }
 0x5f5   : > { %v3807_v44 = vsel %vm3551_vm7, %v3199_v41, %v3679_v9  ;;  %v3909_v63 = vpack.c.bf16 %v3809_v52, %v3808_v42 }
 0x5f6   : > { %v3908_v59 = vpack.c.bf16 %v3807_v44, %v3806_v47 }
 0x5f8   : > { %6614 = vmatprep.mubr.bf16.mxu0 %v3908_v59 }
 0x5f9   : > { %6615 = vmatmul.mubr.bf16.gmra.mrb[244].mxu0 %v3909_v63 }
 0x5fe   : > { %v6476_v18 = vpop.f32.mrb[120].mxu1 }
 0x5ff   : > { %v6564_v11 = vpop.f32.mrb[192].mxu0  ;;  %v3220_v53 = vadd.f32 %v6476_v18, %v9213_v7  ;;  %v3211_v55 = vpop.f32.mrb[121].mxu1 }
 0x600   : > { %v4060_v19 = vadd.f32 %v6564_v11, %v9437_v32  ;;  %v4051_v36 = vpop.f32.mrb[193].mxu0  ;;  %v3212_v0 = vadd.f32 %v9213_v7, %v3211_v55  ;;  %v6477_v49 = vpop.f32.mrb[122].mxu1 }
 0x601   : > { %vm3556_vm8 = vcmp.gt.f32.partialorder %v3220_v53, 0.0  ;;  %v4052_v8 = vadd.f32 %v9437_v32, %v4051_v36  ;;  %v6565_v6 = vpop.f32.mrb[194].mxu0  ;;  %v3223_v40 = vadd.f32 %v6477_v49, %v9213_v7  ;;  %v3214_v16 = vpop.f32.mrb[123].mxu1  ;;  %v3684_v60 = vmul.f32 0.01, %v3220_v53 }
 0x602   : > { %vm4564_vm9 = vcmp.gt.f32.partialorder %v4060_v19, 0.0  ;;  %v4692_v54 = vmul.f32 0.01, %v4060_v19  ;;  %vm3554_vm10 = vcmp.gt.f32.partialorder %v3212_v0, 0.0  ;;  %v3682_v35 = vmul.f32 0.01, %v3212_v0 }
 0x603   : > { %vm4562_vm11 = vcmp.gt.f32.partialorder %v4052_v8, 0.0  ;;  %v4690_v61 = vmul.f32 0.01, %v4052_v8  ;;  %v4063_v33 = vadd.f32 %v6565_v6, %v9437_v32  ;;  %v4054_v14 = vpop.f32.mrb[195].mxu0  ;;  %vm3557_vm12 = vcmp.gt.f32.partialorder %v3223_v40, 0.0 }
 0x604   : > { %v3685_v30 = vmul.f32 0.01, %v3223_v40  ;;  %v4055_v51 = vadd.f32 %v9437_v32, %v4054_v14  ;;  %v3215_v45 = vadd.f32 %v9213_v7, %v3214_v16  ;;  %v4820_v2 = vsel %vm4564_vm9, %v4060_v19, %v4692_v54 }
 0x605   : > { %vm4565_vm13 = vcmp.gt.f32.partialorder %v4063_v33, 0.0  ;;  %v4693_v34 = vmul.f32 0.01, %v4063_v33  ;;  %v4818_v27 = vsel %vm4562_vm11, %v4052_v8, %v4690_v61  ;;  %v3810_v37 = vsel %vm3554_vm10, %v3212_v0, %v3682_v35 }
 0x606   : > { %vm4563_vm14 = vcmp.gt.f32.partialorder %v4055_v51, 0.0  ;;  %v4691_v17 = vmul.f32 0.01, %v4055_v51  ;;  %vm3555_vm15 = vcmp.gt.f32.partialorder %v3215_v45, 0.0  ;;  %v3683_v48 = vmul.f32 0.01, %v3215_v45 }
 0x607   : > { %v4821_v50 = vsel %vm4565_vm13, %v4063_v33, %v4693_v34  ;;  %v3812_v3 = vsel %vm3556_vm8, %v3220_v53, %v3684_v60  ;;  %v3813_v31 = vsel %vm3557_vm12, %v3223_v40, %v3685_v30 }
 0x608   : > { %v4947_v1 = vpack.c.bf16 %v4821_v50, %v4820_v2  ;;  %v4819_v25 = vsel %vm4563_vm14, %v4055_v51, %v4691_v17  ;;  %v3811_v21 = vsel %vm3555_vm15, %v3215_v45, %v3683_v48  ;;  %v3911_v29 = vpack.c.bf16 %v3813_v31, %v3812_v3 }
 0x609   : > { %v4946_v24 = vpack.c.bf16 %v4819_v25, %v4818_v27  ;;  %v3910_v7 = vpack.c.bf16 %v3811_v21, %v3810_v37 }
 0x60b   : > { %6706 = vmatprep.mubr.bf16.mxu1 %v4946_v24  ;;  %6618 = vmatprep.mubr.bf16.mxu0 %v3910_v7 }
 0x60c   : > { %6707 = vmatmul.mubr.bf16.vlgmr.msra.gmra.mrb[192].mxu1 %v4947_v1  ;;  %6619 = vmatmul.mubr.bf16.gmra.mrb[248].mxu0 %v3911_v29 }
 0x60d   : > { %v6568_v26 = vpop.f32.mrb[196].mxu0 }
 0x60e   : > { %v4076_v28 = vadd.f32 %v6568_v26, %v9437_v32  ;;  %v6480_v4 = vpop.f32.mrb[124].mxu1  ;;  %v4067_v56 = vpop.f32.mrb[197].mxu0 }
 0x60f   : > { %v3236_v5 = vadd.f32 %v9450_v58, %v6480_v4  ;;  %v4068_v12 = vadd.f32 %v9437_v32, %v4067_v56  ;;  %v3227_v39 = vpop.f32.mrb[125].mxu1  ;;  %v6569_v46 = vpop.f32.mrb[198].mxu0 }
 0x610   : > { %v4696_v22 = vmul.f32 0.01, %v4076_v28  ;;  %v3228_v15 = vadd.f32 %v9450_v58, %v3227_v39  ;;  %v4079_v62 = vadd.f32 %v6569_v46, %v9437_v32  ;;  %v6481_v38 = vpop.f32.mrb[126].mxu1  ;;  %v4070_v13 = vpop.f32.mrb[199].mxu0  ;;  %vm4568_vm0 = vcmp.gt.f32.partialorder %v4076_v28, 0.0 }
 0x611   : > { %vm4566_vm1 = vcmp.gt.f32.partialorder %v4068_v12, 0.0  ;;  %v4694_v23 = vmul.f32 0.01, %v4068_v12  ;;  %vm3560_vm2 = vcmp.gt.f32.partialorder %v3236_v5, 0.0  ;;  %v3688_v57 = vmul.f32 0.01, %v3236_v5 }
 0x612   : > { %v3686_v20 = vmul.f32 0.01, %v3228_v15  ;;  %vm4569_vm3 = vcmp.gt.f32.partialorder %v4079_v62, 0.0  ;;  %v4697_v10 = vmul.f32 0.01, %v4079_v62  ;;  %vm3558_vm4 = vcmp.gt.f32.partialorder %v3228_v15, 0.0 }
 0x613   : > { %v3239_v41 = vadd.f32 %v9450_v58, %v6481_v38  ;;  %v4071_v43 = vadd.f32 %v9437_v32, %v4070_v13  ;;  %v3230_v9 = vpop.f32.mrb[127].mxu1  ;;  %v4822_v52 = vsel %vm4566_vm1, %v4068_v12, %v4694_v23  ;;  %v4824_v47 = vsel %vm4568_vm0, %v4076_v28, %v4696_v22 }
 0x614   : > { %v3231_v42 = vadd.f32 %v9450_v58, %v3230_v9  ;;  %v4825_v44 = vsel %vm4569_vm3, %v4079_v62, %v4697_v10  ;;  %v3814_v53 = vsel %vm3558_vm4, %v3228_v15, %v3686_v20  ;;  %v3816_v49 = vsel %vm3560_vm2, %v3236_v5, %v3688_v57 }
 0x615   : > { %vm3561_vm5 = vcmp.gt.f32.partialorder %v3239_v41, 0.0  ;;  %v3689_v63 = vmul.f32 0.01, %v3239_v41  ;;  %vm4567_vm6 = vcmp.gt.f32.partialorder %v4071_v43, 0.0  ;;  %v4695_v59 = vmul.f32 0.01, %v4071_v43 }
 0x616   : > { %vm3559_vm7 = vcmp.gt.f32.partialorder %v3231_v42, 0.0  ;;  %v3687_v18 = vmul.f32 0.01, %v3231_v42  ;;  %v6484_v11 = vpop.f32.mrb[128].mxu1  ;;  %v4949_v55 = vpack.c.bf16 %v4825_v44, %v4824_v47 }
 0x617   : > { %v3252_v19 = vadd.f32 %v9450_v58, %v6484_v11  ;;  %v3243_v36 = vpop.f32.mrb[129].mxu1  ;;  %v4823_v0 = vsel %vm4567_vm6, %v4071_v43, %v4695_v59  ;;  %v3817_v8 = vsel %vm3561_vm5, %v3239_v41, %v3689_v63 }
 0x618   : > { %v3244_v6 = vadd.f32 %v9450_v58, %v3243_v36  ;;  %v6485_v40 = vpop.f32.mrb[130].mxu1  ;;  %v4948_v16 = vpack.c.bf16 %v4823_v0, %v4822_v52  ;;  %v3815_v54 = vsel %vm3559_vm7, %v3231_v42, %v3687_v18  ;;  %v3913_v60 = vpack.c.bf16 %v3817_v8, %v3816_v49 }
 0x619   : > { %v3692_v61 = vmul.f32 0.01, %v3252_v19  ;;  %v3255_v35 = vadd.f32 %v9450_v58, %v6485_v40  ;;  %v3246_v33 = vpop.f32.mrb[131].mxu1  ;;  %v3912_v14 = vpack.c.bf16 %v3815_v54, %v3814_v53  ;;  %vm3564_vm8 = vcmp.gt.f32.partialorder %v3252_v19, 0.0 }
 0x61a   : > { %v3690_v30 = vmul.f32 0.01, %v3244_v6  ;;  %6710 = vmatprep.mubr.bf16.mxu1 %v4948_v16  ;;  %v3247_v51 = vadd.f32 %v9450_v58, %v3246_v33  ;;  %vm3562_vm9 = vcmp.gt.f32.partialorder %v3244_v6, 0.0 }
 0x61b   : > { %vm3565_vm10 = vcmp.gt.f32.partialorder %v3255_v35, 0.0  ;;  %v3693_v45 = vmul.f32 0.01, %v3255_v35  ;;  %6622 = vmatprep.mubr.bf16.mxu0 %v3912_v14  ;;  %6711 = vmatmul.mubr.bf16.gmra.mrb[196].mxu1 %v4949_v55  ;;  %v3820_v27 = vsel %vm3564_vm8, %v3252_v19, %v3692_v61 }
 0x61c   : > { %vm3563_vm11 = vcmp.gt.f32.partialorder %v3247_v51, 0.0  ;;  %v3691_v2 = vmul.f32 0.01, %v3247_v51  ;;  %6623 = vmatmul.mubr.bf16.gmra.mrb[252].mxu0 %v3913_v60  ;;  %v6572_v34 = vpop.f32.mrb[200].mxu0  ;;  %v3818_v25 = vsel %vm3562_vm9, %v3244_v6, %v3690_v30 }
 0x61d   : > { %v3821_v17 = vsel %vm3565_vm10, %v3255_v35, %v3693_v45  ;;  %v4092_v48 = vadd.f32 %v6572_v34, %v9437_v32  ;;  %v4083_v50 = vpop.f32.mrb[201].mxu0 }
 0x61e   : > { %v3915_v37 = vpack.c.bf16 %v3821_v17, %v3820_v27  ;;  %v6488_v3 = vpop.f32.mrb[132].mxu1  ;;  %v4084_v31 = vadd.f32 %v9437_v32, %v4083_v50  ;;  %v6573_v1 = vpop.f32.mrb[202].mxu0  ;;  %v3819_v26 = vsel %vm3563_vm11, %v3247_v51, %v3691_v2 }
 0x61f   : > { %vm4572_vm12 = vcmp.gt.f32.partialorder %v4092_v48, 0.0  ;;  %v3268_v21 = vadd.f32 %v9450_v58, %v6488_v3  ;;  %v3259_v29 = vpop.f32.mrb[133].mxu1  ;;  %v4095_v24 = vadd.f32 %v6573_v1, %v9437_v32  ;;  %v4086_v7 = vpop.f32.mrb[203].mxu0  ;;  %v4700_v28 = vmul.f32 0.01, %v4092_v48 }
 0x620   : > { %v4698_v4 = vmul.f32 0.01, %v4084_v31  ;;  %v3260_v56 = vadd.f32 %v9450_v58, %v3259_v29  ;;  %v6489_v5 = vpop.f32.mrb[134].mxu1  ;;  %v4087_v12 = vadd.f32 %v9437_v32, %v4086_v7  ;;  %vm4570_vm14 = vcmp.gt.f32.partialorder %v4084_v31, 0.0 }
 0x621   : > { %vm3568_vm13 = vcmp.gt.f32.partialorder %v3268_v21, 0.0  ;;  %v3696_v39 = vmul.f32 0.01, %v3268_v21  ;;  %v4701_v46 = vmul.f32 0.01, %v4095_v24  ;;  %v3271_v15 = vadd.f32 %v9450_v58, %v6489_v5  ;;  %v3262_v62 = vpop.f32.mrb[135].mxu1 }
 0x622   : > { %vm3566_vm15 = vcmp.gt.f32.partialorder %v3260_v56, 0.0  ;;  %v3694_v22 = vmul.f32 0.01, %v3260_v56  ;;  %vm4571_vm0 = vcmp.gt.f32.partialorder %v4087_v12, 0.0  ;;  %vm4573_vm1 = vcmp.gt.f32.partialorder %v4095_v24, 0.0 }
 0x623   : > { %v4699_v38 = vmul.f32 0.01, %v4087_v12  ;;  %v3263_v13 = vadd.f32 %v9450_v58, %v3262_v62  ;;  %v3914_v23 = vpack.c.bf16 %v3819_v26, %v3818_v25  ;;  %v3824_v20 = vsel %vm3568_vm13, %v3268_v21, %v3696_v39 }
 0x624   : > { %vm3569_vm2 = vcmp.gt.f32.partialorder %v3271_v15, 0.0  ;;  %v3697_v10 = vmul.f32 0.01, %v3271_v15  ;;  %v4826_v57 = vsel %vm4570_vm14, %v4084_v31, %v4698_v4  ;;  %v3822_v9 = vsel %vm3566_vm15, %v3260_v56, %v3694_v22 }
 0x625   : > { %vm3567_vm3 = vcmp.gt.f32.partialorder %v3263_v13, 0.0  ;;  %v3695_v41 = vmul.f32 0.01, %v3263_v13  ;;  %6626 = vmatprep.mubr.bf16.mxu0 %v3914_v23  ;;  %v4827_v43 = vsel %vm4571_vm0, %v4087_v12, %v4699_v38  ;;  %v4828_v44 = vsel %vm4572_vm12, %v4092_v48, %v4700_v28 }
 0x626   : > { %v3825_v42 = vsel %vm3569_vm2, %v3271_v15, %v3697_v10  ;;  %6627 = vmatmul.mubr.bf16.gmra.mrb[0].mxu0 %v3915_v37  ;;  %v6492_v52 = vpop.f32.mrb[136].mxu1  ;;  %v4950_v47 = vpack.c.bf16 %v4827_v43, %v4826_v57  ;;  %v4829_v63 = vsel %vm4573_vm1, %v4095_v24, %v4701_v46 }
 0x627   : > { %v3917_v59 = vpack.c.bf16 %v3825_v42, %v3824_v20  ;;  %v3284_v18 = vadd.f32 %v9450_v58, %v6492_v52  ;;  %v3275_v11 = vpop.f32.mrb[137].mxu1  ;;  %v3823_v53 = vsel %vm3567_vm3, %v3263_v13, %v3695_v41  ;;  %v4951_v55 = vpack.c.bf16 %v4829_v63, %v4828_v44 }
 0x628   : > { %v3276_v19 = vadd.f32 %v9450_v58, %v3275_v11  ;;  %v6493_v36 = vpop.f32.mrb[138].mxu1  ;;  %6714 = vmatprep.mubr.bf16.mxu1 %v4950_v47  ;;  %v3916_v0 = vpack.c.bf16 %v3823_v53, %v3822_v9 }
 0x629   : > { %v3700_v49 = vmul.f32 0.01, %v3284_v18  ;;  %v3287_v8 = vadd.f32 %v9450_v58, %v6493_v36  ;;  %v3278_v6 = vpop.f32.mrb[139].mxu1  ;;  %6715 = vmatmul.mubr.bf16.gmra.mrb[200].mxu1 %v4951_v55  ;;  %vm3572_vm4 = vcmp.gt.f32.partialorder %v3284_v18, 0.0 }
 0x62a   : > { %v3698_v40 = vmul.f32 0.01, %v3276_v19  ;;  %v3279_v16 = vadd.f32 %v9450_v58, %v3278_v6  ;;  %6630 = vmatprep.mubr.bf16.mxu0 %v3916_v0  ;;  %vm3570_vm5 = vcmp.gt.f32.partialorder %v3276_v19, 0.0 }
 0x62b   : > { %vm3573_vm6 = vcmp.gt.f32.partialorder %v3287_v8, 0.0  ;;  %v3701_v54 = vmul.f32 0.01, %v3287_v8  ;;  %v3828_v35 = vsel %vm3572_vm4, %v3284_v18, %v3700_v49 }
 0x62c   : > { %vm3571_vm7 = vcmp.gt.f32.partialorder %v3279_v16, 0.0  ;;  %v3699_v60 = vmul.f32 0.01, %v3279_v16  ;;  %v6576_v61 = vpop.f32.mrb[204].mxu0  ;;  %v3826_v27 = vsel %vm3570_vm5, %v3276_v19, %v3698_v40 }
 0x62d   : > { %v3829_v33 = vsel %vm3573_vm6, %v3287_v8, %v3701_v54  ;;  %v4108_v14 = vadd.f32 %v6576_v61, %v9437_v32  ;;  %v4099_v30 = vpop.f32.mrb[205].mxu0 }
 0x62e   : > { %v3919_v51 = vpack.c.bf16 %v3829_v33, %v3828_v35  ;;  %6631 = vmatmul.mubr.bf16.gmra.mrb[4].mxu0 %v3917_v59  ;;  %v6496_v45 = vpop.f32.mrb[140].mxu1  ;;  %v4100_v2 = vadd.f32 %v9437_v32, %v4099_v30  ;;  %v6577_v34 = vpop.f32.mrb[206].mxu0  ;;  %v3827_v3 = vsel %vm3571_vm7, %v3279_v16, %v3699_v60 }
 0x62f   : > { %vm4576_vm8 = vcmp.gt.f32.partialorder %v4108_v14, 0.0  ;;  %v3300_v17 = vadd.f32 %v9450_v58, %v6496_v45  ;;  %v3291_v48 = vpop.f32.mrb[141].mxu1  ;;  %v4111_v50 = vadd.f32 %v6577_v34, %v9437_v32  ;;  %v4102_v37 = vpop.f32.mrb[207].mxu0  ;;  %v4704_v31 = vmul.f32 0.01, %v4108_v14 }
 0x630   : > { %v4702_v1 = vmul.f32 0.01, %v4100_v2  ;;  %v3292_v25 = vadd.f32 %v9450_v58, %v3291_v48  ;;  %v6497_v21 = vpop.f32.mrb[142].mxu1  ;;  %v4103_v29 = vadd.f32 %v9437_v32, %v4102_v37  ;;  %vm4574_vm10 = vcmp.gt.f32.partialorder %v4100_v2, 0.0 }
 0x631   : > { %vm3576_vm9 = vcmp.gt.f32.partialorder %v3300_v17, 0.0  ;;  %v3704_v24 = vmul.f32 0.01, %v3300_v17  ;;  %v4705_v7 = vmul.f32 0.01, %v4111_v50  ;;  %v3303_v28 = vadd.f32 %v9450_v58, %v6497_v21  ;;  %v3294_v4 = vpop.f32.mrb[143].mxu1 }
 0x632   : > { %vm3574_vm11 = vcmp.gt.f32.partialorder %v3292_v25, 0.0  ;;  %v3702_v26 = vmul.f32 0.01, %v3292_v25  ;;  %vm4575_vm12 = vcmp.gt.f32.partialorder %v4103_v29, 0.0  ;;  %vm4577_vm13 = vcmp.gt.f32.partialorder %v4111_v50, 0.0 }
 0x633   : > { %v4703_v56 = vmul.f32 0.01, %v4103_v29  ;;  %v3295_v5 = vadd.f32 %v9450_v58, %v3294_v4  ;;  %v3918_v12 = vpack.c.bf16 %v3827_v3, %v3826_v27  ;;  %v3832_v39 = vsel %vm3576_vm9, %v3300_v17, %v3704_v24 }
 0x634   : > { %vm3577_vm14 = vcmp.gt.f32.partialorder %v3303_v28, 0.0  ;;  %v3705_v46 = vmul.f32 0.01, %v3303_v28  ;;  %v4830_v22 = vsel %vm4574_vm10, %v4100_v2, %v4702_v1  ;;  %v3830_v38 = vsel %vm3574_vm11, %v3292_v25, %v3702_v26 }
 0x635   : > { %vm3575_vm15 = vcmp.gt.f32.partialorder %v3295_v5, 0.0  ;;  %v3703_v15 = vmul.f32 0.01, %v3295_v5  ;;  %6634 = vmatprep.mubr.bf16.mxu0 %v3918_v12  ;;  %v4831_v62 = vsel %vm4575_vm12, %v4103_v29, %v4703_v56  ;;  %v4832_v10 = vsel %vm4576_vm8, %v4108_v14, %v4704_v31 }
 0x636   : > { %v3833_v13 = vsel %vm3577_vm14, %v3303_v28, %v3705_v46  ;;  %6635 = vmatmul.mubr.bf16.gmra.mrb[8].mxu0 %v3919_v51  ;;  %v6500_v23 = vpop.f32.mrb[144].mxu1  ;;  %v4952_v20 = vpack.c.bf16 %v4831_v62, %v4830_v22  ;;  %v4833_v57 = vsel %vm4577_vm13, %v4111_v50, %v4705_v7 }
 0x637   : > { %v3921_v41 = vpack.c.bf16 %v3833_v13, %v3832_v39  ;;  %v3316_v43 = vadd.f32 %v9450_v58, %v6500_v23  ;;  %v3307_v9 = vpop.f32.mrb[145].mxu1  ;;  %v3831_v42 = vsel %vm3575_vm15, %v3295_v5, %v3703_v15  ;;  %v4953_v52 = vpack.c.bf16 %v4833_v57, %v4832_v10 }
 0x638   : > { %v3308_v47 = vadd.f32 %v9450_v58, %v3307_v9  ;;  %v6501_v44 = vpop.f32.mrb[146].mxu1  ;;  %6718 = vmatprep.mubr.bf16.mxu1 %v4952_v20  ;;  %v3920_v63 = vpack.c.bf16 %v3831_v42, %v3830_v38 }
 0x639   : > { %v3708_v59 = vmul.f32 0.01, %v3316_v43  ;;  %v3319_v18 = vadd.f32 %v9450_v58, %v6501_v44  ;;  %v3310_v11 = vpop.f32.mrb[147].mxu1  ;;  %6719 = vmatmul.mubr.bf16.gmra.mrb[204].mxu1 %v4953_v52  ;;  %vm3580_vm0 = vcmp.gt.f32.partialorder %v3316_v43, 0.0 }
 0x63a   : > { %v3706_v53 = vmul.f32 0.01, %v3308_v47  ;;  %v3311_v55 = vadd.f32 %v9450_v58, %v3310_v11  ;;  %6638 = vmatprep.mubr.bf16.mxu0 %v3920_v63  ;;  %vm3578_vm1 = vcmp.gt.f32.partialorder %v3308_v47, 0.0 }
 0x63b   : > { %vm3581_vm2 = vcmp.gt.f32.partialorder %v3319_v18, 0.0  ;;  %v3709_v19 = vmul.f32 0.01, %v3319_v18  ;;  %v3836_v49 = vsel %vm3580_vm0, %v3316_v43, %v3708_v59 }
 0x63c   : > { %vm3579_vm3 = vcmp.gt.f32.partialorder %v3311_v55, 0.0  ;;  %v3707_v36 = vmul.f32 0.01, %v3311_v55  ;;  %v6580_v0 = vpop.f32.mrb[208].mxu0  ;;  %v3834_v35 = vsel %vm3578_vm1, %v3308_v47, %v3706_v53 }
 0x63d   : > { %v3837_v8 = vsel %vm3581_vm2, %v3319_v18, %v3709_v19  ;;  %v4124_v6 = vadd.f32 %v6580_v0, %v9437_v32  ;;  %v4115_v40 = vpop.f32.mrb[209].mxu0 }
 0x63e   : > { %v3923_v16 = vpack.c.bf16 %v3837_v8, %v3836_v49  ;;  %6639 = vmatmul.mubr.bf16.gmra.mrb[12].mxu0 %v3921_v41  ;;  %v6504_v54 = vpop.f32.mrb[148].mxu1  ;;  %v4116_v60 = vadd.f32 %v9437_v32, %v4115_v40  ;;  %v6581_v61 = vpop.f32.mrb[210].mxu0  ;;  %v3835_v45 = vsel %vm3579_vm3, %v3311_v55, %v3707_v36 }
 0x63f   : > { %vm4580_vm4 = vcmp.gt.f32.partialorder %v4124_v6, 0.0  ;;  %v3332_v33 = vadd.f32 %v9450_v58, %v6504_v54  ;;  %v3323_v14 = vpop.f32.mrb[149].mxu1  ;;  %v4127_v30 = vadd.f32 %v6581_v61, %v9437_v32  ;;  %v4118_v51 = vpop.f32.mrb[211].mxu0  ;;  %v4708_v2 = vmul.f32 0.01, %v4124_v6 }
 0x640   : > { %v4706_v34 = vmul.f32 0.01, %v4116_v60  ;;  %v3324_v27 = vadd.f32 %v9450_v58, %v3323_v14  ;;  %v6505_v17 = vpop.f32.mrb[150].mxu1  ;;  %v4119_v48 = vadd.f32 %v9437_v32, %v4118_v51  ;;  %vm4578_vm6 = vcmp.gt.f32.partialorder %v4116_v60, 0.0 }
 0x641   : > { %vm3584_vm5 = vcmp.gt.f32.partialorder %v3332_v33, 0.0  ;;  %v3712_v50 = vmul.f32 0.01, %v3332_v33  ;;  %v4709_v37 = vmul.f32 0.01, %v4127_v30  ;;  %v3335_v31 = vadd.f32 %v9450_v58, %v6505_v17  ;;  %v3326_v1 = vpop.f32.mrb[151].mxu1 }
 0x642   : > { %vm3582_vm7 = vcmp.gt.f32.partialorder %v3324_v27, 0.0  ;;  %v3710_v3 = vmul.f32 0.01, %v3324_v27  ;;  %vm4579_vm8 = vcmp.gt.f32.partialorder %v4119_v48, 0.0  ;;  %vm4581_vm9 = vcmp.gt.f32.partialorder %v4127_v30, 0.0 }
 0x643   : > { %v4707_v25 = vmul.f32 0.01, %v4119_v48  ;;  %v3327_v21 = vadd.f32 %v9450_v58, %v3326_v1  ;;  %v3922_v29 = vpack.c.bf16 %v3835_v45, %v3834_v35  ;;  %v3840_v24 = vsel %vm3584_vm5, %v3332_v33, %v3712_v50 }
 0x644   : > { %vm3585_vm10 = vcmp.gt.f32.partialorder %v3335_v31, 0.0  ;;  %v3713_v7 = vmul.f32 0.01, %v3335_v31  ;;  %v4834_v26 = vsel %vm4578_vm6, %v4116_v60, %v4706_v34  ;;  %v3838_v56 = vsel %vm3582_vm7, %v3324_v27, %v3710_v3 }
 0x645   : > { %vm3583_vm11 = vcmp.gt.f32.partialorder %v3327_v21, 0.0  ;;  %v3711_v28 = vmul.f32 0.01, %v3327_v21  ;;  %6642 = vmatprep.mubr.bf16.mxu0 %v3922_v29  ;;  %v4835_v4 = vsel %vm4579_vm8, %v4119_v48, %v4707_v25  ;;  %v4836_v46 = vsel %vm4580_vm4, %v4124_v6, %v4708_v2 }
 0x646   : > { %v3841_v5 = vsel %vm3585_vm10, %v3335_v31, %v3713_v7  ;;  %6643 = vmatmul.mubr.bf16.gmra.mrb[16].mxu0 %v3923_v16  ;;  %v6508_v12 = vpop.f32.mrb[152].mxu1  ;;  %v4954_v39 = vpack.c.bf16 %v4835_v4, %v4834_v26  ;;  %v4837_v22 = vsel %vm4581_vm9, %v4127_v30, %v4709_v37 }
 0x647   : > { %v3925_v15 = vpack.c.bf16 %v3841_v5, %v3840_v24  ;;  %v3348_v62 = vadd.f32 %v9450_v58, %v6508_v12  ;;  %v3339_v38 = vpop.f32.mrb[153].mxu1  ;;  %v3839_v13 = vsel %vm3583_vm11, %v3327_v21, %v3711_v28  ;;  %v4955_v23 = vpack.c.bf16 %v4837_v22, %v4836_v46 }
 0x648   : > { %v3340_v20 = vadd.f32 %v9450_v58, %v3339_v38  ;;  %v6509_v10 = vpop.f32.mrb[154].mxu1  ;;  %6722 = vmatprep.mubr.bf16.mxu1 %v4954_v39  ;;  %v3924_v57 = vpack.c.bf16 %v3839_v13, %v3838_v56 }
 0x649   : > { %v3716_v41 = vmul.f32 0.01, %v3348_v62  ;;  %v3351_v43 = vadd.f32 %v9450_v58, %v6509_v10  ;;  %v3342_v9 = vpop.f32.mrb[155].mxu1  ;;  %6723 = vmatmul.mubr.bf16.gmra.mrb[208].mxu1 %v4955_v23  ;;  %vm3588_vm12 = vcmp.gt.f32.partialorder %v3348_v62, 0.0 }
 0x64a   : > { %v3714_v42 = vmul.f32 0.01, %v3340_v20  ;;  %v3343_v52 = vadd.f32 %v9450_v58, %v3342_v9  ;;  %6646 = vmatprep.mubr.bf16.mxu0 %v3924_v57  ;;  %vm3586_vm13 = vcmp.gt.f32.partialorder %v3340_v20, 0.0 }
 0x64b   : > { %vm3589_vm14 = vcmp.gt.f32.partialorder %v3351_v43, 0.0  ;;  %v3717_v47 = vmul.f32 0.01, %v3351_v43  ;;  %v3844_v59 = vsel %vm3588_vm12, %v3348_v62, %v3716_v41 }
 0x64c   : > { %vm3587_vm15 = vcmp.gt.f32.partialorder %v3343_v52, 0.0  ;;  %v3715_v44 = vmul.f32 0.01, %v3343_v52  ;;  %v6584_v63 = vpop.f32.mrb[212].mxu0  ;;  %v3842_v49 = vsel %vm3586_vm13, %v3340_v20, %v3714_v42 }
 0x64d   : > { %v3845_v18 = vsel %vm3589_vm14, %v3351_v43, %v3717_v47  ;;  %v4140_v11 = vadd.f32 %v6584_v63, %v9437_v32  ;;  %v4131_v53 = vpop.f32.mrb[213].mxu0 }
 0x64e   : > { %v3927_v55 = vpack.c.bf16 %v3845_v18, %v3844_v59  ;;  %6647 = vmatmul.mubr.bf16.gmra.mrb[20].mxu0 %v3925_v15  ;;  %v6512_v19 = vpop.f32.mrb[156].mxu1  ;;  %v4132_v36 = vadd.f32 %v9437_v32, %v4131_v53  ;;  %v6585_v0 = vpop.f32.mrb[214].mxu0  ;;  %v3843_v54 = vsel %vm3587_vm15, %v3343_v52, %v3715_v44 }
 0x64f   : > { %vm4584_vm0 = vcmp.gt.f32.partialorder %v4140_v11, 0.0  ;;  %v3364_v8 = vadd.f32 %v9450_v58, %v6512_v19  ;;  %v3355_v6 = vpop.f32.mrb[157].mxu1  ;;  %v4143_v40 = vadd.f32 %v6585_v0, %v9437_v32  ;;  %v4134_v16 = vpop.f32.mrb[215].mxu0  ;;  %v4712_v60 = vmul.f32 0.01, %v4140_v11 }
 0x650   : > { %v4710_v61 = vmul.f32 0.01, %v4132_v36  ;;  %v3356_v35 = vadd.f32 %v9450_v58, %v3355_v6  ;;  %v6513_v33 = vpop.f32.mrb[158].mxu1  ;;  %v4135_v14 = vadd.f32 %v9437_v32, %v4134_v16  ;;  %vm4582_vm2 = vcmp.gt.f32.partialorder %v4132_v36, 0.0 }
 0x651   : > { %vm3592_vm1 = vcmp.gt.f32.partialorder %v3364_v8, 0.0  ;;  %v3720_v30 = vmul.f32 0.01, %v3364_v8  ;;  %v4713_v51 = vmul.f32 0.01, %v4143_v40  ;;  %v3367_v2 = vadd.f32 %v9450_v58, %v6513_v33  ;;  %v3358_v34 = vpop.f32.mrb[159].mxu1 }
 0x652   : > { %vm3590_vm3 = vcmp.gt.f32.partialorder %v3356_v35, 0.0  ;;  %v3718_v45 = vmul.f32 0.01, %v3356_v35  ;;  %vm4583_vm4 = vcmp.gt.f32.partialorder %v4135_v14, 0.0  ;;  %vm4585_vm5 = vcmp.gt.f32.partialorder %v4143_v40, 0.0 }
 0x653   : > { %v4711_v27 = vmul.f32 0.01, %v4135_v14  ;;  %v3359_v17 = vadd.f32 %v9450_v58, %v3358_v34  ;;  %v3926_v48 = vpack.c.bf16 %v3843_v54, %v3842_v49  ;;  %v3848_v50 = vsel %vm3592_vm1, %v3364_v8, %v3720_v30 }
 0x654   : > { %vm3593_vm6 = vcmp.gt.f32.partialorder %v3367_v2, 0.0  ;;  %v3721_v37 = vmul.f32 0.01, %v3367_v2  ;;  %v4838_v3 = vsel %vm4582_vm2, %v4132_v36, %v4710_v61  ;;  %v3846_v25 = vsel %vm3590_vm3, %v3356_v35, %v3718_v45 }
 0x655   : > { %vm3591_vm7 = vcmp.gt.f32.partialorder %v3359_v17, 0.0  ;;  %v3719_v31 = vmul.f32 0.01, %v3359_v17  ;;  %6650 = vmatprep.mubr.bf16.mxu0 %v3926_v48  ;;  %v4839_v1 = vsel %vm4583_vm4, %v4135_v14, %v4711_v27  ;;  %v4840_v7 = vsel %vm4584_vm0, %v4140_v11, %v4712_v60 }
 0x656   : > { %v3849_v21 = vsel %vm3593_vm6, %v3367_v2, %v3721_v37  ;;  %6651 = vmatmul.mubr.bf16.gmra.mrb[24].mxu0 %v3927_v55  ;;  %v6516_v29 = vpop.f32.mrb[160].mxu1  ;;  %v4956_v24 = vpack.c.bf16 %v4839_v1, %v4838_v3  ;;  %v4841_v26 = vsel %vm4585_vm5, %v4143_v40, %v4713_v51 }
 0x657   : > { %v3929_v28 = vpack.c.bf16 %v3849_v21, %v3848_v50  ;;  %v3380_v4 = vadd.f32 %v9450_v58, %v6516_v29  ;;  %v3371_v56 = vpop.f32.mrb[161].mxu1  ;;  %v3847_v5 = vsel %vm3591_vm7, %v3359_v17, %v3719_v31  ;;  %v4957_v12 = vpack.c.bf16 %v4841_v26, %v4840_v7 }
 0x658   : > { %v3372_v39 = vadd.f32 %v9450_v58, %v3371_v56  ;;  %v6517_v46 = vpop.f32.mrb[162].mxu1  ;;  %6726 = vmatprep.mubr.bf16.mxu1 %v4956_v24  ;;  %v3928_v22 = vpack.c.bf16 %v3847_v5, %v3846_v25 }
 0x659   : > { %v3724_v15 = vmul.f32 0.01, %v3380_v4  ;;  %v3383_v62 = vadd.f32 %v9450_v58, %v6517_v46  ;;  %v3374_v38 = vpop.f32.mrb[163].mxu1  ;;  %6727 = vmatmul.mubr.bf16.gmra.mrb[212].mxu1 %v4957_v12  ;;  %vm3596_vm8 = vcmp.gt.f32.partialorder %v3380_v4, 0.0 }
 0x65a   : > { %v3722_v13 = vmul.f32 0.01, %v3372_v39  ;;  %v3375_v23 = vadd.f32 %v9450_v58, %v3374_v38  ;;  %6654 = vmatprep.mubr.bf16.mxu0 %v3928_v22  ;;  %vm3594_vm9 = vcmp.gt.f32.partialorder %v3372_v39, 0.0 }
 0x65b   : > { %vm3597_vm10 = vcmp.gt.f32.partialorder %v3383_v62, 0.0  ;;  %v3725_v20 = vmul.f32 0.01, %v3383_v62  ;;  %v3852_v41 = vsel %vm3596_vm8, %v3380_v4, %v3724_v15 }
 0x65c   : > { %vm3595_vm11 = vcmp.gt.f32.partialorder %v3375_v23, 0.0  ;;  %v3723_v10 = vmul.f32 0.01, %v3375_v23  ;;  %v6588_v57 = vpop.f32.mrb[216].mxu0  ;;  %v3850_v59 = vsel %vm3594_vm9, %v3372_v39, %v3722_v13 }
 0x65d   : > { %v3853_v43 = vsel %vm3597_vm10, %v3383_v62, %v3725_v20  ;;  %v4156_v9 = vadd.f32 %v6588_v57, %v9437_v32  ;;  %v4147_v42 = vpop.f32.mrb[217].mxu0 }
 0x65e   : > { %v3931_v52 = vpack.c.bf16 %v3853_v43, %v3852_v41  ;;  %6655 = vmatmul.mubr.bf16.gmra.mrb[28].mxu0 %v3929_v28  ;;  %v6520_v47 = vpop.f32.mrb[164].mxu1  ;;  %v4148_v44 = vadd.f32 %v9437_v32, %v4147_v42  ;;  %v6589_v63 = vpop.f32.mrb[218].mxu0  ;;  %v3851_v19 = vsel %vm3595_vm11, %v3375_v23, %v3723_v10 }
 0x65f   : > { %vm4588_vm12 = vcmp.gt.f32.partialorder %v4156_v9, 0.0  ;;  %v3396_v18 = vadd.f32 %v9450_v58, %v6520_v47  ;;  %v3387_v11 = vpop.f32.mrb[165].mxu1  ;;  %v4159_v53 = vadd.f32 %v6589_v63, %v9437_v32  ;;  %v4150_v55 = vpop.f32.mrb[219].mxu0  ;;  %v4716_v36 = vmul.f32 0.01, %v4156_v9 }
 0x660   : > { %v4714_v0 = vmul.f32 0.01, %v4148_v44  ;;  %v3388_v49 = vadd.f32 %v9450_v58, %v3387_v11  ;;  %v6521_v8 = vpop.f32.mrb[166].mxu1  ;;  %v4151_v6 = vadd.f32 %v9437_v32, %v4150_v55  ;;  %vm4586_vm14 = vcmp.gt.f32.partialorder %v4148_v44, 0.0 }
 0x661   : > { %vm3600_vm13 = vcmp.gt.f32.partialorder %v3396_v18, 0.0  ;;  %v3728_v40 = vmul.f32 0.01, %v3396_v18  ;;  %v4717_v16 = vmul.f32 0.01, %v4159_v53  ;;  %v3399_v60 = vadd.f32 %v9450_v58, %v6521_v8  ;;  %v3390_v61 = vpop.f32.mrb[167].mxu1 }
 0x662   : > { %vm3598_vm15 = vcmp.gt.f32.partialorder %v3388_v49, 0.0  ;;  %v3726_v54 = vmul.f32 0.01, %v3388_v49  ;;  %vm4587_vm0 = vcmp.gt.f32.partialorder %v4151_v6, 0.0  ;;  %vm4589_vm1 = vcmp.gt.f32.partialorder %v4159_v53, 0.0 }
 0x663   : > { %v4715_v35 = vmul.f32 0.01, %v4151_v6  ;;  %v3391_v33 = vadd.f32 %v9450_v58, %v3390_v61  ;;  %v3930_v14 = vpack.c.bf16 %v3851_v19, %v3850_v59  ;;  %v3856_v30 = vsel %vm3600_vm13, %v3396_v18, %v3728_v40 }
 0x664   : > { %vm3601_vm2 = vcmp.gt.f32.partialorder %v3399_v60, 0.0  ;;  %v3729_v51 = vmul.f32 0.01, %v3399_v60  ;;  %v4842_v45 = vsel %vm4586_vm14, %v4148_v44, %v4714_v0  ;;  %v3854_v27 = vsel %vm3598_vm15, %v3388_v49, %v3726_v54 }
 0x665   : > { %vm3599_vm3 = vcmp.gt.f32.partialorder %v3391_v33, 0.0  ;;  %v3727_v2 = vmul.f32 0.01, %v3391_v33  ;;  %6658 = vmatprep.mubr.bf16.mxu0 %v3930_v14  ;;  %v4843_v34 = vsel %vm4587_vm0, %v4151_v6, %v4715_v35  ;;  %v4844_v37 = vsel %vm4588_vm12, %v4156_v9, %v4716_v36 }
 0x666   : > { %v3857_v17 = vsel %vm3601_vm2, %v3399_v60, %v3729_v51  ;;  %6659 = vmatmul.mubr.bf16.gmra.mrb[32].mxu0 %v3931_v52  ;;  %v6524_v48 = vpop.f32.mrb[168].mxu1  ;;  %v4958_v50 = vpack.c.bf16 %v4843_v34, %v4842_v45  ;;  %v4845_v3 = vsel %vm4589_vm1, %v4159_v53, %v4717_v16 }
 0x667   : > { %v3933_v31 = vpack.c.bf16 %v3857_v17, %v3856_v30  ;;  %v3412_v1 = vadd.f32 %v9450_v58, %v6524_v48  ;;  %v3403_v25 = vpop.f32.mrb[169].mxu1  ;;  %v3855_v21 = vsel %vm3599_vm3, %v3391_v33, %v3727_v2  ;;  %v4959_v29 = vpack.c.bf16 %v4845_v3, %v4844_v37 }
 0x668   : > { %v3404_v24 = vadd.f32 %v9450_v58, %v3403_v25  ;;  %v6525_v7 = vpop.f32.mrb[170].mxu1  ;;  %6730 = vmatprep.mubr.bf16.mxu1 %v4958_v50  ;;  %v3932_v26 = vpack.c.bf16 %v3855_v21, %v3854_v27 }
 0x669   : > { %v3732_v28 = vmul.f32 0.01, %v3412_v1  ;;  %v3415_v4 = vadd.f32 %v9450_v58, %v6525_v7  ;;  %v3406_v56 = vpop.f32.mrb[171].mxu1  ;;  %6731 = vmatmul.mubr.bf16.gmra.mrb[216].mxu1 %v4959_v29  ;;  %vm3604_vm4 = vcmp.gt.f32.partialorder %v3412_v1, 0.0 }
 0x66a   : > { %v3730_v5 = vmul.f32 0.01, %v3404_v24  ;;  %v3407_v12 = vadd.f32 %v9450_v58, %v3406_v56  ;;  %6662 = vmatprep.mubr.bf16.mxu0 %v3932_v26  ;;  %vm3602_vm5 = vcmp.gt.f32.partialorder %v3404_v24, 0.0 }
 0x66b   : > { %vm3605_vm6 = vcmp.gt.f32.partialorder %v3415_v4, 0.0  ;;  %v3733_v39 = vmul.f32 0.01, %v3415_v4  ;;  %v3860_v15 = vsel %vm3604_vm4, %v3412_v1, %v3732_v28 }
 0x66c   : > { %vm3603_vm7 = vcmp.gt.f32.partialorder %v3407_v12, 0.0  ;;  %v3731_v46 = vmul.f32 0.01, %v3407_v12  ;;  %v6592_v22 = vpop.f32.mrb[220].mxu0  ;;  %v3858_v41 = vsel %vm3602_vm5, %v3404_v24, %v3730_v5 }
 0x66d   : > { %v3861_v62 = vsel %vm3605_vm6, %v3415_v4, %v3733_v39  ;;  %v4172_v38 = vadd.f32 %v6592_v22, %v9437_v32  ;;  %v4163_v13 = vpop.f32.mrb[221].mxu0  ;;  %v9561_v4 = vld [vmem:[#allocation19] ss:$0 sm:$0xff] }
 0x66e   : > { %v3935_v23 = vpack.c.bf16 %v3861_v62, %v3860_v15  ;;  %6663 = vmatmul.mubr.bf16.gmra.mrb[36].mxu0 %v3933_v31  ;;  %v6528_v20 = vpop.f32.mrb[172].mxu1  ;;  %v4164_v10 = vadd.f32 %v9437_v32, %v4163_v13  ;;  %v6593_v57 = vpop.f32.mrb[222].mxu0  ;;  %v3859_v47 = vsel %vm3603_vm7, %v3407_v12, %v3731_v46 }
 0x66f   : > { %vm4592_vm8 = vcmp.gt.f32.partialorder %v4172_v38, 0.0  ;;  %v3428_v43 = vadd.f32 %v9450_v58, %v6528_v20  ;;  %v3419_v9 = vpop.f32.mrb[173].mxu1  ;;  %v4175_v42 = vadd.f32 %v6593_v57, %v9437_v32  ;;  %v4166_v52 = vpop.f32.mrb[223].mxu0  ;;  %v4720_v44 = vmul.f32 0.01, %v4172_v38 }
 0x670   : > { %v4718_v63 = vmul.f32 0.01, %v4164_v10  ;;  %v3420_v59 = vadd.f32 %v9450_v58, %v3419_v9  ;;  %v6529_v18 = vpop.f32.mrb[174].mxu1  ;;  %v4167_v11 = vadd.f32 %v9437_v32, %v4166_v52  ;;  %vm4590_vm10 = vcmp.gt.f32.partialorder %v4164_v10, 0.0 }
 0x671   : > { %vm3608_vm9 = vcmp.gt.f32.partialorder %v3428_v43, 0.0  ;;  %v3736_v53 = vmul.f32 0.01, %v3428_v43  ;;  %v4721_v55 = vmul.f32 0.01, %v4175_v42  ;;  %v3431_v36 = vadd.f32 %v9450_v58, %v6529_v18  ;;  %v3422_v0 = vpop.f32.mrb[175].mxu1 }
 0x672   : > { %vm3606_vm11 = vcmp.gt.f32.partialorder %v3420_v59, 0.0  ;;  %v3734_v19 = vmul.f32 0.01, %v3420_v59  ;;  %vm4591_vm12 = vcmp.gt.f32.partialorder %v4167_v11, 0.0  ;;  %vm4593_vm13 = vcmp.gt.f32.partialorder %v4175_v42, 0.0 }
 0x673   : > { %v4719_v49 = vmul.f32 0.01, %v4167_v11  ;;  %v3423_v8 = vadd.f32 %v9450_v58, %v3422_v0  ;;  %v3934_v6 = vpack.c.bf16 %v3859_v47, %v3858_v41  ;;  %v3864_v40 = vsel %vm3608_vm9, %v3428_v43, %v3736_v53 }
 0x674   : > { %vm3609_vm14 = vcmp.gt.f32.partialorder %v3431_v36, 0.0  ;;  %v3737_v16 = vmul.f32 0.01, %v3431_v36  ;;  %v4846_v54 = vsel %vm4590_vm10, %v4164_v10, %v4718_v63  ;;  %v3862_v61 = vsel %vm3606_vm11, %v3420_v59, %v3734_v19 }
 0x675   : > { %vm3607_vm15 = vcmp.gt.f32.partialorder %v3423_v8, 0.0  ;;  %v3735_v32 = vmul.f32 0.01, %v3423_v8  ;;  %6666 = vmatprep.mubr.bf16.mxu0 %v3934_v6  ;;  %v4847_v60 = vsel %vm4591_vm12, %v4167_v11, %v4719_v49  ;;  %v4848_v30 = vsel %vm4592_vm8, %v4172_v38, %v4720_v44  ;;  %v9571_v44 = vld [vmem:[#allocation16] ss:$0 sm:$0xff] }
 0x676   : > { %v3865_v35 = vsel %vm3609_vm14, %v3431_v36, %v3737_v16  ;;  %6667 = vmatmul.mubr.bf16.gmra.mrb[40].mxu0 %v3935_v23  ;;  %v6532_v33 = vpop.f32.mrb[176].mxu1  ;;  %v4960_v14 = vpack.c.bf16 %v4847_v60, %v4846_v54  ;;  %v4849_v51 = vsel %vm4593_vm13, %v4175_v42, %v4721_v55 }
 0x677   : > { %v3937_v45 = vpack.c.bf16 %v3865_v35, %v3864_v40  ;;  %v3444_v2 = vadd.f32 %v9450_v58, %v6532_v33  ;;  %v3435_v34 = vpop.f32.mrb[177].mxu1  ;;  %v3863_v27 = vsel %vm3607_vm15, %v3423_v8, %v3735_v32  ;;  %v4961_v17 = vpack.c.bf16 %v4849_v51, %v4848_v30 }
 0x678   : > { %v3436_v48 = vadd.f32 %v9450_v58, %v3435_v34  ;;  %v6533_v50 = vpop.f32.mrb[178].mxu1  ;;  %6734 = vmatprep.mubr.bf16.mxu1 %v4960_v14  ;;  %v3936_v37 = vpack.c.bf16 %v3863_v27, %v3862_v61 }
 0x679   : > { %v3740_v3 = vmul.f32 0.01, %v3444_v2  ;;  %v3447_v31 = vadd.f32 %v9450_v58, %v6533_v50  ;;  %v3438_v1 = vpop.f32.mrb[179].mxu1  ;;  %6735 = vmatmul.mubr.bf16.gmra.mrb[220].mxu1 %v4961_v17  ;;  %vm3612_vm0 = vcmp.gt.f32.partialorder %v3444_v2, 0.0 }
 0x67a   : > { %v3738_v25 = vmul.f32 0.01, %v3436_v48  ;;  %v3439_v21 = vadd.f32 %v9450_v58, %v3438_v1  ;;  %6670 = vmatprep.mubr.bf16.mxu0 %v3936_v37  ;;  %vm3610_vm1 = vcmp.gt.f32.partialorder %v3436_v48, 0.0 }
 0x67b   : > { %vm3613_vm2 = vcmp.gt.f32.partialorder %v3447_v31, 0.0  ;;  %v3741_v29 = vmul.f32 0.01, %v3447_v31  ;;  %v3868_v26 = vsel %vm3612_vm0, %v3444_v2, %v3740_v3 }
 0x67c   : > { %vm3611_vm3 = vcmp.gt.f32.partialorder %v3439_v21, 0.0  ;;  %v3739_v24 = vmul.f32 0.01, %v3439_v21  ;;  %v6596_v7 = vpop.f32.mrb[224].mxu0  ;;  %v3866_v15 = vsel %vm3610_vm1, %v3436_v48, %v3738_v25 }
 0x67d   : > { %v3869_v28 = vsel %vm3613_vm2, %v3447_v31, %v3741_v29  ;;  %v4188_v56 = vadd.f32 %v9561_v4, %v6596_v7  ;;  %v4179_v5 = vpop.f32.mrb[225].mxu0 }
 0x67e   : > { %v3939_v12 = vpack.c.bf16 %v3869_v28, %v3868_v26  ;;  %6671 = vmatmul.mubr.bf16.gmra.mrb[44].mxu0 %v3937_v45  ;;  %v6536_v39 = vpop.f32.mrb[180].mxu1  ;;  %v4180_v46 = vadd.f32 %v9561_v4, %v4179_v5  ;;  %v6597_v22 = vpop.f32.mrb[226].mxu0  ;;  %v3867_v20 = vsel %vm3611_vm3, %v3439_v21, %v3739_v24 }
 0x67f   : > { %vm4596_vm4 = vcmp.gt.f32.partialorder %v4188_v56, 0.0  ;;  %v3460_v62 = vadd.f32 %v9450_v58, %v6536_v39  ;;  %v3451_v38 = vpop.f32.mrb[181].mxu1  ;;  %v4191_v13 = vadd.f32 %v9561_v4, %v6597_v22  ;;  %v4182_v23 = vpop.f32.mrb[227].mxu0  ;;  %v4724_v10 = vmul.f32 0.01, %v4188_v56 }
 0x680   : > { %v4722_v57 = vmul.f32 0.01, %v4180_v46  ;;  %v3452_v41 = vadd.f32 %v9450_v58, %v3451_v38  ;;  %v6537_v43 = vpop.f32.mrb[182].mxu1  ;;  %v4183_v9 = vadd.f32 %v9561_v4, %v4182_v23  ;;  %vm4594_vm6 = vcmp.gt.f32.partialorder %v4180_v46, 0.0 }
 0x681   : > { %vm3616_vm5 = vcmp.gt.f32.partialorder %v3460_v62, 0.0  ;;  %v3744_v42 = vmul.f32 0.01, %v3460_v62  ;;  %v4725_v52 = vmul.f32 0.01, %v4191_v13  ;;  %v3463_v63 = vadd.f32 %v9571_v44, %v6537_v43  ;;  %v3454_v59 = vpop.f32.mrb[183].mxu1 }
 0x682   : > { %vm3614_vm7 = vcmp.gt.f32.partialorder %v3452_v41, 0.0  ;;  %v3742_v47 = vmul.f32 0.01, %v3452_v41  ;;  %vm4595_vm8 = vcmp.gt.f32.partialorder %v4183_v9, 0.0  ;;  %vm4597_vm9 = vcmp.gt.f32.partialorder %v4191_v13, 0.0 }
 0x683   : > { %v4723_v18 = vmul.f32 0.01, %v4183_v9  ;;  %v3455_v11 = vadd.f32 %v9571_v44, %v3454_v59  ;;  %v3938_v58 = vpack.c.bf16 %v3867_v20, %v3866_v15  ;;  %v3872_v53 = vsel %vm3616_vm5, %v3460_v62, %v3744_v42 }
 0x684   : > { %vm3617_vm10 = vcmp.gt.f32.partialorder %v3463_v63, 0.0  ;;  %v3745_v55 = vmul.f32 0.01, %v3463_v63  ;;  %v4850_v19 = vsel %vm4594_vm6, %v4180_v46, %v4722_v57  ;;  %v3870_v49 = vsel %vm3614_vm7, %v3452_v41, %v3742_v47 }
 0x685   : > { %vm3615_vm11 = vcmp.gt.f32.partialorder %v3455_v11, 0.0  ;;  %v3743_v36 = vmul.f32 0.01, %v3455_v11  ;;  %6674 = vmatprep.mubr.bf16.mxu0 %v3938_v58  ;;  %v4851_v0 = vsel %vm4595_vm8, %v4183_v9, %v4723_v18  ;;  %v4852_v16 = vsel %vm4596_vm4, %v4188_v56, %v4724_v10 }
 0x686   : > { %v3873_v8 = vsel %vm3617_vm10, %v3463_v63, %v3745_v55  ;;  %6675 = vmatmul.mubr.bf16.gmra.mrb[48].mxu0 %v3939_v12  ;;  %v6540_v6 = vpop.f32.mrb[184].mxu1  ;;  %v4962_v40 = vpack.c.bf16 %v4851_v0, %v4850_v19  ;;  %v4853_v54 = vsel %vm4597_vm9, %v4191_v13, %v4725_v52 }
 0x687   : > { %v3941_v32 = vpack.c.bf16 %v3873_v8, %v3872_v53  ;;  %v3476_v60 = vadd.f32 %v9571_v44, %v6540_v6  ;;  %v3467_v61 = vpop.f32.mrb[185].mxu1  ;;  %v3871_v35 = vsel %vm3615_vm11, %v3455_v11, %v3743_v36  ;;  %v4963_v33 = vpack.c.bf16 %v4853_v54, %v4852_v16 }
 0x688   : > { %v3468_v14 = vadd.f32 %v9571_v44, %v3467_v61  ;;  %v6541_v30 = vpop.f32.mrb[186].mxu1  ;;  %6738 = vmatprep.mubr.bf16.mxu1 %v4962_v40  ;;  %v3940_v51 = vpack.c.bf16 %v3871_v35, %v3870_v49 }
 0x689   : > { %v3748_v45 = vmul.f32 0.01, %v3476_v60  ;;  %v3479_v2 = vadd.f32 %v9571_v44, %v6541_v30  ;;  %v3470_v34 = vpop.f32.mrb[187].mxu1  ;;  %6739 = vmatmul.mubr.bf16.gmra.mrb[224].mxu1 %v4963_v33  ;;  %vm3620_vm12 = vcmp.gt.f32.partialorder %v3476_v60, 0.0 }
 0x68a   : > { %v3471_v27 = vadd.f32 %v9571_v44, %v3470_v34  ;;  %6678 = vmatprep.mubr.bf16.mxu0 %v3940_v51  ;;  %v3746_v17 = vmul.f32 0.01, %v3468_v14  ;;  %vm3618_vm14 = vcmp.gt.f32.partialorder %v3468_v14, 0.0 }
 0x68b   : > { %vm3621_vm13 = vcmp.gt.f32.partialorder %v3479_v2, 0.0  ;;  %v3749_v48 = vmul.f32 0.01, %v3479_v2  ;;  %v3876_v3 = vsel %vm3620_vm12, %v3476_v60, %v3748_v45 }
 0x68c   : > { %vm3619_vm15 = vcmp.gt.f32.partialorder %v3471_v27, 0.0  ;;  %v3747_v50 = vmul.f32 0.01, %v3471_v27  ;;  %v6600_v37 = vpop.f32.mrb[228].mxu0  ;;  %v3874_v12 = vsel %vm3618_vm14, %v3468_v14, %v3746_v17 }
 0x68d   : > { %v3877_v31 = vsel %vm3621_vm13, %v3479_v2, %v3749_v48  ;;  %v4204_v1 = vadd.f32 %v9561_v4, %v6600_v37  ;;  %v4195_v25 = vpop.f32.mrb[229].mxu0 }
 0x68e   : > { %v3943_v21 = vpack.c.bf16 %v3877_v31, %v3876_v3  ;;  %6679 = vmatmul.mubr.bf16.gmra.mrb[52].mxu0 %v3941_v32  ;;  %v6544_v29 = vpop.f32.mrb[188].mxu1  ;;  %v4196_v24 = vadd.f32 %v9561_v4, %v4195_v25  ;;  %v6601_v7 = vpop.f32.mrb[230].mxu0  ;;  %v3875_v39 = vsel %vm3619_vm15, %v3471_v27, %v3747_v50 }
 0x68f   : > { %v3492_v26 = vadd.f32 %v9571_v44, %v6544_v29  ;;  %v3483_v28 = vpop.f32.mrb[189].mxu1  ;;  %v4207_v56 = vadd.f32 %v9561_v4, %v6601_v7  ;;  %v4198_v5 = vpop.f32.mrb[231].mxu0  ;;  %vm4600_vm0 = vcmp.gt.f32.partialorder %v4204_v1, 0.0  ;;  %v4728_v46 = vmul.f32 0.01, %v4204_v1 }
 0x690   : > { %v3484_v22 = vadd.f32 %v9571_v44, %v3483_v28  ;;  %v6545_v15 = vpop.f32.mrb[190].mxu1  ;;  %v4199_v62 = vadd.f32 %v9561_v4, %v4198_v5  ;;  %vm4598_vm2 = vcmp.gt.f32.partialorder %v4196_v24, 0.0  ;;  %v4726_v13 = vmul.f32 0.01, %v4196_v24 }
 0x691   : > { %vm3624_vm1 = vcmp.gt.f32.partialorder %v3492_v26, 0.0  ;;  %v3752_v38 = vmul.f32 0.01, %v3492_v26  ;;  %vm4601_vm3 = vcmp.gt.f32.partialorder %v4207_v56, 0.0  ;;  %v4729_v23 = vmul.f32 0.01, %v4207_v56 }
 0x692   : > { %v3495_v20 = vadd.f32 %v9571_v44, %v6545_v15  ;;  %vm4599_vm4 = vcmp.gt.f32.partialorder %v4199_v62, 0.0  ;;  %v3486_v10 = vpop.f32.mrb[191].mxu1  ;;  %v3750_v57 = vmul.f32 0.01, %v3484_v22  ;;  %v4727_v41 = vmul.f32 0.01, %v4199_v62 }
 0x693   : > { %v3487_v43 = vadd.f32 %v9571_v44, %v3486_v10  ;;  %v3942_v9 = vpack.c.bf16 %v3875_v39, %v3874_v12  ;;  %v3880_v42 = vsel %vm3624_vm1, %v3492_v26, %v3752_v38  ;;  %vm3622_vm5 = vcmp.gt.f32.partialorder %v3484_v22, 0.0 }
 0x694   : > { %vm3625_vm6 = vcmp.gt.f32.partialorder %v3495_v20, 0.0  ;;  %v3753_v52 = vmul.f32 0.01, %v3495_v20  ;;  %v4854_v63 = vsel %vm4598_vm2, %v4196_v24, %v4726_v13  ;;  %v4855_v59 = vsel %vm4599_vm4, %v4199_v62, %v4727_v41 }
 0x695   : > { %vm3623_vm7 = vcmp.gt.f32.partialorder %v3487_v43, 0.0  ;;  %v3751_v47 = vmul.f32 0.01, %v3487_v43  ;;  %6682 = vmatprep.mubr.bf16.mxu0 %v3942_v9  ;;  %v4964_v11 = vpack.c.bf16 %v4855_v59, %v4854_v63  ;;  %v4856_v58 = vsel %vm4600_vm0, %v4204_v1, %v4728_v46 }
 0x696   : > { %v3881_v18 = vsel %vm3625_vm6, %v3495_v20, %v3753_v52  ;;  %6683 = vmatmul.mubr.bf16.gmra.mrb[56].mxu0 %v3943_v21  ;;  %v4857_v53 = vsel %vm4601_vm3, %v4207_v56, %v4729_v23  ;;  %v3878_v44 = vsel %vm3622_vm5, %v3484_v22, %v3750_v57 }
 0x697   : > { %v3945_v55 = vpack.c.bf16 %v3881_v18, %v3880_v42  ;;  %v3879_v19 = vsel %vm3623_vm7, %v3487_v43, %v3751_v47  ;;  %v4965_v36 = vpack.c.bf16 %v4857_v53, %v4856_v58  ;;  %6742 = vmatprep.mubr.bf16.mxu1 %v4964_v11 }
 0x698   : > { %v3944_v0 = vpack.c.bf16 %v3879_v19, %v3878_v44 }
 0x699   : > { %6743 = vmatmul.mubr.bf16.gmra.mrb[228].mxu1 %v4965_v36 }
 0x69a   : > { %6686 = vmatprep.mubr.bf16.mxu0 %v3944_v0 }
 0x69c   : > { %v6604_v49 = vpop.f32.mrb[232].mxu0 }
 0x69d   : > { %v4220_v8 = vadd.f32 %v9561_v4, %v6604_v49  ;;  %v4211_v6 = vpop.f32.mrb[233].mxu0 }
 0x69e   : > { %6687 = vmatmul.mubr.bf16.gmra.mrb[60].mxu0 %v3945_v55  ;;  %v4212_v40 = vadd.f32 %v9561_v4, %v4211_v6  ;;  %v6605_v16 = vpop.f32.mrb[234].mxu0 }
 0x69f   : > { %v4732_v54 = vmul.f32 0.01, %v4220_v8  ;;  %v4223_v32 = vadd.f32 %v9561_v4, %v6605_v16  ;;  %v4214_v60 = vpop.f32.mrb[235].mxu0  ;;  %vm4604_vm8 = vcmp.gt.f32.partialorder %v4220_v8, 0.0 }
 0x6a0   : > { %v4730_v61 = vmul.f32 0.01, %v4212_v40  ;;  %v4215_v35 = vadd.f32 %v9561_v4, %v4214_v60  ;;  %vm4602_vm9 = vcmp.gt.f32.partialorder %v4212_v40, 0.0 }
 0x6a1   : > { %vm4605_vm10 = vcmp.gt.f32.partialorder %v4223_v32, 0.0  ;;  %v4733_v33 = vmul.f32 0.01, %v4223_v32  ;;  %v4860_v30 = vsel %vm4604_vm8, %v4220_v8, %v4732_v54 }
 0x6a2   : > { %vm4603_vm11 = vcmp.gt.f32.partialorder %v4215_v35, 0.0  ;;  %v4731_v14 = vmul.f32 0.01, %v4215_v35  ;;  %v4858_v45 = vsel %vm4602_vm9, %v4212_v40, %v4730_v61 }
 0x6a3   : > { %v4861_v51 = vsel %vm4605_vm10, %v4223_v32, %v4733_v33 }
 0x6a4   : > { %v4859_v2 = vsel %vm4603_vm11, %v4215_v35, %v4731_v14  ;;  %v4967_v34 = vpack.c.bf16 %v4861_v51, %v4860_v30  ;;  %v9612_v35 = vld [vmem:[#allocation22] ss:$0 sm:$0xff] }
 0x6a5   : > { %v4966_v27 = vpack.c.bf16 %v4859_v2, %v4858_v45 }
 0x6a7   : > { %6746 = vmatprep.mubr.bf16.mxu1 %v4966_v27 }
 0x6a8   : > { %6747 = vmatmul.mubr.bf16.gmra.mrb[232].mxu1 %v4967_v34 }
 0x6ac   : > { %v6608_v17 = vpop.f32.mrb[236].mxu0 }
 0x6ad   : > { %v4236_v48 = vadd.f32 %v9561_v4, %v6608_v17  ;;  %v4227_v50 = vpop.f32.mrb[237].mxu0 }
 0x6ae   : > { %v4228_v37 = vadd.f32 %v9561_v4, %v4227_v50  ;;  %v6609_v3 = vpop.f32.mrb[238].mxu0 }
 0x6af   : > { %v4736_v31 = vmul.f32 0.01, %v4236_v48  ;;  %v4239_v1 = vadd.f32 %v9561_v4, %v6609_v3  ;;  %v4230_v25 = vpop.f32.mrb[239].mxu0  ;;  %vm4608_vm12 = vcmp.gt.f32.partialorder %v4236_v48, 0.0 }
 0x6b0   : > { %v4734_v21 = vmul.f32 0.01, %v4228_v37  ;;  %v4231_v29 = vadd.f32 %v9561_v4, %v4230_v25  ;;  %vm4606_vm13 = vcmp.gt.f32.partialorder %v4228_v37, 0.0 }
 0x6b1   : > { %vm4609_vm14 = vcmp.gt.f32.partialorder %v4239_v1, 0.0  ;;  %v4737_v24 = vmul.f32 0.01, %v4239_v1  ;;  %v4864_v26 = vsel %vm4608_vm12, %v4236_v48, %v4736_v31 }
 0x6b2   : > { %vm4607_vm15 = vcmp.gt.f32.partialorder %v4231_v29, 0.0  ;;  %v4735_v7 = vmul.f32 0.01, %v4231_v29  ;;  %v4862_v56 = vsel %vm4606_vm13, %v4228_v37, %v4734_v21 }
 0x6b3   : > { %v4865_v28 = vsel %vm4609_vm14, %v4239_v1, %v4737_v24 }
 0x6b4   : > { %v4863_v5 = vsel %vm4607_vm15, %v4231_v29, %v4735_v7  ;;  %v4969_v12 = vpack.c.bf16 %v4865_v28, %v4864_v26 }
 0x6b5   : > { %v4968_v39 = vpack.c.bf16 %v4863_v5, %v4862_v56 }
 0x6b7   : > { %6750 = vmatprep.mubr.bf16.mxu1 %v4968_v39 }
 0x6b8   : > { %6751 = vmatmul.mubr.bf16.gmra.mrb[236].mxu1 %v4969_v12 }
 0x6bc   : > { %v6612_v46 = vpop.f32.mrb[240].mxu0 }
 0x6bd   : > { %v4252_v22 = vadd.f32 %v9561_v4, %v6612_v46  ;;  %v4243_v15 = vpop.f32.mrb[241].mxu0 }
 0x6be   : > { %v4244_v62 = vadd.f32 %v9561_v4, %v4243_v15  ;;  %v6613_v38 = vpop.f32.mrb[242].mxu0 }
 0x6bf   : > { %v4740_v13 = vmul.f32 0.01, %v4252_v22  ;;  %v4255_v23 = vadd.f32 %v9561_v4, %v6613_v38  ;;  %v4246_v20 = vpop.f32.mrb[243].mxu0  ;;  %vm4612_vm0 = vcmp.gt.f32.partialorder %v4252_v22, 0.0 }
 0x6c0   : > { %v4738_v10 = vmul.f32 0.01, %v4244_v62  ;;  %v4247_v57 = vadd.f32 %v9561_v4, %v4246_v20  ;;  %vm4610_vm1 = vcmp.gt.f32.partialorder %v4244_v62, 0.0 }
 0x6c1   : > { %vm4613_vm2 = vcmp.gt.f32.partialorder %v4255_v23, 0.0  ;;  %v4741_v41 = vmul.f32 0.01, %v4255_v23  ;;  %v4868_v9 = vsel %vm4612_vm0, %v4252_v22, %v4740_v13 }
 0x6c2   : > { %vm4611_vm3 = vcmp.gt.f32.partialorder %v4247_v57, 0.0  ;;  %v4739_v43 = vmul.f32 0.01, %v4247_v57  ;;  %v4866_v52 = vsel %vm4610_vm1, %v4244_v62, %v4738_v10 }
 0x6c3   : > { %v4869_v42 = vsel %vm4613_vm2, %v4255_v23, %v4741_v41 }
 0x6c4   : > { %v4867_v47 = vsel %vm4611_vm3, %v4247_v57, %v4739_v43  ;;  %v4971_v63 = vpack.c.bf16 %v4869_v42, %v4868_v9 }
 0x6c5   : > { %v4970_v59 = vpack.c.bf16 %v4867_v47, %v4866_v52 }
 0x6c7   : > { %6754 = vmatprep.mubr.bf16.mxu1 %v4970_v59 }
 0x6c8   : > { %6755 = vmatmul.mubr.bf16.gmra.mrb[240].mxu1 %v4971_v63 }
 0x6cc   : > { %v6616_v18 = vpop.f32.mrb[244].mxu0 }
 0x6cd   : > { %v4268_v11 = vadd.f32 %v9561_v4, %v6616_v18  ;;  %v4259_v58 = vpop.f32.mrb[245].mxu0 }
 0x6ce   : > { %v4260_v53 = vadd.f32 %v9561_v4, %v4259_v58  ;;  %v6617_v55 = vpop.f32.mrb[246].mxu0 }
 0x6cf   : > { %v4744_v44 = vmul.f32 0.01, %v4268_v11  ;;  %v4271_v19 = vadd.f32 %v9561_v4, %v6617_v55  ;;  %v4262_v36 = vpop.f32.mrb[247].mxu0  ;;  %vm4616_vm4 = vcmp.gt.f32.partialorder %v4268_v11, 0.0 }
 0x6d0   : > { %v4742_v0 = vmul.f32 0.01, %v4260_v53  ;;  %v4263_v49 = vadd.f32 %v9561_v4, %v4262_v36  ;;  %vm4614_vm5 = vcmp.gt.f32.partialorder %v4260_v53, 0.0 }
 0x6d1   : > { %vm4617_vm6 = vcmp.gt.f32.partialorder %v4271_v19, 0.0  ;;  %v4745_v8 = vmul.f32 0.01, %v4271_v19  ;;  %v4872_v40 = vsel %vm4616_vm4, %v4268_v11, %v4744_v44 }
 0x6d2   : > { %vm4615_vm7 = vcmp.gt.f32.partialorder %v4263_v49, 0.0  ;;  %v4743_v6 = vmul.f32 0.01, %v4263_v49  ;;  %v4870_v54 = vsel %vm4614_vm5, %v4260_v53, %v4742_v0 }
 0x6d3   : > { %v4873_v16 = vsel %vm4617_vm6, %v4271_v19, %v4745_v8 }
 0x6d4   : > { %v4871_v32 = vsel %vm4615_vm7, %v4263_v49, %v4743_v6  ;;  %v4973_v60 = vpack.c.bf16 %v4873_v16, %v4872_v40 }
 0x6d5   : > { %v4972_v61 = vpack.c.bf16 %v4871_v32, %v4870_v54 }
 0x6d7   : > { %6758 = vmatprep.mubr.bf16.mxu1 %v4972_v61 }
 0x6d8   : > { %6759 = vmatmul.mubr.bf16.gmra.mrb[244].mxu1 %v4973_v60 }
 0x6df   : > { %v6708_v33 = vpop.f32.mrb[192].mxu1  ;;  %v6620_v14 = vpop.f32.mrb[248].mxu0 }
 0x6e0   : > { %v5124_v30 = vadd.f32 %v6708_v33, %v9612_v35  ;;  %v4284_v51 = vadd.f32 %v9561_v4, %v6620_v14  ;;  %v5115_v45 = vpop.f32.mrb[193].mxu1  ;;  %v4275_v2 = vpop.f32.mrb[249].mxu0 }
 0x6e1   : > { %v5116_v34 = vadd.f32 %v9612_v35, %v5115_v45  ;;  %v4276_v27 = vadd.f32 %v9561_v4, %v4275_v2  ;;  %v6709_v17 = vpop.f32.mrb[194].mxu1  ;;  %v6621_v48 = vpop.f32.mrb[250].mxu0 }
 0x6e2   : > { %5634 = vst [vmem:[%s9618_s19 + $0x40] sm:$0xff] %v5124_v30  ;;  %v4748_v50 = vmul.f32 0.01, %v4284_v51  ;;  %v5127_v37 = vadd.f32 %v6709_v17, %v9612_v35  ;;  %v4287_v3 = vadd.f32 %v9561_v4, %v6621_v48  ;;  %v5118_v31 = vpop.f32.mrb[195].mxu1  ;;  %v4278_v1 = vpop.f32.mrb[251].mxu0  ;;  %vm4620_vm8 = vcmp.gt.f32.partialorder %v4284_v51, 0.0 }
 0x6e3   : > { %5626 = vst [vmem:[%s9618_s19] sm:$0xff] %v5116_v34  ;;  %v4746_v25 = vmul.f32 0.01, %v4276_v27  ;;  %v5119_v21 = vadd.f32 %v9612_v35, %v5118_v31  ;;  %v4279_v29 = vadd.f32 %v9561_v4, %v4278_v1  ;;  %vm4618_vm9 = vcmp.gt.f32.partialorder %v4276_v27, 0.0 }
 0x6e4   : > { %5638 = vst [vmem:[%s9618_s19 + $0x60] sm:$0xff] %v5127_v37  ;;  %vm4621_vm10 = vcmp.gt.f32.partialorder %v4287_v3, 0.0  ;;  %v4749_v24 = vmul.f32 0.01, %v4287_v3  ;;  %v4876_v26 = vsel %vm4620_vm8, %v4284_v51, %v4748_v50 }
 0x6e5   : > { %5630 = vst [vmem:[%s9618_s19 + $0x20] sm:$0xff] %v5119_v21  ;;  %vm4619_vm11 = vcmp.gt.f32.partialorder %v4279_v29, 0.0  ;;  %v4747_v7 = vmul.f32 0.01, %v4279_v29  ;;  %v4874_v56 = vsel %vm4618_vm9, %v4276_v27, %v4746_v25 }
 0x6e6   : > { %v4877_v28 = vsel %vm4621_vm10, %v4287_v3, %v4749_v24 }
 0x6e7   : > { %v4875_v5 = vsel %vm4619_vm11, %v4279_v29, %v4747_v7  ;;  %v4975_v12 = vpack.c.bf16 %v4877_v28, %v4876_v26 }
 0x6e8   : > { %v4974_v39 = vpack.c.bf16 %v4875_v5, %v4874_v56 }
 0x6ea   : > { %6762 = vmatprep.mubr.bf16.mxu1 %v4974_v39 }
 0x6eb   : > { %6763 = vmatmul.mubr.bf16.gmra.mrb[248].mxu1 %v4975_v12 }
 0x6ee   : > { %v6712_v46 = vpop.f32.mrb[196].mxu1 }
 0x6ef   : > { %v5140_v22 = vadd.f32 %v6712_v46, %v9612_v35  ;;  %v6624_v15 = vpop.f32.mrb[252].mxu0  ;;  %v5131_v62 = vpop.f32.mrb[197].mxu1 }
 0x6f0   : > { %v4300_v38 = vadd.f32 %v9561_v4, %v6624_v15  ;;  %v5132_v13 = vadd.f32 %v9612_v35, %v5131_v62  ;;  %v4291_v23 = vpop.f32.mrb[253].mxu0  ;;  %v6713_v20 = vpop.f32.mrb[198].mxu1 }
 0x6f1   : > { %5650 = vst [vmem:[%s9618_s19 + $0xc0] sm:$0xff] %v5140_v22  ;;  %v4292_v10 = vadd.f32 %v9561_v4, %v4291_v23  ;;  %v5143_v57 = vadd.f32 %v6713_v20, %v9612_v35  ;;  %v6625_v41 = vpop.f32.mrb[254].mxu0  ;;  %v5134_v43 = vpop.f32.mrb[199].mxu1 }
 0x6f2   : > { %v4752_v9 = vmul.f32 0.01, %v4300_v38  ;;  %5642 = vst [vmem:[%s9618_s19 + $0x80] sm:$0xff] %v5132_v13  ;;  %v4303_v42 = vadd.f32 %v9561_v4, %v6625_v41  ;;  %v5135_v52 = vadd.f32 %v9612_v35, %v5134_v43  ;;  %v4294_v47 = vpop.f32.mrb[255].mxu0  ;;  %vm4624_vm12 = vcmp.gt.f32.partialorder %v4300_v38, 0.0 }
 0x6f3   : > { %v4750_v63 = vmul.f32 0.01, %v4292_v10  ;;  %5654 = vst [vmem:[%s9618_s19 + $0xe0] sm:$0xff] %v5143_v57  ;;  %v4295_v59 = vadd.f32 %v9561_v4, %v4294_v47  ;;  %vm4622_vm13 = vcmp.gt.f32.partialorder %v4292_v10, 0.0 }
 0x6f4   : > { %vm4625_vm14 = vcmp.gt.f32.partialorder %v4303_v42, 0.0  ;;  %v4753_v18 = vmul.f32 0.01, %v4303_v42  ;;  %5646 = vst [vmem:[%s9618_s19 + $0xa0] sm:$0xff] %v5135_v52  ;;  %v4880_v58 = vsel %vm4624_vm12, %v4300_v38, %v4752_v9 }
 0x6f5   : > { %vm4623_vm15 = vcmp.gt.f32.partialorder %v4295_v59, 0.0  ;;  %v4751_v11 = vmul.f32 0.01, %v4295_v59  ;;  %v4878_v55 = vsel %vm4622_vm13, %v4292_v10, %v4750_v63 }
 0x6f6   : > { %v4881_v53 = vsel %vm4625_vm14, %v4303_v42, %v4753_v18 }
 0x6f7   : > { %v4879_v44 = vsel %vm4623_vm15, %v4295_v59, %v4751_v11  ;;  %v4977_v19 = vpack.c.bf16 %v4881_v53, %v4880_v58 }
 0x6f8   : > { %v4976_v36 = vpack.c.bf16 %v4879_v44, %v4878_v55 }
 0x6f9   : > { %v6628_v0 = vpop.f32.mrb[0].mxu0 }
 0x6fa   : > { %v4316_v49 = vadd.f32 %v9561_v4, %v6628_v0  ;;  %v4307_v8 = vpop.f32.mrb[1].mxu0  ;;  %6766 = vmatprep.mubr.bf16.mxu1 %v4976_v36 }
 0x6fb   : > { %v4308_v6 = vadd.f32 %v9561_v4, %v4307_v8  ;;  %v6629_v40 = vpop.f32.mrb[2].mxu0  ;;  %6767 = vmatmul.mubr.bf16.gmra.mrb[252].mxu1 %v4977_v19 }
 0x6fc   : > { %v4756_v16 = vmul.f32 0.01, %v4316_v49  ;;  %v4319_v54 = vadd.f32 %v9561_v4, %v6629_v40  ;;  %v4310_v32 = vpop.f32.mrb[3].mxu0  ;;  %v6716_v60 = vpop.f32.mrb[200].mxu1  ;;  %vm4628_vm0 = vcmp.gt.f32.partialorder %v4316_v49, 0.0 }
 0x6fd   : > { %v4754_v61 = vmul.f32 0.01, %v4308_v6  ;;  %v4311_v33 = vadd.f32 %v9561_v4, %v4310_v32  ;;  %v5156_v14 = vadd.f32 %v6716_v60, %v9612_v35  ;;  %v5147_v30 = vpop.f32.mrb[201].mxu1  ;;  %vm4626_vm1 = vcmp.gt.f32.partialorder %v4308_v6, 0.0 }
 0x6fe   : > { %vm4629_vm2 = vcmp.gt.f32.partialorder %v4319_v54, 0.0  ;;  %v4757_v51 = vmul.f32 0.01, %v4319_v54  ;;  %v5148_v45 = vadd.f32 %v9612_v35, %v5147_v30  ;;  %v6717_v2 = vpop.f32.mrb[202].mxu1  ;;  %v4884_v48 = vsel %vm4628_vm0, %v4316_v49, %v4756_v16 }
 0x6ff   : > { %vm4627_vm3 = vcmp.gt.f32.partialorder %v4311_v33, 0.0  ;;  %v4755_v34 = vmul.f32 0.01, %v4311_v33  ;;  %5666 = vst [vmem:[%s9618_s19 + $0x140] sm:$0xff] %v5156_v14  ;;  %v5159_v27 = vadd.f32 %v6717_v2, %v9612_v35  ;;  %v5150_v17 = vpop.f32.mrb[203].mxu1  ;;  %v4882_v1 = vsel %vm4626_vm1, %v4308_v6, %v4754_v61 }
 0x700   : > { %v4885_v50 = vsel %vm4629_vm2, %v4319_v54, %v4757_v51  ;;  %5658 = vst [vmem:[%s9618_s19 + $0x100] sm:$0xff] %v5148_v45  ;;  %v5151_v37 = vadd.f32 %v9612_v35, %v5150_v17 }
 0x701   : > { %v4979_v3 = vpack.c.bf16 %v4885_v50, %v4884_v48  ;;  %v6632_v31 = vpop.f32.mrb[4].mxu0  ;;  %5670 = vst [vmem:[%s9618_s19 + $0x160] sm:$0xff] %v5159_v27  ;;  %v4883_v25 = vsel %vm4627_vm3, %v4311_v33, %v4755_v34 }
 0x702   : > { %v4332_v21 = vadd.f32 %v9561_v4, %v6632_v31  ;;  %v4323_v29 = vpop.f32.mrb[5].mxu0  ;;  %5662 = vst [vmem:[%s9618_s19 + $0x120] sm:$0xff] %v5151_v37  ;;  %v4978_v24 = vpack.c.bf16 %v4883_v25, %v4882_v1 }
 0x703   : > { %v4324_v7 = vadd.f32 %v9561_v4, %v4323_v29  ;;  %v6633_v26 = vpop.f32.mrb[6].mxu0 }
 0x704   : > { %v4760_v28 = vmul.f32 0.01, %v4332_v21  ;;  %v4335_v56 = vadd.f32 %v9561_v4, %v6633_v26  ;;  %v4326_v5 = vpop.f32.mrb[7].mxu0  ;;  %6770 = vmatprep.mubr.bf16.mxu1 %v4978_v24  ;;  %vm4632_vm4 = vcmp.gt.f32.partialorder %v4332_v21, 0.0 }
 0x705   : > { %v4758_v12 = vmul.f32 0.01, %v4324_v7  ;;  %v4327_v39 = vadd.f32 %v9561_v4, %v4326_v5  ;;  %6771 = vmatmul.mubr.bf16.gmra.mrb[0].mxu1 %v4979_v3  ;;  %vm4630_vm5 = vcmp.gt.f32.partialorder %v4324_v7, 0.0 }
 0x706   : > { %vm4633_vm6 = vcmp.gt.f32.partialorder %v4335_v56, 0.0  ;;  %v4761_v46 = vmul.f32 0.01, %v4335_v56  ;;  %v4888_v15 = vsel %vm4632_vm4, %v4332_v21, %v4760_v28 }
 0x707   : > { %vm4631_vm7 = vcmp.gt.f32.partialorder %v4327_v39, 0.0  ;;  %v4759_v22 = vmul.f32 0.01, %v4327_v39  ;;  %v4886_v23 = vsel %vm4630_vm5, %v4324_v7, %v4758_v12 }
 0x708   : > { %v4889_v62 = vsel %vm4633_vm6, %v4335_v56, %v4761_v46 }
 0x709   : > { %v4981_v38 = vpack.c.bf16 %v4889_v62, %v4888_v15  ;;  %v6636_v13 = vpop.f32.mrb[8].mxu0  ;;  %v4887_v20 = vsel %vm4631_vm7, %v4327_v39, %v4759_v22 }
 0x70a   : > { %v4348_v10 = vadd.f32 %v9561_v4, %v6636_v13  ;;  %v4339_v57 = vpop.f32.mrb[9].mxu0  ;;  %v4980_v41 = vpack.c.bf16 %v4887_v20, %v4886_v23 }
 0x70b   : > { %v4340_v43 = vadd.f32 %v9561_v4, %v4339_v57  ;;  %v6637_v9 = vpop.f32.mrb[10].mxu0 }
 0x70c   : > { %v4764_v42 = vmul.f32 0.01, %v4348_v10  ;;  %v4351_v52 = vadd.f32 %v9561_v4, %v6637_v9  ;;  %v4342_v47 = vpop.f32.mrb[11].mxu0  ;;  %6774 = vmatprep.mubr.bf16.mxu1 %v4980_v41  ;;  %v6720_v63 = vpop.f32.mrb[204].mxu1  ;;  %vm4636_vm8 = vcmp.gt.f32.partialorder %v4348_v10, 0.0 }
 0x70d   : > { %v4762_v59 = vmul.f32 0.01, %v4340_v43  ;;  %v4343_v18 = vadd.f32 %v9561_v4, %v4342_v47  ;;  %6775 = vmatmul.mubr.bf16.gmra.mrb[4].mxu1 %v4981_v38  ;;  %v5172_v11 = vadd.f32 %v6720_v63, %v9612_v35  ;;  %v5163_v58 = vpop.f32.mrb[205].mxu1  ;;  %vm4634_vm9 = vcmp.gt.f32.partialorder %v4340_v43, 0.0 }
 0x70e   : > { %vm4637_vm10 = vcmp.gt.f32.partialorder %v4351_v52, 0.0  ;;  %v4765_v53 = vmul.f32 0.01, %v4351_v52  ;;  %v5164_v55 = vadd.f32 %v9612_v35, %v5163_v58  ;;  %v6721_v44 = vpop.f32.mrb[206].mxu1  ;;  %v4892_v49 = vsel %vm4636_vm8, %v4348_v10, %v4764_v42 }
 0x70f   : > { %vm4635_vm11 = vcmp.gt.f32.partialorder %v4343_v18, 0.0  ;;  %v4763_v19 = vmul.f32 0.01, %v4343_v18  ;;  %5682 = vst [vmem:[%s9618_s19 + $0x1c0] sm:$0xff] %v5172_v11  ;;  %v5175_v36 = vadd.f32 %v6721_v44, %v9612_v35  ;;  %v5166_v0 = vpop.f32.mrb[207].mxu1  ;;  %v4890_v54 = vsel %vm4634_vm9, %v4340_v43, %v4762_v59 }
 0x710   : > { %v4893_v8 = vsel %vm4637_vm10, %v4351_v52, %v4765_v53  ;;  %5674 = vst [vmem:[%s9618_s19 + $0x180] sm:$0xff] %v5164_v55  ;;  %v5167_v6 = vadd.f32 %v9612_v35, %v5166_v0 }
 0x711   : > { %v4983_v40 = vpack.c.bf16 %v4893_v8, %v4892_v49  ;;  %v6640_v16 = vpop.f32.mrb[12].mxu0  ;;  %5686 = vst [vmem:[%s9618_s19 + $0x1e0] sm:$0xff] %v5175_v36  ;;  %v4891_v32 = vsel %vm4635_vm11, %v4343_v18, %v4763_v19 }
 0x712   : > { %v4364_v60 = vadd.f32 %v9561_v4, %v6640_v16  ;;  %v4355_v61 = vpop.f32.mrb[13].mxu0  ;;  %5678 = vst [vmem:[%s9618_s19 + $0x1a0] sm:$0xff] %v5167_v6  ;;  %v4982_v33 = vpack.c.bf16 %v4891_v32, %v4890_v54 }
 0x713   : > { %v4356_v14 = vadd.f32 %v9561_v4, %v4355_v61  ;;  %v6641_v30 = vpop.f32.mrb[14].mxu0 }
 0x714   : > { %v4768_v51 = vmul.f32 0.01, %v4364_v60  ;;  %v4367_v45 = vadd.f32 %v9561_v4, %v6641_v30  ;;  %v4358_v2 = vpop.f32.mrb[15].mxu0  ;;  %6778 = vmatprep.mubr.bf16.mxu1 %v4982_v33  ;;  %vm4640_vm12 = vcmp.gt.f32.partialorder %v4364_v60, 0.0 }
 0x715   : > { %v4766_v34 = vmul.f32 0.01, %v4356_v14  ;;  %v4359_v27 = vadd.f32 %v9561_v4, %v4358_v2  ;;  %6779 = vmatmul.mubr.bf16.gmra.mrb[8].mxu1 %v4983_v40  ;;  %vm4638_vm13 = vcmp.gt.f32.partialorder %v4356_v14, 0.0 }
 0x716   : > { %vm4641_vm14 = vcmp.gt.f32.partialorder %v4367_v45, 0.0  ;;  %v4769_v17 = vmul.f32 0.01, %v4367_v45  ;;  %v4896_v50 = vsel %vm4640_vm12, %v4364_v60, %v4768_v51 }
 0x717   : > { %vm4639_vm15 = vcmp.gt.f32.partialorder %v4359_v27, 0.0  ;;  %v4767_v48 = vmul.f32 0.01, %v4359_v27  ;;  %v4894_v1 = vsel %vm4638_vm13, %v4356_v14, %v4766_v34 }
 0x718   : > { %v4897_v37 = vsel %vm4641_vm14, %v4367_v45, %v4769_v17 }
 0x719   : > { %v4985_v3 = vpack.c.bf16 %v4897_v37, %v4896_v50  ;;  %v6644_v31 = vpop.f32.mrb[16].mxu0  ;;  %v4895_v25 = vsel %vm4639_vm15, %v4359_v27, %v4767_v48 }
 0x71a   : > { %v4380_v21 = vadd.f32 %v9561_v4, %v6644_v31  ;;  %v4371_v29 = vpop.f32.mrb[17].mxu0  ;;  %v4984_v24 = vpack.c.bf16 %v4895_v25, %v4894_v1 }
 0x71b   : > { %v4372_v7 = vadd.f32 %v9561_v4, %v4371_v29  ;;  %v6645_v26 = vpop.f32.mrb[18].mxu0 }
 0x71c   : > { %v4772_v28 = vmul.f32 0.01, %v4380_v21  ;;  %v4383_v56 = vadd.f32 %v9561_v4, %v6645_v26  ;;  %v4374_v5 = vpop.f32.mrb[19].mxu0  ;;  %6782 = vmatprep.mubr.bf16.mxu1 %v4984_v24  ;;  %v6724_v12 = vpop.f32.mrb[208].mxu1  ;;  %vm4644_vm0 = vcmp.gt.f32.partialorder %v4380_v21, 0.0 }
 0x71d   : > { %v4770_v39 = vmul.f32 0.01, %v4372_v7  ;;  %v4375_v46 = vadd.f32 %v9561_v4, %v4374_v5  ;;  %6783 = vmatmul.mubr.bf16.gmra.mrb[12].mxu1 %v4985_v3  ;;  %v5188_v22 = vadd.f32 %v6724_v12, %v9612_v35  ;;  %v5179_v15 = vpop.f32.mrb[209].mxu1  ;;  %vm4642_vm1 = vcmp.gt.f32.partialorder %v4372_v7, 0.0 }
 0x71e   : > { %vm4645_vm2 = vcmp.gt.f32.partialorder %v4383_v56, 0.0  ;;  %v4773_v62 = vmul.f32 0.01, %v4383_v56  ;;  %v5180_v38 = vadd.f32 %v9612_v35, %v5179_v15  ;;  %v6725_v13 = vpop.f32.mrb[210].mxu1  ;;  %v4900_v57 = vsel %vm4644_vm0, %v4380_v21, %v4772_v28 }
 0x71f   : > { %vm4643_vm3 = vcmp.gt.f32.partialorder %v4375_v46, 0.0  ;;  %v4771_v23 = vmul.f32 0.01, %v4375_v46  ;;  %5698 = vst [vmem:[%s9618_s19 + $0x240] sm:$0xff] %v5188_v22  ;;  %v5191_v20 = vadd.f32 %v6725_v13, %v9612_v35  ;;  %v5182_v10 = vpop.f32.mrb[211].mxu1  ;;  %v4898_v52 = vsel %vm4642_vm1, %v4372_v7, %v4770_v39 }
 0x720   : > { %v4901_v41 = vsel %vm4645_vm2, %v4383_v56, %v4773_v62  ;;  %5690 = vst [vmem:[%s9618_s19 + $0x200] sm:$0xff] %v5180_v38  ;;  %v5183_v43 = vadd.f32 %v9612_v35, %v5182_v10  ;;  %v9708_v22 = vld [vmem:[#allocation19] ss:$0 sm:$0xff] }
 0x721   : > { %v4987_v9 = vpack.c.bf16 %v4901_v41, %v4900_v57  ;;  %v6648_v42 = vpop.f32.mrb[20].mxu0  ;;  %5702 = vst [vmem:[%s9618_s19 + $0x260] sm:$0xff] %v5191_v20  ;;  %v4899_v47 = vsel %vm4643_vm3, %v4375_v46, %v4771_v23 }
 0x722   : > { %v4396_v63 = vadd.f32 %v9561_v4, %v6648_v42  ;;  %v4387_v59 = vpop.f32.mrb[21].mxu0  ;;  %5694 = vst [vmem:[%s9618_s19 + $0x220] sm:$0xff] %v5183_v43  ;;  %v4986_v18 = vpack.c.bf16 %v4899_v47, %v4898_v52 }
 0x723   : > { %v4388_v11 = vadd.f32 %v9561_v4, %v4387_v59  ;;  %v6649_v58 = vpop.f32.mrb[22].mxu0 }
 0x724   : > { %v4776_v53 = vmul.f32 0.01, %v4396_v63  ;;  %v4399_v55 = vadd.f32 %v9561_v4, %v6649_v58  ;;  %v4390_v44 = vpop.f32.mrb[23].mxu0  ;;  %6786 = vmatprep.mubr.bf16.mxu1 %v4986_v18  ;;  %vm4648_vm4 = vcmp.gt.f32.partialorder %v4396_v63, 0.0 }
 0x725   : > { %v4774_v19 = vmul.f32 0.01, %v4388_v11  ;;  %v4391_v36 = vadd.f32 %v9561_v4, %v4390_v44  ;;  %6787 = vmatmul.mubr.bf16.gmra.mrb[16].mxu1 %v4987_v9  ;;  %vm4646_vm5 = vcmp.gt.f32.partialorder %v4388_v11, 0.0 }
 0x726   : > { %vm4649_vm6 = vcmp.gt.f32.partialorder %v4399_v55, 0.0  ;;  %v4777_v0 = vmul.f32 0.01, %v4399_v55  ;;  %v4904_v8 = vsel %vm4648_vm4, %v4396_v63, %v4776_v53 }
 0x727   : > { %vm4647_vm7 = vcmp.gt.f32.partialorder %v4391_v36, 0.0  ;;  %v4775_v49 = vmul.f32 0.01, %v4391_v36  ;;  %v4902_v54 = vsel %vm4646_vm5, %v4388_v11, %v4774_v19 }
 0x728   : > { %v4905_v6 = vsel %vm4649_vm6, %v4399_v55, %v4777_v0 }
 0x729   : > { %v4989_v40 = vpack.c.bf16 %v4905_v6, %v4904_v8  ;;  %v6652_v16 = vpop.f32.mrb[24].mxu0  ;;  %v4903_v32 = vsel %vm4647_vm7, %v4391_v36, %v4775_v49 }
 0x72a   : > { %v4412_v60 = vadd.f32 %v9561_v4, %v6652_v16  ;;  %v4403_v61 = vpop.f32.mrb[25].mxu0  ;;  %v4988_v33 = vpack.c.bf16 %v4903_v32, %v4902_v54 }
 0x72b   : > { %v4404_v14 = vadd.f32 %v9561_v4, %v4403_v61  ;;  %v6653_v30 = vpop.f32.mrb[26].mxu0 }
 0x72c   : > { %v4780_v51 = vmul.f32 0.01, %v4412_v60  ;;  %v4415_v45 = vadd.f32 %v9561_v4, %v6653_v30  ;;  %v4406_v2 = vpop.f32.mrb[27].mxu0  ;;  %6790 = vmatprep.mubr.bf16.mxu1 %v4988_v33  ;;  %v6728_v34 = vpop.f32.mrb[212].mxu1  ;;  %vm4652_vm8 = vcmp.gt.f32.partialorder %v4412_v60, 0.0 }
 0x72d   : > { %v4778_v27 = vmul.f32 0.01, %v4404_v14  ;;  %v4407_v17 = vadd.f32 %v9561_v4, %v4406_v2  ;;  %6791 = vmatmul.mubr.bf16.gmra.mrb[20].mxu1 %v4989_v40  ;;  %v5204_v48 = vadd.f32 %v6728_v34, %v9612_v35  ;;  %v5195_v50 = vpop.f32.mrb[213].mxu1  ;;  %vm4650_vm9 = vcmp.gt.f32.partialorder %v4404_v14, 0.0 }
 0x72e   : > { %vm4653_vm10 = vcmp.gt.f32.partialorder %v4415_v45, 0.0  ;;  %v4781_v37 = vmul.f32 0.01, %v4415_v45  ;;  %v5196_v3 = vadd.f32 %v9612_v35, %v5195_v50  ;;  %v6729_v31 = vpop.f32.mrb[214].mxu1  ;;  %v4908_v29 = vsel %vm4652_vm8, %v4412_v60, %v4780_v51 }
 0x72f   : > { %vm4651_vm11 = vcmp.gt.f32.partialorder %v4407_v17, 0.0  ;;  %v4779_v1 = vmul.f32 0.01, %v4407_v17  ;;  %5714 = vst [vmem:[%s9618_s19 + $0x2c0] sm:$0xff] %v5204_v48  ;;  %v5207_v25 = vadd.f32 %v6729_v31, %v9612_v35  ;;  %v5198_v21 = vpop.f32.mrb[215].mxu1  ;;  %v4906_v56 = vsel %vm4650_vm9, %v4404_v14, %v4778_v27 }
 0x730   : > { %v4909_v24 = vsel %vm4653_vm10, %v4415_v45, %v4781_v37  ;;  %5706 = vst [vmem:[%s9618_s19 + $0x280] sm:$0xff] %v5196_v3  ;;  %v5199_v7 = vadd.f32 %v9612_v35, %v5198_v21 }
 0x731   : > { %v4991_v26 = vpack.c.bf16 %v4909_v24, %v4908_v29  ;;  %v6656_v28 = vpop.f32.mrb[28].mxu0  ;;  %5718 = vst [vmem:[%s9618_s19 + $0x2e0] sm:$0xff] %v5207_v25  ;;  %v4907_v5 = vsel %vm4651_vm11, %v4407_v17, %v4779_v1 }
 0x732   : > { %v4428_v12 = vadd.f32 %v9561_v4, %v6656_v28  ;;  %v4419_v39 = vpop.f32.mrb[29].mxu0  ;;  %5710 = vst [vmem:[%s9618_s19 + $0x2a0] sm:$0xff] %v5199_v7  ;;  %v4990_v46 = vpack.c.bf16 %v4907_v5, %v4906_v56 }
 0x733   : > { %v4420_v15 = vadd.f32 %v9708_v22, %v4419_v39  ;;  %v6657_v62 = vpop.f32.mrb[30].mxu0 }
 0x734   : > { %v4784_v38 = vmul.f32 0.01, %v4428_v12  ;;  %v4431_v13 = vadd.f32 %v9708_v22, %v6657_v62  ;;  %v4422_v23 = vpop.f32.mrb[31].mxu0  ;;  %6794 = vmatprep.mubr.bf16.mxu1 %v4990_v46  ;;  %vm4656_vm12 = vcmp.gt.f32.partialorder %v4428_v12, 0.0 }
 0x735   : > { %v4782_v20 = vmul.f32 0.01, %v4420_v15  ;;  %v4423_v10 = vadd.f32 %v9708_v22, %v4422_v23  ;;  %6795 = vmatmul.mubr.bf16.gmra.mrb[24].mxu1 %v4991_v26  ;;  %vm4654_vm13 = vcmp.gt.f32.partialorder %v4420_v15, 0.0 }
 0x736   : > { %vm4657_vm14 = vcmp.gt.f32.partialorder %v4431_v13, 0.0  ;;  %v4785_v4 = vmul.f32 0.01, %v4431_v13  ;;  %v4912_v41 = vsel %vm4656_vm12, %v4428_v12, %v4784_v38 }
 0x737   : > { %vm4655_vm15 = vcmp.gt.f32.partialorder %v4423_v10, 0.0  ;;  %v4783_v57 = vmul.f32 0.01, %v4423_v10  ;;  %v4910_v52 = vsel %vm4654_vm13, %v4420_v15, %v4782_v20 }
 0x738   : > { %v4913_v43 = vsel %vm4657_vm14, %v4431_v13, %v4785_v4 }
 0x739   : > { %v4993_v9 = vpack.c.bf16 %v4913_v43, %v4912_v41  ;;  %v6660_v42 = vpop.f32.mrb[32].mxu0  ;;  %v4911_v47 = vsel %vm4655_vm15, %v4423_v10, %v4783_v57 }
 0x73a   : > { %v4444_v63 = vadd.f32 %v9708_v22, %v6660_v42  ;;  %v4435_v59 = vpop.f32.mrb[33].mxu0  ;;  %v4992_v18 = vpack.c.bf16 %v4911_v47, %v4910_v52 }
 0x73b   : > { %v4436_v11 = vadd.f32 %v9708_v22, %v4435_v59  ;;  %v6661_v58 = vpop.f32.mrb[34].mxu0 }
 0x73c   : > { %v4788_v53 = vmul.f32 0.01, %v4444_v63  ;;  %v4447_v55 = vadd.f32 %v9708_v22, %v6661_v58  ;;  %v4438_v44 = vpop.f32.mrb[35].mxu0  ;;  %6798 = vmatprep.mubr.bf16.mxu1 %v4992_v18  ;;  %v6732_v19 = vpop.f32.mrb[216].mxu1  ;;  %vm4660_vm0 = vcmp.gt.f32.partialorder %v4444_v63, 0.0 }
 0x73d   : > { %v4786_v36 = vmul.f32 0.01, %v4436_v11  ;;  %v4439_v0 = vadd.f32 %v9708_v22, %v4438_v44  ;;  %6799 = vmatmul.mubr.bf16.gmra.mrb[28].mxu1 %v4993_v9  ;;  %v5220_v49 = vadd.f32 %v6732_v19, %v9612_v35  ;;  %v5211_v8 = vpop.f32.mrb[217].mxu1  ;;  %vm4658_vm1 = vcmp.gt.f32.partialorder %v4436_v11, 0.0 }
 0x73e   : > { %vm4661_vm2 = vcmp.gt.f32.partialorder %v4447_v55, 0.0  ;;  %v4789_v6 = vmul.f32 0.01, %v4447_v55  ;;  %v5212_v40 = vadd.f32 %v9612_v35, %v5211_v8  ;;  %v6733_v16 = vpop.f32.mrb[218].mxu1  ;;  %v4916_v61 = vsel %vm4660_vm0, %v4444_v63, %v4788_v53 }
 0x73f   : > { %vm4659_vm3 = vcmp.gt.f32.partialorder %v4439_v0, 0.0  ;;  %v4787_v54 = vmul.f32 0.01, %v4439_v0  ;;  %5730 = vst [vmem:[%s9618_s19 + $0x340] sm:$0xff] %v5220_v49  ;;  %v5223_v32 = vadd.f32 %v6733_v16, %v9612_v35  ;;  %v5214_v60 = vpop.f32.mrb[219].mxu1  ;;  %v4914_v45 = vsel %vm4658_vm1, %v4436_v11, %v4786_v36 }
 0x740   : > { %v4917_v33 = vsel %vm4661_vm2, %v4447_v55, %v4789_v6  ;;  %5722 = vst [vmem:[%s9618_s19 + $0x300] sm:$0xff] %v5212_v40  ;;  %v5215_v14 = vadd.f32 %v9612_v35, %v5214_v60 }
 0x741   : > { %v4995_v30 = vpack.c.bf16 %v4917_v33, %v4916_v61  ;;  %v6664_v51 = vpop.f32.mrb[36].mxu0  ;;  %5734 = vst [vmem:[%s9618_s19 + $0x360] sm:$0xff] %v5223_v32  ;;  %v4915_v2 = vsel %vm4659_vm3, %v4439_v0, %v4787_v54 }
 0x742   : > { %v4460_v34 = vadd.f32 %v9708_v22, %v6664_v51  ;;  %v4451_v27 = vpop.f32.mrb[37].mxu0  ;;  %5726 = vst [vmem:[%s9618_s19 + $0x320] sm:$0xff] %v5215_v14  ;;  %v4994_v17 = vpack.c.bf16 %v4915_v2, %v4914_v45 }
 0x743   : > { %v4452_v48 = vadd.f32 %v9708_v22, %v4451_v27  ;;  %v6665_v50 = vpop.f32.mrb[38].mxu0 }
 0x744   : > { %v4792_v37 = vmul.f32 0.01, %v4460_v34  ;;  %v4463_v3 = vadd.f32 %v9708_v22, %v6665_v50  ;;  %v4454_v31 = vpop.f32.mrb[39].mxu0  ;;  %6802 = vmatprep.mubr.bf16.mxu1 %v4994_v17  ;;  %vm4664_vm4 = vcmp.gt.f32.partialorder %v4460_v34, 0.0 }
 0x745   : > { %v4790_v1 = vmul.f32 0.01, %v4452_v48  ;;  %v4455_v25 = vadd.f32 %v9708_v22, %v4454_v31  ;;  %6803 = vmatmul.mubr.bf16.gmra.mrb[32].mxu1 %v4995_v30  ;;  %vm4662_vm5 = vcmp.gt.f32.partialorder %v4452_v48, 0.0 }
 0x746   : > { %vm4665_vm6 = vcmp.gt.f32.partialorder %v4463_v3, 0.0  ;;  %v4793_v21 = vmul.f32 0.01, %v4463_v3  ;;  %v4920_v24 = vsel %vm4664_vm4, %v4460_v34, %v4792_v37 }
 0x747   : > { %vm4663_vm7 = vcmp.gt.f32.partialorder %v4455_v25, 0.0  ;;  %v4791_v29 = vmul.f32 0.01, %v4455_v25  ;;  %v4918_v56 = vsel %vm4662_vm5, %v4452_v48, %v4790_v1 }
 0x748   : > { %v4921_v7 = vsel %vm4665_vm6, %v4463_v3, %v4793_v21 }
 0x749   : > { %v4997_v26 = vpack.c.bf16 %v4921_v7, %v4920_v24  ;;  %v6668_v28 = vpop.f32.mrb[40].mxu0  ;;  %v4919_v5 = vsel %vm4663_vm7, %v4455_v25, %v4791_v29 }
 0x74a   : > { %v4476_v12 = vadd.f32 %v9708_v22, %v6668_v28  ;;  %v4467_v39 = vpop.f32.mrb[41].mxu0  ;;  %v4996_v46 = vpack.c.bf16 %v4919_v5, %v4918_v56 }
 0x74b   : > { %v4468_v15 = vadd.f32 %v9708_v22, %v4467_v39  ;;  %v6669_v62 = vpop.f32.mrb[42].mxu0 }
 0x74c   : > { %v4796_v38 = vmul.f32 0.01, %v4476_v12  ;;  %v4479_v13 = vadd.f32 %v9708_v22, %v6669_v62  ;;  %v4470_v23 = vpop.f32.mrb[43].mxu0  ;;  %6806 = vmatprep.mubr.bf16.mxu1 %v4996_v46  ;;  %v6736_v20 = vpop.f32.mrb[220].mxu1  ;;  %vm4668_vm8 = vcmp.gt.f32.partialorder %v4476_v12, 0.0 }
 0x74d   : > { %v4794_v10 = vmul.f32 0.01, %v4468_v15  ;;  %v4471_v4 = vadd.f32 %v9708_v22, %v4470_v23  ;;  %6807 = vmatmul.mubr.bf16.gmra.mrb[36].mxu1 %v4997_v26  ;;  %v5236_v57 = vadd.f32 %v6736_v20, %v9612_v35  ;;  %v5227_v41 = vpop.f32.mrb[221].mxu1  ;;  %vm4666_vm9 = vcmp.gt.f32.partialorder %v4468_v15, 0.0 }
 0x74e   : > { %vm4669_vm10 = vcmp.gt.f32.partialorder %v4479_v13, 0.0  ;;  %v4797_v43 = vmul.f32 0.01, %v4479_v13  ;;  %v5228_v9 = vadd.f32 %v9612_v35, %v5227_v41  ;;  %v6737_v42 = vpop.f32.mrb[222].mxu1  ;;  %v4924_v59 = vsel %vm4668_vm8, %v4476_v12, %v4796_v38 }
 0x74f   : > { %vm4667_vm11 = vcmp.gt.f32.partialorder %v4471_v4, 0.0  ;;  %v4795_v52 = vmul.f32 0.01, %v4471_v4  ;;  %5746 = vst [vmem:[%s9618_s19 + $0x3c0] sm:$0xff] %v5236_v57  ;;  %v5239_v47 = vadd.f32 %v6737_v42, %v9612_v35  ;;  %v5230_v63 = vpop.f32.mrb[223].mxu1  ;;  %v4922_v55 = vsel %vm4666_vm9, %v4468_v15, %v4794_v10 }
 0x750   : > { %v4925_v18 = vsel %vm4669_vm10, %v4479_v13, %v4797_v43  ;;  %5738 = vst [vmem:[%s9618_s19 + $0x380] sm:$0xff] %v5228_v9  ;;  %v5231_v11 = vadd.f32 %v9612_v35, %v5230_v63 }
 0x751   : > { %v4999_v58 = vpack.c.bf16 %v4925_v18, %v4924_v59  ;;  %v6672_v53 = vpop.f32.mrb[44].mxu0  ;;  %5750 = vst [vmem:[%s9618_s19 + $0x3e0] sm:$0xff] %v5239_v47  ;;  %v4923_v44 = vsel %vm4667_vm11, %v4471_v4, %v4795_v52 }
 0x752   : > { %v4492_v19 = vadd.f32 %v9708_v22, %v6672_v53  ;;  %v4483_v36 = vpop.f32.mrb[45].mxu0  ;;  %5742 = vst [vmem:[%s9618_s19 + $0x3a0] sm:$0xff] %v5231_v11  ;;  %v4998_v0 = vpack.c.bf16 %v4923_v44, %v4922_v55 }
 0x753   : > { %v4484_v49 = vadd.f32 %v9708_v22, %v4483_v36  ;;  %v6673_v8 = vpop.f32.mrb[46].mxu0 }
 0x754   : > { %v4800_v6 = vmul.f32 0.01, %v4492_v19  ;;  %v4495_v40 = vadd.f32 %v9708_v22, %v6673_v8  ;;  %v4486_v16 = vpop.f32.mrb[47].mxu0  ;;  %6810 = vmatprep.mubr.bf16.mxu1 %v4998_v0  ;;  %vm4672_vm12 = vcmp.gt.f32.partialorder %v4492_v19, 0.0 }
 0x755   : > { %v4798_v54 = vmul.f32 0.01, %v4484_v49  ;;  %v4487_v32 = vadd.f32 %v9708_v22, %v4486_v16  ;;  %6811 = vmatmul.mubr.bf16.gmra.mrb[40].mxu1 %v4999_v58  ;;  %vm4670_vm13 = vcmp.gt.f32.partialorder %v4484_v49, 0.0 }
 0x756   : > { %vm4673_vm14 = vcmp.gt.f32.partialorder %v4495_v40, 0.0  ;;  %v4801_v60 = vmul.f32 0.01, %v4495_v40  ;;  %v4928_v33 = vsel %vm4672_vm12, %v4492_v19, %v4800_v6 }
 0x757   : > { %vm4671_vm15 = vcmp.gt.f32.partialorder %v4487_v32, 0.0  ;;  %v4799_v61 = vmul.f32 0.01, %v4487_v32  ;;  %v4926_v45 = vsel %vm4670_vm13, %v4484_v49, %v4798_v54 }
 0x758   : > { %v4929_v14 = vsel %vm4673_vm14, %v4495_v40, %v4801_v60 }
 0x759   : > { %v5001_v30 = vpack.c.bf16 %v4929_v14, %v4928_v33  ;;  %v6676_v51 = vpop.f32.mrb[48].mxu0  ;;  %v4927_v2 = vsel %vm4671_vm15, %v4487_v32, %v4799_v61 }
 0x75a   : > { %v4508_v34 = vadd.f32 %v9708_v22, %v6676_v51  ;;  %v4499_v27 = vpop.f32.mrb[49].mxu0  ;;  %v5000_v17 = vpack.c.bf16 %v4927_v2, %v4926_v45  ;;  %v9774_v2 = vld [vmem:[#allocation22] ss:$0 sm:$0xff] }
 0x75b   : > { %v4500_v48 = vadd.f32 %v9708_v22, %v4499_v27  ;;  %v6677_v50 = vpop.f32.mrb[50].mxu0 }
 0x75c   : > { %v4804_v37 = vmul.f32 0.01, %v4508_v34  ;;  %v4511_v3 = vadd.f32 %v9708_v22, %v6677_v50  ;;  %v4502_v31 = vpop.f32.mrb[51].mxu0  ;;  %6814 = vmatprep.mubr.bf16.mxu1 %v5000_v17  ;;  %v6740_v1 = vpop.f32.mrb[224].mxu1  ;;  %vm4676_vm0 = vcmp.gt.f32.partialorder %v4508_v34, 0.0 }
 0x75d   : > { %v4802_v25 = vmul.f32 0.01, %v4500_v48  ;;  %v4503_v21 = vadd.f32 %v9708_v22, %v4502_v31  ;;  %6815 = vmatmul.mubr.bf16.gmra.mrb[44].mxu1 %v5001_v30  ;;  %v5252_v29 = vadd.f32 %v6740_v1, %v9612_v35  ;;  %v5243_v24 = vpop.f32.mrb[225].mxu1  ;;  %vm4674_vm1 = vcmp.gt.f32.partialorder %v4500_v48, 0.0 }
 0x75e   : > { %vm4677_vm2 = vcmp.gt.f32.partialorder %v4511_v3, 0.0  ;;  %v4805_v7 = vmul.f32 0.01, %v4511_v3  ;;  %v5244_v26 = vadd.f32 %v9612_v35, %v5243_v24  ;;  %v6741_v28 = vpop.f32.mrb[226].mxu1  ;;  %v4932_v39 = vsel %vm4676_vm0, %v4508_v34, %v4804_v37 }
 0x75f   : > { %vm4675_vm3 = vcmp.gt.f32.partialorder %v4503_v21, 0.0  ;;  %v4803_v56 = vmul.f32 0.01, %v4503_v21  ;;  %5635 = vst [vmem:[%s9618_s19 + $0x48] sm:$0xff] %v5252_v29  ;;  %v5255_v5 = vadd.f32 %v6741_v28, %v9612_v35  ;;  %v5246_v12 = vpop.f32.mrb[227].mxu1  ;;  %v4930_v13 = vsel %vm4674_vm1, %v4500_v48, %v4802_v25 }
 0x760   : > { %v4933_v46 = vsel %vm4677_vm2, %v4511_v3, %v4805_v7  ;;  %5627 = vst [vmem:[%s9618_s19 + $0x8] sm:$0xff] %v5244_v26  ;;  %v5247_v15 = vadd.f32 %v9612_v35, %v5246_v12 }
 0x761   : > { %v5003_v62 = vpack.c.bf16 %v4933_v46, %v4932_v39  ;;  %v6680_v38 = vpop.f32.mrb[52].mxu0  ;;  %5639 = vst [vmem:[%s9618_s19 + $0x68] sm:$0xff] %v5255_v5  ;;  %v4931_v23 = vsel %vm4675_vm3, %v4503_v21, %v4803_v56 }
 0x762   : > { %v4524_v20 = vadd.f32 %v9708_v22, %v6680_v38  ;;  %v4515_v10 = vpop.f32.mrb[53].mxu0  ;;  %5631 = vst [vmem:[%s9618_s19 + $0x28] sm:$0xff] %v5247_v15  ;;  %v5002_v4 = vpack.c.bf16 %v4931_v23, %v4930_v13 }
 0x763   : > { %v4516_v57 = vadd.f32 %v9708_v22, %v4515_v10  ;;  %v6681_v41 = vpop.f32.mrb[54].mxu0 }
 0x764   : > { %v4808_v43 = vmul.f32 0.01, %v4524_v20  ;;  %v4527_v9 = vadd.f32 %v9708_v22, %v6681_v41  ;;  %v4518_v42 = vpop.f32.mrb[55].mxu0  ;;  %6818 = vmatprep.mubr.bf16.mxu1 %v5002_v4  ;;  %vm4680_vm4 = vcmp.gt.f32.partialorder %v4524_v20, 0.0 }
 0x765   : > { %v4806_v52 = vmul.f32 0.01, %v4516_v57  ;;  %v4519_v47 = vadd.f32 %v9708_v22, %v4518_v42  ;;  %6819 = vmatmul.mubr.bf16.gmra.mrb[48].mxu1 %v5003_v62  ;;  %vm4678_vm5 = vcmp.gt.f32.partialorder %v4516_v57, 0.0 }
 0x766   : > { %vm4681_vm6 = vcmp.gt.f32.partialorder %v4527_v9, 0.0  ;;  %v4809_v63 = vmul.f32 0.01, %v4527_v9  ;;  %v4936_v18 = vsel %vm4680_vm4, %v4524_v20, %v4808_v43 }
 0x767   : > { %vm4679_vm7 = vcmp.gt.f32.partialorder %v4519_v47, 0.0  ;;  %v4807_v59 = vmul.f32 0.01, %v4519_v47  ;;  %v4934_v55 = vsel %vm4678_vm5, %v4516_v57, %v4806_v52 }
 0x768   : > { %v4937_v11 = vsel %vm4681_vm6, %v4527_v9, %v4809_v63 }
 0x769   : > { %v5005_v58 = vpack.c.bf16 %v4937_v11, %v4936_v18  ;;  %v6684_v53 = vpop.f32.mrb[56].mxu0  ;;  %v4935_v44 = vsel %vm4679_vm7, %v4519_v47, %v4807_v59 }
 0x76a   : > { %v4540_v19 = vadd.f32 %v9708_v22, %v6684_v53  ;;  %v4531_v36 = vpop.f32.mrb[57].mxu0  ;;  %v5004_v0 = vpack.c.bf16 %v4935_v44, %v4934_v55 }
 0x76b   : > { %v4532_v49 = vadd.f32 %v9708_v22, %v4531_v36  ;;  %v6685_v8 = vpop.f32.mrb[58].mxu0 }
 0x76c   : > { %v4812_v6 = vmul.f32 0.01, %v4540_v19  ;;  %v4543_v40 = vadd.f32 %v9708_v22, %v6685_v8  ;;  %v4534_v16 = vpop.f32.mrb[59].mxu0  ;;  %6822 = vmatprep.mubr.bf16.mxu1 %v5004_v0  ;;  %v6744_v54 = vpop.f32.mrb[228].mxu1  ;;  %vm4684_vm8 = vcmp.gt.f32.partialorder %v4540_v19, 0.0 }
 0x76d   : > { %v4810_v32 = vmul.f32 0.01, %v4532_v49  ;;  %v4535_v60 = vadd.f32 %v9708_v22, %v4534_v16  ;;  %6823 = vmatmul.mubr.bf16.gmra.mrb[52].mxu1 %v5005_v58  ;;  %v5268_v61 = vadd.f32 %v6744_v54, %v9612_v35  ;;  %v5259_v33 = vpop.f32.mrb[229].mxu1  ;;  %vm4682_vm9 = vcmp.gt.f32.partialorder %v4532_v49, 0.0 }
 0x76e   : > { %vm4685_vm10 = vcmp.gt.f32.partialorder %v4543_v40, 0.0  ;;  %v4813_v14 = vmul.f32 0.01, %v4543_v40  ;;  %v5260_v30 = vadd.f32 %v9612_v35, %v5259_v33  ;;  %v6745_v51 = vpop.f32.mrb[230].mxu1  ;;  %v4940_v17 = vsel %vm4684_vm8, %v4540_v19, %v4812_v6 }
 0x76f   : > { %vm4683_vm11 = vcmp.gt.f32.partialorder %v4535_v60, 0.0  ;;  %v4811_v45 = vmul.f32 0.01, %v4535_v60  ;;  %5651 = vst [vmem:[%s9618_s19 + $0xc8] sm:$0xff] %v5268_v61  ;;  %v5271_v34 = vadd.f32 %v9774_v2, %v6745_v51  ;;  %v5262_v27 = vpop.f32.mrb[231].mxu1  ;;  %v4938_v35 = vsel %vm4682_vm9, %v4532_v49, %v4810_v32 }
 0x770   : > { %v4941_v48 = vsel %vm4685_vm10, %v4543_v40, %v4813_v14  ;;  %5643 = vst [vmem:[%s9618_s19 + $0x88] sm:$0xff] %v5260_v30  ;;  %v5263_v50 = vadd.f32 %v9774_v2, %v5262_v27 }
 0x771   : > { %v5007_v37 = vpack.c.bf16 %v4941_v48, %v4940_v17  ;;  %v6688_v3 = vpop.f32.mrb[60].mxu0  ;;  %5655 = vst [vmem:[%s9618_s19 + $0xe8] sm:$0xff] %v5271_v34  ;;  %v4939_v31 = vsel %vm4683_vm11, %v4535_v60, %v4811_v45 }
 0x772   : > { %v4556_v1 = vadd.f32 %v9708_v22, %v6688_v3  ;;  %v4547_v25 = vpop.f32.mrb[61].mxu0  ;;  %5647 = vst [vmem:[%s9618_s19 + $0xa8] sm:$0xff] %v5263_v50  ;;  %v5006_v21 = vpack.c.bf16 %v4939_v31, %v4938_v35 }
 0x773   : > { %v4548_v29 = vadd.f32 %v9708_v22, %v4547_v25  ;;  %v6689_v24 = vpop.f32.mrb[62].mxu0 }
 0x774   : > { %v4816_v7 = vmul.f32 0.01, %v4556_v1  ;;  %v4559_v26 = vadd.f32 %v9708_v22, %v6689_v24  ;;  %v4550_v28 = vpop.f32.mrb[63].mxu0  ;;  %6826 = vmatprep.mubr.bf16.mxu1 %v5006_v21  ;;  %vm4688_vm12 = vcmp.gt.f32.partialorder %v4556_v1, 0.0 }
 0x775   : > { %v4814_v56 = vmul.f32 0.01, %v4548_v29  ;;  %v4551_v5 = vadd.f32 %v9708_v22, %v4550_v28  ;;  %6827 = vmatmul.mubr.bf16.gmra.mrb[56].mxu1 %v5007_v37  ;;  %vm4686_vm13 = vcmp.gt.f32.partialorder %v4548_v29, 0.0 }
 0x776   : > { %vm4689_vm14 = vcmp.gt.f32.partialorder %v4559_v26, 0.0  ;;  %v4817_v12 = vmul.f32 0.01, %v4559_v26  ;;  %v4944_v46 = vsel %vm4688_vm12, %v4556_v1, %v4816_v7 }
 0x777   : > { %vm4687_vm15 = vcmp.gt.f32.partialorder %v4551_v5, 0.0  ;;  %v4815_v39 = vmul.f32 0.01, %v4551_v5  ;;  %v4942_v38 = vsel %vm4686_vm13, %v4548_v29, %v4814_v56 }
 0x778   : > { %v4945_v15 = vsel %vm4689_vm14, %v4559_v26, %v4817_v12 }
 0x779   : > { %v5009_v62 = vpack.c.bf16 %v4945_v15, %v4944_v46  ;;  %v4943_v13 = vsel %vm4687_vm15, %v4551_v5, %v4815_v39 }
 0x77a   : > { %v5008_v23 = vpack.c.bf16 %v4943_v13, %v4942_v38 }
 0x77b   : > { %v6748_v20 = vpop.f32.mrb[232].mxu1 }
 0x77c   : > { %6830 = vmatprep.mubr.bf16.mxu1 %v5008_v23  ;;  %v5284_v22 = vadd.f32 %v9774_v2, %v6748_v20  ;;  %v5275_v10 = vpop.f32.mrb[233].mxu1 }
 0x77d   : > { %6831 = vmatmul.mubr.bf16.gmra.mrb[60].mxu1 %v5009_v62  ;;  %v5276_v4 = vadd.f32 %v9774_v2, %v5275_v10  ;;  %v6749_v57 = vpop.f32.mrb[234].mxu1 }
 0x77e   : > { %5667 = vst [vmem:[%s9618_s19 + $0x148] sm:$0xff] %v5284_v22  ;;  %v5287_v41 = vadd.f32 %v9774_v2, %v6749_v57  ;;  %v5278_v43 = vpop.f32.mrb[235].mxu1 }
 0x77f   : > { %5659 = vst [vmem:[%s9618_s19 + $0x108] sm:$0xff] %v5276_v4  ;;  %v5279_v9 = vadd.f32 %v9774_v2, %v5278_v43 }
 0x780   : > { %5671 = vst [vmem:[%s9618_s19 + $0x168] sm:$0xff] %v5287_v41 }
 0x781   : > { %5663 = vst [vmem:[%s9618_s19 + $0x128] sm:$0xff] %v5279_v9 }
 0x78b   : > { %v6752_v42 = vpop.f32.mrb[236].mxu1 }
 0x78c   : > { %v5300_v52 = vadd.f32 %v9774_v2, %v6752_v42  ;;  %v5291_v47 = vpop.f32.mrb[237].mxu1 }
 0x78d   : > { %v5292_v63 = vadd.f32 %v9774_v2, %v5291_v47  ;;  %v6753_v59 = vpop.f32.mrb[238].mxu1 }
 0x78e   : > { %5683 = vst [vmem:[%s9618_s19 + $0x1c8] sm:$0xff] %v5300_v52  ;;  %v5303_v18 = vadd.f32 %v9774_v2, %v6753_v59  ;;  %v5294_v11 = vpop.f32.mrb[239].mxu1 }
 0x78f   : > { %5675 = vst [vmem:[%s9618_s19 + $0x188] sm:$0xff] %v5292_v63  ;;  %v5295_v58 = vadd.f32 %v9774_v2, %v5294_v11 }
 0x790   : > { %5687 = vst [vmem:[%s9618_s19 + $0x1e8] sm:$0xff] %v5303_v18 }
 0x791   : > { %5679 = vst [vmem:[%s9618_s19 + $0x1a8] sm:$0xff] %v5295_v58 }
 0x79b   : > { %v6756_v53 = vpop.f32.mrb[240].mxu1 }
 0x79c   : > { %v5316_v55 = vadd.f32 %v9774_v2, %v6756_v53  ;;  %v5307_v44 = vpop.f32.mrb[241].mxu1 }
 0x79d   : > { %v5308_v19 = vadd.f32 %v9774_v2, %v5307_v44  ;;  %v6757_v36 = vpop.f32.mrb[242].mxu1 }
 0x79e   : > { %5699 = vst [vmem:[%s9618_s19 + $0x248] sm:$0xff] %v5316_v55  ;;  %v5319_v0 = vadd.f32 %v9774_v2, %v6757_v36  ;;  %v5310_v49 = vpop.f32.mrb[243].mxu1 }
 0x79f   : > { %5691 = vst [vmem:[%s9618_s19 + $0x208] sm:$0xff] %v5308_v19  ;;  %v5311_v8 = vadd.f32 %v9774_v2, %v5310_v49 }
 0x7a0   : > { %5703 = vst [vmem:[%s9618_s19 + $0x268] sm:$0xff] %v5319_v0 }
 0x7a1   : > { %5695 = vst [vmem:[%s9618_s19 + $0x228] sm:$0xff] %v5311_v8 }
 0x7ab   : > { %v6760_v6 = vpop.f32.mrb[244].mxu1 }
 0x7ac   : > { %v5332_v40 = vadd.f32 %v9774_v2, %v6760_v6  ;;  %v5323_v16 = vpop.f32.mrb[245].mxu1 }
 0x7ad   : > { %v5324_v54 = vadd.f32 %v9774_v2, %v5323_v16  ;;  %v6761_v32 = vpop.f32.mrb[246].mxu1 }
 0x7ae   : > { %5715 = vst [vmem:[%s9618_s19 + $0x2c8] sm:$0xff] %v5332_v40  ;;  %v5335_v60 = vadd.f32 %v9774_v2, %v6761_v32  ;;  %v5326_v61 = vpop.f32.mrb[247].mxu1 }
 0x7af   : > { %5707 = vst [vmem:[%s9618_s19 + $0x288] sm:$0xff] %v5324_v54  ;;  %v5327_v33 = vadd.f32 %v9774_v2, %v5326_v61 }
 0x7b0   : > { %5719 = vst [vmem:[%s9618_s19 + $0x2e8] sm:$0xff] %v5335_v60 }
 0x7b1   : > { %5711 = vst [vmem:[%s9618_s19 + $0x2a8] sm:$0xff] %v5327_v33 }
 0x7be   : > { %v6764_v14 = vpop.f32.mrb[248].mxu1 }
 0x7bf   : > { %v5348_v30 = vadd.f32 %v9774_v2, %v6764_v14  ;;  %v5339_v51 = vpop.f32.mrb[249].mxu1 }
 0x7c0   : > { %v5340_v45 = vadd.f32 %v9774_v2, %v5339_v51  ;;  %v6765_v34 = vpop.f32.mrb[250].mxu1 }
 0x7c1   : > { %5731 = vst [vmem:[%s9618_s19 + $0x348] sm:$0xff] %v5348_v30  ;;  %v5351_v27 = vadd.f32 %v9774_v2, %v6765_v34  ;;  %v5342_v17 = vpop.f32.mrb[251].mxu1 }
 0x7c2   : > { %5723 = vst [vmem:[%s9618_s19 + $0x308] sm:$0xff] %v5340_v45  ;;  %v5343_v48 = vadd.f32 %v9774_v2, %v5342_v17 }
 0x7c3   : > { %5735 = vst [vmem:[%s9618_s19 + $0x368] sm:$0xff] %v5351_v27 }
 0x7c4   : > { %5727 = vst [vmem:[%s9618_s19 + $0x328] sm:$0xff] %v5343_v48 }
 0x7ce   : > { %v6768_v50 = vpop.f32.mrb[252].mxu1 }
 0x7cf   : > { %v5364_v37 = vadd.f32 %v9774_v2, %v6768_v50  ;;  %v5355_v3 = vpop.f32.mrb[253].mxu1 }
 0x7d0   : > { %v5356_v35 = vadd.f32 %v9774_v2, %v5355_v3  ;;  %v6769_v31 = vpop.f32.mrb[254].mxu1 }
 0x7d1   : > { %5747 = vst [vmem:[%s9618_s19 + $0x3c8] sm:$0xff] %v5364_v37  ;;  %v5367_v1 = vadd.f32 %v9774_v2, %v6769_v31  ;;  %v5358_v25 = vpop.f32.mrb[255].mxu1 }
 0x7d2   : > { %5739 = vst [vmem:[%s9618_s19 + $0x388] sm:$0xff] %v5356_v35  ;;  %v5359_v21 = vadd.f32 %v9774_v2, %v5358_v25 }
 0x7d3   : > { %5751 = vst [vmem:[%s9618_s19 + $0x3e8] sm:$0xff] %v5367_v1 }
 0x7d4   : > { %5743 = vst [vmem:[%s9618_s19 + $0x3a8] sm:$0xff] %v5359_v21 }
 0x7d8   : > { %v6772_v29 = vpop.f32.mrb[0].mxu1 }
 0x7d9   : > { %v5380_v24 = vadd.f32 %v9774_v2, %v6772_v29  ;;  %v5371_v7 = vpop.f32.mrb[1].mxu1 }
 0x7da   : > { %v5372_v26 = vadd.f32 %v9774_v2, %v5371_v7  ;;  %v6773_v28 = vpop.f32.mrb[2].mxu1 }
 0x7db   : > { %5636 = vst [vmem:[%s9618_s19 + $0x50] sm:$0xff] %v5380_v24  ;;  %v5383_v56 = vadd.f32 %v9774_v2, %v6773_v28  ;;  %v5374_v5 = vpop.f32.mrb[3].mxu1 }
 0x7dc   : > { %5628 = vst [vmem:[%s9618_s19 + $0x10] sm:$0xff] %v5372_v26  ;;  %v5375_v12 = vadd.f32 %v9774_v2, %v5374_v5 }
 0x7dd   : > { %5640 = vst [vmem:[%s9618_s19 + $0x70] sm:$0xff] %v5383_v56 }
 0x7de   : > { %5632 = vst [vmem:[%s9618_s19 + $0x30] sm:$0xff] %v5375_v12 }
 0x7e0   : > { %v6776_v39 = vpop.f32.mrb[4].mxu1 }
 0x7e1   : > { %v5396_v46 = vadd.f32 %v9774_v2, %v6776_v39  ;;  %v5387_v15 = vpop.f32.mrb[5].mxu1 }
 0x7e2   : > { %v5388_v62 = vadd.f32 %v9774_v2, %v5387_v15  ;;  %v6777_v38 = vpop.f32.mrb[6].mxu1 }
 0x7e3   : > { %5652 = vst [vmem:[%s9618_s19 + $0xd0] sm:$0xff] %v5396_v46  ;;  %v5399_v13 = vadd.f32 %v9774_v2, %v6777_v38  ;;  %v5390_v23 = vpop.f32.mrb[7].mxu1 }
 0x7e4   : > { %5644 = vst [vmem:[%s9618_s19 + $0x90] sm:$0xff] %v5388_v62  ;;  %v5391_v20 = vadd.f32 %v9774_v2, %v5390_v23 }
 0x7e5   : > { %5656 = vst [vmem:[%s9618_s19 + $0xf0] sm:$0xff] %v5399_v13 }
 0x7e6   : > { %5648 = vst [vmem:[%s9618_s19 + $0xb0] sm:$0xff] %v5391_v20 }
 0x7e8   : > { %v6780_v22 = vpop.f32.mrb[8].mxu1 }
 0x7e9   : > { %v5412_v10 = vadd.f32 %v9774_v2, %v6780_v22  ;;  %v5403_v4 = vpop.f32.mrb[9].mxu1 }
 0x7ea   : > { %v5404_v57 = vadd.f32 %v9774_v2, %v5403_v4  ;;  %v6781_v41 = vpop.f32.mrb[10].mxu1 }
 0x7eb   : > { %5668 = vst [vmem:[%s9618_s19 + $0x150] sm:$0xff] %v5412_v10  ;;  %v5415_v43 = vadd.f32 %v9774_v2, %v6781_v41  ;;  %v5406_v9 = vpop.f32.mrb[11].mxu1 }
 0x7ec   : > { %5660 = vst [vmem:[%s9618_s19 + $0x110] sm:$0xff] %v5404_v57  ;;  %v5407_v42 = vadd.f32 %v9774_v2, %v5406_v9 }
 0x7ed   : > { %5672 = vst [vmem:[%s9618_s19 + $0x170] sm:$0xff] %v5415_v43 }
 0x7ee   : > { %5664 = vst [vmem:[%s9618_s19 + $0x130] sm:$0xff] %v5407_v42 }
 0x7f0   : > { %v6784_v52 = vpop.f32.mrb[12].mxu1 }
 0x7f1   : > { %v5428_v47 = vadd.f32 %v9774_v2, %v6784_v52  ;;  %v5419_v63 = vpop.f32.mrb[13].mxu1 }
 0x7f2   : > { %v5420_v59 = vadd.f32 %v9774_v2, %v5419_v63  ;;  %v6785_v18 = vpop.f32.mrb[14].mxu1 }
 0x7f3   : > { %5684 = vst [vmem:[%s9618_s19 + $0x1d0] sm:$0xff] %v5428_v47  ;;  %v5431_v11 = vadd.f32 %v9774_v2, %v6785_v18  ;;  %v5422_v58 = vpop.f32.mrb[15].mxu1 }
 0x7f4   : > { %5676 = vst [vmem:[%s9618_s19 + $0x190] sm:$0xff] %v5420_v59  ;;  %v5423_v53 = vadd.f32 %v9774_v2, %v5422_v58 }
 0x7f5   : > { %5688 = vst [vmem:[%s9618_s19 + $0x1f0] sm:$0xff] %v5431_v11 }
 0x7f6   : > { %5680 = vst [vmem:[%s9618_s19 + $0x1b0] sm:$0xff] %v5423_v53 }
 0x7f8   : > { %v6788_v55 = vpop.f32.mrb[16].mxu1 }
 0x7f9   : > { %v5444_v44 = vadd.f32 %v9774_v2, %v6788_v55  ;;  %v5435_v19 = vpop.f32.mrb[17].mxu1 }
 0x7fa   : > { %v5436_v36 = vadd.f32 %v9774_v2, %v5435_v19  ;;  %v6789_v0 = vpop.f32.mrb[18].mxu1 }
 0x7fb   : > { %5700 = vst [vmem:[%s9618_s19 + $0x250] sm:$0xff] %v5444_v44  ;;  %v5447_v49 = vadd.f32 %v9774_v2, %v6789_v0  ;;  %v5438_v8 = vpop.f32.mrb[19].mxu1 }
 0x7fc   : > { %5692 = vst [vmem:[%s9618_s19 + $0x210] sm:$0xff] %v5436_v36  ;;  %v5439_v6 = vadd.f32 %v9774_v2, %v5438_v8 }
 0x7fd   : > { %5704 = vst [vmem:[%s9618_s19 + $0x270] sm:$0xff] %v5447_v49 }
 0x7fe   : > { %5696 = vst [vmem:[%s9618_s19 + $0x230] sm:$0xff] %v5439_v6 }
 0x800   : > { %v6792_v40 = vpop.f32.mrb[20].mxu1 }
 0x801   : > { %v5460_v16 = vadd.f32 %v9774_v2, %v6792_v40  ;;  %v5451_v54 = vpop.f32.mrb[21].mxu1 }
 0x802   : > { %v5452_v32 = vadd.f32 %v9774_v2, %v5451_v54  ;;  %v6793_v60 = vpop.f32.mrb[22].mxu1 }
 0x803   : > { %5716 = vst [vmem:[%s9618_s19 + $0x2d0] sm:$0xff] %v5460_v16  ;;  %v5463_v61 = vadd.f32 %v9774_v2, %v6793_v60  ;;  %v5454_v33 = vpop.f32.mrb[23].mxu1 }
 0x804   : > { %5708 = vst [vmem:[%s9618_s19 + $0x290] sm:$0xff] %v5452_v32  ;;  %v5455_v14 = vadd.f32 %v9774_v2, %v5454_v33 }
 0x805   : > { %5720 = vst [vmem:[%s9618_s19 + $0x2f0] sm:$0xff] %v5463_v61 }
 0x806   : > { %5712 = vst [vmem:[%s9618_s19 + $0x2b0] sm:$0xff] %v5455_v14 }
 0x808   : > { %v6796_v30 = vpop.f32.mrb[24].mxu1 }
 0x809   : > { %v5476_v51 = vadd.f32 %v9774_v2, %v6796_v30  ;;  %v5467_v45 = vpop.f32.mrb[25].mxu1 }
 0x80a   : > { %v5468_v34 = vadd.f32 %v9774_v2, %v5467_v45  ;;  %v6797_v27 = vpop.f32.mrb[26].mxu1 }
 0x80b   : > { %5732 = vst [vmem:[%s9618_s19 + $0x350] sm:$0xff] %v5476_v51  ;;  %v5479_v17 = vadd.f32 %v9774_v2, %v6797_v27  ;;  %v5470_v48 = vpop.f32.mrb[27].mxu1 }
 0x80c   : > { %5724 = vst [vmem:[%s9618_s19 + $0x310] sm:$0xff] %v5468_v34  ;;  %v5471_v50 = vadd.f32 %v9774_v2, %v5470_v48 }
 0x80d   : > { %5736 = vst [vmem:[%s9618_s19 + $0x370] sm:$0xff] %v5479_v17 }
 0x80e   : > { %5728 = vst [vmem:[%s9618_s19 + $0x330] sm:$0xff] %v5471_v50 }
 0x810   : > { %v6800_v37 = vpop.f32.mrb[28].mxu1 }
 0x811   : > { %v5492_v3 = vadd.f32 %v9774_v2, %v6800_v37  ;;  %v5483_v35 = vpop.f32.mrb[29].mxu1 }
 0x812   : > { %v5484_v31 = vadd.f32 %v9774_v2, %v5483_v35  ;;  %v6801_v1 = vpop.f32.mrb[30].mxu1 }
 0x813   : > { %5748 = vst [vmem:[%s9618_s19 + $0x3d0] sm:$0xff] %v5492_v3  ;;  %v5495_v25 = vadd.f32 %v9774_v2, %v6801_v1  ;;  %v5486_v21 = vpop.f32.mrb[31].mxu1 }
 0x814   : > { %5740 = vst [vmem:[%s9618_s19 + $0x390] sm:$0xff] %v5484_v31  ;;  %v5487_v29 = vadd.f32 %v9774_v2, %v5486_v21 }
 0x815   : > { %5752 = vst [vmem:[%s9618_s19 + $0x3f0] sm:$0xff] %v5495_v25 }
 0x816   : > { %5744 = vst [vmem:[%s9618_s19 + $0x3b0] sm:$0xff] %v5487_v29 }
 0x818   : > { %v6804_v24 = vpop.f32.mrb[32].mxu1 }
 0x819   : > { %v5508_v7 = vadd.f32 %v9774_v2, %v6804_v24  ;;  %v5499_v26 = vpop.f32.mrb[33].mxu1 }
 0x81a   : > { %v5500_v28 = vadd.f32 %v9774_v2, %v5499_v26  ;;  %v6805_v56 = vpop.f32.mrb[34].mxu1 }
 0x81b   : > { %5637 = vst [vmem:[%s9618_s19 + $0x58] sm:$0xff] %v5508_v7  ;;  %v5511_v5 = vadd.f32 %v9774_v2, %v6805_v56  ;;  %v5502_v12 = vpop.f32.mrb[35].mxu1 }
 0x81c   : > { %5629 = vst [vmem:[%s9618_s19 + $0x18] sm:$0xff] %v5500_v28  ;;  %v5503_v39 = vadd.f32 %v9774_v2, %v5502_v12 }
 0x81d   : > { %5641 = vst [vmem:[%s9618_s19 + $0x78] sm:$0xff] %v5511_v5 }
 0x81e   : > { %5633 = vst [vmem:[%s9618_s19 + $0x38] sm:$0xff] %v5503_v39 }
 0x820   : > { %v6808_v46 = vpop.f32.mrb[36].mxu1 }
 0x821   : > { %v5524_v15 = vadd.f32 %v9774_v2, %v6808_v46  ;;  %v5515_v62 = vpop.f32.mrb[37].mxu1 }
 0x822   : > { %v5516_v38 = vadd.f32 %v9774_v2, %v5515_v62  ;;  %v6809_v13 = vpop.f32.mrb[38].mxu1 }
 0x823   : > { %5653 = vst [vmem:[%s9618_s19 + $0xd8] sm:$0xff] %v5524_v15  ;;  %v5527_v23 = vadd.f32 %v9774_v2, %v6809_v13  ;;  %v5518_v20 = vpop.f32.mrb[39].mxu1 }
 0x824   : > { %5645 = vst [vmem:[%s9618_s19 + $0x98] sm:$0xff] %v5516_v38  ;;  %v5519_v22 = vadd.f32 %v9774_v2, %v5518_v20 }
 0x825   : > { %5657 = vst [vmem:[%s9618_s19 + $0xf8] sm:$0xff] %v5527_v23 }
 0x826   : > { %5649 = vst [vmem:[%s9618_s19 + $0xb8] sm:$0xff] %v5519_v22 }
 0x828   : > { %v6812_v10 = vpop.f32.mrb[40].mxu1 }
 0x829   : > { %v5540_v4 = vadd.f32 %v9774_v2, %v6812_v10  ;;  %v5531_v57 = vpop.f32.mrb[41].mxu1 }
 0x82a   : > { %v5532_v41 = vadd.f32 %v9774_v2, %v5531_v57  ;;  %v6813_v43 = vpop.f32.mrb[42].mxu1 }
 0x82b   : > { %5669 = vst [vmem:[%s9618_s19 + $0x158] sm:$0xff] %v5540_v4  ;;  %v5543_v9 = vadd.f32 %v9774_v2, %v6813_v43  ;;  %v5534_v42 = vpop.f32.mrb[43].mxu1 }
 0x82c   : > { %5661 = vst [vmem:[%s9618_s19 + $0x118] sm:$0xff] %v5532_v41  ;;  %v5535_v52 = vadd.f32 %v9774_v2, %v5534_v42 }
 0x82d   : > { %5673 = vst [vmem:[%s9618_s19 + $0x178] sm:$0xff] %v5543_v9 }
 0x82e   : > { %5665 = vst [vmem:[%s9618_s19 + $0x138] sm:$0xff] %v5535_v52 }
 0x830   : > { %v6816_v47 = vpop.f32.mrb[44].mxu1 }
 0x831   : > { %v5556_v63 = vadd.f32 %v9774_v2, %v6816_v47  ;;  %v5547_v59 = vpop.f32.mrb[45].mxu1 }
 0x832   : > { %v5548_v18 = vadd.f32 %v9774_v2, %v5547_v59  ;;  %v6817_v11 = vpop.f32.mrb[46].mxu1 }
 0x833   : > { %5685 = vst [vmem:[%s9618_s19 + $0x1d8] sm:$0xff] %v5556_v63  ;;  %v5559_v58 = vadd.f32 %v9774_v2, %v6817_v11  ;;  %v5550_v53 = vpop.f32.mrb[47].mxu1 }
 0x834   : > { %5677 = vst [vmem:[%s9618_s19 + $0x198] sm:$0xff] %v5548_v18  ;;  %v5551_v55 = vadd.f32 %v9774_v2, %v5550_v53 }
 0x835   : > { %5689 = vst [vmem:[%s9618_s19 + $0x1f8] sm:$0xff] %v5559_v58 }
 0x836   : > { %5681 = vst [vmem:[%s9618_s19 + $0x1b8] sm:$0xff] %v5551_v55 }
 0x838   : > { %v6820_v44 = vpop.f32.mrb[48].mxu1 }
 0x839   : > { %v5572_v19 = vadd.f32 %v9774_v2, %v6820_v44  ;;  %v5563_v36 = vpop.f32.mrb[49].mxu1 }
 0x83a   : > { %v5564_v0 = vadd.f32 %v9774_v2, %v5563_v36  ;;  %v6821_v49 = vpop.f32.mrb[50].mxu1 }
 0x83b   : > { %5701 = vst [vmem:[%s9618_s19 + $0x258] sm:$0xff] %v5572_v19  ;;  %v5575_v8 = vadd.f32 %v9774_v2, %v6821_v49  ;;  %v5566_v6 = vpop.f32.mrb[51].mxu1 }
 0x83c   : > { %5693 = vst [vmem:[%s9618_s19 + $0x218] sm:$0xff] %v5564_v0  ;;  %v5567_v40 = vadd.f32 %v9774_v2, %v5566_v6 }
 0x83d   : > { %5705 = vst [vmem:[%s9618_s19 + $0x278] sm:$0xff] %v5575_v8 }
 0x83e   : > { %5697 = vst [vmem:[%s9618_s19 + $0x238] sm:$0xff] %v5567_v40 }
 0x840   : > { %v6824_v16 = vpop.f32.mrb[52].mxu1 }
 0x841   : > { %v5588_v54 = vadd.f32 %v9774_v2, %v6824_v16  ;;  %v5579_v32 = vpop.f32.mrb[53].mxu1 }
 0x842   : > { %v5580_v60 = vadd.f32 %v9774_v2, %v5579_v32  ;;  %v6825_v61 = vpop.f32.mrb[54].mxu1 }
 0x843   : > { %5717 = vst [vmem:[%s9618_s19 + $0x2d8] sm:$0xff] %v5588_v54  ;;  %v5591_v33 = vadd.f32 %v9774_v2, %v6825_v61  ;;  %v5582_v14 = vpop.f32.mrb[55].mxu1 }
 0x844   : > { %5709 = vst [vmem:[%s9618_s19 + $0x298] sm:$0xff] %v5580_v60  ;;  %v5583_v30 = vadd.f32 %v9774_v2, %v5582_v14 }
 0x845   : > { %5721 = vst [vmem:[%s9618_s19 + $0x2f8] sm:$0xff] %v5591_v33 }
 0x846   : > { %5713 = vst [vmem:[%s9618_s19 + $0x2b8] sm:$0xff] %v5583_v30 }
 0x848   : > { %v6828_v51 = vpop.f32.mrb[56].mxu1 }
 0x849   : > { %v5604_v45 = vadd.f32 %v9774_v2, %v6828_v51  ;;  %v5595_v34 = vpop.f32.mrb[57].mxu1 }
 0x84a   : > { %v5596_v27 = vadd.f32 %v9774_v2, %v5595_v34  ;;  %v6829_v17 = vpop.f32.mrb[58].mxu1 }
 0x84b   : > { %5733 = vst [vmem:[%s9618_s19 + $0x358] sm:$0xff] %v5604_v45  ;;  %v5607_v48 = vadd.f32 %v9774_v2, %v6829_v17  ;;  %v5598_v50 = vpop.f32.mrb[59].mxu1 }
 0x84c   : > { %5725 = vst [vmem:[%s9618_s19 + $0x318] sm:$0xff] %v5596_v27  ;;  %v5599_v37 = vadd.f32 %v9774_v2, %v5598_v50 }
 0x84d   : > { %5737 = vst [vmem:[%s9618_s19 + $0x378] sm:$0xff] %v5607_v48 }
 0x84e   : > { %5729 = vst [vmem:[%s9618_s19 + $0x338] sm:$0xff] %v5599_v37 }
 0x850   : > { %v6832_v3 = vpop.f32.mrb[60].mxu1 }
 0x851   : > { %v5620_v35 = vadd.f32 %v9774_v2, %v6832_v3  ;;  %v5611_v31 = vpop.f32.mrb[61].mxu1 }
 0x852   : > { %v5612_v1 = vadd.f32 %v9774_v2, %v5611_v31  ;;  %v6833_v25 = vpop.f32.mrb[62].mxu1 }
 0x853   : > { %5749 = vst [vmem:[%s9618_s19 + $0x3d8] sm:$0xff] %v5620_v35  ;;  %v5623_v21 = vadd.f32 %v9774_v2, %v6833_v25  ;;  %v5614_v29 = vpop.f32.mrb[63].mxu1 }
 0x854   : > { %5741 = vst [vmem:[%s9618_s19 + $0x398] sm:$0xff] %v5612_v1  ;;  %v5615_v24 = vadd.f32 %v9774_v2, %v5614_v29 }
 0x855   : > { %5753 = vst [vmem:[%s9618_s19 + $0x3f8] sm:$0xff] %v5623_v21 }
 0x856   : > { %5745 = vst [vmem:[%s9618_s19 + $0x3b8] sm:$0xff] %v5615_v24 }
 0x857   : > { %7504 = shalt.err (!%p7501_p2)
}
 0x858   : > { %s7505_s19 = scalar_lea.hbm %s9964_s0, 16384  ;;  %s7509_s14 = scalar_lea.hbm %s10216_s21, 32768 }
 0x859   : > { %p7506_p6 = scmp.ne.s32.totalorder %s9964_s0, %s7505_s19  ;;  %p7510_p1 = scmp.lt.u32.totalorder %s9964_s0, %s10216_s21 }
 0x85a   : > { %p7511_p11 = scmp.lt.u32.totalorder %s7509_s14, %s7505_s19  ;;  %p7513_p13 = scmp.lt.u32.totalorder %s7505_s19, %s9964_s0 }
 0x85b   : > { %p7507_p5 = pnand %p7506_p6, %p10217_p8 }
 0x85c   : > { %p7512_p12 = por %p7511_p11, %p7510_p1 }
 0x85d   : > { %p7508_p10 = pneg %p7507_p5 }
 0x85e   : > { %p7514_p7 = por %p7513_p13, %p7512_p12 }
 0x860   : > { %p7515_p9 = pnand %p7514_p7, %p7508_p10 }
 0x862   : > { %7518 = shalt.err (!%p7515_p9)
}
 0x863   : > { %s7602_s23 = smov 512   ;;  %s7603_s17 = smov 32  }
 0x864   : > { %6884 = dma.vmem_to_hbm [thread:$0]  (%p10217_p8), %s9966_s13, 16384, %s9964_s0, %s5755_s29, %s7602_s23, %s7602_s23, %s7603_s17  }
 0x865 PF: > { %s10218_s16 = sld [smem:[#allocation32_spill]]  ;;  %p10219_p4 = scmp.ne.s32.totalorder %s10099_s15, 0 }
 0x866   : > { %p10220_p3 = scmp.ge.s32.totalorder %s7581_s28, 2 }
 0x868   : > { %p6928_p0 = pnand %p10220_p3, %p10219_p4 }
 0x86b   : > { %s5784_s1 = sand.u32 1, %s10218_s16  }
 0x86c   : > { %s5785_s19 = scalar_lea.sflag [#allocation4], %s5784_s1 }
 0x86d   : > { %7564 = dma.done.wait (!%p6928_p0), %s5785_s19, 16384  }
 0x86e   : > { %7566 = vsyncadd (!%p6928_p0), %s5785_s19, 4294950912  ;;  %p32_p2 = scmp.ge.s32.totalorder %s7972_s18, 4   ;;  %s10221_s25 = smov %s7573_s26 }
 0x86f   : > { %s10222_s26 = smov %s7577_s27  ;;  %s10223_s27 = smov %s7983_s30 }
 0x870   : > { %s10224_s28 = smov %s7972_s18  ;;  %34 = sbr.rel (!%p32_p2) target bundleno = 16 (0x10), region = 165 }
 0x877   :  { %5790 = vsyncpa [#allocation3], 1 }
 0x878   :  { %5792 = vsyncpa [#allocation3 + $0x1], 1 }
 0x879   :  { %5793 = vsyncpa [#allocation6], 1 }
 0x87a   :  { %5794 = vsyncpa [#allocation9], 1 }
 0x87b   :  { %5795 = vsyncpa [#allocation12], 1 }
 0x87c   :  { %5796 = vsyncpa [#allocation15], 1 }
 0x87d   :  { %5797 = vsyncpa [#allocation18], 1 }
 0x87e   :  { %5798 = vsyncpa [#allocation21], 1 }
 0x87f   :  { %5799 = vsyncpa [#allocation4], 1 }
 0x880   :  { %5801 = vsyncpa [#allocation4 + $0x1], 1 }

</bundles_post_ra>
